<compile_context>
chip_gen: v7x
topology: tpu7x:2x2x1
jax: 0.10.0
libtpu: 0.0.40
codegen_flags: <defaults>
</compile_context>

<pallas_src>
import jax
import jax.numpy as jnp
from jax.experimental import pallas as pl
from jax.experimental.pallas import tpu as pltpu

# ----------------------------- static config -------------------------------
HIDDEN = [32, 64, 128, 256]
LATENT = 128
IN_CH = 1
IMG = 32
BATCH = 2
CPAD = 128                      # lane-dense channel padding
K1PAD = 128                     # lane-dense K for the (tiny) first conv
BN_EPS = 1e-5
OUTS = [IMG // 2 ** (i + 1) for i in range(len(HIDDEN))]      # [16, 8, 4, 2]


# ------------------------------ fused kernel -------------------------------
def _make_kernel(B):
    o1, o2, o3, o4 = OUTS
    S = o4 * o4
    C4 = HIDDEN[-1]

    def bn_relu(y, g_ref, b_ref, m):
        # Train-mode BatchNorm2d folded to one per-channel FMA:
        # one-pass sum / sum-of-squares, biased variance, eps = 1e-5.
        s1 = jnp.sum(y, axis=0, keepdims=True)
        s2 = jnp.sum(y * y, axis=0, keepdims=True)
        mean = s1 * (1.0 / m)
        var = s2 * (1.0 / m) - mean * mean
        scale = g_ref[...] * jax.lax.rsqrt(var + BN_EPS)
        shift = b_ref[...] - mean * scale
        return jnp.maximum(y * scale + shift, 0.0)

    def zero_halo(act_ref, OH):
        # Only the 1-pixel padding ring must be zero; `scatter` overwrites the
        # whole interior, so a full-buffer clear would waste ~80% of the stores.
        Hp = OH + 2                                   # padded (square) frame
        band = jnp.zeros((Hp + 1, CPAD), jnp.float32)
        pair = jnp.zeros((2, CPAD), jnp.float32)
        for b in range(B):
            base = b * Hp * Hp
            # top padded row + (row 1, col 0)
            act_ref[pl.ds(base, Hp + 1), :] = band
            # (row OH, col Hp-1) + bottom padded row
            act_ref[pl.ds(base + (Hp - 1) * Hp - 1, Hp + 1), :] = band
            # (ih, Hp-1) and (ih+1, 0) are adjacent flat rows -> one 2-row store
            for ih in range(1, OH):
                act_ref[pl.ds(base + ih * Hp + Hp - 1, 2), :] = pair

    def scatter(h, act_ref, OH):
        # Write (B*OH*OW, C) rows into the zero-haloed flat-NHWC buffer.
        OW = OH
        Hp, Wp = OH + 2, OW + 2
        for b in range(B):
            for oh in range(OH):
                src = (b * OH + oh) * OW
                dst = (b * Hp + oh + 1) * Wp + 1
                act_ref[pl.ds(dst, OW), :] = h[src:src + OW, :]

    def gather(act_ref, patch_ref, OH):
        # In-kernel im2col for a 3x3 / stride-2 / pad-1 conv: 9 sublane-strided
        # reads per output row, cast to bf16 at store time (patch_ref is bf16).
        # TODO(synk): collapse the 3 stride-2 reads per (b, oh, kh) into one
        #             contiguous read + in-register sublane selects (XLU) once
        #             strided value-slices lower reliably; these gathers
        #             dominate the kernel's bundle count.
        OW = OH
        Hp, Wp = 2 * OH + 2, 2 * OW + 2
        for b in range(B):
            for oh in range(OH):
                dst = (b * OH + oh) * OW
                for kh in range(3):
                    src = (b * Hp + 2 * oh + kh) * Wp
                    for kw in range(3):
                        t = kh * 3 + kw
                        patch_ref[pl.ds(dst, OW), pl.ds(t * CPAD, CPAD)] = (
                            act_ref[pl.ds(src + kw, OW, stride=2), :]
                            .astype(jnp.bfloat16))

    def kernel(p1, w1, g1, b1, w2, g2, b2, w3, g3, b3, w4, g4, b4,
               wf, fb, out_ref, act1, act2, act3, patch, fcbuf):
        acts = [act1, act2, act3]
        for a, o in zip(acts, (o1, o2, o3)):      # padding ring must be exact zero
            zero_halo(a, o)

        # ---- layer 1: host-prepared lane-dense patches of the raw input ----
        m = B * o1 * o1
        y = jnp.dot(p1[...], w1[...], preferred_element_type=jnp.float32)
        h = bn_relu(y, g1, b1, m)
        scatter(h, act1, o1)

        # ---- layers 2..4: in-kernel im2col + bf16 MXU matmul ----------------
        ws, gs, bs = [w2, w3, w4], [g2, g3, g4], [b2, b3, b4]
        h_last = None
        for li, OH in enumerate([o2, o3, o4]):
            m = B * OH * OH
            gather(acts[li], patch, OH)
            y = jnp.dot(patch[0:m, :], ws[li][...],
                        preferred_element_type=jnp.float32)
            h = bn_relu(y, gs[li], bs[li], m)
            if li < 2:
                scatter(h, acts[li + 1], OH)
            else:
                h_last = h                    # (B*S, 256), rows in (b, oh, ow) order

        # ---- fc: single (B, S*C4) x (S*C4, latent) matmul --------------------
        # The NCHW flatten is folded into the FC weight at param-prep time; here
        # we only lay the 8 layer-4 rows out batch-major in a tiny VMEM scratch.
        for b in range(B):
            for s in range(S):
                fcbuf[pl.ds(b, 1), pl.ds(s * C4, C4)] = (
                    h_last[b * S + s:b * S + s + 1, :])
        out_ref[...] = (
            jnp.dot(fcbuf[...].astype(jnp.bfloat16), wf[...],
                    preferred_element_type=jnp.float32) + fb[...])

    return kernel


# ------------------------------ JAX wrapper ---------------------------------
def encoder_forward(x_nchw, params):
    B, cin = x_nchw.shape[0], x_nchw.shape[1]
    o1 = OUTS[0]

    # Host-side im2col for layer 1 only (raw input is 1 channel and tiny;
    # later layers gather their patches inside the kernel).  K is zero-padded
    # to 128 lanes so the MXU LHS is lane-dense (no masked loads / relayout).
    x = jnp.transpose(x_nchw, (0, 2, 3, 1))                    # NHWC
    xp = jnp.pad(x, ((0, 0), (1, 1), (1, 1), (0, 0)))
    cols = [xp[:, kh:kh + 2 * o1 - 1:2, kw:kw + 2 * o1 - 1:2, :]
            for kh in range(3) for kw in range(3)]
    patches1 = jnp.stack(cols, axis=3).reshape(B * o1 * o1, 9 * cin)
    patches1 = jnp.pad(patches1,
                       ((0, 0), (0, K1PAD - 9 * cin))).astype(jnp.bfloat16)

    args = [patches1]
    for (w, g, bt) in params["conv"]:
        args += [w, g, bt]
    args += [params["fc"][0], params["fc"][1]]

    act_scratch = [pltpu.VMEM((B * (o + 2) * (o + 2), CPAD), jnp.float32)
                   for o in OUTS[:3]]
    patch_scratch = pltpu.VMEM((B * OUTS[1] * OUTS[1], 9 * CPAD), jnp.bfloat16)
    fc_scratch = pltpu.VMEM((B, OUTS[3] * OUTS[3] * HIDDEN[-1]), jnp.float32)

    return pl.pallas_call(
        _make_kernel(B),
        out_shape=jax.ShapeDtypeStruct((B, LATENT), jnp.float32),
        in_specs=[pl.BlockSpec(memory_space=pltpu.MemorySpace.VMEM)] * len(args),
        out_specs=pl.BlockSpec(memory_space=pltpu.MemorySpace.VMEM),
        scratch_shapes=act_scratch + [patch_scratch, fc_scratch],
        compiler_params=pltpu.CompilerParams(
            vmem_limit_bytes=8 * 1024 * 1024),   # real footprint ~2.5 MB
    )(*args)


# --------------------------- parameter handling -----------------------------
def _prep_conv_w(w, cin_pad, cout_pad, k_rows):
    cout, cin = w.shape[0], w.shape[1]
    wt = jnp.transpose(w, (2, 3, 1, 0))                        # (3,3,cin,cout)
    wt = jnp.pad(wt, ((0, 0), (0, 0), (0, cin_pad - cin), (0, cout_pad - cout)))
    wk = wt.reshape(9 * cin_pad, cout_pad)
    wk = jnp.pad(wk, ((0, k_rows - wk.shape[0]), (0, 0)))      # lane-dense K
    return wk.astype(jnp.bfloat16)


def prepare_params(raw):
    """One-time conversion of PyTorch-layout params to kernel layout."""
    conv = []
    for li, (w, gamma, beta) in enumerate(raw["conv"]):
        cout, cin = w.shape[0], w.shape[1]
        cin_pad = cin if li == 0 else CPAD
        cout_pad = max(cout, CPAD)
        k_rows = K1PAD if li == 0 else 9 * cin_pad
        wk = _prep_conv_w(w, cin_pad, cout_pad, k_rows)
        gk = jnp.pad(gamma, (0, cout_pad - cout)).reshape(1, cout_pad).astype(jnp.float32)
        bk = jnp.pad(beta, (0, cout_pad - cout)).reshape(1, cout_pad).astype(jnp.float32)
        conv.append((wk, gk, bk))
    wf, bfc = raw["fc"]                                        # wf: (latent, C*fs*fs)
    fs = OUTS[-1]
    c4 = HIDDEN[-1]
    # Fold torch's NCHW flatten into the weight:
    #   (latent, c, oh, ow) -> ((oh, ow, c), latent) = (S*c4, latent)
    wfk = jnp.transpose(wf.reshape(LATENT, c4, fs, fs), (2, 3, 1, 0))
    wfk = wfk.reshape(fs * fs * c4, LATENT).astype(jnp.bfloat16)
    bfk = bfc.reshape(1, LATENT).astype(jnp.float32)
    return {"conv": conv, "fc": (wfk, bfk)}


def init_params(key):
    conv = []
    cin = IN_CH
    for hdim in HIDDEN:
        key, kw = jax.random.split(key)
        fan_in = cin * 9
        w = jax.random.normal(kw, (hdim, cin, 3, 3), jnp.float32) * (2.0 / fan_in) ** 0.5
        gamma = jnp.ones((hdim,), jnp.float32)     # BatchNorm2d default init
        beta = jnp.zeros((hdim,), jnp.float32)
        # Conv bias omitted: with train-mode BatchNorm it cancels exactly.
        conv.append((w, gamma, beta))
        cin = hdim
    fs = IMG // 2 ** len(HIDDEN)
    fan_in = HIDDEN[-1] * fs * fs
    key, kw, kb = jax.random.split(key, 3)
    wf = jax.random.normal(kw, (LATENT, fan_in), jnp.float32) * (1.0 / fan_in) ** 0.5
    bf = jax.random.normal(kb, (LATENT,), jnp.float32) * 0.01
    return {"conv": conv, "fc": (wf, bf)}


# --------------------------------- main --------------------------------------
if __name__ == "__main__":
    key = jax.random.PRNGKey(0)
    key, kx = jax.random.split(key)
    x = jax.random.normal(kx, (BATCH, IN_CH, IMG, IMG), jnp.float32)

    params = prepare_params(init_params(key))

    fwd = jax.jit(encoder_forward)
    out = jax.block_until_ready(fwd(x, params))
    assert out.shape == (BATCH, LATENT), out.shape
    print("KERNEL_OK")
</pallas_src>

<mosaic_0001>
module attributes {stable_mosaic.version = 11 : i64} {
  func.func @kernel(%arg0: memref<512x128xbf16, #tpu.memory_space<vmem>>, %arg1: memref<128x128xbf16, #tpu.memory_space<vmem>>, %arg2: memref<1x128xf32, #tpu.memory_space<vmem>>, %arg3: memref<1x128xf32, #tpu.memory_space<vmem>>, %arg4: memref<1152x128xbf16, #tpu.memory_space<vmem>>, %arg5: memref<1x128xf32, #tpu.memory_space<vmem>>, %arg6: memref<1x128xf32, #tpu.memory_space<vmem>>, %arg7: memref<1152x128xbf16, #tpu.memory_space<vmem>>, %arg8: memref<1x128xf32, #tpu.memory_space<vmem>>, %arg9: memref<1x128xf32, #tpu.memory_space<vmem>>, %arg10: memref<1152x256xbf16, #tpu.memory_space<vmem>>, %arg11: memref<1x256xf32, #tpu.memory_space<vmem>>, %arg12: memref<1x256xf32, #tpu.memory_space<vmem>>, %arg13: memref<1024x128xbf16, #tpu.memory_space<vmem>>, %arg14: memref<1x128xf32, #tpu.memory_space<vmem>>, %arg15: memref<2x128xf32, #tpu.memory_space<vmem>>, %arg16: memref<648x128xf32, #tpu.memory_space<vmem>>, %arg17: memref<200x128xf32, #tpu.memory_space<vmem>>, %arg18: memref<72x128xf32, #tpu.memory_space<vmem>>, %arg19: memref<128x1152xbf16, #tpu.memory_space<vmem>>, %arg20: memref<2x1024xf32, #tpu.memory_space<vmem>>) attributes {dimension_semantics = [], scalar_prefetch = 0 : i64, scratch_operands = 5 : i64, tpu.core_type = #tpu.core_type<tc>} {
    %cst = arith.constant 0.000000e+00 : f32
    %0 = vector.broadcast %cst : f32 to vector<19x128xf32>
    %cst_0 = arith.constant 0.000000e+00 : f32
    %1 = vector.broadcast %cst_0 : f32 to vector<2x128xf32>
    %c0 = arith.constant 0 : index
    %c0_1 = arith.constant 0 : index
    %2 = vector.load %arg16[%c0, %c0_1] : memref<648x128xf32, #tpu.memory_space<vmem>>, vector<19x128xf32>
    tpu.vector_store %arg16[%c0, %c0_1], %0 {strides = array<i32>} : memref<648x128xf32, #tpu.memory_space<vmem>>, vector<19x128xf32>,
    %c305 = arith.constant 305 : index
    %c0_2 = arith.constant 0 : index
    %3 = vector.load %arg16[%c305, %c0_2] : memref<648x128xf32, #tpu.memory_space<vmem>>, vector<19x128xf32>
    tpu.vector_store %arg16[%c305, %c0_2], %0 {strides = array<i32>} : memref<648x128xf32, #tpu.memory_space<vmem>>, vector<19x128xf32>,
    %c35 = arith.constant 35 : index
    %c0_3 = arith.constant 0 : index
    %4 = vector.load %arg16[%c35, %c0_3] : memref<648x128xf32, #tpu.memory_space<vmem>>, vector<2x128xf32>
    tpu.vector_store %arg16[%c35, %c0_3], %1 {strides = array<i32>} : memref<648x128xf32, #tpu.memory_space<vmem>>, vector<2x128xf32>,
    %c53 = arith.constant 53 : index
    %c0_4 = arith.constant 0 : index
    %5 = vector.load %arg16[%c53, %c0_4] : memref<648x128xf32, #tpu.memory_space<vmem>>, vector<2x128xf32>
    tpu.vector_store %arg16[%c53, %c0_4], %1 {strides = array<i32>} : memref<648x128xf32, #tpu.memory_space<vmem>>, vector<2x128xf32>,
    %c71 = arith.constant 71 : index
    %c0_5 = arith.constant 0 : index
    %6 = vector.load %arg16[%c71, %c0_5] : memref<648x128xf32, #tpu.memory_space<vmem>>, vector<2x128xf32>
    tpu.vector_store %arg16[%c71, %c0_5], %1 {strides = array<i32>} : memref<648x128xf32, #tpu.memory_space<vmem>>, vector<2x128xf32>,
    %c89 = arith.constant 89 : index
    %c0_6 = arith.constant 0 : index
    %7 = vector.load %arg16[%c89, %c0_6] : memref<648x128xf32, #tpu.memory_space<vmem>>, vector<2x128xf32>
    tpu.vector_store %arg16[%c89, %c0_6], %1 {strides = array<i32>} : memref<648x128xf32, #tpu.memory_space<vmem>>, vector<2x128xf32>,
    %c107 = arith.constant 107 : index
    %c0_7 = arith.constant 0 : index
    %8 = vector.load %arg16[%c107, %c0_7] : memref<648x128xf32, #tpu.memory_space<vmem>>, vector<2x128xf32>
    tpu.vector_store %arg16[%c107, %c0_7], %1 {strides = array<i32>} : memref<648x128xf32, #tpu.memory_space<vmem>>, vector<2x128xf32>,
    %c125 = arith.constant 125 : index
    %c0_8 = arith.constant 0 : index
    %9 = vector.load %arg16[%c125, %c0_8] : memref<648x128xf32, #tpu.memory_space<vmem>>, vector<2x128xf32>
    tpu.vector_store %arg16[%c125, %c0_8], %1 {strides = array<i32>} : memref<648x128xf32, #tpu.memory_space<vmem>>, vector<2x128xf32>,
    %c143 = arith.constant 143 : index
    %c0_9 = arith.constant 0 : index
    %10 = vector.load %arg16[%c143, %c0_9] : memref<648x128xf32, #tpu.memory_space<vmem>>, vector<2x128xf32>
    tpu.vector_store %arg16[%c143, %c0_9], %1 {strides = array<i32>} : memref<648x128xf32, #tpu.memory_space<vmem>>, vector<2x128xf32>,
    %c161 = arith.constant 161 : index
    %c0_10 = arith.constant 0 : index
    %11 = vector.load %arg16[%c161, %c0_10] : memref<648x128xf32, #tpu.memory_space<vmem>>, vector<2x128xf32>
    tpu.vector_store %arg16[%c161, %c0_10], %1 {strides = array<i32>} : memref<648x128xf32, #tpu.memory_space<vmem>>, vector<2x128xf32>,
    %c179 = arith.constant 179 : index
    %c0_11 = arith.constant 0 : index
    %12 = vector.load %arg16[%c179, %c0_11] : memref<648x128xf32, #tpu.memory_space<vmem>>, vector<2x128xf32>
    tpu.vector_store %arg16[%c179, %c0_11], %1 {strides = array<i32>} : memref<648x128xf32, #tpu.memory_space<vmem>>, vector<2x128xf32>,
    %c197 = arith.constant 197 : index
    %c0_12 = arith.constant 0 : index
    %13 = vector.load %arg16[%c197, %c0_12] : memref<648x128xf32, #tpu.memory_space<vmem>>, vector<2x128xf32>
    tpu.vector_store %arg16[%c197, %c0_12], %1 {strides = array<i32>} : memref<648x128xf32, #tpu.memory_space<vmem>>, vector<2x128xf32>,
    %c215 = arith.constant 215 : index
    %c0_13 = arith.constant 0 : index
    %14 = vector.load %arg16[%c215, %c0_13] : memref<648x128xf32, #tpu.memory_space<vmem>>, vector<2x128xf32>
    tpu.vector_store %arg16[%c215, %c0_13], %1 {strides = array<i32>} : memref<648x128xf32, #tpu.memory_space<vmem>>, vector<2x128xf32>,
    %c233 = arith.constant 233 : index
    %c0_14 = arith.constant 0 : index
    %15 = vector.load %arg16[%c233, %c0_14] : memref<648x128xf32, #tpu.memory_space<vmem>>, vector<2x128xf32>
    tpu.vector_store %arg16[%c233, %c0_14], %1 {strides = array<i32>} : memref<648x128xf32, #tpu.memory_space<vmem>>, vector<2x128xf32>,
    %c251 = arith.constant 251 : index
    %c0_15 = arith.constant 0 : index
    %16 = vector.load %arg16[%c251, %c0_15] : memref<648x128xf32, #tpu.memory_space<vmem>>, vector<2x128xf32>
    tpu.vector_store %arg16[%c251, %c0_15], %1 {strides = array<i32>} : memref<648x128xf32, #tpu.memory_space<vmem>>, vector<2x128xf32>,
    %c269 = arith.constant 269 : index
    %c0_16 = arith.constant 0 : index
    %17 = vector.load %arg16[%c269, %c0_16] : memref<648x128xf32, #tpu.memory_space<vmem>>, vector<2x128xf32>
    tpu.vector_store %arg16[%c269, %c0_16], %1 {strides = array<i32>} : memref<648x128xf32, #tpu.memory_space<vmem>>, vector<2x128xf32>,
    %c287 = arith.constant 287 : index
    %c0_17 = arith.constant 0 : index
    %18 = vector.load %arg16[%c287, %c0_17] : memref<648x128xf32, #tpu.memory_space<vmem>>, vector<2x128xf32>
    tpu.vector_store %arg16[%c287, %c0_17], %1 {strides = array<i32>} : memref<648x128xf32, #tpu.memory_space<vmem>>, vector<2x128xf32>,
    %c324 = arith.constant 324 : index
    %c0_18 = arith.constant 0 : index
    %19 = vector.load %arg16[%c324, %c0_18] : memref<648x128xf32, #tpu.memory_space<vmem>>, vector<19x128xf32>
    tpu.vector_store %arg16[%c324, %c0_18], %0 {strides = array<i32>} : memref<648x128xf32, #tpu.memory_space<vmem>>, vector<19x128xf32>,
    %c629 = arith.constant 629 : index
    %c0_19 = arith.constant 0 : index
    %20 = vector.load %arg16[%c629, %c0_19] : memref<648x128xf32, #tpu.memory_space<vmem>>, vector<19x128xf32>
    tpu.vector_store %arg16[%c629, %c0_19], %0 {strides = array<i32>} : memref<648x128xf32, #tpu.memory_space<vmem>>, vector<19x128xf32>,
    %c359 = arith.constant 359 : index
    %c0_20 = arith.constant 0 : index
    %21 = vector.load %arg16[%c359, %c0_20] : memref<648x128xf32, #tpu.memory_space<vmem>>, vector<2x128xf32>
    tpu.vector_store %arg16[%c359, %c0_20], %1 {strides = array<i32>} : memref<648x128xf32, #tpu.memory_space<vmem>>, vector<2x128xf32>,
    %c377 = arith.constant 377 : index
    %c0_21 = arith.constant 0 : index
    %22 = vector.load %arg16[%c377, %c0_21] : memref<648x128xf32, #tpu.memory_space<vmem>>, vector<2x128xf32>
    tpu.vector_store %arg16[%c377, %c0_21], %1 {strides = array<i32>} : memref<648x128xf32, #tpu.memory_space<vmem>>, vector<2x128xf32>,
    %c395 = arith.constant 395 : index
    %c0_22 = arith.constant 0 : index
    %23 = vector.load %arg16[%c395, %c0_22] : memref<648x128xf32, #tpu.memory_space<vmem>>, vector<2x128xf32>
    tpu.vector_store %arg16[%c395, %c0_22], %1 {strides = array<i32>} : memref<648x128xf32, #tpu.memory_space<vmem>>, vector<2x128xf32>,
    %c413 = arith.constant 413 : index
    %c0_23 = arith.constant 0 : index
    %24 = vector.load %arg16[%c413, %c0_23] : memref<648x128xf32, #tpu.memory_space<vmem>>, vector<2x128xf32>
    tpu.vector_store %arg16[%c413, %c0_23], %1 {strides = array<i32>} : memref<648x128xf32, #tpu.memory_space<vmem>>, vector<2x128xf32>,
    %c431 = arith.constant 431 : index
    %c0_24 = arith.constant 0 : index
    %25 = vector.load %arg16[%c431, %c0_24] : memref<648x128xf32, #tpu.memory_space<vmem>>, vector<2x128xf32>
    tpu.vector_store %arg16[%c431, %c0_24], %1 {strides = array<i32>} : memref<648x128xf32, #tpu.memory_space<vmem>>, vector<2x128xf32>,
    %c449 = arith.constant 449 : index
    %c0_25 = arith.constant 0 : index
    %26 = vector.load %arg16[%c449, %c0_25] : memref<648x128xf32, #tpu.memory_space<vmem>>, vector<2x128xf32>
    tpu.vector_store %arg16[%c449, %c0_25], %1 {strides = array<i32>} : memref<648x128xf32, #tpu.memory_space<vmem>>, vector<2x128xf32>,
    %c467 = arith.constant 467 : index
    %c0_26 = arith.constant 0 : index
    %27 = vector.load %arg16[%c467, %c0_26] : memref<648x128xf32, #tpu.memory_space<vmem>>, vector<2x128xf32>
    tpu.vector_store %arg16[%c467, %c0_26], %1 {strides = array<i32>} : memref<648x128xf32, #tpu.memory_space<vmem>>, vector<2x128xf32>,
    %c485 = arith.constant 485 : index
    %c0_27 = arith.constant 0 : index
    %28 = vector.load %arg16[%c485, %c0_27] : memref<648x128xf32, #tpu.memory_space<vmem>>, vector<2x128xf32>
    tpu.vector_store %arg16[%c485, %c0_27], %1 {strides = array<i32>} : memref<648x128xf32, #tpu.memory_space<vmem>>, vector<2x128xf32>,
    %c503 = arith.constant 503 : index
    %c0_28 = arith.constant 0 : index
    %29 = vector.load %arg16[%c503, %c0_28] : memref<648x128xf32, #tpu.memory_space<vmem>>, vector<2x128xf32>
    tpu.vector_store %arg16[%c503, %c0_28], %1 {strides = array<i32>} : memref<648x128xf32, #tpu.memory_space<vmem>>, vector<2x128xf32>,
    %c521 = arith.constant 521 : index
    %c0_29 = arith.constant 0 : index
    %30 = vector.load %arg16[%c521, %c0_29] : memref<648x128xf32, #tpu.memory_space<vmem>>, vector<2x128xf32>
    tpu.vector_store %arg16[%c521, %c0_29], %1 {strides = array<i32>} : memref<648x128xf32, #tpu.memory_space<vmem>>, vector<2x128xf32>,
    %c539 = arith.constant 539 : index
    %c0_30 = arith.constant 0 : index
    %31 = vector.load %arg16[%c539, %c0_30] : memref<648x128xf32, #tpu.memory_space<vmem>>, vector<2x128xf32>
    tpu.vector_store %arg16[%c539, %c0_30], %1 {strides = array<i32>} : memref<648x128xf32, #tpu.memory_space<vmem>>, vector<2x128xf32>,
    %c557 = arith.constant 557 : index
    %c0_31 = arith.constant 0 : index
    %32 = vector.load %arg16[%c557, %c0_31] : memref<648x128xf32, #tpu.memory_space<vmem>>, vector<2x128xf32>
    tpu.vector_store %arg16[%c557, %c0_31], %1 {strides = array<i32>} : memref<648x128xf32, #tpu.memory_space<vmem>>, vector<2x128xf32>,
    %c575 = arith.constant 575 : index
    %c0_32 = arith.constant 0 : index
    %33 = vector.load %arg16[%c575, %c0_32] : memref<648x128xf32, #tpu.memory_space<vmem>>, vector<2x128xf32>
    tpu.vector_store %arg16[%c575, %c0_32], %1 {strides = array<i32>} : memref<648x128xf32, #tpu.memory_space<vmem>>, vector<2x128xf32>,
    %c593 = arith.constant 593 : index
    %c0_33 = arith.constant 0 : index
    %34 = vector.load %arg16[%c593, %c0_33] : memref<648x128xf32, #tpu.memory_space<vmem>>, vector<2x128xf32>
    tpu.vector_store %arg16[%c593, %c0_33], %1 {strides = array<i32>} : memref<648x128xf32, #tpu.memory_space<vmem>>, vector<2x128xf32>,
    %c611 = arith.constant 611 : index
    %c0_34 = arith.constant 0 : index
    %35 = vector.load %arg16[%c611, %c0_34] : memref<648x128xf32, #tpu.memory_space<vmem>>, vector<2x128xf32>
    tpu.vector_store %arg16[%c611, %c0_34], %1 {strides = array<i32>} : memref<648x128xf32, #tpu.memory_space<vmem>>, vector<2x128xf32>,
    %cst_35 = arith.constant 0.000000e+00 : f32
    %36 = vector.broadcast %cst_35 : f32 to vector<11x128xf32>
    %cst_36 = arith.constant 0.000000e+00 : f32
    %37 = vector.broadcast %cst_36 : f32 to vector<2x128xf32>
    %c0_37 = arith.constant 0 : index
    %c0_38 = arith.constant 0 : index
    %38 = vector.load %arg17[%c0_37, %c0_38] : memref<200x128xf32, #tpu.memory_space<vmem>>, vector<11x128xf32>
    tpu.vector_store %arg17[%c0_37, %c0_38], %36 {strides = array<i32>} : memref<200x128xf32, #tpu.memory_space<vmem>>, vector<11x128xf32>,
    %c89_39 = arith.constant 89 : index
    %c0_40 = arith.constant 0 : index
    %39 = vector.load %arg17[%c89_39, %c0_40] : memref<200x128xf32, #tpu.memory_space<vmem>>, vector<11x128xf32>
    tpu.vector_store %arg17[%c89_39, %c0_40], %36 {strides = array<i32>} : memref<200x128xf32, #tpu.memory_space<vmem>>, vector<11x128xf32>,
    %c19 = arith.constant 19 : index
    %c0_41 = arith.constant 0 : index
    %40 = vector.load %arg17[%c19, %c0_41] : memref<200x128xf32, #tpu.memory_space<vmem>>, vector<2x128xf32>
    tpu.vector_store %arg17[%c19, %c0_41], %37 {strides = array<i32>} : memref<200x128xf32, #tpu.memory_space<vmem>>, vector<2x128xf32>,
    %c29 = arith.constant 29 : index
    %c0_42 = arith.constant 0 : index
    %41 = vector.load %arg17[%c29, %c0_42] : memref<200x128xf32, #tpu.memory_space<vmem>>, vector<2x128xf32>
    tpu.vector_store %arg17[%c29, %c0_42], %37 {strides = array<i32>} : memref<200x128xf32, #tpu.memory_space<vmem>>, vector<2x128xf32>,
    %c39 = arith.constant 39 : index
    %c0_43 = arith.constant 0 : index
    %42 = vector.load %arg17[%c39, %c0_43] : memref<200x128xf32, #tpu.memory_space<vmem>>, vector<2x128xf32>
    tpu.vector_store %arg17[%c39, %c0_43], %37 {strides = array<i32>} : memref<200x128xf32, #tpu.memory_space<vmem>>, vector<2x128xf32>,
    %c49 = arith.constant 49 : index
    %c0_44 = arith.constant 0 : index
    %43 = vector.load %arg17[%c49, %c0_44] : memref<200x128xf32, #tpu.memory_space<vmem>>, vector<2x128xf32>
    tpu.vector_store %arg17[%c49, %c0_44], %37 {strides = array<i32>} : memref<200x128xf32, #tpu.memory_space<vmem>>, vector<2x128xf32>,
    %c59 = arith.constant 59 : index
    %c0_45 = arith.constant 0 : index
    %44 = vector.load %arg17[%c59, %c0_45] : memref<200x128xf32, #tpu.memory_space<vmem>>, vector<2x128xf32>
    tpu.vector_store %arg17[%c59, %c0_45], %37 {strides = array<i32>} : memref<200x128xf32, #tpu.memory_space<vmem>>, vector<2x128xf32>,
    %c69 = arith.constant 69 : index
    %c0_46 = arith.constant 0 : index
    %45 = vector.load %arg17[%c69, %c0_46] : memref<200x128xf32, #tpu.memory_space<vmem>>, vector<2x128xf32>
    tpu.vector_store %arg17[%c69, %c0_46], %37 {strides = array<i32>} : memref<200x128xf32, #tpu.memory_space<vmem>>, vector<2x128xf32>,
    %c79 = arith.constant 79 : index
    %c0_47 = arith.constant 0 : index
    %46 = vector.load %arg17[%c79, %c0_47] : memref<200x128xf32, #tpu.memory_space<vmem>>, vector<2x128xf32>
    tpu.vector_store %arg17[%c79, %c0_47], %37 {strides = array<i32>} : memref<200x128xf32, #tpu.memory_space<vmem>>, vector<2x128xf32>,
    %c100 = arith.constant 100 : index
    %c0_48 = arith.constant 0 : index
    %47 = vector.load %arg17[%c100, %c0_48] : memref<200x128xf32, #tpu.memory_space<vmem>>, vector<11x128xf32>
    tpu.vector_store %arg17[%c100, %c0_48], %36 {strides = array<i32>} : memref<200x128xf32, #tpu.memory_space<vmem>>, vector<11x128xf32>,
    %c189 = arith.constant 189 : index
    %c0_49 = arith.constant 0 : index
    %48 = vector.load %arg17[%c189, %c0_49] : memref<200x128xf32, #tpu.memory_space<vmem>>, vector<11x128xf32>
    tpu.vector_store %arg17[%c189, %c0_49], %36 {strides = array<i32>} : memref<200x128xf32, #tpu.memory_space<vmem>>, vector<11x128xf32>,
    %c119 = arith.constant 119 : index
    %c0_50 = arith.constant 0 : index
    %49 = vector.load %arg17[%c119, %c0_50] : memref<200x128xf32, #tpu.memory_space<vmem>>, vector<2x128xf32>
    tpu.vector_store %arg17[%c119, %c0_50], %37 {strides = array<i32>} : memref<200x128xf32, #tpu.memory_space<vmem>>, vector<2x128xf32>,
    %c129 = arith.constant 129 : index
    %c0_51 = arith.constant 0 : index
    %50 = vector.load %arg17[%c129, %c0_51] : memref<200x128xf32, #tpu.memory_space<vmem>>, vector<2x128xf32>
    tpu.vector_store %arg17[%c129, %c0_51], %37 {strides = array<i32>} : memref<200x128xf32, #tpu.memory_space<vmem>>, vector<2x128xf32>,
    %c139 = arith.constant 139 : index
    %c0_52 = arith.constant 0 : index
    %51 = vector.load %arg17[%c139, %c0_52] : memref<200x128xf32, #tpu.memory_space<vmem>>, vector<2x128xf32>
    tpu.vector_store %arg17[%c139, %c0_52], %37 {strides = array<i32>} : memref<200x128xf32, #tpu.memory_space<vmem>>, vector<2x128xf32>,
    %c149 = arith.constant 149 : index
    %c0_53 = arith.constant 0 : index
    %52 = vector.load %arg17[%c149, %c0_53] : memref<200x128xf32, #tpu.memory_space<vmem>>, vector<2x128xf32>
    tpu.vector_store %arg17[%c149, %c0_53], %37 {strides = array<i32>} : memref<200x128xf32, #tpu.memory_space<vmem>>, vector<2x128xf32>,
    %c159 = arith.constant 159 : index
    %c0_54 = arith.constant 0 : index
    %53 = vector.load %arg17[%c159, %c0_54] : memref<200x128xf32, #tpu.memory_space<vmem>>, vector<2x128xf32>
    tpu.vector_store %arg17[%c159, %c0_54], %37 {strides = array<i32>} : memref<200x128xf32, #tpu.memory_space<vmem>>, vector<2x128xf32>,
    %c169 = arith.constant 169 : index
    %c0_55 = arith.constant 0 : index
    %54 = vector.load %arg17[%c169, %c0_55] : memref<200x128xf32, #tpu.memory_space<vmem>>, vector<2x128xf32>
    tpu.vector_store %arg17[%c169, %c0_55], %37 {strides = array<i32>} : memref<200x128xf32, #tpu.memory_space<vmem>>, vector<2x128xf32>,
    %c179_56 = arith.constant 179 : index
    %c0_57 = arith.constant 0 : index
    %55 = vector.load %arg17[%c179_56, %c0_57] : memref<200x128xf32, #tpu.memory_space<vmem>>, vector<2x128xf32>
    tpu.vector_store %arg17[%c179_56, %c0_57], %37 {strides = array<i32>} : memref<200x128xf32, #tpu.memory_space<vmem>>, vector<2x128xf32>,
    %cst_58 = arith.constant 0.000000e+00 : f32
    %56 = vector.broadcast %cst_58 : f32 to vector<7x128xf32>
    %cst_59 = arith.constant 0.000000e+00 : f32
    %57 = vector.broadcast %cst_59 : f32 to vector<2x128xf32>
    %c0_60 = arith.constant 0 : index
    %c0_61 = arith.constant 0 : index
    %58 = vector.load %arg18[%c0_60, %c0_61] : memref<72x128xf32, #tpu.memory_space<vmem>>, vector<7x128xf32>
    tpu.vector_store %arg18[%c0_60, %c0_61], %56 {strides = array<i32>} : memref<72x128xf32, #tpu.memory_space<vmem>>, vector<7x128xf32>,
    %c29_62 = arith.constant 29 : index
    %c0_63 = arith.constant 0 : index
    %59 = vector.load %arg18[%c29_62, %c0_63] : memref<72x128xf32, #tpu.memory_space<vmem>>, vector<7x128xf32>
    tpu.vector_store %arg18[%c29_62, %c0_63], %56 {strides = array<i32>} : memref<72x128xf32, #tpu.memory_space<vmem>>, vector<7x128xf32>,
    %c11 = arith.constant 11 : index
    %c0_64 = arith.constant 0 : index
    %60 = vector.load %arg18[%c11, %c0_64] : memref<72x128xf32, #tpu.memory_space<vmem>>, vector<2x128xf32>
    tpu.vector_store %arg18[%c11, %c0_64], %57 {strides = array<i32>} : memref<72x128xf32, #tpu.memory_space<vmem>>, vector<2x128xf32>,
    %c17 = arith.constant 17 : index
    %c0_65 = arith.constant 0 : index
    %61 = vector.load %arg18[%c17, %c0_65] : memref<72x128xf32, #tpu.memory_space<vmem>>, vector<2x128xf32>
    tpu.vector_store %arg18[%c17, %c0_65], %57 {strides = array<i32>} : memref<72x128xf32, #tpu.memory_space<vmem>>, vector<2x128xf32>,
    %c23 = arith.constant 23 : index
    %c0_66 = arith.constant 0 : index
    %62 = vector.load %arg18[%c23, %c0_66] : memref<72x128xf32, #tpu.memory_space<vmem>>, vector<2x128xf32>
    tpu.vector_store %arg18[%c23, %c0_66], %57 {strides = array<i32>} : memref<72x128xf32, #tpu.memory_space<vmem>>, vector<2x128xf32>,
    %c36 = arith.constant 36 : index
    %c0_67 = arith.constant 0 : index
    %63 = vector.load %arg18[%c36, %c0_67] : memref<72x128xf32, #tpu.memory_space<vmem>>, vector<7x128xf32>
    tpu.vector_store %arg18[%c36, %c0_67], %56 {strides = array<i32>} : memref<72x128xf32, #tpu.memory_space<vmem>>, vector<7x128xf32>,
    %c65 = arith.constant 65 : index
    %c0_68 = arith.constant 0 : index
    %64 = vector.load %arg18[%c65, %c0_68] : memref<72x128xf32, #tpu.memory_space<vmem>>, vector<7x128xf32>
    tpu.vector_store %arg18[%c65, %c0_68], %56 {strides = array<i32>} : memref<72x128xf32, #tpu.memory_space<vmem>>, vector<7x128xf32>,
    %c47 = arith.constant 47 : index
    %c0_69 = arith.constant 0 : index
    %65 = vector.load %arg18[%c47, %c0_69] : memref<72x128xf32, #tpu.memory_space<vmem>>, vector<2x128xf32>
    tpu.vector_store %arg18[%c47, %c0_69], %57 {strides = array<i32>} : memref<72x128xf32, #tpu.memory_space<vmem>>, vector<2x128xf32>,
    %c53_70 = arith.constant 53 : index
    %c0_71 = arith.constant 0 : index
    %66 = vector.load %arg18[%c53_70, %c0_71] : memref<72x128xf32, #tpu.memory_space<vmem>>, vector<2x128xf32>
    tpu.vector_store %arg18[%c53_70, %c0_71], %57 {strides = array<i32>} : memref<72x128xf32, #tpu.memory_space<vmem>>, vector<2x128xf32>,
    %c59_72 = arith.constant 59 : index
    %c0_73 = arith.constant 0 : index
    %67 = vector.load %arg18[%c59_72, %c0_73] : memref<72x128xf32, #tpu.memory_space<vmem>>, vector<2x128xf32>
    tpu.vector_store %arg18[%c59_72, %c0_73], %57 {strides = array<i32>} : memref<72x128xf32, #tpu.memory_space<vmem>>, vector<2x128xf32>,
    %c0_74 = arith.constant 0 : index
    %c0_75 = arith.constant 0 : index
    %68 = vector.load %arg0[%c0_74, %c0_75] : memref<512x128xbf16, #tpu.memory_space<vmem>>, vector<512x128xbf16>
    %c0_76 = arith.constant 0 : index
    %c0_77 = arith.constant 0 : index
    %69 = vector.load %arg1[%c0_76, %c0_77] : memref<128x128xbf16, #tpu.memory_space<vmem>>, vector<128x128xbf16>
    %cst_78 = arith.constant dense<0.000000e+00> : vector<512x128xf32>
    %70 = tpu.matmul %68, %69, %cst_78 {dimension_numbers = #tpu.dot_dimension_numbers<[1], [0], [0], [1], [0, 0, 1, 1], [], []>} : vector<512x128xbf16>, vector<128x128xbf16>, vector<512x128xf32> -> vector<512x128xf32>
    %cst_79 = arith.constant dense<0.000000e+00> : vector<128xf32>
    %71 = vector.multi_reduction <add>, %70, %cst_79 [0] : vector<512x128xf32> to vector<128xf32>
    %72 = vector.shape_cast %71 : vector<128xf32> to vector<1x128xf32>
    %73 = arith.mulf %70, %70 : vector<512x128xf32>
    %cst_80 = arith.constant dense<0.000000e+00> : vector<128xf32>
    %74 = vector.multi_reduction <add>, %73, %cst_80 [0] : vector<512x128xf32> to vector<128xf32>
    %75 = vector.shape_cast %74 : vector<128xf32> to vector<1x128xf32>
    %cst_81 = arith.constant 0.001953125 : f32
    %76 = vector.broadcast %cst_81 : f32 to vector<1x128xf32>
    %77 = arith.mulf %72, %76 : vector<1x128xf32>
    %cst_82 = arith.constant 0.001953125 : f32
    %78 = vector.broadcast %cst_82 : f32 to vector<1x128xf32>
    %79 = arith.mulf %75, %78 : vector<1x128xf32>
    %80 = arith.mulf %77, %77 : vector<1x128xf32>
    %81 = arith.subf %79, %80 : vector<1x128xf32>
    %c0_83 = arith.constant 0 : index
    %c0_84 = arith.constant 0 : index
    %82 = vector.load %arg2[%c0_83, %c0_84] : memref<1x128xf32, #tpu.memory_space<vmem>>, vector<1x128xf32>
    %cst_85 = arith.constant 9.99999974E-6 : f32
    %83 = vector.broadcast %cst_85 : f32 to vector<1x128xf32>
    %84 = arith.addf %81, %83 : vector<1x128xf32>
    %85 = math.rsqrt %84 : vector<1x128xf32>
    %86 = arith.mulf %82, %85 : vector<1x128xf32>
    %c0_86 = arith.constant 0 : index
    %c0_87 = arith.constant 0 : index
    %87 = vector.load %arg3[%c0_86, %c0_87] : memref<1x128xf32, #tpu.memory_space<vmem>>, vector<1x128xf32>
    %88 = arith.mulf %77, %86 : vector<1x128xf32>
    %89 = arith.subf %87, %88 : vector<1x128xf32>
    %90 = vector.broadcast %86 : vector<1x128xf32> to vector<512x128xf32>
    %91 = arith.mulf %70, %90 : vector<512x128xf32>
    %92 = vector.broadcast %89 : vector<1x128xf32> to vector<512x128xf32>
    %93 = arith.addf %91, %92 : vector<512x128xf32>
    %cst_88 = arith.constant 0.000000e+00 : f32
    %94 = vector.broadcast %cst_88 : f32 to vector<512x128xf32>
    %95 = arith.maximumf %93, %94 : vector<512x128xf32>
    %96 = vector.extract_strided_slice %95 {offsets = [0, 0], sizes = [16, 128], strides = [1, 1]} : vector<512x128xf32> to vector<16x128xf32>
    %c19_89 = arith.constant 19 : index
    %c0_90 = arith.constant 0 : index
    %97 = vector.load %arg16[%c19_89, %c0_90] : memref<648x128xf32, #tpu.memory_space<vmem>>, vector<16x128xf32>
    tpu.vector_store %arg16[%c19_89, %c0_90], %96 {strides = array<i32>} : memref<648x128xf32, #tpu.memory_space<vmem>>, vector<16x128xf32>,
    %98 = vector.extract_strided_slice %95 {offsets = [16, 0], sizes = [16, 128], strides = [1, 1]} : vector<512x128xf32> to vector<16x128xf32>
    %c37 = arith.constant 37 : index
    %c0_91 = arith.constant 0 : index
    %99 = vector.load %arg16[%c37, %c0_91] : memref<648x128xf32, #tpu.memory_space<vmem>>, vector<16x128xf32>
    tpu.vector_store %arg16[%c37, %c0_91], %98 {strides = array<i32>} : memref<648x128xf32, #tpu.memory_space<vmem>>, vector<16x128xf32>,
    %100 = vector.extract_strided_slice %95 {offsets = [32, 0], sizes = [16, 128], strides = [1, 1]} : vector<512x128xf32> to vector<16x128xf32>
    %c55 = arith.constant 55 : index
    %c0_92 = arith.constant 0 : index
    %101 = vector.load %arg16[%c55, %c0_92] : memref<648x128xf32, #tpu.memory_space<vmem>>, vector<16x128xf32>
    tpu.vector_store %arg16[%c55, %c0_92], %100 {strides = array<i32>} : memref<648x128xf32, #tpu.memory_space<vmem>>, vector<16x128xf32>,
    %102 = vector.extract_strided_slice %95 {offsets = [48, 0], sizes = [16, 128], strides = [1, 1]} : vector<512x128xf32> to vector<16x128xf32>
    %c73 = arith.constant 73 : index
    %c0_93 = arith.constant 0 : index
    %103 = vector.load %arg16[%c73, %c0_93] : memref<648x128xf32, #tpu.memory_space<vmem>>, vector<16x128xf32>
    tpu.vector_store %arg16[%c73, %c0_93], %102 {strides = array<i32>} : memref<648x128xf32, #tpu.memory_space<vmem>>, vector<16x128xf32>,
    %104 = vector.extract_strided_slice %95 {offsets = [64, 0], sizes = [16, 128], strides = [1, 1]} : vector<512x128xf32> to vector<16x128xf32>
    %c91 = arith.constant 91 : index
    %c0_94 = arith.constant 0 : index
    %105 = vector.load %arg16[%c91, %c0_94] : memref<648x128xf32, #tpu.memory_space<vmem>>, vector<16x128xf32>
    tpu.vector_store %arg16[%c91, %c0_94], %104 {strides = array<i32>} : memref<648x128xf32, #tpu.memory_space<vmem>>, vector<16x128xf32>,
    %106 = vector.extract_strided_slice %95 {offsets = [80, 0], sizes = [16, 128], strides = [1, 1]} : vector<512x128xf32> to vector<16x128xf32>
    %c109 = arith.constant 109 : index
    %c0_95 = arith.constant 0 : index
    %107 = vector.load %arg16[%c109, %c0_95] : memref<648x128xf32, #tpu.memory_space<vmem>>, vector<16x128xf32>
    tpu.vector_store %arg16[%c109, %c0_95], %106 {strides = array<i32>} : memref<648x128xf32, #tpu.memory_space<vmem>>, vector<16x128xf32>,
    %108 = vector.extract_strided_slice %95 {offsets = [96, 0], sizes = [16, 128], strides = [1, 1]} : vector<512x128xf32> to vector<16x128xf32>
    %c127 = arith.constant 127 : index
    %c0_96 = arith.constant 0 : index
    %109 = vector.load %arg16[%c127, %c0_96] : memref<648x128xf32, #tpu.memory_space<vmem>>, vector<16x128xf32>
    tpu.vector_store %arg16[%c127, %c0_96], %108 {strides = array<i32>} : memref<648x128xf32, #tpu.memory_space<vmem>>, vector<16x128xf32>,
    %110 = vector.extract_strided_slice %95 {offsets = [112, 0], sizes = [16, 128], strides = [1, 1]} : vector<512x128xf32> to vector<16x128xf32>
    %c145 = arith.constant 145 : index
    %c0_97 = arith.constant 0 : index
    %111 = vector.load %arg16[%c145, %c0_97] : memref<648x128xf32, #tpu.memory_space<vmem>>, vector<16x128xf32>
    tpu.vector_store %arg16[%c145, %c0_97], %110 {strides = array<i32>} : memref<648x128xf32, #tpu.memory_space<vmem>>, vector<16x128xf32>,
    %112 = vector.extract_strided_slice %95 {offsets = [128, 0], sizes = [16, 128], strides = [1, 1]} : vector<512x128xf32> to vector<16x128xf32>
    %c163 = arith.constant 163 : index
    %c0_98 = arith.constant 0 : index
    %113 = vector.load %arg16[%c163, %c0_98] : memref<648x128xf32, #tpu.memory_space<vmem>>, vector<16x128xf32>
    tpu.vector_store %arg16[%c163, %c0_98], %112 {strides = array<i32>} : memref<648x128xf32, #tpu.memory_space<vmem>>, vector<16x128xf32>,
    %114 = vector.extract_strided_slice %95 {offsets = [144, 0], sizes = [16, 128], strides = [1, 1]} : vector<512x128xf32> to vector<16x128xf32>
    %c181 = arith.constant 181 : index
    %c0_99 = arith.constant 0 : index
    %115 = vector.load %arg16[%c181, %c0_99] : memref<648x128xf32, #tpu.memory_space<vmem>>, vector<16x128xf32>
    tpu.vector_store %arg16[%c181, %c0_99], %114 {strides = array<i32>} : memref<648x128xf32, #tpu.memory_space<vmem>>, vector<16x128xf32>,
    %116 = vector.extract_strided_slice %95 {offsets = [160, 0], sizes = [16, 128], strides = [1, 1]} : vector<512x128xf32> to vector<16x128xf32>
    %c199 = arith.constant 199 : index
    %c0_100 = arith.constant 0 : index
    %117 = vector.load %arg16[%c199, %c0_100] : memref<648x128xf32, #tpu.memory_space<vmem>>, vector<16x128xf32>
    tpu.vector_store %arg16[%c199, %c0_100], %116 {strides = array<i32>} : memref<648x128xf32, #tpu.memory_space<vmem>>, vector<16x128xf32>,
    %118 = vector.extract_strided_slice %95 {offsets = [176, 0], sizes = [16, 128], strides = [1, 1]} : vector<512x128xf32> to vector<16x128xf32>
    %c217 = arith.constant 217 : index
    %c0_101 = arith.constant 0 : index
    %119 = vector.load %arg16[%c217, %c0_101] : memref<648x128xf32, #tpu.memory_space<vmem>>, vector<16x128xf32>
    tpu.vector_store %arg16[%c217, %c0_101], %118 {strides = array<i32>} : memref<648x128xf32, #tpu.memory_space<vmem>>, vector<16x128xf32>,
    %120 = vector.extract_strided_slice %95 {offsets = [192, 0], sizes = [16, 128], strides = [1, 1]} : vector<512x128xf32> to vector<16x128xf32>
    %c235 = arith.constant 235 : index
    %c0_102 = arith.constant 0 : index
    %121 = vector.load %arg16[%c235, %c0_102] : memref<648x128xf32, #tpu.memory_space<vmem>>, vector<16x128xf32>
    tpu.vector_store %arg16[%c235, %c0_102], %120 {strides = array<i32>} : memref<648x128xf32, #tpu.memory_space<vmem>>, vector<16x128xf32>,
    %122 = vector.extract_strided_slice %95 {offsets = [208, 0], sizes = [16, 128], strides = [1, 1]} : vector<512x128xf32> to vector<16x128xf32>
    %c253 = arith.constant 253 : index
    %c0_103 = arith.constant 0 : index
    %123 = vector.load %arg16[%c253, %c0_103] : memref<648x128xf32, #tpu.memory_space<vmem>>, vector<16x128xf32>
    tpu.vector_store %arg16[%c253, %c0_103], %122 {strides = array<i32>} : memref<648x128xf32, #tpu.memory_space<vmem>>, vector<16x128xf32>,
    %124 = vector.extract_strided_slice %95 {offsets = [224, 0], sizes = [16, 128], strides = [1, 1]} : vector<512x128xf32> to vector<16x128xf32>
    %c271 = arith.constant 271 : index
    %c0_104 = arith.constant 0 : index
    %125 = vector.load %arg16[%c271, %c0_104] : memref<648x128xf32, #tpu.memory_space<vmem>>, vector<16x128xf32>
    tpu.vector_store %arg16[%c271, %c0_104], %124 {strides = array<i32>} : memref<648x128xf32, #tpu.memory_space<vmem>>, vector<16x128xf32>,
    %126 = vector.extract_strided_slice %95 {offsets = [240, 0], sizes = [16, 128], strides = [1, 1]} : vector<512x128xf32> to vector<16x128xf32>
    %c289 = arith.constant 289 : index
    %c0_105 = arith.constant 0 : index
    %127 = vector.load %arg16[%c289, %c0_105] : memref<648x128xf32, #tpu.memory_space<vmem>>, vector<16x128xf32>
    tpu.vector_store %arg16[%c289, %c0_105], %126 {strides = array<i32>} : memref<648x128xf32, #tpu.memory_space<vmem>>, vector<16x128xf32>,
    %128 = vector.extract_strided_slice %95 {offsets = [256, 0], sizes = [16, 128], strides = [1, 1]} : vector<512x128xf32> to vector<16x128xf32>
    %c343 = arith.constant 343 : index
    %c0_106 = arith.constant 0 : index
    %129 = vector.load %arg16[%c343, %c0_106] : memref<648x128xf32, #tpu.memory_space<vmem>>, vector<16x128xf32>
    tpu.vector_store %arg16[%c343, %c0_106], %128 {strides = array<i32>} : memref<648x128xf32, #tpu.memory_space<vmem>>, vector<16x128xf32>,
    %130 = vector.extract_strided_slice %95 {offsets = [272, 0], sizes = [16, 128], strides = [1, 1]} : vector<512x128xf32> to vector<16x128xf32>
    %c361 = arith.constant 361 : index
    %c0_107 = arith.constant 0 : index
    %131 = vector.load %arg16[%c361, %c0_107] : memref<648x128xf32, #tpu.memory_space<vmem>>, vector<16x128xf32>
    tpu.vector_store %arg16[%c361, %c0_107], %130 {strides = array<i32>} : memref<648x128xf32, #tpu.memory_space<vmem>>, vector<16x128xf32>,
    %132 = vector.extract_strided_slice %95 {offsets = [288, 0], sizes = [16, 128], strides = [1, 1]} : vector<512x128xf32> to vector<16x128xf32>
    %c379 = arith.constant 379 : index
    %c0_108 = arith.constant 0 : index
    %133 = vector.load %arg16[%c379, %c0_108] : memref<648x128xf32, #tpu.memory_space<vmem>>, vector<16x128xf32>
    tpu.vector_store %arg16[%c379, %c0_108], %132 {strides = array<i32>} : memref<648x128xf32, #tpu.memory_space<vmem>>, vector<16x128xf32>,
    %134 = vector.extract_strided_slice %95 {offsets = [304, 0], sizes = [16, 128], strides = [1, 1]} : vector<512x128xf32> to vector<16x128xf32>
    %c397 = arith.constant 397 : index
    %c0_109 = arith.constant 0 : index
    %135 = vector.load %arg16[%c397, %c0_109] : memref<648x128xf32, #tpu.memory_space<vmem>>, vector<16x128xf32>
    tpu.vector_store %arg16[%c397, %c0_109], %134 {strides = array<i32>} : memref<648x128xf32, #tpu.memory_space<vmem>>, vector<16x128xf32>,
    %136 = vector.extract_strided_slice %95 {offsets = [320, 0], sizes = [16, 128], strides = [1, 1]} : vector<512x128xf32> to vector<16x128xf32>
    %c415 = arith.constant 415 : index
    %c0_110 = arith.constant 0 : index
    %137 = vector.load %arg16[%c415, %c0_110] : memref<648x128xf32, #tpu.memory_space<vmem>>, vector<16x128xf32>
    tpu.vector_store %arg16[%c415, %c0_110], %136 {strides = array<i32>} : memref<648x128xf32, #tpu.memory_space<vmem>>, vector<16x128xf32>,
    %138 = vector.extract_strided_slice %95 {offsets = [336, 0], sizes = [16, 128], strides = [1, 1]} : vector<512x128xf32> to vector<16x128xf32>
    %c433 = arith.constant 433 : index
    %c0_111 = arith.constant 0 : index
    %139 = vector.load %arg16[%c433, %c0_111] : memref<648x128xf32, #tpu.memory_space<vmem>>, vector<16x128xf32>
    tpu.vector_store %arg16[%c433, %c0_111], %138 {strides = array<i32>} : memref<648x128xf32, #tpu.memory_space<vmem>>, vector<16x128xf32>,
    %140 = vector.extract_strided_slice %95 {offsets = [352, 0], sizes = [16, 128], strides = [1, 1]} : vector<512x128xf32> to vector<16x128xf32>
    %c451 = arith.constant 451 : index
    %c0_112 = arith.constant 0 : index
    %141 = vector.load %arg16[%c451, %c0_112] : memref<648x128xf32, #tpu.memory_space<vmem>>, vector<16x128xf32>
    tpu.vector_store %arg16[%c451, %c0_112], %140 {strides = array<i32>} : memref<648x128xf32, #tpu.memory_space<vmem>>, vector<16x128xf32>,
    %142 = vector.extract_strided_slice %95 {offsets = [368, 0], sizes = [16, 128], strides = [1, 1]} : vector<512x128xf32> to vector<16x128xf32>
    %c469 = arith.constant 469 : index
    %c0_113 = arith.constant 0 : index
    %143 = vector.load %arg16[%c469, %c0_113] : memref<648x128xf32, #tpu.memory_space<vmem>>, vector<16x128xf32>
    tpu.vector_store %arg16[%c469, %c0_113], %142 {strides = array<i32>} : memref<648x128xf32, #tpu.memory_space<vmem>>, vector<16x128xf32>,
    %144 = vector.extract_strided_slice %95 {offsets = [384, 0], sizes = [16, 128], strides = [1, 1]} : vector<512x128xf32> to vector<16x128xf32>
    %c487 = arith.constant 487 : index
    %c0_114 = arith.constant 0 : index
    %145 = vector.load %arg16[%c487, %c0_114] : memref<648x128xf32, #tpu.memory_space<vmem>>, vector<16x128xf32>
    tpu.vector_store %arg16[%c487, %c0_114], %144 {strides = array<i32>} : memref<648x128xf32, #tpu.memory_space<vmem>>, vector<16x128xf32>,
    %146 = vector.extract_strided_slice %95 {offsets = [400, 0], sizes = [16, 128], strides = [1, 1]} : vector<512x128xf32> to vector<16x128xf32>
    %c505 = arith.constant 505 : index
    %c0_115 = arith.constant 0 : index
    %147 = vector.load %arg16[%c505, %c0_115] : memref<648x128xf32, #tpu.memory_space<vmem>>, vector<16x128xf32>
    tpu.vector_store %arg16[%c505, %c0_115], %146 {strides = array<i32>} : memref<648x128xf32, #tpu.memory_space<vmem>>, vector<16x128xf32>,
    %148 = vector.extract_strided_slice %95 {offsets = [416, 0], sizes = [16, 128], strides = [1, 1]} : vector<512x128xf32> to vector<16x128xf32>
    %c523 = arith.constant 523 : index
    %c0_116 = arith.constant 0 : index
    %149 = vector.load %arg16[%c523, %c0_116] : memref<648x128xf32, #tpu.memory_space<vmem>>, vector<16x128xf32>
    tpu.vector_store %arg16[%c523, %c0_116], %148 {strides = array<i32>} : memref<648x128xf32, #tpu.memory_space<vmem>>, vector<16x128xf32>,
    %150 = vector.extract_strided_slice %95 {offsets = [432, 0], sizes = [16, 128], strides = [1, 1]} : vector<512x128xf32> to vector<16x128xf32>
    %c541 = arith.constant 541 : index
    %c0_117 = arith.constant 0 : index
    %151 = vector.load %arg16[%c541, %c0_117] : memref<648x128xf32, #tpu.memory_space<vmem>>, vector<16x128xf32>
    tpu.vector_store %arg16[%c541, %c0_117], %150 {strides = array<i32>} : memref<648x128xf32, #tpu.memory_space<vmem>>, vector<16x128xf32>,
    %152 = vector.extract_strided_slice %95 {offsets = [448, 0], sizes = [16, 128], strides = [1, 1]} : vector<512x128xf32> to vector<16x128xf32>
    %c559 = arith.constant 559 : index
    %c0_118 = arith.constant 0 : index
    %153 = vector.load %arg16[%c559, %c0_118] : memref<648x128xf32, #tpu.memory_space<vmem>>, vector<16x128xf32>
    tpu.vector_store %arg16[%c559, %c0_118], %152 {strides = array<i32>} : memref<648x128xf32, #tpu.memory_space<vmem>>, vector<16x128xf32>,
    %154 = vector.extract_strided_slice %95 {offsets = [464, 0], sizes = [16, 128], strides = [1, 1]} : vector<512x128xf32> to vector<16x128xf32>
    %c577 = arith.constant 577 : index
    %c0_119 = arith.constant 0 : index
    %155 = vector.load %arg16[%c577, %c0_119] : memref<648x128xf32, #tpu.memory_space<vmem>>, vector<16x128xf32>
    tpu.vector_store %arg16[%c577, %c0_119], %154 {strides = array<i32>} : memref<648x128xf32, #tpu.memory_space<vmem>>, vector<16x128xf32>,
    %156 = vector.extract_strided_slice %95 {offsets = [480, 0], sizes = [16, 128], strides = [1, 1]} : vector<512x128xf32> to vector<16x128xf32>
    %c595 = arith.constant 595 : index
    %c0_120 = arith.constant 0 : index
    %157 = vector.load %arg16[%c595, %c0_120] : memref<648x128xf32, #tpu.memory_space<vmem>>, vector<16x128xf32>
    tpu.vector_store %arg16[%c595, %c0_120], %156 {strides = array<i32>} : memref<648x128xf32, #tpu.memory_space<vmem>>, vector<16x128xf32>,
    %158 = vector.extract_strided_slice %95 {offsets = [496, 0], sizes = [16, 128], strides = [1, 1]} : vector<512x128xf32> to vector<16x128xf32>
    %c613 = arith.constant 613 : index
    %c0_121 = arith.constant 0 : index
    %159 = vector.load %arg16[%c613, %c0_121] : memref<648x128xf32, #tpu.memory_space<vmem>>, vector<16x128xf32>
    tpu.vector_store %arg16[%c613, %c0_121], %158 {strides = array<i32>} : memref<648x128xf32, #tpu.memory_space<vmem>>, vector<16x128xf32>,
    %c0_122 = arith.constant 0 : index
    %c0_123 = arith.constant 0 : index
    %160 = tpu.strided_load %arg16[%c0_122, %c0_123] {strides = array<i32: 2, 1>} : memref<648x128xf32, #tpu.memory_space<vmem>>, vector<8x128xf32>
    %161 = arith.truncf %160 : vector<8x128xf32> to vector<8x128xbf16>
    %c0_124 = arith.constant 0 : index
    %c0_125 = arith.constant 0 : index
    %162 = vector.load %arg19[%c0_124, %c0_125] : memref<128x1152xbf16, #tpu.memory_space<vmem>>, vector<8x128xbf16>
    tpu.vector_store %arg19[%c0_124, %c0_125], %161 {strides = array<i32>} : memref<128x1152xbf16, #tpu.memory_space<vmem>>, vector<8x128xbf16>,
    %c1 = arith.constant 1 : index
    %c0_126 = arith.constant 0 : index
    %163 = tpu.strided_load %arg16[%c1, %c0_126] {strides = array<i32: 2, 1>} : memref<648x128xf32, #tpu.memory_space<vmem>>, vector<8x128xf32>
    %164 = arith.truncf %163 : vector<8x128xf32> to vector<8x128xbf16>
    %c0_127 = arith.constant 0 : index
    %c128 = arith.constant 128 : index
    %165 = vector.load %arg19[%c0_127, %c128] : memref<128x1152xbf16, #tpu.memory_space<vmem>>, vector<8x128xbf16>
    tpu.vector_store %arg19[%c0_127, %c128], %164 {strides = array<i32>} : memref<128x1152xbf16, #tpu.memory_space<vmem>>, vector<8x128xbf16>,
    %c2 = arith.constant 2 : index
    %c0_128 = arith.constant 0 : index
    %166 = tpu.strided_load %arg16[%c2, %c0_128] {strides = array<i32: 2, 1>} : memref<648x128xf32, #tpu.memory_space<vmem>>, vector<8x128xf32>
    %167 = arith.truncf %166 : vector<8x128xf32> to vector<8x128xbf16>
    %c0_129 = arith.constant 0 : index
    %c256 = arith.constant 256 : index
    %168 = vector.load %arg19[%c0_129, %c256] : memref<128x1152xbf16, #tpu.memory_space<vmem>>, vector<8x128xbf16>
    tpu.vector_store %arg19[%c0_129, %c256], %167 {strides = array<i32>} : memref<128x1152xbf16, #tpu.memory_space<vmem>>, vector<8x128xbf16>,
    %c18 = arith.constant 18 : index
    %c0_130 = arith.constant 0 : index
    %169 = tpu.strided_load %arg16[%c18, %c0_130] {strides = array<i32: 2, 1>} : memref<648x128xf32, #tpu.memory_space<vmem>>, vector<8x128xf32>
    %170 = arith.truncf %169 : vector<8x128xf32> to vector<8x128xbf16>
    %c0_131 = arith.constant 0 : index
    %c384 = arith.constant 384 : index
    %171 = vector.load %arg19[%c0_131, %c384] : memref<128x1152xbf16, #tpu.memory_space<vmem>>, vector<8x128xbf16>
    tpu.vector_store %arg19[%c0_131, %c384], %170 {strides = array<i32>} : memref<128x1152xbf16, #tpu.memory_space<vmem>>, vector<8x128xbf16>,
    %c19_132 = arith.constant 19 : index
    %c0_133 = arith.constant 0 : index
    %172 = tpu.strided_load %arg16[%c19_132, %c0_133] {strides = array<i32: 2, 1>} : memref<648x128xf32, #tpu.memory_space<vmem>>, vector<8x128xf32>
    %173 = arith.truncf %172 : vector<8x128xf32> to vector<8x128xbf16>
    %c0_134 = arith.constant 0 : index
    %c512 = arith.constant 512 : index
    %174 = vector.load %arg19[%c0_134, %c512] : memref<128x1152xbf16, #tpu.memory_space<vmem>>, vector<8x128xbf16>
    tpu.vector_store %arg19[%c0_134, %c512], %173 {strides = array<i32>} : memref<128x1152xbf16, #tpu.memory_space<vmem>>, vector<8x128xbf16>,
    %c20 = arith.constant 20 : index
    %c0_135 = arith.constant 0 : index
    %175 = tpu.strided_load %arg16[%c20, %c0_135] {strides = array<i32: 2, 1>} : memref<648x128xf32, #tpu.memory_space<vmem>>, vector<8x128xf32>
    %176 = arith.truncf %175 : vector<8x128xf32> to vector<8x128xbf16>
    %c0_136 = arith.constant 0 : index
    %c640 = arith.constant 640 : index
    %177 = vector.load %arg19[%c0_136, %c640] : memref<128x1152xbf16, #tpu.memory_space<vmem>>, vector<8x128xbf16>
    tpu.vector_store %arg19[%c0_136, %c640], %176 {strides = array<i32>} : memref<128x1152xbf16, #tpu.memory_space<vmem>>, vector<8x128xbf16>,
    %c36_137 = arith.constant 36 : index
    %c0_138 = arith.constant 0 : index
    %178 = tpu.strided_load %arg16[%c36_137, %c0_138] {strides = array<i32: 2, 1>} : memref<648x128xf32, #tpu.memory_space<vmem>>, vector<8x128xf32>
    %179 = arith.truncf %178 : vector<8x128xf32> to vector<8x128xbf16>
    %c0_139 = arith.constant 0 : index
    %c768 = arith.constant 768 : index
    %180 = vector.load %arg19[%c0_139, %c768] : memref<128x1152xbf16, #tpu.memory_space<vmem>>, vector<8x128xbf16>
    tpu.vector_store %arg19[%c0_139, %c768], %179 {strides = array<i32>} : memref<128x1152xbf16, #tpu.memory_space<vmem>>, vector<8x128xbf16>,
    %c37_140 = arith.constant 37 : index
    %c0_141 = arith.constant 0 : index
    %181 = tpu.strided_load %arg16[%c37_140, %c0_141] {strides = array<i32: 2, 1>} : memref<648x128xf32, #tpu.memory_space<vmem>>, vector<8x128xf32>
    %182 = arith.truncf %181 : vector<8x128xf32> to vector<8x128xbf16>
    %c0_142 = arith.constant 0 : index
    %c896 = arith.constant 896 : index
    %183 = vector.load %arg19[%c0_142, %c896] : memref<128x1152xbf16, #tpu.memory_space<vmem>>, vector<8x128xbf16>
    tpu.vector_store %arg19[%c0_142, %c896], %182 {strides = array<i32>} : memref<128x1152xbf16, #tpu.memory_space<vmem>>, vector<8x128xbf16>,
    %c38 = arith.constant 38 : index
    %c0_143 = arith.constant 0 : index
    %184 = tpu.strided_load %arg16[%c38, %c0_143] {strides = array<i32: 2, 1>} : memref<648x128xf32, #tpu.memory_space<vmem>>, vector<8x128xf32>
    %185 = arith.truncf %184 : vector<8x128xf32> to vector<8x128xbf16>
    %c0_144 = arith.constant 0 : index
    %c1024 = arith.constant 1024 : index
    %186 = vector.load %arg19[%c0_144, %c1024] : memref<128x1152xbf16, #tpu.memory_space<vmem>>, vector<8x128xbf16>
    tpu.vector_store %arg19[%c0_144, %c1024], %185 {strides = array<i32>} : memref<128x1152xbf16, #tpu.memory_space<vmem>>, vector<8x128xbf16>,
    %c36_145 = arith.constant 36 : index
    %c0_146 = arith.constant 0 : index
    %187 = tpu.strided_load %arg16[%c36_145, %c0_146] {strides = array<i32: 2, 1>} : memref<648x128xf32, #tpu.memory_space<vmem>>, vector<8x128xf32>
    %188 = arith.truncf %187 : vector<8x128xf32> to vector<8x128xbf16>
    %c8 = arith.constant 8 : index
    %c0_147 = arith.constant 0 : index
    %189 = vector.load %arg19[%c8, %c0_147] : memref<128x1152xbf16, #tpu.memory_space<vmem>>, vector<8x128xbf16>
    tpu.vector_store %arg19[%c8, %c0_147], %188 {strides = array<i32>} : memref<128x1152xbf16, #tpu.memory_space<vmem>>, vector<8x128xbf16>,
    %c37_148 = arith.constant 37 : index
    %c0_149 = arith.constant 0 : index
    %190 = tpu.strided_load %arg16[%c37_148, %c0_149] {strides = array<i32: 2, 1>} : memref<648x128xf32, #tpu.memory_space<vmem>>, vector<8x128xf32>
    %191 = arith.truncf %190 : vector<8x128xf32> to vector<8x128xbf16>
    %c8_150 = arith.constant 8 : index
    %c128_151 = arith.constant 128 : index
    %192 = vector.load %arg19[%c8_150, %c128_151] : memref<128x1152xbf16, #tpu.memory_space<vmem>>, vector<8x128xbf16>
    tpu.vector_store %arg19[%c8_150, %c128_151], %191 {strides = array<i32>} : memref<128x1152xbf16, #tpu.memory_space<vmem>>, vector<8x128xbf16>,
    %c38_152 = arith.constant 38 : index
    %c0_153 = arith.constant 0 : index
    %193 = tpu.strided_load %arg16[%c38_152, %c0_153] {strides = array<i32: 2, 1>} : memref<648x128xf32, #tpu.memory_space<vmem>>, vector<8x128xf32>
    %194 = arith.truncf %193 : vector<8x128xf32> to vector<8x128xbf16>
    %c8_154 = arith.constant 8 : index
    %c256_155 = arith.constant 256 : index
    %195 = vector.load %arg19[%c8_154, %c256_155] : memref<128x1152xbf16, #tpu.memory_space<vmem>>, vector<8x128xbf16>
    tpu.vector_store %arg19[%c8_154, %c256_155], %194 {strides = array<i32>} : memref<128x1152xbf16, #tpu.memory_space<vmem>>, vector<8x128xbf16>,
    %c54 = arith.constant 54 : index
    %c0_156 = arith.constant 0 : index
    %196 = tpu.strided_load %arg16[%c54, %c0_156] {strides = array<i32: 2, 1>} : memref<648x128xf32, #tpu.memory_space<vmem>>, vector<8x128xf32>
    %197 = arith.truncf %196 : vector<8x128xf32> to vector<8x128xbf16>
    %c8_157 = arith.constant 8 : index
    %c384_158 = arith.constant 384 : index
    %198 = vector.load %arg19[%c8_157, %c384_158] : memref<128x1152xbf16, #tpu.memory_space<vmem>>, vector<8x128xbf16>
    tpu.vector_store %arg19[%c8_157, %c384_158], %197 {strides = array<i32>} : memref<128x1152xbf16, #tpu.memory_space<vmem>>, vector<8x128xbf16>,
    %c55_159 = arith.constant 55 : index
    %c0_160 = arith.constant 0 : index
    %199 = tpu.strided_load %arg16[%c55_159, %c0_160] {strides = array<i32: 2, 1>} : memref<648x128xf32, #tpu.memory_space<vmem>>, vector<8x128xf32>
    %200 = arith.truncf %199 : vector<8x128xf32> to vector<8x128xbf16>
    %c8_161 = arith.constant 8 : index
    %c512_162 = arith.constant 512 : index
    %201 = vector.load %arg19[%c8_161, %c512_162] : memref<128x1152xbf16, #tpu.memory_space<vmem>>, vector<8x128xbf16>
    tpu.vector_store %arg19[%c8_161, %c512_162], %200 {strides = array<i32>} : memref<128x1152xbf16, #tpu.memory_space<vmem>>, vector<8x128xbf16>,
    %c56 = arith.constant 56 : index
    %c0_163 = arith.constant 0 : index
    %202 = tpu.strided_load %arg16[%c56, %c0_163] {strides = array<i32: 2, 1>} : memref<648x128xf32, #tpu.memory_space<vmem>>, vector<8x128xf32>
    %203 = arith.truncf %202 : vector<8x128xf32> to vector<8x128xbf16>
    %c8_164 = arith.constant 8 : index
    %c640_165 = arith.constant 640 : index
    %204 = vector.load %arg19[%c8_164, %c640_165] : memref<128x1152xbf16, #tpu.memory_space<vmem>>, vector<8x128xbf16>
    tpu.vector_store %arg19[%c8_164, %c640_165], %203 {strides = array<i32>} : memref<128x1152xbf16, #tpu.memory_space<vmem>>, vector<8x128xbf16>,
    %c72 = arith.constant 72 : index
    %c0_166 = arith.constant 0 : index
    %205 = tpu.strided_load %arg16[%c72, %c0_166] {strides = array<i32: 2, 1>} : memref<648x128xf32, #tpu.memory_space<vmem>>, vector<8x128xf32>
    %206 = arith.truncf %205 : vector<8x128xf32> to vector<8x128xbf16>
    %c8_167 = arith.constant 8 : index
    %c768_168 = arith.constant 768 : index
    %207 = vector.load %arg19[%c8_167, %c768_168] : memref<128x1152xbf16, #tpu.memory_space<vmem>>, vector<8x128xbf16>
    tpu.vector_store %arg19[%c8_167, %c768_168], %206 {strides = array<i32>} : memref<128x1152xbf16, #tpu.memory_space<vmem>>, vector<8x128xbf16>,
    %c73_169 = arith.constant 73 : index
    %c0_170 = arith.constant 0 : index
    %208 = tpu.strided_load %arg16[%c73_169, %c0_170] {strides = array<i32: 2, 1>} : memref<648x128xf32, #tpu.memory_space<vmem>>, vector<8x128xf32>
    %209 = arith.truncf %208 : vector<8x128xf32> to vector<8x128xbf16>
    %c8_171 = arith.constant 8 : index
    %c896_172 = arith.constant 896 : index
    %210 = vector.load %arg19[%c8_171, %c896_172] : memref<128x1152xbf16, #tpu.memory_space<vmem>>, vector<8x128xbf16>
    tpu.vector_store %arg19[%c8_171, %c896_172], %209 {strides = array<i32>} : memref<128x1152xbf16, #tpu.memory_space<vmem>>, vector<8x128xbf16>,
    %c74 = arith.constant 74 : index
    %c0_173 = arith.constant 0 : index
    %211 = tpu.strided_load %arg16[%c74, %c0_173] {strides = array<i32: 2, 1>} : memref<648x128xf32, #tpu.memory_space<vmem>>, vector<8x128xf32>
    %212 = arith.truncf %211 : vector<8x128xf32> to vector<8x128xbf16>
    %c8_174 = arith.constant 8 : index
    %c1024_175 = arith.constant 1024 : index
    %213 = vector.load %arg19[%c8_174, %c1024_175] : memref<128x1152xbf16, #tpu.memory_space<vmem>>, vector<8x128xbf16>
    tpu.vector_store %arg19[%c8_174, %c1024_175], %212 {strides = array<i32>} : memref<128x1152xbf16, #tpu.memory_space<vmem>>, vector<8x128xbf16>,
    %c72_176 = arith.constant 72 : index
    %c0_177 = arith.constant 0 : index
    %214 = tpu.strided_load %arg16[%c72_176, %c0_177] {strides = array<i32: 2, 1>} : memref<648x128xf32, #tpu.memory_space<vmem>>, vector<8x128xf32>
    %215 = arith.truncf %214 : vector<8x128xf32> to vector<8x128xbf16>
    %c16 = arith.constant 16 : index
    %c0_178 = arith.constant 0 : index
    %216 = vector.load %arg19[%c16, %c0_178] : memref<128x1152xbf16, #tpu.memory_space<vmem>>, vector<8x128xbf16>
    tpu.vector_store %arg19[%c16, %c0_178], %215 {strides = array<i32>} : memref<128x1152xbf16, #tpu.memory_space<vmem>>, vector<8x128xbf16>,
    %c73_179 = arith.constant 73 : index
    %c0_180 = arith.constant 0 : index
    %217 = tpu.strided_load %arg16[%c73_179, %c0_180] {strides = array<i32: 2, 1>} : memref<648x128xf32, #tpu.memory_space<vmem>>, vector<8x128xf32>
    %218 = arith.truncf %217 : vector<8x128xf32> to vector<8x128xbf16>
    %c16_181 = arith.constant 16 : index
    %c128_182 = arith.constant 128 : index
    %219 = vector.load %arg19[%c16_181, %c128_182] : memref<128x1152xbf16, #tpu.memory_space<vmem>>, vector<8x128xbf16>
    tpu.vector_store %arg19[%c16_181, %c128_182], %218 {strides = array<i32>} : memref<128x1152xbf16, #tpu.memory_space<vmem>>, vector<8x128xbf16>,
    %c74_183 = arith.constant 74 : index
    %c0_184 = arith.constant 0 : index
    %220 = tpu.strided_load %arg16[%c74_183, %c0_184] {strides = array<i32: 2, 1>} : memref<648x128xf32, #tpu.memory_space<vmem>>, vector<8x128xf32>
    %221 = arith.truncf %220 : vector<8x128xf32> to vector<8x128xbf16>
    %c16_185 = arith.constant 16 : index
    %c256_186 = arith.constant 256 : index
    %222 = vector.load %arg19[%c16_185, %c256_186] : memref<128x1152xbf16, #tpu.memory_space<vmem>>, vector<8x128xbf16>
    tpu.vector_store %arg19[%c16_185, %c256_186], %221 {strides = array<i32>} : memref<128x1152xbf16, #tpu.memory_space<vmem>>, vector<8x128xbf16>,
    %c90 = arith.constant 90 : index
    %c0_187 = arith.constant 0 : index
    %223 = tpu.strided_load %arg16[%c90, %c0_187] {strides = array<i32: 2, 1>} : memref<648x128xf32, #tpu.memory_space<vmem>>, vector<8x128xf32>
    %224 = arith.truncf %223 : vector<8x128xf32> to vector<8x128xbf16>
    %c16_188 = arith.constant 16 : index
    %c384_189 = arith.constant 384 : index
    %225 = vector.load %arg19[%c16_188, %c384_189] : memref<128x1152xbf16, #tpu.memory_space<vmem>>, vector<8x128xbf16>
    tpu.vector_store %arg19[%c16_188, %c384_189], %224 {strides = array<i32>} : memref<128x1152xbf16, #tpu.memory_space<vmem>>, vector<8x128xbf16>,
    %c91_190 = arith.constant 91 : index
    %c0_191 = arith.constant 0 : index
    %226 = tpu.strided_load %arg16[%c91_190, %c0_191] {strides = array<i32: 2, 1>} : memref<648x128xf32, #tpu.memory_space<vmem>>, vector<8x128xf32>
    %227 = arith.truncf %226 : vector<8x128xf32> to vector<8x128xbf16>
    %c16_192 = arith.constant 16 : index
    %c512_193 = arith.constant 512 : index
    %228 = vector.load %arg19[%c16_192, %c512_193] : memref<128x1152xbf16, #tpu.memory_space<vmem>>, vector<8x128xbf16>
    tpu.vector_store %arg19[%c16_192, %c512_193], %227 {strides = array<i32>} : memref<128x1152xbf16, #tpu.memory_space<vmem>>, vector<8x128xbf16>,
    %c92 = arith.constant 92 : index
    %c0_194 = arith.constant 0 : index
    %229 = tpu.strided_load %arg16[%c92, %c0_194] {strides = array<i32: 2, 1>} : memref<648x128xf32, #tpu.memory_space<vmem>>, vector<8x128xf32>
    %230 = arith.truncf %229 : vector<8x128xf32> to vector<8x128xbf16>
    %c16_195 = arith.constant 16 : index
    %c640_196 = arith.constant 640 : index
    %231 = vector.load %arg19[%c16_195, %c640_196] : memref<128x1152xbf16, #tpu.memory_space<vmem>>, vector<8x128xbf16>
    tpu.vector_store %arg19[%c16_195, %c640_196], %230 {strides = array<i32>} : memref<128x1152xbf16, #tpu.memory_space<vmem>>, vector<8x128xbf16>,
    %c108 = arith.constant 108 : index
    %c0_197 = arith.constant 0 : index
    %232 = tpu.strided_load %arg16[%c108, %c0_197] {strides = array<i32: 2, 1>} : memref<648x128xf32, #tpu.memory_space<vmem>>, vector<8x128xf32>
    %233 = arith.truncf %232 : vector<8x128xf32> to vector<8x128xbf16>
    %c16_198 = arith.constant 16 : index
    %c768_199 = arith.constant 768 : index
    %234 = vector.load %arg19[%c16_198, %c768_199] : memref<128x1152xbf16, #tpu.memory_space<vmem>>, vector<8x128xbf16>
    tpu.vector_store %arg19[%c16_198, %c768_199], %233 {strides = array<i32>} : memref<128x1152xbf16, #tpu.memory_space<vmem>>, vector<8x128xbf16>,
    %c109_200 = arith.constant 109 : index
    %c0_201 = arith.constant 0 : index
    %235 = tpu.strided_load %arg16[%c109_200, %c0_201] {strides = array<i32: 2, 1>} : memref<648x128xf32, #tpu.memory_space<vmem>>, vector<8x128xf32>
    %236 = arith.truncf %235 : vector<8x128xf32> to vector<8x128xbf16>
    %c16_202 = arith.constant 16 : index
    %c896_203 = arith.constant 896 : index
    %237 = vector.load %arg19[%c16_202, %c896_203] : memref<128x1152xbf16, #tpu.memory_space<vmem>>, vector<8x128xbf16>
    tpu.vector_store %arg19[%c16_202, %c896_203], %236 {strides = array<i32>} : memref<128x1152xbf16, #tpu.memory_space<vmem>>, vector<8x128xbf16>,
    %c110 = arith.constant 110 : index
    %c0_204 = arith.constant 0 : index
    %238 = tpu.strided_load %arg16[%c110, %c0_204] {strides = array<i32: 2, 1>} : memref<648x128xf32, #tpu.memory_space<vmem>>, vector<8x128xf32>
    %239 = arith.truncf %238 : vector<8x128xf32> to vector<8x128xbf16>
    %c16_205 = arith.constant 16 : index
    %c1024_206 = arith.constant 1024 : index
    %240 = vector.load %arg19[%c16_205, %c1024_206] : memref<128x1152xbf16, #tpu.memory_space<vmem>>, vector<8x128xbf16>
    tpu.vector_store %arg19[%c16_205, %c1024_206], %239 {strides = array<i32>} : memref<128x1152xbf16, #tpu.memory_space<vmem>>, vector<8x128xbf16>,
    %c108_207 = arith.constant 108 : index
    %c0_208 = arith.constant 0 : index
    %241 = tpu.strided_load %arg16[%c108_207, %c0_208] {strides = array<i32: 2, 1>} : memref<648x128xf32, #tpu.memory_space<vmem>>, vector<8x128xf32>
    %242 = arith.truncf %241 : vector<8x128xf32> to vector<8x128xbf16>
    %c24 = arith.constant 24 : index
    %c0_209 = arith.constant 0 : index
    %243 = vector.load %arg19[%c24, %c0_209] : memref<128x1152xbf16, #tpu.memory_space<vmem>>, vector<8x128xbf16>
    tpu.vector_store %arg19[%c24, %c0_209], %242 {strides = array<i32>} : memref<128x1152xbf16, #tpu.memory_space<vmem>>, vector<8x128xbf16>,
    %c109_210 = arith.constant 109 : index
    %c0_211 = arith.constant 0 : index
    %244 = tpu.strided_load %arg16[%c109_210, %c0_211] {strides = array<i32: 2, 1>} : memref<648x128xf32, #tpu.memory_space<vmem>>, vector<8x128xf32>
    %245 = arith.truncf %244 : vector<8x128xf32> to vector<8x128xbf16>
    %c24_212 = arith.constant 24 : index
    %c128_213 = arith.constant 128 : index
    %246 = vector.load %arg19[%c24_212, %c128_213] : memref<128x1152xbf16, #tpu.memory_space<vmem>>, vector<8x128xbf16>
    tpu.vector_store %arg19[%c24_212, %c128_213], %245 {strides = array<i32>} : memref<128x1152xbf16, #tpu.memory_space<vmem>>, vector<8x128xbf16>,
    %c110_214 = arith.constant 110 : index
    %c0_215 = arith.constant 0 : index
    %247 = tpu.strided_load %arg16[%c110_214, %c0_215] {strides = array<i32: 2, 1>} : memref<648x128xf32, #tpu.memory_space<vmem>>, vector<8x128xf32>
    %248 = arith.truncf %247 : vector<8x128xf32> to vector<8x128xbf16>
    %c24_216 = arith.constant 24 : index
    %c256_217 = arith.constant 256 : index
    %249 = vector.load %arg19[%c24_216, %c256_217] : memref<128x1152xbf16, #tpu.memory_space<vmem>>, vector<8x128xbf16>
    tpu.vector_store %arg19[%c24_216, %c256_217], %248 {strides = array<i32>} : memref<128x1152xbf16, #tpu.memory_space<vmem>>, vector<8x128xbf16>,
    %c126 = arith.constant 126 : index
    %c0_218 = arith.constant 0 : index
    %250 = tpu.strided_load %arg16[%c126, %c0_218] {strides = array<i32: 2, 1>} : memref<648x128xf32, #tpu.memory_space<vmem>>, vector<8x128xf32>
    %251 = arith.truncf %250 : vector<8x128xf32> to vector<8x128xbf16>
    %c24_219 = arith.constant 24 : index
    %c384_220 = arith.constant 384 : index
    %252 = vector.load %arg19[%c24_219, %c384_220] : memref<128x1152xbf16, #tpu.memory_space<vmem>>, vector<8x128xbf16>
    tpu.vector_store %arg19[%c24_219, %c384_220], %251 {strides = array<i32>} : memref<128x1152xbf16, #tpu.memory_space<vmem>>, vector<8x128xbf16>,
    %c127_221 = arith.constant 127 : index
    %c0_222 = arith.constant 0 : index
    %253 = tpu.strided_load %arg16[%c127_221, %c0_222] {strides = array<i32: 2, 1>} : memref<648x128xf32, #tpu.memory_space<vmem>>, vector<8x128xf32>
    %254 = arith.truncf %253 : vector<8x128xf32> to vector<8x128xbf16>
    %c24_223 = arith.constant 24 : index
    %c512_224 = arith.constant 512 : index
    %255 = vector.load %arg19[%c24_223, %c512_224] : memref<128x1152xbf16, #tpu.memory_space<vmem>>, vector<8x128xbf16>
    tpu.vector_store %arg19[%c24_223, %c512_224], %254 {strides = array<i32>} : memref<128x1152xbf16, #tpu.memory_space<vmem>>, vector<8x128xbf16>,
    %c128_225 = arith.constant 128 : index
    %c0_226 = arith.constant 0 : index
    %256 = tpu.strided_load %arg16[%c128_225, %c0_226] {strides = array<i32: 2, 1>} : memref<648x128xf32, #tpu.memory_space<vmem>>, vector<8x128xf32>
    %257 = arith.truncf %256 : vector<8x128xf32> to vector<8x128xbf16>
    %c24_227 = arith.constant 24 : index
    %c640_228 = arith.constant 640 : index
    %258 = vector.load %arg19[%c24_227, %c640_228] : memref<128x1152xbf16, #tpu.memory_space<vmem>>, vector<8x128xbf16>
    tpu.vector_store %arg19[%c24_227, %c640_228], %257 {strides = array<i32>} : memref<128x1152xbf16, #tpu.memory_space<vmem>>, vector<8x128xbf16>,
    %c144 = arith.constant 144 : index
    %c0_229 = arith.constant 0 : index
    %259 = tpu.strided_load %arg16[%c144, %c0_229] {strides = array<i32: 2, 1>} : memref<648x128xf32, #tpu.memory_space<vmem>>, vector<8x128xf32>
    %260 = arith.truncf %259 : vector<8x128xf32> to vector<8x128xbf16>
    %c24_230 = arith.constant 24 : index
    %c768_231 = arith.constant 768 : index
    %261 = vector.load %arg19[%c24_230, %c768_231] : memref<128x1152xbf16, #tpu.memory_space<vmem>>, vector<8x128xbf16>
    tpu.vector_store %arg19[%c24_230, %c768_231], %260 {strides = array<i32>} : memref<128x1152xbf16, #tpu.memory_space<vmem>>, vector<8x128xbf16>,
    %c145_232 = arith.constant 145 : index
    %c0_233 = arith.constant 0 : index
    %262 = tpu.strided_load %arg16[%c145_232, %c0_233] {strides = array<i32: 2, 1>} : memref<648x128xf32, #tpu.memory_space<vmem>>, vector<8x128xf32>
    %263 = arith.truncf %262 : vector<8x128xf32> to vector<8x128xbf16>
    %c24_234 = arith.constant 24 : index
    %c896_235 = arith.constant 896 : index
    %264 = vector.load %arg19[%c24_234, %c896_235] : memref<128x1152xbf16, #tpu.memory_space<vmem>>, vector<8x128xbf16>
    tpu.vector_store %arg19[%c24_234, %c896_235], %263 {strides = array<i32>} : memref<128x1152xbf16, #tpu.memory_space<vmem>>, vector<8x128xbf16>,
    %c146 = arith.constant 146 : index
    %c0_236 = arith.constant 0 : index
    %265 = tpu.strided_load %arg16[%c146, %c0_236] {strides = array<i32: 2, 1>} : memref<648x128xf32, #tpu.memory_space<vmem>>, vector<8x128xf32>
    %266 = arith.truncf %265 : vector<8x128xf32> to vector<8x128xbf16>
    %c24_237 = arith.constant 24 : index
    %c1024_238 = arith.constant 1024 : index
    %267 = vector.load %arg19[%c24_237, %c1024_238] : memref<128x1152xbf16, #tpu.memory_space<vmem>>, vector<8x128xbf16>
    tpu.vector_store %arg19[%c24_237, %c1024_238], %266 {strides = array<i32>} : memref<128x1152xbf16, #tpu.memory_space<vmem>>, vector<8x128xbf16>,
    %c144_239 = arith.constant 144 : index
    %c0_240 = arith.constant 0 : index
    %268 = tpu.strided_load %arg16[%c144_239, %c0_240] {strides = array<i32: 2, 1>} : memref<648x128xf32, #tpu.memory_space<vmem>>, vector<8x128xf32>
    %269 = arith.truncf %268 : vector<8x128xf32> to vector<8x128xbf16>
    %c32 = arith.constant 32 : index
    %c0_241 = arith.constant 0 : index
    %270 = vector.load %arg19[%c32, %c0_241] : memref<128x1152xbf16, #tpu.memory_space<vmem>>, vector<8x128xbf16>
    tpu.vector_store %arg19[%c32, %c0_241], %269 {strides = array<i32>} : memref<128x1152xbf16, #tpu.memory_space<vmem>>, vector<8x128xbf16>,
    %c145_242 = arith.constant 145 : index
    %c0_243 = arith.constant 0 : index
    %271 = tpu.strided_load %arg16[%c145_242, %c0_243] {strides = array<i32: 2, 1>} : memref<648x128xf32, #tpu.memory_space<vmem>>, vector<8x128xf32>
    %272 = arith.truncf %271 : vector<8x128xf32> to vector<8x128xbf16>
    %c32_244 = arith.constant 32 : index
    %c128_245 = arith.constant 128 : index
    %273 = vector.load %arg19[%c32_244, %c128_245] : memref<128x1152xbf16, #tpu.memory_space<vmem>>, vector<8x128xbf16>
    tpu.vector_store %arg19[%c32_244, %c128_245], %272 {strides = array<i32>} : memref<128x1152xbf16, #tpu.memory_space<vmem>>, vector<8x128xbf16>,
    %c146_246 = arith.constant 146 : index
    %c0_247 = arith.constant 0 : index
    %274 = tpu.strided_load %arg16[%c146_246, %c0_247] {strides = array<i32: 2, 1>} : memref<648x128xf32, #tpu.memory_space<vmem>>, vector<8x128xf32>
    %275 = arith.truncf %274 : vector<8x128xf32> to vector<8x128xbf16>
    %c32_248 = arith.constant 32 : index
    %c256_249 = arith.constant 256 : index
    %276 = vector.load %arg19[%c32_248, %c256_249] : memref<128x1152xbf16, #tpu.memory_space<vmem>>, vector<8x128xbf16>
    tpu.vector_store %arg19[%c32_248, %c256_249], %275 {strides = array<i32>} : memref<128x1152xbf16, #tpu.memory_space<vmem>>, vector<8x128xbf16>,
    %c162 = arith.constant 162 : index
    %c0_250 = arith.constant 0 : index
    %277 = tpu.strided_load %arg16[%c162, %c0_250] {strides = array<i32: 2, 1>} : memref<648x128xf32, #tpu.memory_space<vmem>>, vector<8x128xf32>
    %278 = arith.truncf %277 : vector<8x128xf32> to vector<8x128xbf16>
    %c32_251 = arith.constant 32 : index
    %c384_252 = arith.constant 384 : index
    %279 = vector.load %arg19[%c32_251, %c384_252] : memref<128x1152xbf16, #tpu.memory_space<vmem>>, vector<8x128xbf16>
    tpu.vector_store %arg19[%c32_251, %c384_252], %278 {strides = array<i32>} : memref<128x1152xbf16, #tpu.memory_space<vmem>>, vector<8x128xbf16>,
    %c163_253 = arith.constant 163 : index
    %c0_254 = arith.constant 0 : index
    %280 = tpu.strided_load %arg16[%c163_253, %c0_254] {strides = array<i32: 2, 1>} : memref<648x128xf32, #tpu.memory_space<vmem>>, vector<8x128xf32>
    %281 = arith.truncf %280 : vector<8x128xf32> to vector<8x128xbf16>
    %c32_255 = arith.constant 32 : index
    %c512_256 = arith.constant 512 : index
    %282 = vector.load %arg19[%c32_255, %c512_256] : memref<128x1152xbf16, #tpu.memory_space<vmem>>, vector<8x128xbf16>
    tpu.vector_store %arg19[%c32_255, %c512_256], %281 {strides = array<i32>} : memref<128x1152xbf16, #tpu.memory_space<vmem>>, vector<8x128xbf16>,
    %c164 = arith.constant 164 : index
    %c0_257 = arith.constant 0 : index
    %283 = tpu.strided_load %arg16[%c164, %c0_257] {strides = array<i32: 2, 1>} : memref<648x128xf32, #tpu.memory_space<vmem>>, vector<8x128xf32>
    %284 = arith.truncf %283 : vector<8x128xf32> to vector<8x128xbf16>
    %c32_258 = arith.constant 32 : index
    %c640_259 = arith.constant 640 : index
    %285 = vector.load %arg19[%c32_258, %c640_259] : memref<128x1152xbf16, #tpu.memory_space<vmem>>, vector<8x128xbf16>
    tpu.vector_store %arg19[%c32_258, %c640_259], %284 {strides = array<i32>} : memref<128x1152xbf16, #tpu.memory_space<vmem>>, vector<8x128xbf16>,
    %c180 = arith.constant 180 : index
    %c0_260 = arith.constant 0 : index
    %286 = tpu.strided_load %arg16[%c180, %c0_260] {strides = array<i32: 2, 1>} : memref<648x128xf32, #tpu.memory_space<vmem>>, vector<8x128xf32>
    %287 = arith.truncf %286 : vector<8x128xf32> to vector<8x128xbf16>
    %c32_261 = arith.constant 32 : index
    %c768_262 = arith.constant 768 : index
    %288 = vector.load %arg19[%c32_261, %c768_262] : memref<128x1152xbf16, #tpu.memory_space<vmem>>, vector<8x128xbf16>
    tpu.vector_store %arg19[%c32_261, %c768_262], %287 {strides = array<i32>} : memref<128x1152xbf16, #tpu.memory_space<vmem>>, vector<8x128xbf16>,
    %c181_263 = arith.constant 181 : index
    %c0_264 = arith.constant 0 : index
    %289 = tpu.strided_load %arg16[%c181_263, %c0_264] {strides = array<i32: 2, 1>} : memref<648x128xf32, #tpu.memory_space<vmem>>, vector<8x128xf32>
    %290 = arith.truncf %289 : vector<8x128xf32> to vector<8x128xbf16>
    %c32_265 = arith.constant 32 : index
    %c896_266 = arith.constant 896 : index
    %291 = vector.load %arg19[%c32_265, %c896_266] : memref<128x1152xbf16, #tpu.memory_space<vmem>>, vector<8x128xbf16>
    tpu.vector_store %arg19[%c32_265, %c896_266], %290 {strides = array<i32>} : memref<128x1152xbf16, #tpu.memory_space<vmem>>, vector<8x128xbf16>,
    %c182 = arith.constant 182 : index
    %c0_267 = arith.constant 0 : index
    %292 = tpu.strided_load %arg16[%c182, %c0_267] {strides = array<i32: 2, 1>} : memref<648x128xf32, #tpu.memory_space<vmem>>, vector<8x128xf32>
    %293 = arith.truncf %292 : vector<8x128xf32> to vector<8x128xbf16>
    %c32_268 = arith.constant 32 : index
    %c1024_269 = arith.constant 1024 : index
    %294 = vector.load %arg19[%c32_268, %c1024_269] : memref<128x1152xbf16, #tpu.memory_space<vmem>>, vector<8x128xbf16>
    tpu.vector_store %arg19[%c32_268, %c1024_269], %293 {strides = array<i32>} : memref<128x1152xbf16, #tpu.memory_space<vmem>>, vector<8x128xbf16>,
    %c180_270 = arith.constant 180 : index
    %c0_271 = arith.constant 0 : index
    %295 = tpu.strided_load %arg16[%c180_270, %c0_271] {strides = array<i32: 2, 1>} : memref<648x128xf32, #tpu.memory_space<vmem>>, vector<8x128xf32>
    %296 = arith.truncf %295 : vector<8x128xf32> to vector<8x128xbf16>
    %c40 = arith.constant 40 : index
    %c0_272 = arith.constant 0 : index
    %297 = vector.load %arg19[%c40, %c0_272] : memref<128x1152xbf16, #tpu.memory_space<vmem>>, vector<8x128xbf16>
    tpu.vector_store %arg19[%c40, %c0_272], %296 {strides = array<i32>} : memref<128x1152xbf16, #tpu.memory_space<vmem>>, vector<8x128xbf16>,
    %c181_273 = arith.constant 181 : index
    %c0_274 = arith.constant 0 : index
    %298 = tpu.strided_load %arg16[%c181_273, %c0_274] {strides = array<i32: 2, 1>} : memref<648x128xf32, #tpu.memory_space<vmem>>, vector<8x128xf32>
    %299 = arith.truncf %298 : vector<8x128xf32> to vector<8x128xbf16>
    %c40_275 = arith.constant 40 : index
    %c128_276 = arith.constant 128 : index
    %300 = vector.load %arg19[%c40_275, %c128_276] : memref<128x1152xbf16, #tpu.memory_space<vmem>>, vector<8x128xbf16>
    tpu.vector_store %arg19[%c40_275, %c128_276], %299 {strides = array<i32>} : memref<128x1152xbf16, #tpu.memory_space<vmem>>, vector<8x128xbf16>,
    %c182_277 = arith.constant 182 : index
    %c0_278 = arith.constant 0 : index
    %301 = tpu.strided_load %arg16[%c182_277, %c0_278] {strides = array<i32: 2, 1>} : memref<648x128xf32, #tpu.memory_space<vmem>>, vector<8x128xf32>
    %302 = arith.truncf %301 : vector<8x128xf32> to vector<8x128xbf16>
    %c40_279 = arith.constant 40 : index
    %c256_280 = arith.constant 256 : index
    %303 = vector.load %arg19[%c40_279, %c256_280] : memref<128x1152xbf16, #tpu.memory_space<vmem>>, vector<8x128xbf16>
    tpu.vector_store %arg19[%c40_279, %c256_280], %302 {strides = array<i32>} : memref<128x1152xbf16, #tpu.memory_space<vmem>>, vector<8x128xbf16>,
    %c198 = arith.constant 198 : index
    %c0_281 = arith.constant 0 : index
    %304 = tpu.strided_load %arg16[%c198, %c0_281] {strides = array<i32: 2, 1>} : memref<648x128xf32, #tpu.memory_space<vmem>>, vector<8x128xf32>
    %305 = arith.truncf %304 : vector<8x128xf32> to vector<8x128xbf16>
    %c40_282 = arith.constant 40 : index
    %c384_283 = arith.constant 384 : index
    %306 = vector.load %arg19[%c40_282, %c384_283] : memref<128x1152xbf16, #tpu.memory_space<vmem>>, vector<8x128xbf16>
    tpu.vector_store %arg19[%c40_282, %c384_283], %305 {strides = array<i32>} : memref<128x1152xbf16, #tpu.memory_space<vmem>>, vector<8x128xbf16>,
    %c199_284 = arith.constant 199 : index
    %c0_285 = arith.constant 0 : index
    %307 = tpu.strided_load %arg16[%c199_284, %c0_285] {strides = array<i32: 2, 1>} : memref<648x128xf32, #tpu.memory_space<vmem>>, vector<8x128xf32>
    %308 = arith.truncf %307 : vector<8x128xf32> to vector<8x128xbf16>
    %c40_286 = arith.constant 40 : index
    %c512_287 = arith.constant 512 : index
    %309 = vector.load %arg19[%c40_286, %c512_287] : memref<128x1152xbf16, #tpu.memory_space<vmem>>, vector<8x128xbf16>
    tpu.vector_store %arg19[%c40_286, %c512_287], %308 {strides = array<i32>} : memref<128x1152xbf16, #tpu.memory_space<vmem>>, vector<8x128xbf16>,
    %c200 = arith.constant 200 : index
    %c0_288 = arith.constant 0 : index
    %310 = tpu.strided_load %arg16[%c200, %c0_288] {strides = array<i32: 2, 1>} : memref<648x128xf32, #tpu.memory_space<vmem>>, vector<8x128xf32>
    %311 = arith.truncf %310 : vector<8x128xf32> to vector<8x128xbf16>
    %c40_289 = arith.constant 40 : index
    %c640_290 = arith.constant 640 : index
    %312 = vector.load %arg19[%c40_289, %c640_290] : memref<128x1152xbf16, #tpu.memory_space<vmem>>, vector<8x128xbf16>
    tpu.vector_store %arg19[%c40_289, %c640_290], %311 {strides = array<i32>} : memref<128x1152xbf16, #tpu.memory_space<vmem>>, vector<8x128xbf16>,
    %c216 = arith.constant 216 : index
    %c0_291 = arith.constant 0 : index
    %313 = tpu.strided_load %arg16[%c216, %c0_291] {strides = array<i32: 2, 1>} : memref<648x128xf32, #tpu.memory_space<vmem>>, vector<8x128xf32>
    %314 = arith.truncf %313 : vector<8x128xf32> to vector<8x128xbf16>
    %c40_292 = arith.constant 40 : index
    %c768_293 = arith.constant 768 : index
    %315 = vector.load %arg19[%c40_292, %c768_293] : memref<128x1152xbf16, #tpu.memory_space<vmem>>, vector<8x128xbf16>
    tpu.vector_store %arg19[%c40_292, %c768_293], %314 {strides = array<i32>} : memref<128x1152xbf16, #tpu.memory_space<vmem>>, vector<8x128xbf16>,
    %c217_294 = arith.constant 217 : index
    %c0_295 = arith.constant 0 : index
    %316 = tpu.strided_load %arg16[%c217_294, %c0_295] {strides = array<i32: 2, 1>} : memref<648x128xf32, #tpu.memory_space<vmem>>, vector<8x128xf32>
    %317 = arith.truncf %316 : vector<8x128xf32> to vector<8x128xbf16>
    %c40_296 = arith.constant 40 : index
    %c896_297 = arith.constant 896 : index
    %318 = vector.load %arg19[%c40_296, %c896_297] : memref<128x1152xbf16, #tpu.memory_space<vmem>>, vector<8x128xbf16>
    tpu.vector_store %arg19[%c40_296, %c896_297], %317 {strides = array<i32>} : memref<128x1152xbf16, #tpu.memory_space<vmem>>, vector<8x128xbf16>,
    %c218 = arith.constant 218 : index
    %c0_298 = arith.constant 0 : index
    %319 = tpu.strided_load %arg16[%c218, %c0_298] {strides = array<i32: 2, 1>} : memref<648x128xf32, #tpu.memory_space<vmem>>, vector<8x128xf32>
    %320 = arith.truncf %319 : vector<8x128xf32> to vector<8x128xbf16>
    %c40_299 = arith.constant 40 : index
    %c1024_300 = arith.constant 1024 : index
    %321 = vector.load %arg19[%c40_299, %c1024_300] : memref<128x1152xbf16, #tpu.memory_space<vmem>>, vector<8x128xbf16>
    tpu.vector_store %arg19[%c40_299, %c1024_300], %320 {strides = array<i32>} : memref<128x1152xbf16, #tpu.memory_space<vmem>>, vector<8x128xbf16>,
    %c216_301 = arith.constant 216 : index
    %c0_302 = arith.constant 0 : index
    %322 = tpu.strided_load %arg16[%c216_301, %c0_302] {strides = array<i32: 2, 1>} : memref<648x128xf32, #tpu.memory_space<vmem>>, vector<8x128xf32>
    %323 = arith.truncf %322 : vector<8x128xf32> to vector<8x128xbf16>
    %c48 = arith.constant 48 : index
    %c0_303 = arith.constant 0 : index
    %324 = vector.load %arg19[%c48, %c0_303] : memref<128x1152xbf16, #tpu.memory_space<vmem>>, vector<8x128xbf16>
    tpu.vector_store %arg19[%c48, %c0_303], %323 {strides = array<i32>} : memref<128x1152xbf16, #tpu.memory_space<vmem>>, vector<8x128xbf16>,
    %c217_304 = arith.constant 217 : index
    %c0_305 = arith.constant 0 : index
    %325 = tpu.strided_load %arg16[%c217_304, %c0_305] {strides = array<i32: 2, 1>} : memref<648x128xf32, #tpu.memory_space<vmem>>, vector<8x128xf32>
    %326 = arith.truncf %325 : vector<8x128xf32> to vector<8x128xbf16>
    %c48_306 = arith.constant 48 : index
    %c128_307 = arith.constant 128 : index
    %327 = vector.load %arg19[%c48_306, %c128_307] : memref<128x1152xbf16, #tpu.memory_space<vmem>>, vector<8x128xbf16>
    tpu.vector_store %arg19[%c48_306, %c128_307], %326 {strides = array<i32>} : memref<128x1152xbf16, #tpu.memory_space<vmem>>, vector<8x128xbf16>,
    %c218_308 = arith.constant 218 : index
    %c0_309 = arith.constant 0 : index
    %328 = tpu.strided_load %arg16[%c218_308, %c0_309] {strides = array<i32: 2, 1>} : memref<648x128xf32, #tpu.memory_space<vmem>>, vector<8x128xf32>
    %329 = arith.truncf %328 : vector<8x128xf32> to vector<8x128xbf16>
    %c48_310 = arith.constant 48 : index
    %c256_311 = arith.constant 256 : index
    %330 = vector.load %arg19[%c48_310, %c256_311] : memref<128x1152xbf16, #tpu.memory_space<vmem>>, vector<8x128xbf16>
    tpu.vector_store %arg19[%c48_310, %c256_311], %329 {strides = array<i32>} : memref<128x1152xbf16, #tpu.memory_space<vmem>>, vector<8x128xbf16>,
    %c234 = arith.constant 234 : index
    %c0_312 = arith.constant 0 : index
    %331 = tpu.strided_load %arg16[%c234, %c0_312] {strides = array<i32: 2, 1>} : memref<648x128xf32, #tpu.memory_space<vmem>>, vector<8x128xf32>
    %332 = arith.truncf %331 : vector<8x128xf32> to vector<8x128xbf16>
    %c48_313 = arith.constant 48 : index
    %c384_314 = arith.constant 384 : index
    %333 = vector.load %arg19[%c48_313, %c384_314] : memref<128x1152xbf16, #tpu.memory_space<vmem>>, vector<8x128xbf16>
    tpu.vector_store %arg19[%c48_313, %c384_314], %332 {strides = array<i32>} : memref<128x1152xbf16, #tpu.memory_space<vmem>>, vector<8x128xbf16>,
    %c235_315 = arith.constant 235 : index
    %c0_316 = arith.constant 0 : index
    %334 = tpu.strided_load %arg16[%c235_315, %c0_316] {strides = array<i32: 2, 1>} : memref<648x128xf32, #tpu.memory_space<vmem>>, vector<8x128xf32>
    %335 = arith.truncf %334 : vector<8x128xf32> to vector<8x128xbf16>
    %c48_317 = arith.constant 48 : index
    %c512_318 = arith.constant 512 : index
    %336 = vector.load %arg19[%c48_317, %c512_318] : memref<128x1152xbf16, #tpu.memory_space<vmem>>, vector<8x128xbf16>
    tpu.vector_store %arg19[%c48_317, %c512_318], %335 {strides = array<i32>} : memref<128x1152xbf16, #tpu.memory_space<vmem>>, vector<8x128xbf16>,
    %c236 = arith.constant 236 : index
    %c0_319 = arith.constant 0 : index
    %337 = tpu.strided_load %arg16[%c236, %c0_319] {strides = array<i32: 2, 1>} : memref<648x128xf32, #tpu.memory_space<vmem>>, vector<8x128xf32>
    %338 = arith.truncf %337 : vector<8x128xf32> to vector<8x128xbf16>
    %c48_320 = arith.constant 48 : index
    %c640_321 = arith.constant 640 : index
    %339 = vector.load %arg19[%c48_320, %c640_321] : memref<128x1152xbf16, #tpu.memory_space<vmem>>, vector<8x128xbf16>
    tpu.vector_store %arg19[%c48_320, %c640_321], %338 {strides = array<i32>} : memref<128x1152xbf16, #tpu.memory_space<vmem>>, vector<8x128xbf16>,
    %c252 = arith.constant 252 : index
    %c0_322 = arith.constant 0 : index
    %340 = tpu.strided_load %arg16[%c252, %c0_322] {strides = array<i32: 2, 1>} : memref<648x128xf32, #tpu.memory_space<vmem>>, vector<8x128xf32>
    %341 = arith.truncf %340 : vector<8x128xf32> to vector<8x128xbf16>
    %c48_323 = arith.constant 48 : index
    %c768_324 = arith.constant 768 : index
    %342 = vector.load %arg19[%c48_323, %c768_324] : memref<128x1152xbf16, #tpu.memory_space<vmem>>, vector<8x128xbf16>
    tpu.vector_store %arg19[%c48_323, %c768_324], %341 {strides = array<i32>} : memref<128x1152xbf16, #tpu.memory_space<vmem>>, vector<8x128xbf16>,
    %c253_325 = arith.constant 253 : index
    %c0_326 = arith.constant 0 : index
    %343 = tpu.strided_load %arg16[%c253_325, %c0_326] {strides = array<i32: 2, 1>} : memref<648x128xf32, #tpu.memory_space<vmem>>, vector<8x128xf32>
    %344 = arith.truncf %343 : vector<8x128xf32> to vector<8x128xbf16>
    %c48_327 = arith.constant 48 : index
    %c896_328 = arith.constant 896 : index
    %345 = vector.load %arg19[%c48_327, %c896_328] : memref<128x1152xbf16, #tpu.memory_space<vmem>>, vector<8x128xbf16>
    tpu.vector_store %arg19[%c48_327, %c896_328], %344 {strides = array<i32>} : memref<128x1152xbf16, #tpu.memory_space<vmem>>, vector<8x128xbf16>,
    %c254 = arith.constant 254 : index
    %c0_329 = arith.constant 0 : index
    %346 = tpu.strided_load %arg16[%c254, %c0_329] {strides = array<i32: 2, 1>} : memref<648x128xf32, #tpu.memory_space<vmem>>, vector<8x128xf32>
    %347 = arith.truncf %346 : vector<8x128xf32> to vector<8x128xbf16>
    %c48_330 = arith.constant 48 : index
    %c1024_331 = arith.constant 1024 : index
    %348 = vector.load %arg19[%c48_330, %c1024_331] : memref<128x1152xbf16, #tpu.memory_space<vmem>>, vector<8x128xbf16>
    tpu.vector_store %arg19[%c48_330, %c1024_331], %347 {strides = array<i32>} : memref<128x1152xbf16, #tpu.memory_space<vmem>>, vector<8x128xbf16>,
    %c252_332 = arith.constant 252 : index
    %c0_333 = arith.constant 0 : index
    %349 = tpu.strided_load %arg16[%c252_332, %c0_333] {strides = array<i32: 2, 1>} : memref<648x128xf32, #tpu.memory_space<vmem>>, vector<8x128xf32>
    %350 = arith.truncf %349 : vector<8x128xf32> to vector<8x128xbf16>
    %c56_334 = arith.constant 56 : index
    %c0_335 = arith.constant 0 : index
    %351 = vector.load %arg19[%c56_334, %c0_335] : memref<128x1152xbf16, #tpu.memory_space<vmem>>, vector<8x128xbf16>
    tpu.vector_store %arg19[%c56_334, %c0_335], %350 {strides = array<i32>} : memref<128x1152xbf16, #tpu.memory_space<vmem>>, vector<8x128xbf16>,
    %c253_336 = arith.constant 253 : index
    %c0_337 = arith.constant 0 : index
    %352 = tpu.strided_load %arg16[%c253_336, %c0_337] {strides = array<i32: 2, 1>} : memref<648x128xf32, #tpu.memory_space<vmem>>, vector<8x128xf32>
    %353 = arith.truncf %352 : vector<8x128xf32> to vector<8x128xbf16>
    %c56_338 = arith.constant 56 : index
    %c128_339 = arith.constant 128 : index
    %354 = vector.load %arg19[%c56_338, %c128_339] : memref<128x1152xbf16, #tpu.memory_space<vmem>>, vector<8x128xbf16>
    tpu.vector_store %arg19[%c56_338, %c128_339], %353 {strides = array<i32>} : memref<128x1152xbf16, #tpu.memory_space<vmem>>, vector<8x128xbf16>,
    %c254_340 = arith.constant 254 : index
    %c0_341 = arith.constant 0 : index
    %355 = tpu.strided_load %arg16[%c254_340, %c0_341] {strides = array<i32: 2, 1>} : memref<648x128xf32, #tpu.memory_space<vmem>>, vector<8x128xf32>
    %356 = arith.truncf %355 : vector<8x128xf32> to vector<8x128xbf16>
    %c56_342 = arith.constant 56 : index
    %c256_343 = arith.constant 256 : index
    %357 = vector.load %arg19[%c56_342, %c256_343] : memref<128x1152xbf16, #tpu.memory_space<vmem>>, vector<8x128xbf16>
    tpu.vector_store %arg19[%c56_342, %c256_343], %356 {strides = array<i32>} : memref<128x1152xbf16, #tpu.memory_space<vmem>>, vector<8x128xbf16>,
    %c270 = arith.constant 270 : index
    %c0_344 = arith.constant 0 : index
    %358 = tpu.strided_load %arg16[%c270, %c0_344] {strides = array<i32: 2, 1>} : memref<648x128xf32, #tpu.memory_space<vmem>>, vector<8x128xf32>
    %359 = arith.truncf %358 : vector<8x128xf32> to vector<8x128xbf16>
    %c56_345 = arith.constant 56 : index
    %c384_346 = arith.constant 384 : index
    %360 = vector.load %arg19[%c56_345, %c384_346] : memref<128x1152xbf16, #tpu.memory_space<vmem>>, vector<8x128xbf16>
    tpu.vector_store %arg19[%c56_345, %c384_346], %359 {strides = array<i32>} : memref<128x1152xbf16, #tpu.memory_space<vmem>>, vector<8x128xbf16>,
    %c271_347 = arith.constant 271 : index
    %c0_348 = arith.constant 0 : index
    %361 = tpu.strided_load %arg16[%c271_347, %c0_348] {strides = array<i32: 2, 1>} : memref<648x128xf32, #tpu.memory_space<vmem>>, vector<8x128xf32>
    %362 = arith.truncf %361 : vector<8x128xf32> to vector<8x128xbf16>
    %c56_349 = arith.constant 56 : index
    %c512_350 = arith.constant 512 : index
    %363 = vector.load %arg19[%c56_349, %c512_350] : memref<128x1152xbf16, #tpu.memory_space<vmem>>, vector<8x128xbf16>
    tpu.vector_store %arg19[%c56_349, %c512_350], %362 {strides = array<i32>} : memref<128x1152xbf16, #tpu.memory_space<vmem>>, vector<8x128xbf16>,
    %c272 = arith.constant 272 : index
    %c0_351 = arith.constant 0 : index
    %364 = tpu.strided_load %arg16[%c272, %c0_351] {strides = array<i32: 2, 1>} : memref<648x128xf32, #tpu.memory_space<vmem>>, vector<8x128xf32>
    %365 = arith.truncf %364 : vector<8x128xf32> to vector<8x128xbf16>
    %c56_352 = arith.constant 56 : index
    %c640_353 = arith.constant 640 : index
    %366 = vector.load %arg19[%c56_352, %c640_353] : memref<128x1152xbf16, #tpu.memory_space<vmem>>, vector<8x128xbf16>
    tpu.vector_store %arg19[%c56_352, %c640_353], %365 {strides = array<i32>} : memref<128x1152xbf16, #tpu.memory_space<vmem>>, vector<8x128xbf16>,
    %c288 = arith.constant 288 : index
    %c0_354 = arith.constant 0 : index
    %367 = tpu.strided_load %arg16[%c288, %c0_354] {strides = array<i32: 2, 1>} : memref<648x128xf32, #tpu.memory_space<vmem>>, vector<8x128xf32>
    %368 = arith.truncf %367 : vector<8x128xf32> to vector<8x128xbf16>
    %c56_355 = arith.constant 56 : index
    %c768_356 = arith.constant 768 : index
    %369 = vector.load %arg19[%c56_355, %c768_356] : memref<128x1152xbf16, #tpu.memory_space<vmem>>, vector<8x128xbf16>
    tpu.vector_store %arg19[%c56_355, %c768_356], %368 {strides = array<i32>} : memref<128x1152xbf16, #tpu.memory_space<vmem>>, vector<8x128xbf16>,
    %c289_357 = arith.constant 289 : index
    %c0_358 = arith.constant 0 : index
    %370 = tpu.strided_load %arg16[%c289_357, %c0_358] {strides = array<i32: 2, 1>} : memref<648x128xf32, #tpu.memory_space<vmem>>, vector<8x128xf32>
    %371 = arith.truncf %370 : vector<8x128xf32> to vector<8x128xbf16>
    %c56_359 = arith.constant 56 : index
    %c896_360 = arith.constant 896 : index
    %372 = vector.load %arg19[%c56_359, %c896_360] : memref<128x1152xbf16, #tpu.memory_space<vmem>>, vector<8x128xbf16>
    tpu.vector_store %arg19[%c56_359, %c896_360], %371 {strides = array<i32>} : memref<128x1152xbf16, #tpu.memory_space<vmem>>, vector<8x128xbf16>,
    %c290 = arith.constant 290 : index
    %c0_361 = arith.constant 0 : index
    %373 = tpu.strided_load %arg16[%c290, %c0_361] {strides = array<i32: 2, 1>} : memref<648x128xf32, #tpu.memory_space<vmem>>, vector<8x128xf32>
    %374 = arith.truncf %373 : vector<8x128xf32> to vector<8x128xbf16>
    %c56_362 = arith.constant 56 : index
    %c1024_363 = arith.constant 1024 : index
    %375 = vector.load %arg19[%c56_362, %c1024_363] : memref<128x1152xbf16, #tpu.memory_space<vmem>>, vector<8x128xbf16>
    tpu.vector_store %arg19[%c56_362, %c1024_363], %374 {strides = array<i32>} : memref<128x1152xbf16, #tpu.memory_space<vmem>>, vector<8x128xbf16>,
    %c324_364 = arith.constant 324 : index
    %c0_365 = arith.constant 0 : index
    %376 = tpu.strided_load %arg16[%c324_364, %c0_365] {strides = array<i32: 2, 1>} : memref<648x128xf32, #tpu.memory_space<vmem>>, vector<8x128xf32>
    %377 = arith.truncf %376 : vector<8x128xf32> to vector<8x128xbf16>
    %c64 = arith.constant 64 : index
    %c0_366 = arith.constant 0 : index
    %378 = vector.load %arg19[%c64, %c0_366] : memref<128x1152xbf16, #tpu.memory_space<vmem>>, vector<8x128xbf16>
    tpu.vector_store %arg19[%c64, %c0_366], %377 {strides = array<i32>} : memref<128x1152xbf16, #tpu.memory_space<vmem>>, vector<8x128xbf16>,
    %c325 = arith.constant 325 : index
    %c0_367 = arith.constant 0 : index
    %379 = tpu.strided_load %arg16[%c325, %c0_367] {strides = array<i32: 2, 1>} : memref<648x128xf32, #tpu.memory_space<vmem>>, vector<8x128xf32>
    %380 = arith.truncf %379 : vector<8x128xf32> to vector<8x128xbf16>
    %c64_368 = arith.constant 64 : index
    %c128_369 = arith.constant 128 : index
    %381 = vector.load %arg19[%c64_368, %c128_369] : memref<128x1152xbf16, #tpu.memory_space<vmem>>, vector<8x128xbf16>
    tpu.vector_store %arg19[%c64_368, %c128_369], %380 {strides = array<i32>} : memref<128x1152xbf16, #tpu.memory_space<vmem>>, vector<8x128xbf16>,
    %c326 = arith.constant 326 : index
    %c0_370 = arith.constant 0 : index
    %382 = tpu.strided_load %arg16[%c326, %c0_370] {strides = array<i32: 2, 1>} : memref<648x128xf32, #tpu.memory_space<vmem>>, vector<8x128xf32>
    %383 = arith.truncf %382 : vector<8x128xf32> to vector<8x128xbf16>
    %c64_371 = arith.constant 64 : index
    %c256_372 = arith.constant 256 : index
    %384 = vector.load %arg19[%c64_371, %c256_372] : memref<128x1152xbf16, #tpu.memory_space<vmem>>, vector<8x128xbf16>
    tpu.vector_store %arg19[%c64_371, %c256_372], %383 {strides = array<i32>} : memref<128x1152xbf16, #tpu.memory_space<vmem>>, vector<8x128xbf16>,
    %c342 = arith.constant 342 : index
    %c0_373 = arith.constant 0 : index
    %385 = tpu.strided_load %arg16[%c342, %c0_373] {strides = array<i32: 2, 1>} : memref<648x128xf32, #tpu.memory_space<vmem>>, vector<8x128xf32>
    %386 = arith.truncf %385 : vector<8x128xf32> to vector<8x128xbf16>
    %c64_374 = arith.constant 64 : index
    %c384_375 = arith.constant 384 : index
    %387 = vector.load %arg19[%c64_374, %c384_375] : memref<128x1152xbf16, #tpu.memory_space<vmem>>, vector<8x128xbf16>
    tpu.vector_store %arg19[%c64_374, %c384_375], %386 {strides = array<i32>} : memref<128x1152xbf16, #tpu.memory_space<vmem>>, vector<8x128xbf16>,
    %c343_376 = arith.constant 343 : index
    %c0_377 = arith.constant 0 : index
    %388 = tpu.strided_load %arg16[%c343_376, %c0_377] {strides = array<i32: 2, 1>} : memref<648x128xf32, #tpu.memory_space<vmem>>, vector<8x128xf32>
    %389 = arith.truncf %388 : vector<8x128xf32> to vector<8x128xbf16>
    %c64_378 = arith.constant 64 : index
    %c512_379 = arith.constant 512 : index
    %390 = vector.load %arg19[%c64_378, %c512_379] : memref<128x1152xbf16, #tpu.memory_space<vmem>>, vector<8x128xbf16>
    tpu.vector_store %arg19[%c64_378, %c512_379], %389 {strides = array<i32>} : memref<128x1152xbf16, #tpu.memory_space<vmem>>, vector<8x128xbf16>,
    %c344 = arith.constant 344 : index
    %c0_380 = arith.constant 0 : index
    %391 = tpu.strided_load %arg16[%c344, %c0_380] {strides = array<i32: 2, 1>} : memref<648x128xf32, #tpu.memory_space<vmem>>, vector<8x128xf32>
    %392 = arith.truncf %391 : vector<8x128xf32> to vector<8x128xbf16>
    %c64_381 = arith.constant 64 : index
    %c640_382 = arith.constant 640 : index
    %393 = vector.load %arg19[%c64_381, %c640_382] : memref<128x1152xbf16, #tpu.memory_space<vmem>>, vector<8x128xbf16>
    tpu.vector_store %arg19[%c64_381, %c640_382], %392 {strides = array<i32>} : memref<128x1152xbf16, #tpu.memory_space<vmem>>, vector<8x128xbf16>,
    %c360 = arith.constant 360 : index
    %c0_383 = arith.constant 0 : index
    %394 = tpu.strided_load %arg16[%c360, %c0_383] {strides = array<i32: 2, 1>} : memref<648x128xf32, #tpu.memory_space<vmem>>, vector<8x128xf32>
    %395 = arith.truncf %394 : vector<8x128xf32> to vector<8x128xbf16>
    %c64_384 = arith.constant 64 : index
    %c768_385 = arith.constant 768 : index
    %396 = vector.load %arg19[%c64_384, %c768_385] : memref<128x1152xbf16, #tpu.memory_space<vmem>>, vector<8x128xbf16>
    tpu.vector_store %arg19[%c64_384, %c768_385], %395 {strides = array<i32>} : memref<128x1152xbf16, #tpu.memory_space<vmem>>, vector<8x128xbf16>,
    %c361_386 = arith.constant 361 : index
    %c0_387 = arith.constant 0 : index
    %397 = tpu.strided_load %arg16[%c361_386, %c0_387] {strides = array<i32: 2, 1>} : memref<648x128xf32, #tpu.memory_space<vmem>>, vector<8x128xf32>
    %398 = arith.truncf %397 : vector<8x128xf32> to vector<8x128xbf16>
    %c64_388 = arith.constant 64 : index
    %c896_389 = arith.constant 896 : index
    %399 = vector.load %arg19[%c64_388, %c896_389] : memref<128x1152xbf16, #tpu.memory_space<vmem>>, vector<8x128xbf16>
    tpu.vector_store %arg19[%c64_388, %c896_389], %398 {strides = array<i32>} : memref<128x1152xbf16, #tpu.memory_space<vmem>>, vector<8x128xbf16>,
    %c362 = arith.constant 362 : index
    %c0_390 = arith.constant 0 : index
    %400 = tpu.strided_load %arg16[%c362, %c0_390] {strides = array<i32: 2, 1>} : memref<648x128xf32, #tpu.memory_space<vmem>>, vector<8x128xf32>
    %401 = arith.truncf %400 : vector<8x128xf32> to vector<8x128xbf16>
    %c64_391 = arith.constant 64 : index
    %c1024_392 = arith.constant 1024 : index
    %402 = vector.load %arg19[%c64_391, %c1024_392] : memref<128x1152xbf16, #tpu.memory_space<vmem>>, vector<8x128xbf16>
    tpu.vector_store %arg19[%c64_391, %c1024_392], %401 {strides = array<i32>} : memref<128x1152xbf16, #tpu.memory_space<vmem>>, vector<8x128xbf16>,
    %c360_393 = arith.constant 360 : index
    %c0_394 = arith.constant 0 : index
    %403 = tpu.strided_load %arg16[%c360_393, %c0_394] {strides = array<i32: 2, 1>} : memref<648x128xf32, #tpu.memory_space<vmem>>, vector<8x128xf32>
    %404 = arith.truncf %403 : vector<8x128xf32> to vector<8x128xbf16>
    %c72_395 = arith.constant 72 : index
    %c0_396 = arith.constant 0 : index
    %405 = vector.load %arg19[%c72_395, %c0_396] : memref<128x1152xbf16, #tpu.memory_space<vmem>>, vector<8x128xbf16>
    tpu.vector_store %arg19[%c72_395, %c0_396], %404 {strides = array<i32>} : memref<128x1152xbf16, #tpu.memory_space<vmem>>, vector<8x128xbf16>,
    %c361_397 = arith.constant 361 : index
    %c0_398 = arith.constant 0 : index
    %406 = tpu.strided_load %arg16[%c361_397, %c0_398] {strides = array<i32: 2, 1>} : memref<648x128xf32, #tpu.memory_space<vmem>>, vector<8x128xf32>
    %407 = arith.truncf %406 : vector<8x128xf32> to vector<8x128xbf16>
    %c72_399 = arith.constant 72 : index
    %c128_400 = arith.constant 128 : index
    %408 = vector.load %arg19[%c72_399, %c128_400] : memref<128x1152xbf16, #tpu.memory_space<vmem>>, vector<8x128xbf16>
    tpu.vector_store %arg19[%c72_399, %c128_400], %407 {strides = array<i32>} : memref<128x1152xbf16, #tpu.memory_space<vmem>>, vector<8x128xbf16>,
    %c362_401 = arith.constant 362 : index
    %c0_402 = arith.constant 0 : index
    %409 = tpu.strided_load %arg16[%c362_401, %c0_402] {strides = array<i32: 2, 1>} : memref<648x128xf32, #tpu.memory_space<vmem>>, vector<8x128xf32>
    %410 = arith.truncf %409 : vector<8x128xf32> to vector<8x128xbf16>
    %c72_403 = arith.constant 72 : index
    %c256_404 = arith.constant 256 : index
    %411 = vector.load %arg19[%c72_403, %c256_404] : memref<128x1152xbf16, #tpu.memory_space<vmem>>, vector<8x128xbf16>
    tpu.vector_store %arg19[%c72_403, %c256_404], %410 {strides = array<i32>} : memref<128x1152xbf16, #tpu.memory_space<vmem>>, vector<8x128xbf16>,
    %c378 = arith.constant 378 : index
    %c0_405 = arith.constant 0 : index
    %412 = tpu.strided_load %arg16[%c378, %c0_405] {strides = array<i32: 2, 1>} : memref<648x128xf32, #tpu.memory_space<vmem>>, vector<8x128xf32>
    %413 = arith.truncf %412 : vector<8x128xf32> to vector<8x128xbf16>
    %c72_406 = arith.constant 72 : index
    %c384_407 = arith.constant 384 : index
    %414 = vector.load %arg19[%c72_406, %c384_407] : memref<128x1152xbf16, #tpu.memory_space<vmem>>, vector<8x128xbf16>
    tpu.vector_store %arg19[%c72_406, %c384_407], %413 {strides = array<i32>} : memref<128x1152xbf16, #tpu.memory_space<vmem>>, vector<8x128xbf16>,
    %c379_408 = arith.constant 379 : index
    %c0_409 = arith.constant 0 : index
    %415 = tpu.strided_load %arg16[%c379_408, %c0_409] {strides = array<i32: 2, 1>} : memref<648x128xf32, #tpu.memory_space<vmem>>, vector<8x128xf32>
    %416 = arith.truncf %415 : vector<8x128xf32> to vector<8x128xbf16>
    %c72_410 = arith.constant 72 : index
    %c512_411 = arith.constant 512 : index
    %417 = vector.load %arg19[%c72_410, %c512_411] : memref<128x1152xbf16, #tpu.memory_space<vmem>>, vector<8x128xbf16>
    tpu.vector_store %arg19[%c72_410, %c512_411], %416 {strides = array<i32>} : memref<128x1152xbf16, #tpu.memory_space<vmem>>, vector<8x128xbf16>,
    %c380 = arith.constant 380 : index
    %c0_412 = arith.constant 0 : index
    %418 = tpu.strided_load %arg16[%c380, %c0_412] {strides = array<i32: 2, 1>} : memref<648x128xf32, #tpu.memory_space<vmem>>, vector<8x128xf32>
    %419 = arith.truncf %418 : vector<8x128xf32> to vector<8x128xbf16>
    %c72_413 = arith.constant 72 : index
    %c640_414 = arith.constant 640 : index
    %420 = vector.load %arg19[%c72_413, %c640_414] : memref<128x1152xbf16, #tpu.memory_space<vmem>>, vector<8x128xbf16>
    tpu.vector_store %arg19[%c72_413, %c640_414], %419 {strides = array<i32>} : memref<128x1152xbf16, #tpu.memory_space<vmem>>, vector<8x128xbf16>,
    %c396 = arith.constant 396 : index
    %c0_415 = arith.constant 0 : index
    %421 = tpu.strided_load %arg16[%c396, %c0_415] {strides = array<i32: 2, 1>} : memref<648x128xf32, #tpu.memory_space<vmem>>, vector<8x128xf32>
    %422 = arith.truncf %421 : vector<8x128xf32> to vector<8x128xbf16>
    %c72_416 = arith.constant 72 : index
    %c768_417 = arith.constant 768 : index
    %423 = vector.load %arg19[%c72_416, %c768_417] : memref<128x1152xbf16, #tpu.memory_space<vmem>>, vector<8x128xbf16>
    tpu.vector_store %arg19[%c72_416, %c768_417], %422 {strides = array<i32>} : memref<128x1152xbf16, #tpu.memory_space<vmem>>, vector<8x128xbf16>,
    %c397_418 = arith.constant 397 : index
    %c0_419 = arith.constant 0 : index
    %424 = tpu.strided_load %arg16[%c397_418, %c0_419] {strides = array<i32: 2, 1>} : memref<648x128xf32, #tpu.memory_space<vmem>>, vector<8x128xf32>
    %425 = arith.truncf %424 : vector<8x128xf32> to vector<8x128xbf16>
    %c72_420 = arith.constant 72 : index
    %c896_421 = arith.constant 896 : index
    %426 = vector.load %arg19[%c72_420, %c896_421] : memref<128x1152xbf16, #tpu.memory_space<vmem>>, vector<8x128xbf16>
    tpu.vector_store %arg19[%c72_420, %c896_421], %425 {strides = array<i32>} : memref<128x1152xbf16, #tpu.memory_space<vmem>>, vector<8x128xbf16>,
    %c398 = arith.constant 398 : index
    %c0_422 = arith.constant 0 : index
    %427 = tpu.strided_load %arg16[%c398, %c0_422] {strides = array<i32: 2, 1>} : memref<648x128xf32, #tpu.memory_space<vmem>>, vector<8x128xf32>
    %428 = arith.truncf %427 : vector<8x128xf32> to vector<8x128xbf16>
    %c72_423 = arith.constant 72 : index
    %c1024_424 = arith.constant 1024 : index
    %429 = vector.load %arg19[%c72_423, %c1024_424] : memref<128x1152xbf16, #tpu.memory_space<vmem>>, vector<8x128xbf16>
    tpu.vector_store %arg19[%c72_423, %c1024_424], %428 {strides = array<i32>} : memref<128x1152xbf16, #tpu.memory_space<vmem>>, vector<8x128xbf16>,
    %c396_425 = arith.constant 396 : index
    %c0_426 = arith.constant 0 : index
    %430 = tpu.strided_load %arg16[%c396_425, %c0_426] {strides = array<i32: 2, 1>} : memref<648x128xf32, #tpu.memory_space<vmem>>, vector<8x128xf32>
    %431 = arith.truncf %430 : vector<8x128xf32> to vector<8x128xbf16>
    %c80 = arith.constant 80 : index
    %c0_427 = arith.constant 0 : index
    %432 = vector.load %arg19[%c80, %c0_427] : memref<128x1152xbf16, #tpu.memory_space<vmem>>, vector<8x128xbf16>
    tpu.vector_store %arg19[%c80, %c0_427], %431 {strides = array<i32>} : memref<128x1152xbf16, #tpu.memory_space<vmem>>, vector<8x128xbf16>,
    %c397_428 = arith.constant 397 : index
    %c0_429 = arith.constant 0 : index
    %433 = tpu.strided_load %arg16[%c397_428, %c0_429] {strides = array<i32: 2, 1>} : memref<648x128xf32, #tpu.memory_space<vmem>>, vector<8x128xf32>
    %434 = arith.truncf %433 : vector<8x128xf32> to vector<8x128xbf16>
    %c80_430 = arith.constant 80 : index
    %c128_431 = arith.constant 128 : index
    %435 = vector.load %arg19[%c80_430, %c128_431] : memref<128x1152xbf16, #tpu.memory_space<vmem>>, vector<8x128xbf16>
    tpu.vector_store %arg19[%c80_430, %c128_431], %434 {strides = array<i32>} : memref<128x1152xbf16, #tpu.memory_space<vmem>>, vector<8x128xbf16>,
    %c398_432 = arith.constant 398 : index
    %c0_433 = arith.constant 0 : index
    %436 = tpu.strided_load %arg16[%c398_432, %c0_433] {strides = array<i32: 2, 1>} : memref<648x128xf32, #tpu.memory_space<vmem>>, vector<8x128xf32>
    %437 = arith.truncf %436 : vector<8x128xf32> to vector<8x128xbf16>
    %c80_434 = arith.constant 80 : index
    %c256_435 = arith.constant 256 : index
    %438 = vector.load %arg19[%c80_434, %c256_435] : memref<128x1152xbf16, #tpu.memory_space<vmem>>, vector<8x128xbf16>
    tpu.vector_store %arg19[%c80_434, %c256_435], %437 {strides = array<i32>} : memref<128x1152xbf16, #tpu.memory_space<vmem>>, vector<8x128xbf16>,
    %c414 = arith.constant 414 : index
    %c0_436 = arith.constant 0 : index
    %439 = tpu.strided_load %arg16[%c414, %c0_436] {strides = array<i32: 2, 1>} : memref<648x128xf32, #tpu.memory_space<vmem>>, vector<8x128xf32>
    %440 = arith.truncf %439 : vector<8x128xf32> to vector<8x128xbf16>
    %c80_437 = arith.constant 80 : index
    %c384_438 = arith.constant 384 : index
    %441 = vector.load %arg19[%c80_437, %c384_438] : memref<128x1152xbf16, #tpu.memory_space<vmem>>, vector<8x128xbf16>
    tpu.vector_store %arg19[%c80_437, %c384_438], %440 {strides = array<i32>} : memref<128x1152xbf16, #tpu.memory_space<vmem>>, vector<8x128xbf16>,
    %c415_439 = arith.constant 415 : index
    %c0_440 = arith.constant 0 : index
    %442 = tpu.strided_load %arg16[%c415_439, %c0_440] {strides = array<i32: 2, 1>} : memref<648x128xf32, #tpu.memory_space<vmem>>, vector<8x128xf32>
    %443 = arith.truncf %442 : vector<8x128xf32> to vector<8x128xbf16>
    %c80_441 = arith.constant 80 : index
    %c512_442 = arith.constant 512 : index
    %444 = vector.load %arg19[%c80_441, %c512_442] : memref<128x1152xbf16, #tpu.memory_space<vmem>>, vector<8x128xbf16>
    tpu.vector_store %arg19[%c80_441, %c512_442], %443 {strides = array<i32>} : memref<128x1152xbf16, #tpu.memory_space<vmem>>, vector<8x128xbf16>,
    %c416 = arith.constant 416 : index
    %c0_443 = arith.constant 0 : index
    %445 = tpu.strided_load %arg16[%c416, %c0_443] {strides = array<i32: 2, 1>} : memref<648x128xf32, #tpu.memory_space<vmem>>, vector<8x128xf32>
    %446 = arith.truncf %445 : vector<8x128xf32> to vector<8x128xbf16>
    %c80_444 = arith.constant 80 : index
    %c640_445 = arith.constant 640 : index
    %447 = vector.load %arg19[%c80_444, %c640_445] : memref<128x1152xbf16, #tpu.memory_space<vmem>>, vector<8x128xbf16>
    tpu.vector_store %arg19[%c80_444, %c640_445], %446 {strides = array<i32>} : memref<128x1152xbf16, #tpu.memory_space<vmem>>, vector<8x128xbf16>,
    %c432 = arith.constant 432 : index
    %c0_446 = arith.constant 0 : index
    %448 = tpu.strided_load %arg16[%c432, %c0_446] {strides = array<i32: 2, 1>} : memref<648x128xf32, #tpu.memory_space<vmem>>, vector<8x128xf32>
    %449 = arith.truncf %448 : vector<8x128xf32> to vector<8x128xbf16>
    %c80_447 = arith.constant 80 : index
    %c768_448 = arith.constant 768 : index
    %450 = vector.load %arg19[%c80_447, %c768_448] : memref<128x1152xbf16, #tpu.memory_space<vmem>>, vector<8x128xbf16>
    tpu.vector_store %arg19[%c80_447, %c768_448], %449 {strides = array<i32>} : memref<128x1152xbf16, #tpu.memory_space<vmem>>, vector<8x128xbf16>,
    %c433_449 = arith.constant 433 : index
    %c0_450 = arith.constant 0 : index
    %451 = tpu.strided_load %arg16[%c433_449, %c0_450] {strides = array<i32: 2, 1>} : memref<648x128xf32, #tpu.memory_space<vmem>>, vector<8x128xf32>
    %452 = arith.truncf %451 : vector<8x128xf32> to vector<8x128xbf16>
    %c80_451 = arith.constant 80 : index
    %c896_452 = arith.constant 896 : index
    %453 = vector.load %arg19[%c80_451, %c896_452] : memref<128x1152xbf16, #tpu.memory_space<vmem>>, vector<8x128xbf16>
    tpu.vector_store %arg19[%c80_451, %c896_452], %452 {strides = array<i32>} : memref<128x1152xbf16, #tpu.memory_space<vmem>>, vector<8x128xbf16>,
    %c434 = arith.constant 434 : index
    %c0_453 = arith.constant 0 : index
    %454 = tpu.strided_load %arg16[%c434, %c0_453] {strides = array<i32: 2, 1>} : memref<648x128xf32, #tpu.memory_space<vmem>>, vector<8x128xf32>
    %455 = arith.truncf %454 : vector<8x128xf32> to vector<8x128xbf16>
    %c80_454 = arith.constant 80 : index
    %c1024_455 = arith.constant 1024 : index
    %456 = vector.load %arg19[%c80_454, %c1024_455] : memref<128x1152xbf16, #tpu.memory_space<vmem>>, vector<8x128xbf16>
    tpu.vector_store %arg19[%c80_454, %c1024_455], %455 {strides = array<i32>} : memref<128x1152xbf16, #tpu.memory_space<vmem>>, vector<8x128xbf16>,
    %c432_456 = arith.constant 432 : index
    %c0_457 = arith.constant 0 : index
    %457 = tpu.strided_load %arg16[%c432_456, %c0_457] {strides = array<i32: 2, 1>} : memref<648x128xf32, #tpu.memory_space<vmem>>, vector<8x128xf32>
    %458 = arith.truncf %457 : vector<8x128xf32> to vector<8x128xbf16>
    %c88 = arith.constant 88 : index
    %c0_458 = arith.constant 0 : index
    %459 = vector.load %arg19[%c88, %c0_458] : memref<128x1152xbf16, #tpu.memory_space<vmem>>, vector<8x128xbf16>
    tpu.vector_store %arg19[%c88, %c0_458], %458 {strides = array<i32>} : memref<128x1152xbf16, #tpu.memory_space<vmem>>, vector<8x128xbf16>,
    %c433_459 = arith.constant 433 : index
    %c0_460 = arith.constant 0 : index
    %460 = tpu.strided_load %arg16[%c433_459, %c0_460] {strides = array<i32: 2, 1>} : memref<648x128xf32, #tpu.memory_space<vmem>>, vector<8x128xf32>
    %461 = arith.truncf %460 : vector<8x128xf32> to vector<8x128xbf16>
    %c88_461 = arith.constant 88 : index
    %c128_462 = arith.constant 128 : index
    %462 = vector.load %arg19[%c88_461, %c128_462] : memref<128x1152xbf16, #tpu.memory_space<vmem>>, vector<8x128xbf16>
    tpu.vector_store %arg19[%c88_461, %c128_462], %461 {strides = array<i32>} : memref<128x1152xbf16, #tpu.memory_space<vmem>>, vector<8x128xbf16>,
    %c434_463 = arith.constant 434 : index
    %c0_464 = arith.constant 0 : index
    %463 = tpu.strided_load %arg16[%c434_463, %c0_464] {strides = array<i32: 2, 1>} : memref<648x128xf32, #tpu.memory_space<vmem>>, vector<8x128xf32>
    %464 = arith.truncf %463 : vector<8x128xf32> to vector<8x128xbf16>
    %c88_465 = arith.constant 88 : index
    %c256_466 = arith.constant 256 : index
    %465 = vector.load %arg19[%c88_465, %c256_466] : memref<128x1152xbf16, #tpu.memory_space<vmem>>, vector<8x128xbf16>
    tpu.vector_store %arg19[%c88_465, %c256_466], %464 {strides = array<i32>} : memref<128x1152xbf16, #tpu.memory_space<vmem>>, vector<8x128xbf16>,
    %c450 = arith.constant 450 : index
    %c0_467 = arith.constant 0 : index
    %466 = tpu.strided_load %arg16[%c450, %c0_467] {strides = array<i32: 2, 1>} : memref<648x128xf32, #tpu.memory_space<vmem>>, vector<8x128xf32>
    %467 = arith.truncf %466 : vector<8x128xf32> to vector<8x128xbf16>
    %c88_468 = arith.constant 88 : index
    %c384_469 = arith.constant 384 : index
    %468 = vector.load %arg19[%c88_468, %c384_469] : memref<128x1152xbf16, #tpu.memory_space<vmem>>, vector<8x128xbf16>
    tpu.vector_store %arg19[%c88_468, %c384_469], %467 {strides = array<i32>} : memref<128x1152xbf16, #tpu.memory_space<vmem>>, vector<8x128xbf16>,
    %c451_470 = arith.constant 451 : index
    %c0_471 = arith.constant 0 : index
    %469 = tpu.strided_load %arg16[%c451_470, %c0_471] {strides = array<i32: 2, 1>} : memref<648x128xf32, #tpu.memory_space<vmem>>, vector<8x128xf32>
    %470 = arith.truncf %469 : vector<8x128xf32> to vector<8x128xbf16>
    %c88_472 = arith.constant 88 : index
    %c512_473 = arith.constant 512 : index
    %471 = vector.load %arg19[%c88_472, %c512_473] : memref<128x1152xbf16, #tpu.memory_space<vmem>>, vector<8x128xbf16>
    tpu.vector_store %arg19[%c88_472, %c512_473], %470 {strides = array<i32>} : memref<128x1152xbf16, #tpu.memory_space<vmem>>, vector<8x128xbf16>,
    %c452 = arith.constant 452 : index
    %c0_474 = arith.constant 0 : index
    %472 = tpu.strided_load %arg16[%c452, %c0_474] {strides = array<i32: 2, 1>} : memref<648x128xf32, #tpu.memory_space<vmem>>, vector<8x128xf32>
    %473 = arith.truncf %472 : vector<8x128xf32> to vector<8x128xbf16>
    %c88_475 = arith.constant 88 : index
    %c640_476 = arith.constant 640 : index
    %474 = vector.load %arg19[%c88_475, %c640_476] : memref<128x1152xbf16, #tpu.memory_space<vmem>>, vector<8x128xbf16>
    tpu.vector_store %arg19[%c88_475, %c640_476], %473 {strides = array<i32>} : memref<128x1152xbf16, #tpu.memory_space<vmem>>, vector<8x128xbf16>,
    %c468 = arith.constant 468 : index
    %c0_477 = arith.constant 0 : index
    %475 = tpu.strided_load %arg16[%c468, %c0_477] {strides = array<i32: 2, 1>} : memref<648x128xf32, #tpu.memory_space<vmem>>, vector<8x128xf32>
    %476 = arith.truncf %475 : vector<8x128xf32> to vector<8x128xbf16>
    %c88_478 = arith.constant 88 : index
    %c768_479 = arith.constant 768 : index
    %477 = vector.load %arg19[%c88_478, %c768_479] : memref<128x1152xbf16, #tpu.memory_space<vmem>>, vector<8x128xbf16>
    tpu.vector_store %arg19[%c88_478, %c768_479], %476 {strides = array<i32>} : memref<128x1152xbf16, #tpu.memory_space<vmem>>, vector<8x128xbf16>,
    %c469_480 = arith.constant 469 : index
    %c0_481 = arith.constant 0 : index
    %478 = tpu.strided_load %arg16[%c469_480, %c0_481] {strides = array<i32: 2, 1>} : memref<648x128xf32, #tpu.memory_space<vmem>>, vector<8x128xf32>
    %479 = arith.truncf %478 : vector<8x128xf32> to vector<8x128xbf16>
    %c88_482 = arith.constant 88 : index
    %c896_483 = arith.constant 896 : index
    %480 = vector.load %arg19[%c88_482, %c896_483] : memref<128x1152xbf16, #tpu.memory_space<vmem>>, vector<8x128xbf16>
    tpu.vector_store %arg19[%c88_482, %c896_483], %479 {strides = array<i32>} : memref<128x1152xbf16, #tpu.memory_space<vmem>>, vector<8x128xbf16>,
    %c470 = arith.constant 470 : index
    %c0_484 = arith.constant 0 : index
    %481 = tpu.strided_load %arg16[%c470, %c0_484] {strides = array<i32: 2, 1>} : memref<648x128xf32, #tpu.memory_space<vmem>>, vector<8x128xf32>
    %482 = arith.truncf %481 : vector<8x128xf32> to vector<8x128xbf16>
    %c88_485 = arith.constant 88 : index
    %c1024_486 = arith.constant 1024 : index
    %483 = vector.load %arg19[%c88_485, %c1024_486] : memref<128x1152xbf16, #tpu.memory_space<vmem>>, vector<8x128xbf16>
    tpu.vector_store %arg19[%c88_485, %c1024_486], %482 {strides = array<i32>} : memref<128x1152xbf16, #tpu.memory_space<vmem>>, vector<8x128xbf16>,
    %c468_487 = arith.constant 468 : index
    %c0_488 = arith.constant 0 : index
    %484 = tpu.strided_load %arg16[%c468_487, %c0_488] {strides = array<i32: 2, 1>} : memref<648x128xf32, #tpu.memory_space<vmem>>, vector<8x128xf32>
    %485 = arith.truncf %484 : vector<8x128xf32> to vector<8x128xbf16>
    %c96 = arith.constant 96 : index
    %c0_489 = arith.constant 0 : index
    %486 = vector.load %arg19[%c96, %c0_489] : memref<128x1152xbf16, #tpu.memory_space<vmem>>, vector<8x128xbf16>
    tpu.vector_store %arg19[%c96, %c0_489], %485 {strides = array<i32>} : memref<128x1152xbf16, #tpu.memory_space<vmem>>, vector<8x128xbf16>,
    %c469_490 = arith.constant 469 : index
    %c0_491 = arith.constant 0 : index
    %487 = tpu.strided_load %arg16[%c469_490, %c0_491] {strides = array<i32: 2, 1>} : memref<648x128xf32, #tpu.memory_space<vmem>>, vector<8x128xf32>
    %488 = arith.truncf %487 : vector<8x128xf32> to vector<8x128xbf16>
    %c96_492 = arith.constant 96 : index
    %c128_493 = arith.constant 128 : index
    %489 = vector.load %arg19[%c96_492, %c128_493] : memref<128x1152xbf16, #tpu.memory_space<vmem>>, vector<8x128xbf16>
    tpu.vector_store %arg19[%c96_492, %c128_493], %488 {strides = array<i32>} : memref<128x1152xbf16, #tpu.memory_space<vmem>>, vector<8x128xbf16>,
    %c470_494 = arith.constant 470 : index
    %c0_495 = arith.constant 0 : index
    %490 = tpu.strided_load %arg16[%c470_494, %c0_495] {strides = array<i32: 2, 1>} : memref<648x128xf32, #tpu.memory_space<vmem>>, vector<8x128xf32>
    %491 = arith.truncf %490 : vector<8x128xf32> to vector<8x128xbf16>
    %c96_496 = arith.constant 96 : index
    %c256_497 = arith.constant 256 : index
    %492 = vector.load %arg19[%c96_496, %c256_497] : memref<128x1152xbf16, #tpu.memory_space<vmem>>, vector<8x128xbf16>
    tpu.vector_store %arg19[%c96_496, %c256_497], %491 {strides = array<i32>} : memref<128x1152xbf16, #tpu.memory_space<vmem>>, vector<8x128xbf16>,
    %c486 = arith.constant 486 : index
    %c0_498 = arith.constant 0 : index
    %493 = tpu.strided_load %arg16[%c486, %c0_498] {strides = array<i32: 2, 1>} : memref<648x128xf32, #tpu.memory_space<vmem>>, vector<8x128xf32>
    %494 = arith.truncf %493 : vector<8x128xf32> to vector<8x128xbf16>
    %c96_499 = arith.constant 96 : index
    %c384_500 = arith.constant 384 : index
    %495 = vector.load %arg19[%c96_499, %c384_500] : memref<128x1152xbf16, #tpu.memory_space<vmem>>, vector<8x128xbf16>
    tpu.vector_store %arg19[%c96_499, %c384_500], %494 {strides = array<i32>} : memref<128x1152xbf16, #tpu.memory_space<vmem>>, vector<8x128xbf16>,
    %c487_501 = arith.constant 487 : index
    %c0_502 = arith.constant 0 : index
    %496 = tpu.strided_load %arg16[%c487_501, %c0_502] {strides = array<i32: 2, 1>} : memref<648x128xf32, #tpu.memory_space<vmem>>, vector<8x128xf32>
    %497 = arith.truncf %496 : vector<8x128xf32> to vector<8x128xbf16>
    %c96_503 = arith.constant 96 : index
    %c512_504 = arith.constant 512 : index
    %498 = vector.load %arg19[%c96_503, %c512_504] : memref<128x1152xbf16, #tpu.memory_space<vmem>>, vector<8x128xbf16>
    tpu.vector_store %arg19[%c96_503, %c512_504], %497 {strides = array<i32>} : memref<128x1152xbf16, #tpu.memory_space<vmem>>, vector<8x128xbf16>,
    %c488 = arith.constant 488 : index
    %c0_505 = arith.constant 0 : index
    %499 = tpu.strided_load %arg16[%c488, %c0_505] {strides = array<i32: 2, 1>} : memref<648x128xf32, #tpu.memory_space<vmem>>, vector<8x128xf32>
    %500 = arith.truncf %499 : vector<8x128xf32> to vector<8x128xbf16>
    %c96_506 = arith.constant 96 : index
    %c640_507 = arith.constant 640 : index
    %501 = vector.load %arg19[%c96_506, %c640_507] : memref<128x1152xbf16, #tpu.memory_space<vmem>>, vector<8x128xbf16>
    tpu.vector_store %arg19[%c96_506, %c640_507], %500 {strides = array<i32>} : memref<128x1152xbf16, #tpu.memory_space<vmem>>, vector<8x128xbf16>,
    %c504 = arith.constant 504 : index
    %c0_508 = arith.constant 0 : index
    %502 = tpu.strided_load %arg16[%c504, %c0_508] {strides = array<i32: 2, 1>} : memref<648x128xf32, #tpu.memory_space<vmem>>, vector<8x128xf32>
    %503 = arith.truncf %502 : vector<8x128xf32> to vector<8x128xbf16>
    %c96_509 = arith.constant 96 : index
    %c768_510 = arith.constant 768 : index
    %504 = vector.load %arg19[%c96_509, %c768_510] : memref<128x1152xbf16, #tpu.memory_space<vmem>>, vector<8x128xbf16>
    tpu.vector_store %arg19[%c96_509, %c768_510], %503 {strides = array<i32>} : memref<128x1152xbf16, #tpu.memory_space<vmem>>, vector<8x128xbf16>,
    %c505_511 = arith.constant 505 : index
    %c0_512 = arith.constant 0 : index
    %505 = tpu.strided_load %arg16[%c505_511, %c0_512] {strides = array<i32: 2, 1>} : memref<648x128xf32, #tpu.memory_space<vmem>>, vector<8x128xf32>
    %506 = arith.truncf %505 : vector<8x128xf32> to vector<8x128xbf16>
    %c96_513 = arith.constant 96 : index
    %c896_514 = arith.constant 896 : index
    %507 = vector.load %arg19[%c96_513, %c896_514] : memref<128x1152xbf16, #tpu.memory_space<vmem>>, vector<8x128xbf16>
    tpu.vector_store %arg19[%c96_513, %c896_514], %506 {strides = array<i32>} : memref<128x1152xbf16, #tpu.memory_space<vmem>>, vector<8x128xbf16>,
    %c506 = arith.constant 506 : index
    %c0_515 = arith.constant 0 : index
    %508 = tpu.strided_load %arg16[%c506, %c0_515] {strides = array<i32: 2, 1>} : memref<648x128xf32, #tpu.memory_space<vmem>>, vector<8x128xf32>
    %509 = arith.truncf %508 : vector<8x128xf32> to vector<8x128xbf16>
    %c96_516 = arith.constant 96 : index
    %c1024_517 = arith.constant 1024 : index
    %510 = vector.load %arg19[%c96_516, %c1024_517] : memref<128x1152xbf16, #tpu.memory_space<vmem>>, vector<8x128xbf16>
    tpu.vector_store %arg19[%c96_516, %c1024_517], %509 {strides = array<i32>} : memref<128x1152xbf16, #tpu.memory_space<vmem>>, vector<8x128xbf16>,
    %c504_518 = arith.constant 504 : index
    %c0_519 = arith.constant 0 : index
    %511 = tpu.strided_load %arg16[%c504_518, %c0_519] {strides = array<i32: 2, 1>} : memref<648x128xf32, #tpu.memory_space<vmem>>, vector<8x128xf32>
    %512 = arith.truncf %511 : vector<8x128xf32> to vector<8x128xbf16>
    %c104 = arith.constant 104 : index
    %c0_520 = arith.constant 0 : index
    %513 = vector.load %arg19[%c104, %c0_520] : memref<128x1152xbf16, #tpu.memory_space<vmem>>, vector<8x128xbf16>
    tpu.vector_store %arg19[%c104, %c0_520], %512 {strides = array<i32>} : memref<128x1152xbf16, #tpu.memory_space<vmem>>, vector<8x128xbf16>,
    %c505_521 = arith.constant 505 : index
    %c0_522 = arith.constant 0 : index
    %514 = tpu.strided_load %arg16[%c505_521, %c0_522] {strides = array<i32: 2, 1>} : memref<648x128xf32, #tpu.memory_space<vmem>>, vector<8x128xf32>
    %515 = arith.truncf %514 : vector<8x128xf32> to vector<8x128xbf16>
    %c104_523 = arith.constant 104 : index
    %c128_524 = arith.constant 128 : index
    %516 = vector.load %arg19[%c104_523, %c128_524] : memref<128x1152xbf16, #tpu.memory_space<vmem>>, vector<8x128xbf16>
    tpu.vector_store %arg19[%c104_523, %c128_524], %515 {strides = array<i32>} : memref<128x1152xbf16, #tpu.memory_space<vmem>>, vector<8x128xbf16>,
    %c506_525 = arith.constant 506 : index
    %c0_526 = arith.constant 0 : index
    %517 = tpu.strided_load %arg16[%c506_525, %c0_526] {strides = array<i32: 2, 1>} : memref<648x128xf32, #tpu.memory_space<vmem>>, vector<8x128xf32>
    %518 = arith.truncf %517 : vector<8x128xf32> to vector<8x128xbf16>
    %c104_527 = arith.constant 104 : index
    %c256_528 = arith.constant 256 : index
    %519 = vector.load %arg19[%c104_527, %c256_528] : memref<128x1152xbf16, #tpu.memory_space<vmem>>, vector<8x128xbf16>
    tpu.vector_store %arg19[%c104_527, %c256_528], %518 {strides = array<i32>} : memref<128x1152xbf16, #tpu.memory_space<vmem>>, vector<8x128xbf16>,
    %c522 = arith.constant 522 : index
    %c0_529 = arith.constant 0 : index
    %520 = tpu.strided_load %arg16[%c522, %c0_529] {strides = array<i32: 2, 1>} : memref<648x128xf32, #tpu.memory_space<vmem>>, vector<8x128xf32>
    %521 = arith.truncf %520 : vector<8x128xf32> to vector<8x128xbf16>
    %c104_530 = arith.constant 104 : index
    %c384_531 = arith.constant 384 : index
    %522 = vector.load %arg19[%c104_530, %c384_531] : memref<128x1152xbf16, #tpu.memory_space<vmem>>, vector<8x128xbf16>
    tpu.vector_store %arg19[%c104_530, %c384_531], %521 {strides = array<i32>} : memref<128x1152xbf16, #tpu.memory_space<vmem>>, vector<8x128xbf16>,
    %c523_532 = arith.constant 523 : index
    %c0_533 = arith.constant 0 : index
    %523 = tpu.strided_load %arg16[%c523_532, %c0_533] {strides = array<i32: 2, 1>} : memref<648x128xf32, #tpu.memory_space<vmem>>, vector<8x128xf32>
    %524 = arith.truncf %523 : vector<8x128xf32> to vector<8x128xbf16>
    %c104_534 = arith.constant 104 : index
    %c512_535 = arith.constant 512 : index
    %525 = vector.load %arg19[%c104_534, %c512_535] : memref<128x1152xbf16, #tpu.memory_space<vmem>>, vector<8x128xbf16>
    tpu.vector_store %arg19[%c104_534, %c512_535], %524 {strides = array<i32>} : memref<128x1152xbf16, #tpu.memory_space<vmem>>, vector<8x128xbf16>,
    %c524 = arith.constant 524 : index
    %c0_536 = arith.constant 0 : index
    %526 = tpu.strided_load %arg16[%c524, %c0_536] {strides = array<i32: 2, 1>} : memref<648x128xf32, #tpu.memory_space<vmem>>, vector<8x128xf32>
    %527 = arith.truncf %526 : vector<8x128xf32> to vector<8x128xbf16>
    %c104_537 = arith.constant 104 : index
    %c640_538 = arith.constant 640 : index
    %528 = vector.load %arg19[%c104_537, %c640_538] : memref<128x1152xbf16, #tpu.memory_space<vmem>>, vector<8x128xbf16>
    tpu.vector_store %arg19[%c104_537, %c640_538], %527 {strides = array<i32>} : memref<128x1152xbf16, #tpu.memory_space<vmem>>, vector<8x128xbf16>,
    %c540 = arith.constant 540 : index
    %c0_539 = arith.constant 0 : index
    %529 = tpu.strided_load %arg16[%c540, %c0_539] {strides = array<i32: 2, 1>} : memref<648x128xf32, #tpu.memory_space<vmem>>, vector<8x128xf32>
    %530 = arith.truncf %529 : vector<8x128xf32> to vector<8x128xbf16>
    %c104_540 = arith.constant 104 : index
    %c768_541 = arith.constant 768 : index
    %531 = vector.load %arg19[%c104_540, %c768_541] : memref<128x1152xbf16, #tpu.memory_space<vmem>>, vector<8x128xbf16>
    tpu.vector_store %arg19[%c104_540, %c768_541], %530 {strides = array<i32>} : memref<128x1152xbf16, #tpu.memory_space<vmem>>, vector<8x128xbf16>,
    %c541_542 = arith.constant 541 : index
    %c0_543 = arith.constant 0 : index
    %532 = tpu.strided_load %arg16[%c541_542, %c0_543] {strides = array<i32: 2, 1>} : memref<648x128xf32, #tpu.memory_space<vmem>>, vector<8x128xf32>
    %533 = arith.truncf %532 : vector<8x128xf32> to vector<8x128xbf16>
    %c104_544 = arith.constant 104 : index
    %c896_545 = arith.constant 896 : index
    %534 = vector.load %arg19[%c104_544, %c896_545] : memref<128x1152xbf16, #tpu.memory_space<vmem>>, vector<8x128xbf16>
    tpu.vector_store %arg19[%c104_544, %c896_545], %533 {strides = array<i32>} : memref<128x1152xbf16, #tpu.memory_space<vmem>>, vector<8x128xbf16>,
    %c542 = arith.constant 542 : index
    %c0_546 = arith.constant 0 : index
    %535 = tpu.strided_load %arg16[%c542, %c0_546] {strides = array<i32: 2, 1>} : memref<648x128xf32, #tpu.memory_space<vmem>>, vector<8x128xf32>
    %536 = arith.truncf %535 : vector<8x128xf32> to vector<8x128xbf16>
    %c104_547 = arith.constant 104 : index
    %c1024_548 = arith.constant 1024 : index
    %537 = vector.load %arg19[%c104_547, %c1024_548] : memref<128x1152xbf16, #tpu.memory_space<vmem>>, vector<8x128xbf16>
    tpu.vector_store %arg19[%c104_547, %c1024_548], %536 {strides = array<i32>} : memref<128x1152xbf16, #tpu.memory_space<vmem>>, vector<8x128xbf16>,
    %c540_549 = arith.constant 540 : index
    %c0_550 = arith.constant 0 : index
    %538 = tpu.strided_load %arg16[%c540_549, %c0_550] {strides = array<i32: 2, 1>} : memref<648x128xf32, #tpu.memory_space<vmem>>, vector<8x128xf32>
    %539 = arith.truncf %538 : vector<8x128xf32> to vector<8x128xbf16>
    %c112 = arith.constant 112 : index
    %c0_551 = arith.constant 0 : index
    %540 = vector.load %arg19[%c112, %c0_551] : memref<128x1152xbf16, #tpu.memory_space<vmem>>, vector<8x128xbf16>
    tpu.vector_store %arg19[%c112, %c0_551], %539 {strides = array<i32>} : memref<128x1152xbf16, #tpu.memory_space<vmem>>, vector<8x128xbf16>,
    %c541_552 = arith.constant 541 : index
    %c0_553 = arith.constant 0 : index
    %541 = tpu.strided_load %arg16[%c541_552, %c0_553] {strides = array<i32: 2, 1>} : memref<648x128xf32, #tpu.memory_space<vmem>>, vector<8x128xf32>
    %542 = arith.truncf %541 : vector<8x128xf32> to vector<8x128xbf16>
    %c112_554 = arith.constant 112 : index
    %c128_555 = arith.constant 128 : index
    %543 = vector.load %arg19[%c112_554, %c128_555] : memref<128x1152xbf16, #tpu.memory_space<vmem>>, vector<8x128xbf16>
    tpu.vector_store %arg19[%c112_554, %c128_555], %542 {strides = array<i32>} : memref<128x1152xbf16, #tpu.memory_space<vmem>>, vector<8x128xbf16>,
    %c542_556 = arith.constant 542 : index
    %c0_557 = arith.constant 0 : index
    %544 = tpu.strided_load %arg16[%c542_556, %c0_557] {strides = array<i32: 2, 1>} : memref<648x128xf32, #tpu.memory_space<vmem>>, vector<8x128xf32>
    %545 = arith.truncf %544 : vector<8x128xf32> to vector<8x128xbf16>
    %c112_558 = arith.constant 112 : index
    %c256_559 = arith.constant 256 : index
    %546 = vector.load %arg19[%c112_558, %c256_559] : memref<128x1152xbf16, #tpu.memory_space<vmem>>, vector<8x128xbf16>
    tpu.vector_store %arg19[%c112_558, %c256_559], %545 {strides = array<i32>} : memref<128x1152xbf16, #tpu.memory_space<vmem>>, vector<8x128xbf16>,
    %c558 = arith.constant 558 : index
    %c0_560 = arith.constant 0 : index
    %547 = tpu.strided_load %arg16[%c558, %c0_560] {strides = array<i32: 2, 1>} : memref<648x128xf32, #tpu.memory_space<vmem>>, vector<8x128xf32>
    %548 = arith.truncf %547 : vector<8x128xf32> to vector<8x128xbf16>
    %c112_561 = arith.constant 112 : index
    %c384_562 = arith.constant 384 : index
    %549 = vector.load %arg19[%c112_561, %c384_562] : memref<128x1152xbf16, #tpu.memory_space<vmem>>, vector<8x128xbf16>
    tpu.vector_store %arg19[%c112_561, %c384_562], %548 {strides = array<i32>} : memref<128x1152xbf16, #tpu.memory_space<vmem>>, vector<8x128xbf16>,
    %c559_563 = arith.constant 559 : index
    %c0_564 = arith.constant 0 : index
    %550 = tpu.strided_load %arg16[%c559_563, %c0_564] {strides = array<i32: 2, 1>} : memref<648x128xf32, #tpu.memory_space<vmem>>, vector<8x128xf32>
    %551 = arith.truncf %550 : vector<8x128xf32> to vector<8x128xbf16>
    %c112_565 = arith.constant 112 : index
    %c512_566 = arith.constant 512 : index
    %552 = vector.load %arg19[%c112_565, %c512_566] : memref<128x1152xbf16, #tpu.memory_space<vmem>>, vector<8x128xbf16>
    tpu.vector_store %arg19[%c112_565, %c512_566], %551 {strides = array<i32>} : memref<128x1152xbf16, #tpu.memory_space<vmem>>, vector<8x128xbf16>,
    %c560 = arith.constant 560 : index
    %c0_567 = arith.constant 0 : index
    %553 = tpu.strided_load %arg16[%c560, %c0_567] {strides = array<i32: 2, 1>} : memref<648x128xf32, #tpu.memory_space<vmem>>, vector<8x128xf32>
    %554 = arith.truncf %553 : vector<8x128xf32> to vector<8x128xbf16>
    %c112_568 = arith.constant 112 : index
    %c640_569 = arith.constant 640 : index
    %555 = vector.load %arg19[%c112_568, %c640_569] : memref<128x1152xbf16, #tpu.memory_space<vmem>>, vector<8x128xbf16>
    tpu.vector_store %arg19[%c112_568, %c640_569], %554 {strides = array<i32>} : memref<128x1152xbf16, #tpu.memory_space<vmem>>, vector<8x128xbf16>,
    %c576 = arith.constant 576 : index
    %c0_570 = arith.constant 0 : index
    %556 = tpu.strided_load %arg16[%c576, %c0_570] {strides = array<i32: 2, 1>} : memref<648x128xf32, #tpu.memory_space<vmem>>, vector<8x128xf32>
    %557 = arith.truncf %556 : vector<8x128xf32> to vector<8x128xbf16>
    %c112_571 = arith.constant 112 : index
    %c768_572 = arith.constant 768 : index
    %558 = vector.load %arg19[%c112_571, %c768_572] : memref<128x1152xbf16, #tpu.memory_space<vmem>>, vector<8x128xbf16>
    tpu.vector_store %arg19[%c112_571, %c768_572], %557 {strides = array<i32>} : memref<128x1152xbf16, #tpu.memory_space<vmem>>, vector<8x128xbf16>,
    %c577_573 = arith.constant 577 : index
    %c0_574 = arith.constant 0 : index
    %559 = tpu.strided_load %arg16[%c577_573, %c0_574] {strides = array<i32: 2, 1>} : memref<648x128xf32, #tpu.memory_space<vmem>>, vector<8x128xf32>
    %560 = arith.truncf %559 : vector<8x128xf32> to vector<8x128xbf16>
    %c112_575 = arith.constant 112 : index
    %c896_576 = arith.constant 896 : index
    %561 = vector.load %arg19[%c112_575, %c896_576] : memref<128x1152xbf16, #tpu.memory_space<vmem>>, vector<8x128xbf16>
    tpu.vector_store %arg19[%c112_575, %c896_576], %560 {strides = array<i32>} : memref<128x1152xbf16, #tpu.memory_space<vmem>>, vector<8x128xbf16>,
    %c578 = arith.constant 578 : index
    %c0_577 = arith.constant 0 : index
    %562 = tpu.strided_load %arg16[%c578, %c0_577] {strides = array<i32: 2, 1>} : memref<648x128xf32, #tpu.memory_space<vmem>>, vector<8x128xf32>
    %563 = arith.truncf %562 : vector<8x128xf32> to vector<8x128xbf16>
    %c112_578 = arith.constant 112 : index
    %c1024_579 = arith.constant 1024 : index
    %564 = vector.load %arg19[%c112_578, %c1024_579] : memref<128x1152xbf16, #tpu.memory_space<vmem>>, vector<8x128xbf16>
    tpu.vector_store %arg19[%c112_578, %c1024_579], %563 {strides = array<i32>} : memref<128x1152xbf16, #tpu.memory_space<vmem>>, vector<8x128xbf16>,
    %c576_580 = arith.constant 576 : index
    %c0_581 = arith.constant 0 : index
    %565 = tpu.strided_load %arg16[%c576_580, %c0_581] {strides = array<i32: 2, 1>} : memref<648x128xf32, #tpu.memory_space<vmem>>, vector<8x128xf32>
    %566 = arith.truncf %565 : vector<8x128xf32> to vector<8x128xbf16>
    %c120 = arith.constant 120 : index
    %c0_582 = arith.constant 0 : index
    %567 = vector.load %arg19[%c120, %c0_582] : memref<128x1152xbf16, #tpu.memory_space<vmem>>, vector<8x128xbf16>
    tpu.vector_store %arg19[%c120, %c0_582], %566 {strides = array<i32>} : memref<128x1152xbf16, #tpu.memory_space<vmem>>, vector<8x128xbf16>,
    %c577_583 = arith.constant 577 : index
    %c0_584 = arith.constant 0 : index
    %568 = tpu.strided_load %arg16[%c577_583, %c0_584] {strides = array<i32: 2, 1>} : memref<648x128xf32, #tpu.memory_space<vmem>>, vector<8x128xf32>
    %569 = arith.truncf %568 : vector<8x128xf32> to vector<8x128xbf16>
    %c120_585 = arith.constant 120 : index
    %c128_586 = arith.constant 128 : index
    %570 = vector.load %arg19[%c120_585, %c128_586] : memref<128x1152xbf16, #tpu.memory_space<vmem>>, vector<8x128xbf16>
    tpu.vector_store %arg19[%c120_585, %c128_586], %569 {strides = array<i32>} : memref<128x1152xbf16, #tpu.memory_space<vmem>>, vector<8x128xbf16>,
    %c578_587 = arith.constant 578 : index
    %c0_588 = arith.constant 0 : index
    %571 = tpu.strided_load %arg16[%c578_587, %c0_588] {strides = array<i32: 2, 1>} : memref<648x128xf32, #tpu.memory_space<vmem>>, vector<8x128xf32>
    %572 = arith.truncf %571 : vector<8x128xf32> to vector<8x128xbf16>
    %c120_589 = arith.constant 120 : index
    %c256_590 = arith.constant 256 : index
    %573 = vector.load %arg19[%c120_589, %c256_590] : memref<128x1152xbf16, #tpu.memory_space<vmem>>, vector<8x128xbf16>
    tpu.vector_store %arg19[%c120_589, %c256_590], %572 {strides = array<i32>} : memref<128x1152xbf16, #tpu.memory_space<vmem>>, vector<8x128xbf16>,
    %c594 = arith.constant 594 : index
    %c0_591 = arith.constant 0 : index
    %574 = tpu.strided_load %arg16[%c594, %c0_591] {strides = array<i32: 2, 1>} : memref<648x128xf32, #tpu.memory_space<vmem>>, vector<8x128xf32>
    %575 = arith.truncf %574 : vector<8x128xf32> to vector<8x128xbf16>
    %c120_592 = arith.constant 120 : index
    %c384_593 = arith.constant 384 : index
    %576 = vector.load %arg19[%c120_592, %c384_593] : memref<128x1152xbf16, #tpu.memory_space<vmem>>, vector<8x128xbf16>
    tpu.vector_store %arg19[%c120_592, %c384_593], %575 {strides = array<i32>} : memref<128x1152xbf16, #tpu.memory_space<vmem>>, vector<8x128xbf16>,
    %c595_594 = arith.constant 595 : index
    %c0_595 = arith.constant 0 : index
    %577 = tpu.strided_load %arg16[%c595_594, %c0_595] {strides = array<i32: 2, 1>} : memref<648x128xf32, #tpu.memory_space<vmem>>, vector<8x128xf32>
    %578 = arith.truncf %577 : vector<8x128xf32> to vector<8x128xbf16>
    %c120_596 = arith.constant 120 : index
    %c512_597 = arith.constant 512 : index
    %579 = vector.load %arg19[%c120_596, %c512_597] : memref<128x1152xbf16, #tpu.memory_space<vmem>>, vector<8x128xbf16>
    tpu.vector_store %arg19[%c120_596, %c512_597], %578 {strides = array<i32>} : memref<128x1152xbf16, #tpu.memory_space<vmem>>, vector<8x128xbf16>,
    %c596 = arith.constant 596 : index
    %c0_598 = arith.constant 0 : index
    %580 = tpu.strided_load %arg16[%c596, %c0_598] {strides = array<i32: 2, 1>} : memref<648x128xf32, #tpu.memory_space<vmem>>, vector<8x128xf32>
    %581 = arith.truncf %580 : vector<8x128xf32> to vector<8x128xbf16>
    %c120_599 = arith.constant 120 : index
    %c640_600 = arith.constant 640 : index
    %582 = vector.load %arg19[%c120_599, %c640_600] : memref<128x1152xbf16, #tpu.memory_space<vmem>>, vector<8x128xbf16>
    tpu.vector_store %arg19[%c120_599, %c640_600], %581 {strides = array<i32>} : memref<128x1152xbf16, #tpu.memory_space<vmem>>, vector<8x128xbf16>,
    %c612 = arith.constant 612 : index
    %c0_601 = arith.constant 0 : index
    %583 = tpu.strided_load %arg16[%c612, %c0_601] {strides = array<i32: 2, 1>} : memref<648x128xf32, #tpu.memory_space<vmem>>, vector<8x128xf32>
    %584 = arith.truncf %583 : vector<8x128xf32> to vector<8x128xbf16>
    %c120_602 = arith.constant 120 : index
    %c768_603 = arith.constant 768 : index
    %585 = vector.load %arg19[%c120_602, %c768_603] : memref<128x1152xbf16, #tpu.memory_space<vmem>>, vector<8x128xbf16>
    tpu.vector_store %arg19[%c120_602, %c768_603], %584 {strides = array<i32>} : memref<128x1152xbf16, #tpu.memory_space<vmem>>, vector<8x128xbf16>,
    %c613_604 = arith.constant 613 : index
    %c0_605 = arith.constant 0 : index
    %586 = tpu.strided_load %arg16[%c613_604, %c0_605] {strides = array<i32: 2, 1>} : memref<648x128xf32, #tpu.memory_space<vmem>>, vector<8x128xf32>
    %587 = arith.truncf %586 : vector<8x128xf32> to vector<8x128xbf16>
    %c120_606 = arith.constant 120 : index
    %c896_607 = arith.constant 896 : index
    %588 = vector.load %arg19[%c120_606, %c896_607] : memref<128x1152xbf16, #tpu.memory_space<vmem>>, vector<8x128xbf16>
    tpu.vector_store %arg19[%c120_606, %c896_607], %587 {strides = array<i32>} : memref<128x1152xbf16, #tpu.memory_space<vmem>>, vector<8x128xbf16>,
    %c614 = arith.constant 614 : index
    %c0_608 = arith.constant 0 : index
    %589 = tpu.strided_load %arg16[%c614, %c0_608] {strides = array<i32: 2, 1>} : memref<648x128xf32, #tpu.memory_space<vmem>>, vector<8x128xf32>
    %590 = arith.truncf %589 : vector<8x128xf32> to vector<8x128xbf16>
    %c120_609 = arith.constant 120 : index
    %c1024_610 = arith.constant 1024 : index
    %591 = vector.load %arg19[%c120_609, %c1024_610] : memref<128x1152xbf16, #tpu.memory_space<vmem>>, vector<8x128xbf16>
    tpu.vector_store %arg19[%c120_609, %c1024_610], %590 {strides = array<i32>} : memref<128x1152xbf16, #tpu.memory_space<vmem>>, vector<8x128xbf16>,
    %c0_611 = arith.constant 0 : index
    %c0_612 = arith.constant 0 : index
    %592 = vector.load %arg19[%c0_611, %c0_612] : memref<128x1152xbf16, #tpu.memory_space<vmem>>, vector<128x1152xbf16>
    %c0_613 = arith.constant 0 : index
    %c0_614 = arith.constant 0 : index
    %593 = vector.load %arg4[%c0_613, %c0_614] : memref<1152x128xbf16, #tpu.memory_space<vmem>>, vector<1152x128xbf16>
    %cst_615 = arith.constant dense<0.000000e+00> : vector<128x128xf32>
    %594 = tpu.matmul %592, %593, %cst_615 {dimension_numbers = #tpu.dot_dimension_numbers<[1], [0], [0], [1], [0, 0, 1, 1], [], []>} : vector<128x1152xbf16>, vector<1152x128xbf16>, vector<128x128xf32> -> vector<128x128xf32>
    %cst_616 = arith.constant dense<0.000000e+00> : vector<128xf32>
    %595 = vector.multi_reduction <add>, %594, %cst_616 [0] : vector<128x128xf32> to vector<128xf32>
    %596 = vector.shape_cast %595 : vector<128xf32> to vector<1x128xf32>
    %597 = arith.mulf %594, %594 : vector<128x128xf32>
    %cst_617 = arith.constant dense<0.000000e+00> : vector<128xf32>
    %598 = vector.multi_reduction <add>, %597, %cst_617 [0] : vector<128x128xf32> to vector<128xf32>
    %599 = vector.shape_cast %598 : vector<128xf32> to vector<1x128xf32>
    %cst_618 = arith.constant 7.812500e-03 : f32
    %600 = vector.broadcast %cst_618 : f32 to vector<1x128xf32>
    %601 = arith.mulf %596, %600 : vector<1x128xf32>
    %cst_619 = arith.constant 7.812500e-03 : f32
    %602 = vector.broadcast %cst_619 : f32 to vector<1x128xf32>
    %603 = arith.mulf %599, %602 : vector<1x128xf32>
    %604 = arith.mulf %601, %601 : vector<1x128xf32>
    %605 = arith.subf %603, %604 : vector<1x128xf32>
    %c0_620 = arith.constant 0 : index
    %c0_621 = arith.constant 0 : index
    %606 = vector.load %arg5[%c0_620, %c0_621] : memref<1x128xf32, #tpu.memory_space<vmem>>, vector<1x128xf32>
    %cst_622 = arith.constant 9.99999974E-6 : f32
    %607 = vector.broadcast %cst_622 : f32 to vector<1x128xf32>
    %608 = arith.addf %605, %607 : vector<1x128xf32>
    %609 = math.rsqrt %608 : vector<1x128xf32>
    %610 = arith.mulf %606, %609 : vector<1x128xf32>
    %c0_623 = arith.constant 0 : index
    %c0_624 = arith.constant 0 : index
    %611 = vector.load %arg6[%c0_623, %c0_624] : memref<1x128xf32, #tpu.memory_space<vmem>>, vector<1x128xf32>
    %612 = arith.mulf %601, %610 : vector<1x128xf32>
    %613 = arith.subf %611, %612 : vector<1x128xf32>
    %614 = vector.broadcast %610 : vector<1x128xf32> to vector<128x128xf32>
    %615 = arith.mulf %594, %614 : vector<128x128xf32>
    %616 = vector.broadcast %613 : vector<1x128xf32> to vector<128x128xf32>
    %617 = arith.addf %615, %616 : vector<128x128xf32>
    %cst_625 = arith.constant 0.000000e+00 : f32
    %618 = vector.broadcast %cst_625 : f32 to vector<128x128xf32>
    %619 = arith.maximumf %617, %618 : vector<128x128xf32>
    %620 = vector.extract_strided_slice %619 {offsets = [0, 0], sizes = [8, 128], strides = [1, 1]} : vector<128x128xf32> to vector<8x128xf32>
    %c11_626 = arith.constant 11 : index
    %c0_627 = arith.constant 0 : index
    %621 = vector.load %arg17[%c11_626, %c0_627] : memref<200x128xf32, #tpu.memory_space<vmem>>, vector<8x128xf32>
    tpu.vector_store %arg17[%c11_626, %c0_627], %620 {strides = array<i32>} : memref<200x128xf32, #tpu.memory_space<vmem>>, vector<8x128xf32>,
    %622 = vector.extract_strided_slice %619 {offsets = [8, 0], sizes = [8, 128], strides = [1, 1]} : vector<128x128xf32> to vector<8x128xf32>
    %c21 = arith.constant 21 : index
    %c0_628 = arith.constant 0 : index
    %623 = vector.load %arg17[%c21, %c0_628] : memref<200x128xf32, #tpu.memory_space<vmem>>, vector<8x128xf32>
    tpu.vector_store %arg17[%c21, %c0_628], %622 {strides = array<i32>} : memref<200x128xf32, #tpu.memory_space<vmem>>, vector<8x128xf32>,
    %624 = vector.extract_strided_slice %619 {offsets = [16, 0], sizes = [8, 128], strides = [1, 1]} : vector<128x128xf32> to vector<8x128xf32>
    %c31 = arith.constant 31 : index
    %c0_629 = arith.constant 0 : index
    %625 = vector.load %arg17[%c31, %c0_629] : memref<200x128xf32, #tpu.memory_space<vmem>>, vector<8x128xf32>
    tpu.vector_store %arg17[%c31, %c0_629], %624 {strides = array<i32>} : memref<200x128xf32, #tpu.memory_space<vmem>>, vector<8x128xf32>,
    %626 = vector.extract_strided_slice %619 {offsets = [24, 0], sizes = [8, 128], strides = [1, 1]} : vector<128x128xf32> to vector<8x128xf32>
    %c41 = arith.constant 41 : index
    %c0_630 = arith.constant 0 : index
    %627 = vector.load %arg17[%c41, %c0_630] : memref<200x128xf32, #tpu.memory_space<vmem>>, vector<8x128xf32>
    tpu.vector_store %arg17[%c41, %c0_630], %626 {strides = array<i32>} : memref<200x128xf32, #tpu.memory_space<vmem>>, vector<8x128xf32>,
    %628 = vector.extract_strided_slice %619 {offsets = [32, 0], sizes = [8, 128], strides = [1, 1]} : vector<128x128xf32> to vector<8x128xf32>
    %c51 = arith.constant 51 : index
    %c0_631 = arith.constant 0 : index
    %629 = vector.load %arg17[%c51, %c0_631] : memref<200x128xf32, #tpu.memory_space<vmem>>, vector<8x128xf32>
    tpu.vector_store %arg17[%c51, %c0_631], %628 {strides = array<i32>} : memref<200x128xf32, #tpu.memory_space<vmem>>, vector<8x128xf32>,
    %630 = vector.extract_strided_slice %619 {offsets = [40, 0], sizes = [8, 128], strides = [1, 1]} : vector<128x128xf32> to vector<8x128xf32>
    %c61 = arith.constant 61 : index
    %c0_632 = arith.constant 0 : index
    %631 = vector.load %arg17[%c61, %c0_632] : memref<200x128xf32, #tpu.memory_space<vmem>>, vector<8x128xf32>
    tpu.vector_store %arg17[%c61, %c0_632], %630 {strides = array<i32>} : memref<200x128xf32, #tpu.memory_space<vmem>>, vector<8x128xf32>,
    %632 = vector.extract_strided_slice %619 {offsets = [48, 0], sizes = [8, 128], strides = [1, 1]} : vector<128x128xf32> to vector<8x128xf32>
    %c71_633 = arith.constant 71 : index
    %c0_634 = arith.constant 0 : index
    %633 = vector.load %arg17[%c71_633, %c0_634] : memref<200x128xf32, #tpu.memory_space<vmem>>, vector<8x128xf32>
    tpu.vector_store %arg17[%c71_633, %c0_634], %632 {strides = array<i32>} : memref<200x128xf32, #tpu.memory_space<vmem>>, vector<8x128xf32>,
    %634 = vector.extract_strided_slice %619 {offsets = [56, 0], sizes = [8, 128], strides = [1, 1]} : vector<128x128xf32> to vector<8x128xf32>
    %c81 = arith.constant 81 : index
    %c0_635 = arith.constant 0 : index
    %635 = vector.load %arg17[%c81, %c0_635] : memref<200x128xf32, #tpu.memory_space<vmem>>, vector<8x128xf32>
    tpu.vector_store %arg17[%c81, %c0_635], %634 {strides = array<i32>} : memref<200x128xf32, #tpu.memory_space<vmem>>, vector<8x128xf32>,
    %636 = vector.extract_strided_slice %619 {offsets = [64, 0], sizes = [8, 128], strides = [1, 1]} : vector<128x128xf32> to vector<8x128xf32>
    %c111 = arith.constant 111 : index
    %c0_636 = arith.constant 0 : index
    %637 = vector.load %arg17[%c111, %c0_636] : memref<200x128xf32, #tpu.memory_space<vmem>>, vector<8x128xf32>
    tpu.vector_store %arg17[%c111, %c0_636], %636 {strides = array<i32>} : memref<200x128xf32, #tpu.memory_space<vmem>>, vector<8x128xf32>,
    %638 = vector.extract_strided_slice %619 {offsets = [72, 0], sizes = [8, 128], strides = [1, 1]} : vector<128x128xf32> to vector<8x128xf32>
    %c121 = arith.constant 121 : index
    %c0_637 = arith.constant 0 : index
    %639 = vector.load %arg17[%c121, %c0_637] : memref<200x128xf32, #tpu.memory_space<vmem>>, vector<8x128xf32>
    tpu.vector_store %arg17[%c121, %c0_637], %638 {strides = array<i32>} : memref<200x128xf32, #tpu.memory_space<vmem>>, vector<8x128xf32>,
    %640 = vector.extract_strided_slice %619 {offsets = [80, 0], sizes = [8, 128], strides = [1, 1]} : vector<128x128xf32> to vector<8x128xf32>
    %c131 = arith.constant 131 : index
    %c0_638 = arith.constant 0 : index
    %641 = vector.load %arg17[%c131, %c0_638] : memref<200x128xf32, #tpu.memory_space<vmem>>, vector<8x128xf32>
    tpu.vector_store %arg17[%c131, %c0_638], %640 {strides = array<i32>} : memref<200x128xf32, #tpu.memory_space<vmem>>, vector<8x128xf32>,
    %642 = vector.extract_strided_slice %619 {offsets = [88, 0], sizes = [8, 128], strides = [1, 1]} : vector<128x128xf32> to vector<8x128xf32>
    %c141 = arith.constant 141 : index
    %c0_639 = arith.constant 0 : index
    %643 = vector.load %arg17[%c141, %c0_639] : memref<200x128xf32, #tpu.memory_space<vmem>>, vector<8x128xf32>
    tpu.vector_store %arg17[%c141, %c0_639], %642 {strides = array<i32>} : memref<200x128xf32, #tpu.memory_space<vmem>>, vector<8x128xf32>,
    %644 = vector.extract_strided_slice %619 {offsets = [96, 0], sizes = [8, 128], strides = [1, 1]} : vector<128x128xf32> to vector<8x128xf32>
    %c151 = arith.constant 151 : index
    %c0_640 = arith.constant 0 : index
    %645 = vector.load %arg17[%c151, %c0_640] : memref<200x128xf32, #tpu.memory_space<vmem>>, vector<8x128xf32>
    tpu.vector_store %arg17[%c151, %c0_640], %644 {strides = array<i32>} : memref<200x128xf32, #tpu.memory_space<vmem>>, vector<8x128xf32>,
    %646 = vector.extract_strided_slice %619 {offsets = [104, 0], sizes = [8, 128], strides = [1, 1]} : vector<128x128xf32> to vector<8x128xf32>
    %c161_641 = arith.constant 161 : index
    %c0_642 = arith.constant 0 : index
    %647 = vector.load %arg17[%c161_641, %c0_642] : memref<200x128xf32, #tpu.memory_space<vmem>>, vector<8x128xf32>
    tpu.vector_store %arg17[%c161_641, %c0_642], %646 {strides = array<i32>} : memref<200x128xf32, #tpu.memory_space<vmem>>, vector<8x128xf32>,
    %648 = vector.extract_strided_slice %619 {offsets = [112, 0], sizes = [8, 128], strides = [1, 1]} : vector<128x128xf32> to vector<8x128xf32>
    %c171 = arith.constant 171 : index
    %c0_643 = arith.constant 0 : index
    %649 = vector.load %arg17[%c171, %c0_643] : memref<200x128xf32, #tpu.memory_space<vmem>>, vector<8x128xf32>
    tpu.vector_store %arg17[%c171, %c0_643], %648 {strides = array<i32>} : memref<200x128xf32, #tpu.memory_space<vmem>>, vector<8x128xf32>,
    %650 = vector.extract_strided_slice %619 {offsets = [120, 0], sizes = [8, 128], strides = [1, 1]} : vector<128x128xf32> to vector<8x128xf32>
    %c181_644 = arith.constant 181 : index
    %c0_645 = arith.constant 0 : index
    %651 = vector.load %arg17[%c181_644, %c0_645] : memref<200x128xf32, #tpu.memory_space<vmem>>, vector<8x128xf32>
    tpu.vector_store %arg17[%c181_644, %c0_645], %650 {strides = array<i32>} : memref<200x128xf32, #tpu.memory_space<vmem>>, vector<8x128xf32>,
    %c0_646 = arith.constant 0 : index
    %c0_647 = arith.constant 0 : index
    %652 = tpu.strided_load %arg17[%c0_646, %c0_647] {strides = array<i32: 2, 1>} : memref<200x128xf32, #tpu.memory_space<vmem>>, vector<4x128xf32>
    %653 = arith.truncf %652 : vector<4x128xf32> to vector<4x128xbf16>
    %c0_648 = arith.constant 0 : index
    %c0_649 = arith.constant 0 : index
    %654 = vector.load %arg19[%c0_648, %c0_649] : memref<128x1152xbf16, #tpu.memory_space<vmem>>, vector<4x128xbf16>
    tpu.vector_store %arg19[%c0_648, %c0_649], %653 {strides = array<i32>} : memref<128x1152xbf16, #tpu.memory_space<vmem>>, vector<4x128xbf16>,
    %c1_650 = arith.constant 1 : index
    %c0_651 = arith.constant 0 : index
    %655 = tpu.strided_load %arg17[%c1_650, %c0_651] {strides = array<i32: 2, 1>} : memref<200x128xf32, #tpu.memory_space<vmem>>, vector<4x128xf32>
    %656 = arith.truncf %655 : vector<4x128xf32> to vector<4x128xbf16>
    %c0_652 = arith.constant 0 : index
    %c128_653 = arith.constant 128 : index
    %657 = vector.load %arg19[%c0_652, %c128_653] : memref<128x1152xbf16, #tpu.memory_space<vmem>>, vector<4x128xbf16>
    tpu.vector_store %arg19[%c0_652, %c128_653], %656 {strides = array<i32>} : memref<128x1152xbf16, #tpu.memory_space<vmem>>, vector<4x128xbf16>,
    %c2_654 = arith.constant 2 : index
    %c0_655 = arith.constant 0 : index
    %658 = tpu.strided_load %arg17[%c2_654, %c0_655] {strides = array<i32: 2, 1>} : memref<200x128xf32, #tpu.memory_space<vmem>>, vector<4x128xf32>
    %659 = arith.truncf %658 : vector<4x128xf32> to vector<4x128xbf16>
    %c0_656 = arith.constant 0 : index
    %c256_657 = arith.constant 256 : index
    %660 = vector.load %arg19[%c0_656, %c256_657] : memref<128x1152xbf16, #tpu.memory_space<vmem>>, vector<4x128xbf16>
    tpu.vector_store %arg19[%c0_656, %c256_657], %659 {strides = array<i32>} : memref<128x1152xbf16, #tpu.memory_space<vmem>>, vector<4x128xbf16>,
    %c10 = arith.constant 10 : index
    %c0_658 = arith.constant 0 : index
    %661 = tpu.strided_load %arg17[%c10, %c0_658] {strides = array<i32: 2, 1>} : memref<200x128xf32, #tpu.memory_space<vmem>>, vector<4x128xf32>
    %662 = arith.truncf %661 : vector<4x128xf32> to vector<4x128xbf16>
    %c0_659 = arith.constant 0 : index
    %c384_660 = arith.constant 384 : index
    %663 = vector.load %arg19[%c0_659, %c384_660] : memref<128x1152xbf16, #tpu.memory_space<vmem>>, vector<4x128xbf16>
    tpu.vector_store %arg19[%c0_659, %c384_660], %662 {strides = array<i32>} : memref<128x1152xbf16, #tpu.memory_space<vmem>>, vector<4x128xbf16>,
    %c11_661 = arith.constant 11 : index
    %c0_662 = arith.constant 0 : index
    %664 = tpu.strided_load %arg17[%c11_661, %c0_662] {strides = array<i32: 2, 1>} : memref<200x128xf32, #tpu.memory_space<vmem>>, vector<4x128xf32>
    %665 = arith.truncf %664 : vector<4x128xf32> to vector<4x128xbf16>
    %c0_663 = arith.constant 0 : index
    %c512_664 = arith.constant 512 : index
    %666 = vector.load %arg19[%c0_663, %c512_664] : memref<128x1152xbf16, #tpu.memory_space<vmem>>, vector<4x128xbf16>
    tpu.vector_store %arg19[%c0_663, %c512_664], %665 {strides = array<i32>} : memref<128x1152xbf16, #tpu.memory_space<vmem>>, vector<4x128xbf16>,
    %c12 = arith.constant 12 : index
    %c0_665 = arith.constant 0 : index
    %667 = tpu.strided_load %arg17[%c12, %c0_665] {strides = array<i32: 2, 1>} : memref<200x128xf32, #tpu.memory_space<vmem>>, vector<4x128xf32>
    %668 = arith.truncf %667 : vector<4x128xf32> to vector<4x128xbf16>
    %c0_666 = arith.constant 0 : index
    %c640_667 = arith.constant 640 : index
    %669 = vector.load %arg19[%c0_666, %c640_667] : memref<128x1152xbf16, #tpu.memory_space<vmem>>, vector<4x128xbf16>
    tpu.vector_store %arg19[%c0_666, %c640_667], %668 {strides = array<i32>} : memref<128x1152xbf16, #tpu.memory_space<vmem>>, vector<4x128xbf16>,
    %c20_668 = arith.constant 20 : index
    %c0_669 = arith.constant 0 : index
    %670 = tpu.strided_load %arg17[%c20_668, %c0_669] {strides = array<i32: 2, 1>} : memref<200x128xf32, #tpu.memory_space<vmem>>, vector<4x128xf32>
    %671 = arith.truncf %670 : vector<4x128xf32> to vector<4x128xbf16>
    %c0_670 = arith.constant 0 : index
    %c768_671 = arith.constant 768 : index
    %672 = vector.load %arg19[%c0_670, %c768_671] : memref<128x1152xbf16, #tpu.memory_space<vmem>>, vector<4x128xbf16>
    tpu.vector_store %arg19[%c0_670, %c768_671], %671 {strides = array<i32>} : memref<128x1152xbf16, #tpu.memory_space<vmem>>, vector<4x128xbf16>,
    %c21_672 = arith.constant 21 : index
    %c0_673 = arith.constant 0 : index
    %673 = tpu.strided_load %arg17[%c21_672, %c0_673] {strides = array<i32: 2, 1>} : memref<200x128xf32, #tpu.memory_space<vmem>>, vector<4x128xf32>
    %674 = arith.truncf %673 : vector<4x128xf32> to vector<4x128xbf16>
    %c0_674 = arith.constant 0 : index
    %c896_675 = arith.constant 896 : index
    %675 = vector.load %arg19[%c0_674, %c896_675] : memref<128x1152xbf16, #tpu.memory_space<vmem>>, vector<4x128xbf16>
    tpu.vector_store %arg19[%c0_674, %c896_675], %674 {strides = array<i32>} : memref<128x1152xbf16, #tpu.memory_space<vmem>>, vector<4x128xbf16>,
    %c22 = arith.constant 22 : index
    %c0_676 = arith.constant 0 : index
    %676 = tpu.strided_load %arg17[%c22, %c0_676] {strides = array<i32: 2, 1>} : memref<200x128xf32, #tpu.memory_space<vmem>>, vector<4x128xf32>
    %677 = arith.truncf %676 : vector<4x128xf32> to vector<4x128xbf16>
    %c0_677 = arith.constant 0 : index
    %c1024_678 = arith.constant 1024 : index
    %678 = vector.load %arg19[%c0_677, %c1024_678] : memref<128x1152xbf16, #tpu.memory_space<vmem>>, vector<4x128xbf16>
    tpu.vector_store %arg19[%c0_677, %c1024_678], %677 {strides = array<i32>} : memref<128x1152xbf16, #tpu.memory_space<vmem>>, vector<4x128xbf16>,
    %c20_679 = arith.constant 20 : index
    %c0_680 = arith.constant 0 : index
    %679 = tpu.strided_load %arg17[%c20_679, %c0_680] {strides = array<i32: 2, 1>} : memref<200x128xf32, #tpu.memory_space<vmem>>, vector<4x128xf32>
    %680 = arith.truncf %679 : vector<4x128xf32> to vector<4x128xbf16>
    %c4 = arith.constant 4 : index
    %c0_681 = arith.constant 0 : index
    %681 = vector.load %arg19[%c4, %c0_681] : memref<128x1152xbf16, #tpu.memory_space<vmem>>, vector<4x128xbf16>
    tpu.vector_store %arg19[%c4, %c0_681], %680 {strides = array<i32>} : memref<128x1152xbf16, #tpu.memory_space<vmem>>, vector<4x128xbf16>,
    %c21_682 = arith.constant 21 : index
    %c0_683 = arith.constant 0 : index
    %682 = tpu.strided_load %arg17[%c21_682, %c0_683] {strides = array<i32: 2, 1>} : memref<200x128xf32, #tpu.memory_space<vmem>>, vector<4x128xf32>
    %683 = arith.truncf %682 : vector<4x128xf32> to vector<4x128xbf16>
    %c4_684 = arith.constant 4 : index
    %c128_685 = arith.constant 128 : index
    %684 = vector.load %arg19[%c4_684, %c128_685] : memref<128x1152xbf16, #tpu.memory_space<vmem>>, vector<4x128xbf16>
    tpu.vector_store %arg19[%c4_684, %c128_685], %683 {strides = array<i32>} : memref<128x1152xbf16, #tpu.memory_space<vmem>>, vector<4x128xbf16>,
    %c22_686 = arith.constant 22 : index
    %c0_687 = arith.constant 0 : index
    %685 = tpu.strided_load %arg17[%c22_686, %c0_687] {strides = array<i32: 2, 1>} : memref<200x128xf32, #tpu.memory_space<vmem>>, vector<4x128xf32>
    %686 = arith.truncf %685 : vector<4x128xf32> to vector<4x128xbf16>
    %c4_688 = arith.constant 4 : index
    %c256_689 = arith.constant 256 : index
    %687 = vector.load %arg19[%c4_688, %c256_689] : memref<128x1152xbf16, #tpu.memory_space<vmem>>, vector<4x128xbf16>
    tpu.vector_store %arg19[%c4_688, %c256_689], %686 {strides = array<i32>} : memref<128x1152xbf16, #tpu.memory_space<vmem>>, vector<4x128xbf16>,
    %c30 = arith.constant 30 : index
    %c0_690 = arith.constant 0 : index
    %688 = tpu.strided_load %arg17[%c30, %c0_690] {strides = array<i32: 2, 1>} : memref<200x128xf32, #tpu.memory_space<vmem>>, vector<4x128xf32>
    %689 = arith.truncf %688 : vector<4x128xf32> to vector<4x128xbf16>
    %c4_691 = arith.constant 4 : index
    %c384_692 = arith.constant 384 : index
    %690 = vector.load %arg19[%c4_691, %c384_692] : memref<128x1152xbf16, #tpu.memory_space<vmem>>, vector<4x128xbf16>
    tpu.vector_store %arg19[%c4_691, %c384_692], %689 {strides = array<i32>} : memref<128x1152xbf16, #tpu.memory_space<vmem>>, vector<4x128xbf16>,
    %c31_693 = arith.constant 31 : index
    %c0_694 = arith.constant 0 : index
    %691 = tpu.strided_load %arg17[%c31_693, %c0_694] {strides = array<i32: 2, 1>} : memref<200x128xf32, #tpu.memory_space<vmem>>, vector<4x128xf32>
    %692 = arith.truncf %691 : vector<4x128xf32> to vector<4x128xbf16>
    %c4_695 = arith.constant 4 : index
    %c512_696 = arith.constant 512 : index
    %693 = vector.load %arg19[%c4_695, %c512_696] : memref<128x1152xbf16, #tpu.memory_space<vmem>>, vector<4x128xbf16>
    tpu.vector_store %arg19[%c4_695, %c512_696], %692 {strides = array<i32>} : memref<128x1152xbf16, #tpu.memory_space<vmem>>, vector<4x128xbf16>,
    %c32_697 = arith.constant 32 : index
    %c0_698 = arith.constant 0 : index
    %694 = tpu.strided_load %arg17[%c32_697, %c0_698] {strides = array<i32: 2, 1>} : memref<200x128xf32, #tpu.memory_space<vmem>>, vector<4x128xf32>
    %695 = arith.truncf %694 : vector<4x128xf32> to vector<4x128xbf16>
    %c4_699 = arith.constant 4 : index
    %c640_700 = arith.constant 640 : index
    %696 = vector.load %arg19[%c4_699, %c640_700] : memref<128x1152xbf16, #tpu.memory_space<vmem>>, vector<4x128xbf16>
    tpu.vector_store %arg19[%c4_699, %c640_700], %695 {strides = array<i32>} : memref<128x1152xbf16, #tpu.memory_space<vmem>>, vector<4x128xbf16>,
    %c40_701 = arith.constant 40 : index
    %c0_702 = arith.constant 0 : index
    %697 = tpu.strided_load %arg17[%c40_701, %c0_702] {strides = array<i32: 2, 1>} : memref<200x128xf32, #tpu.memory_space<vmem>>, vector<4x128xf32>
    %698 = arith.truncf %697 : vector<4x128xf32> to vector<4x128xbf16>
    %c4_703 = arith.constant 4 : index
    %c768_704 = arith.constant 768 : index
    %699 = vector.load %arg19[%c4_703, %c768_704] : memref<128x1152xbf16, #tpu.memory_space<vmem>>, vector<4x128xbf16>
    tpu.vector_store %arg19[%c4_703, %c768_704], %698 {strides = array<i32>} : memref<128x1152xbf16, #tpu.memory_space<vmem>>, vector<4x128xbf16>,
    %c41_705 = arith.constant 41 : index
    %c0_706 = arith.constant 0 : index
    %700 = tpu.strided_load %arg17[%c41_705, %c0_706] {strides = array<i32: 2, 1>} : memref<200x128xf32, #tpu.memory_space<vmem>>, vector<4x128xf32>
    %701 = arith.truncf %700 : vector<4x128xf32> to vector<4x128xbf16>
    %c4_707 = arith.constant 4 : index
    %c896_708 = arith.constant 896 : index
    %702 = vector.load %arg19[%c4_707, %c896_708] : memref<128x1152xbf16, #tpu.memory_space<vmem>>, vector<4x128xbf16>
    tpu.vector_store %arg19[%c4_707, %c896_708], %701 {strides = array<i32>} : memref<128x1152xbf16, #tpu.memory_space<vmem>>, vector<4x128xbf16>,
    %c42 = arith.constant 42 : index
    %c0_709 = arith.constant 0 : index
    %703 = tpu.strided_load %arg17[%c42, %c0_709] {strides = array<i32: 2, 1>} : memref<200x128xf32, #tpu.memory_space<vmem>>, vector<4x128xf32>
    %704 = arith.truncf %703 : vector<4x128xf32> to vector<4x128xbf16>
    %c4_710 = arith.constant 4 : index
    %c1024_711 = arith.constant 1024 : index
    %705 = vector.load %arg19[%c4_710, %c1024_711] : memref<128x1152xbf16, #tpu.memory_space<vmem>>, vector<4x128xbf16>
    tpu.vector_store %arg19[%c4_710, %c1024_711], %704 {strides = array<i32>} : memref<128x1152xbf16, #tpu.memory_space<vmem>>, vector<4x128xbf16>,
    %c40_712 = arith.constant 40 : index
    %c0_713 = arith.constant 0 : index
    %706 = tpu.strided_load %arg17[%c40_712, %c0_713] {strides = array<i32: 2, 1>} : memref<200x128xf32, #tpu.memory_space<vmem>>, vector<4x128xf32>
    %707 = arith.truncf %706 : vector<4x128xf32> to vector<4x128xbf16>
    %c8_714 = arith.constant 8 : index
    %c0_715 = arith.constant 0 : index
    %708 = vector.load %arg19[%c8_714, %c0_715] : memref<128x1152xbf16, #tpu.memory_space<vmem>>, vector<4x128xbf16>
    tpu.vector_store %arg19[%c8_714, %c0_715], %707 {strides = array<i32>} : memref<128x1152xbf16, #tpu.memory_space<vmem>>, vector<4x128xbf16>,
    %c41_716 = arith.constant 41 : index
    %c0_717 = arith.constant 0 : index
    %709 = tpu.strided_load %arg17[%c41_716, %c0_717] {strides = array<i32: 2, 1>} : memref<200x128xf32, #tpu.memory_space<vmem>>, vector<4x128xf32>
    %710 = arith.truncf %709 : vector<4x128xf32> to vector<4x128xbf16>
    %c8_718 = arith.constant 8 : index
    %c128_719 = arith.constant 128 : index
    %711 = vector.load %arg19[%c8_718, %c128_719] : memref<128x1152xbf16, #tpu.memory_space<vmem>>, vector<4x128xbf16>
    tpu.vector_store %arg19[%c8_718, %c128_719], %710 {strides = array<i32>} : memref<128x1152xbf16, #tpu.memory_space<vmem>>, vector<4x128xbf16>,
    %c42_720 = arith.constant 42 : index
    %c0_721 = arith.constant 0 : index
    %712 = tpu.strided_load %arg17[%c42_720, %c0_721] {strides = array<i32: 2, 1>} : memref<200x128xf32, #tpu.memory_space<vmem>>, vector<4x128xf32>
    %713 = arith.truncf %712 : vector<4x128xf32> to vector<4x128xbf16>
    %c8_722 = arith.constant 8 : index
    %c256_723 = arith.constant 256 : index
    %714 = vector.load %arg19[%c8_722, %c256_723] : memref<128x1152xbf16, #tpu.memory_space<vmem>>, vector<4x128xbf16>
    tpu.vector_store %arg19[%c8_722, %c256_723], %713 {strides = array<i32>} : memref<128x1152xbf16, #tpu.memory_space<vmem>>, vector<4x128xbf16>,
    %c50 = arith.constant 50 : index
    %c0_724 = arith.constant 0 : index
    %715 = tpu.strided_load %arg17[%c50, %c0_724] {strides = array<i32: 2, 1>} : memref<200x128xf32, #tpu.memory_space<vmem>>, vector<4x128xf32>
    %716 = arith.truncf %715 : vector<4x128xf32> to vector<4x128xbf16>
    %c8_725 = arith.constant 8 : index
    %c384_726 = arith.constant 384 : index
    %717 = vector.load %arg19[%c8_725, %c384_726] : memref<128x1152xbf16, #tpu.memory_space<vmem>>, vector<4x128xbf16>
    tpu.vector_store %arg19[%c8_725, %c384_726], %716 {strides = array<i32>} : memref<128x1152xbf16, #tpu.memory_space<vmem>>, vector<4x128xbf16>,
    %c51_727 = arith.constant 51 : index
    %c0_728 = arith.constant 0 : index
    %718 = tpu.strided_load %arg17[%c51_727, %c0_728] {strides = array<i32: 2, 1>} : memref<200x128xf32, #tpu.memory_space<vmem>>, vector<4x128xf32>
    %719 = arith.truncf %718 : vector<4x128xf32> to vector<4x128xbf16>
    %c8_729 = arith.constant 8 : index
    %c512_730 = arith.constant 512 : index
    %720 = vector.load %arg19[%c8_729, %c512_730] : memref<128x1152xbf16, #tpu.memory_space<vmem>>, vector<4x128xbf16>
    tpu.vector_store %arg19[%c8_729, %c512_730], %719 {strides = array<i32>} : memref<128x1152xbf16, #tpu.memory_space<vmem>>, vector<4x128xbf16>,
    %c52 = arith.constant 52 : index
    %c0_731 = arith.constant 0 : index
    %721 = tpu.strided_load %arg17[%c52, %c0_731] {strides = array<i32: 2, 1>} : memref<200x128xf32, #tpu.memory_space<vmem>>, vector<4x128xf32>
    %722 = arith.truncf %721 : vector<4x128xf32> to vector<4x128xbf16>
    %c8_732 = arith.constant 8 : index
    %c640_733 = arith.constant 640 : index
    %723 = vector.load %arg19[%c8_732, %c640_733] : memref<128x1152xbf16, #tpu.memory_space<vmem>>, vector<4x128xbf16>
    tpu.vector_store %arg19[%c8_732, %c640_733], %722 {strides = array<i32>} : memref<128x1152xbf16, #tpu.memory_space<vmem>>, vector<4x128xbf16>,
    %c60 = arith.constant 60 : index
    %c0_734 = arith.constant 0 : index
    %724 = tpu.strided_load %arg17[%c60, %c0_734] {strides = array<i32: 2, 1>} : memref<200x128xf32, #tpu.memory_space<vmem>>, vector<4x128xf32>
    %725 = arith.truncf %724 : vector<4x128xf32> to vector<4x128xbf16>
    %c8_735 = arith.constant 8 : index
    %c768_736 = arith.constant 768 : index
    %726 = vector.load %arg19[%c8_735, %c768_736] : memref<128x1152xbf16, #tpu.memory_space<vmem>>, vector<4x128xbf16>
    tpu.vector_store %arg19[%c8_735, %c768_736], %725 {strides = array<i32>} : memref<128x1152xbf16, #tpu.memory_space<vmem>>, vector<4x128xbf16>,
    %c61_737 = arith.constant 61 : index
    %c0_738 = arith.constant 0 : index
    %727 = tpu.strided_load %arg17[%c61_737, %c0_738] {strides = array<i32: 2, 1>} : memref<200x128xf32, #tpu.memory_space<vmem>>, vector<4x128xf32>
    %728 = arith.truncf %727 : vector<4x128xf32> to vector<4x128xbf16>
    %c8_739 = arith.constant 8 : index
    %c896_740 = arith.constant 896 : index
    %729 = vector.load %arg19[%c8_739, %c896_740] : memref<128x1152xbf16, #tpu.memory_space<vmem>>, vector<4x128xbf16>
    tpu.vector_store %arg19[%c8_739, %c896_740], %728 {strides = array<i32>} : memref<128x1152xbf16, #tpu.memory_space<vmem>>, vector<4x128xbf16>,
    %c62 = arith.constant 62 : index
    %c0_741 = arith.constant 0 : index
    %730 = tpu.strided_load %arg17[%c62, %c0_741] {strides = array<i32: 2, 1>} : memref<200x128xf32, #tpu.memory_space<vmem>>, vector<4x128xf32>
    %731 = arith.truncf %730 : vector<4x128xf32> to vector<4x128xbf16>
    %c8_742 = arith.constant 8 : index
    %c1024_743 = arith.constant 1024 : index
    %732 = vector.load %arg19[%c8_742, %c1024_743] : memref<128x1152xbf16, #tpu.memory_space<vmem>>, vector<4x128xbf16>
    tpu.vector_store %arg19[%c8_742, %c1024_743], %731 {strides = array<i32>} : memref<128x1152xbf16, #tpu.memory_space<vmem>>, vector<4x128xbf16>,
    %c60_744 = arith.constant 60 : index
    %c0_745 = arith.constant 0 : index
    %733 = tpu.strided_load %arg17[%c60_744, %c0_745] {strides = array<i32: 2, 1>} : memref<200x128xf32, #tpu.memory_space<vmem>>, vector<4x128xf32>
    %734 = arith.truncf %733 : vector<4x128xf32> to vector<4x128xbf16>
    %c12_746 = arith.constant 12 : index
    %c0_747 = arith.constant 0 : index
    %735 = vector.load %arg19[%c12_746, %c0_747] : memref<128x1152xbf16, #tpu.memory_space<vmem>>, vector<4x128xbf16>
    tpu.vector_store %arg19[%c12_746, %c0_747], %734 {strides = array<i32>} : memref<128x1152xbf16, #tpu.memory_space<vmem>>, vector<4x128xbf16>,
    %c61_748 = arith.constant 61 : index
    %c0_749 = arith.constant 0 : index
    %736 = tpu.strided_load %arg17[%c61_748, %c0_749] {strides = array<i32: 2, 1>} : memref<200x128xf32, #tpu.memory_space<vmem>>, vector<4x128xf32>
    %737 = arith.truncf %736 : vector<4x128xf32> to vector<4x128xbf16>
    %c12_750 = arith.constant 12 : index
    %c128_751 = arith.constant 128 : index
    %738 = vector.load %arg19[%c12_750, %c128_751] : memref<128x1152xbf16, #tpu.memory_space<vmem>>, vector<4x128xbf16>
    tpu.vector_store %arg19[%c12_750, %c128_751], %737 {strides = array<i32>} : memref<128x1152xbf16, #tpu.memory_space<vmem>>, vector<4x128xbf16>,
    %c62_752 = arith.constant 62 : index
    %c0_753 = arith.constant 0 : index
    %739 = tpu.strided_load %arg17[%c62_752, %c0_753] {strides = array<i32: 2, 1>} : memref<200x128xf32, #tpu.memory_space<vmem>>, vector<4x128xf32>
    %740 = arith.truncf %739 : vector<4x128xf32> to vector<4x128xbf16>
    %c12_754 = arith.constant 12 : index
    %c256_755 = arith.constant 256 : index
    %741 = vector.load %arg19[%c12_754, %c256_755] : memref<128x1152xbf16, #tpu.memory_space<vmem>>, vector<4x128xbf16>
    tpu.vector_store %arg19[%c12_754, %c256_755], %740 {strides = array<i32>} : memref<128x1152xbf16, #tpu.memory_space<vmem>>, vector<4x128xbf16>,
    %c70 = arith.constant 70 : index
    %c0_756 = arith.constant 0 : index
    %742 = tpu.strided_load %arg17[%c70, %c0_756] {strides = array<i32: 2, 1>} : memref<200x128xf32, #tpu.memory_space<vmem>>, vector<4x128xf32>
    %743 = arith.truncf %742 : vector<4x128xf32> to vector<4x128xbf16>
    %c12_757 = arith.constant 12 : index
    %c384_758 = arith.constant 384 : index
    %744 = vector.load %arg19[%c12_757, %c384_758] : memref<128x1152xbf16, #tpu.memory_space<vmem>>, vector<4x128xbf16>
    tpu.vector_store %arg19[%c12_757, %c384_758], %743 {strides = array<i32>} : memref<128x1152xbf16, #tpu.memory_space<vmem>>, vector<4x128xbf16>,
    %c71_759 = arith.constant 71 : index
    %c0_760 = arith.constant 0 : index
    %745 = tpu.strided_load %arg17[%c71_759, %c0_760] {strides = array<i32: 2, 1>} : memref<200x128xf32, #tpu.memory_space<vmem>>, vector<4x128xf32>
    %746 = arith.truncf %745 : vector<4x128xf32> to vector<4x128xbf16>
    %c12_761 = arith.constant 12 : index
    %c512_762 = arith.constant 512 : index
    %747 = vector.load %arg19[%c12_761, %c512_762] : memref<128x1152xbf16, #tpu.memory_space<vmem>>, vector<4x128xbf16>
    tpu.vector_store %arg19[%c12_761, %c512_762], %746 {strides = array<i32>} : memref<128x1152xbf16, #tpu.memory_space<vmem>>, vector<4x128xbf16>,
    %c72_763 = arith.constant 72 : index
    %c0_764 = arith.constant 0 : index
    %748 = tpu.strided_load %arg17[%c72_763, %c0_764] {strides = array<i32: 2, 1>} : memref<200x128xf32, #tpu.memory_space<vmem>>, vector<4x128xf32>
    %749 = arith.truncf %748 : vector<4x128xf32> to vector<4x128xbf16>
    %c12_765 = arith.constant 12 : index
    %c640_766 = arith.constant 640 : index
    %750 = vector.load %arg19[%c12_765, %c640_766] : memref<128x1152xbf16, #tpu.memory_space<vmem>>, vector<4x128xbf16>
    tpu.vector_store %arg19[%c12_765, %c640_766], %749 {strides = array<i32>} : memref<128x1152xbf16, #tpu.memory_space<vmem>>, vector<4x128xbf16>,
    %c80_767 = arith.constant 80 : index
    %c0_768 = arith.constant 0 : index
    %751 = tpu.strided_load %arg17[%c80_767, %c0_768] {strides = array<i32: 2, 1>} : memref<200x128xf32, #tpu.memory_space<vmem>>, vector<4x128xf32>
    %752 = arith.truncf %751 : vector<4x128xf32> to vector<4x128xbf16>
    %c12_769 = arith.constant 12 : index
    %c768_770 = arith.constant 768 : index
    %753 = vector.load %arg19[%c12_769, %c768_770] : memref<128x1152xbf16, #tpu.memory_space<vmem>>, vector<4x128xbf16>
    tpu.vector_store %arg19[%c12_769, %c768_770], %752 {strides = array<i32>} : memref<128x1152xbf16, #tpu.memory_space<vmem>>, vector<4x128xbf16>,
    %c81_771 = arith.constant 81 : index
    %c0_772 = arith.constant 0 : index
    %754 = tpu.strided_load %arg17[%c81_771, %c0_772] {strides = array<i32: 2, 1>} : memref<200x128xf32, #tpu.memory_space<vmem>>, vector<4x128xf32>
    %755 = arith.truncf %754 : vector<4x128xf32> to vector<4x128xbf16>
    %c12_773 = arith.constant 12 : index
    %c896_774 = arith.constant 896 : index
    %756 = vector.load %arg19[%c12_773, %c896_774] : memref<128x1152xbf16, #tpu.memory_space<vmem>>, vector<4x128xbf16>
    tpu.vector_store %arg19[%c12_773, %c896_774], %755 {strides = array<i32>} : memref<128x1152xbf16, #tpu.memory_space<vmem>>, vector<4x128xbf16>,
    %c82 = arith.constant 82 : index
    %c0_775 = arith.constant 0 : index
    %757 = tpu.strided_load %arg17[%c82, %c0_775] {strides = array<i32: 2, 1>} : memref<200x128xf32, #tpu.memory_space<vmem>>, vector<4x128xf32>
    %758 = arith.truncf %757 : vector<4x128xf32> to vector<4x128xbf16>
    %c12_776 = arith.constant 12 : index
    %c1024_777 = arith.constant 1024 : index
    %759 = vector.load %arg19[%c12_776, %c1024_777] : memref<128x1152xbf16, #tpu.memory_space<vmem>>, vector<4x128xbf16>
    tpu.vector_store %arg19[%c12_776, %c1024_777], %758 {strides = array<i32>} : memref<128x1152xbf16, #tpu.memory_space<vmem>>, vector<4x128xbf16>,
    %c100_778 = arith.constant 100 : index
    %c0_779 = arith.constant 0 : index
    %760 = tpu.strided_load %arg17[%c100_778, %c0_779] {strides = array<i32: 2, 1>} : memref<200x128xf32, #tpu.memory_space<vmem>>, vector<4x128xf32>
    %761 = arith.truncf %760 : vector<4x128xf32> to vector<4x128xbf16>
    %c16_780 = arith.constant 16 : index
    %c0_781 = arith.constant 0 : index
    %762 = vector.load %arg19[%c16_780, %c0_781] : memref<128x1152xbf16, #tpu.memory_space<vmem>>, vector<4x128xbf16>
    tpu.vector_store %arg19[%c16_780, %c0_781], %761 {strides = array<i32>} : memref<128x1152xbf16, #tpu.memory_space<vmem>>, vector<4x128xbf16>,
    %c101 = arith.constant 101 : index
    %c0_782 = arith.constant 0 : index
    %763 = tpu.strided_load %arg17[%c101, %c0_782] {strides = array<i32: 2, 1>} : memref<200x128xf32, #tpu.memory_space<vmem>>, vector<4x128xf32>
    %764 = arith.truncf %763 : vector<4x128xf32> to vector<4x128xbf16>
    %c16_783 = arith.constant 16 : index
    %c128_784 = arith.constant 128 : index
    %765 = vector.load %arg19[%c16_783, %c128_784] : memref<128x1152xbf16, #tpu.memory_space<vmem>>, vector<4x128xbf16>
    tpu.vector_store %arg19[%c16_783, %c128_784], %764 {strides = array<i32>} : memref<128x1152xbf16, #tpu.memory_space<vmem>>, vector<4x128xbf16>,
    %c102 = arith.constant 102 : index
    %c0_785 = arith.constant 0 : index
    %766 = tpu.strided_load %arg17[%c102, %c0_785] {strides = array<i32: 2, 1>} : memref<200x128xf32, #tpu.memory_space<vmem>>, vector<4x128xf32>
    %767 = arith.truncf %766 : vector<4x128xf32> to vector<4x128xbf16>
    %c16_786 = arith.constant 16 : index
    %c256_787 = arith.constant 256 : index
    %768 = vector.load %arg19[%c16_786, %c256_787] : memref<128x1152xbf16, #tpu.memory_space<vmem>>, vector<4x128xbf16>
    tpu.vector_store %arg19[%c16_786, %c256_787], %767 {strides = array<i32>} : memref<128x1152xbf16, #tpu.memory_space<vmem>>, vector<4x128xbf16>,
    %c110_788 = arith.constant 110 : index
    %c0_789 = arith.constant 0 : index
    %769 = tpu.strided_load %arg17[%c110_788, %c0_789] {strides = array<i32: 2, 1>} : memref<200x128xf32, #tpu.memory_space<vmem>>, vector<4x128xf32>
    %770 = arith.truncf %769 : vector<4x128xf32> to vector<4x128xbf16>
    %c16_790 = arith.constant 16 : index
    %c384_791 = arith.constant 384 : index
    %771 = vector.load %arg19[%c16_790, %c384_791] : memref<128x1152xbf16, #tpu.memory_space<vmem>>, vector<4x128xbf16>
    tpu.vector_store %arg19[%c16_790, %c384_791], %770 {strides = array<i32>} : memref<128x1152xbf16, #tpu.memory_space<vmem>>, vector<4x128xbf16>,
    %c111_792 = arith.constant 111 : index
    %c0_793 = arith.constant 0 : index
    %772 = tpu.strided_load %arg17[%c111_792, %c0_793] {strides = array<i32: 2, 1>} : memref<200x128xf32, #tpu.memory_space<vmem>>, vector<4x128xf32>
    %773 = arith.truncf %772 : vector<4x128xf32> to vector<4x128xbf16>
    %c16_794 = arith.constant 16 : index
    %c512_795 = arith.constant 512 : index
    %774 = vector.load %arg19[%c16_794, %c512_795] : memref<128x1152xbf16, #tpu.memory_space<vmem>>, vector<4x128xbf16>
    tpu.vector_store %arg19[%c16_794, %c512_795], %773 {strides = array<i32>} : memref<128x1152xbf16, #tpu.memory_space<vmem>>, vector<4x128xbf16>,
    %c112_796 = arith.constant 112 : index
    %c0_797 = arith.constant 0 : index
    %775 = tpu.strided_load %arg17[%c112_796, %c0_797] {strides = array<i32: 2, 1>} : memref<200x128xf32, #tpu.memory_space<vmem>>, vector<4x128xf32>
    %776 = arith.truncf %775 : vector<4x128xf32> to vector<4x128xbf16>
    %c16_798 = arith.constant 16 : index
    %c640_799 = arith.constant 640 : index
    %777 = vector.load %arg19[%c16_798, %c640_799] : memref<128x1152xbf16, #tpu.memory_space<vmem>>, vector<4x128xbf16>
    tpu.vector_store %arg19[%c16_798, %c640_799], %776 {strides = array<i32>} : memref<128x1152xbf16, #tpu.memory_space<vmem>>, vector<4x128xbf16>,
    %c120_800 = arith.constant 120 : index
    %c0_801 = arith.constant 0 : index
    %778 = tpu.strided_load %arg17[%c120_800, %c0_801] {strides = array<i32: 2, 1>} : memref<200x128xf32, #tpu.memory_space<vmem>>, vector<4x128xf32>
    %779 = arith.truncf %778 : vector<4x128xf32> to vector<4x128xbf16>
    %c16_802 = arith.constant 16 : index
    %c768_803 = arith.constant 768 : index
    %780 = vector.load %arg19[%c16_802, %c768_803] : memref<128x1152xbf16, #tpu.memory_space<vmem>>, vector<4x128xbf16>
    tpu.vector_store %arg19[%c16_802, %c768_803], %779 {strides = array<i32>} : memref<128x1152xbf16, #tpu.memory_space<vmem>>, vector<4x128xbf16>,
    %c121_804 = arith.constant 121 : index
    %c0_805 = arith.constant 0 : index
    %781 = tpu.strided_load %arg17[%c121_804, %c0_805] {strides = array<i32: 2, 1>} : memref<200x128xf32, #tpu.memory_space<vmem>>, vector<4x128xf32>
    %782 = arith.truncf %781 : vector<4x128xf32> to vector<4x128xbf16>
    %c16_806 = arith.constant 16 : index
    %c896_807 = arith.constant 896 : index
    %783 = vector.load %arg19[%c16_806, %c896_807] : memref<128x1152xbf16, #tpu.memory_space<vmem>>, vector<4x128xbf16>
    tpu.vector_store %arg19[%c16_806, %c896_807], %782 {strides = array<i32>} : memref<128x1152xbf16, #tpu.memory_space<vmem>>, vector<4x128xbf16>,
    %c122 = arith.constant 122 : index
    %c0_808 = arith.constant 0 : index
    %784 = tpu.strided_load %arg17[%c122, %c0_808] {strides = array<i32: 2, 1>} : memref<200x128xf32, #tpu.memory_space<vmem>>, vector<4x128xf32>
    %785 = arith.truncf %784 : vector<4x128xf32> to vector<4x128xbf16>
    %c16_809 = arith.constant 16 : index
    %c1024_810 = arith.constant 1024 : index
    %786 = vector.load %arg19[%c16_809, %c1024_810] : memref<128x1152xbf16, #tpu.memory_space<vmem>>, vector<4x128xbf16>
    tpu.vector_store %arg19[%c16_809, %c1024_810], %785 {strides = array<i32>} : memref<128x1152xbf16, #tpu.memory_space<vmem>>, vector<4x128xbf16>,
    %c120_811 = arith.constant 120 : index
    %c0_812 = arith.constant 0 : index
    %787 = tpu.strided_load %arg17[%c120_811, %c0_812] {strides = array<i32: 2, 1>} : memref<200x128xf32, #tpu.memory_space<vmem>>, vector<4x128xf32>
    %788 = arith.truncf %787 : vector<4x128xf32> to vector<4x128xbf16>
    %c20_813 = arith.constant 20 : index
    %c0_814 = arith.constant 0 : index
    %789 = vector.load %arg19[%c20_813, %c0_814] : memref<128x1152xbf16, #tpu.memory_space<vmem>>, vector<4x128xbf16>
    tpu.vector_store %arg19[%c20_813, %c0_814], %788 {strides = array<i32>} : memref<128x1152xbf16, #tpu.memory_space<vmem>>, vector<4x128xbf16>,
    %c121_815 = arith.constant 121 : index
    %c0_816 = arith.constant 0 : index
    %790 = tpu.strided_load %arg17[%c121_815, %c0_816] {strides = array<i32: 2, 1>} : memref<200x128xf32, #tpu.memory_space<vmem>>, vector<4x128xf32>
    %791 = arith.truncf %790 : vector<4x128xf32> to vector<4x128xbf16>
    %c20_817 = arith.constant 20 : index
    %c128_818 = arith.constant 128 : index
    %792 = vector.load %arg19[%c20_817, %c128_818] : memref<128x1152xbf16, #tpu.memory_space<vmem>>, vector<4x128xbf16>
    tpu.vector_store %arg19[%c20_817, %c128_818], %791 {strides = array<i32>} : memref<128x1152xbf16, #tpu.memory_space<vmem>>, vector<4x128xbf16>,
    %c122_819 = arith.constant 122 : index
    %c0_820 = arith.constant 0 : index
    %793 = tpu.strided_load %arg17[%c122_819, %c0_820] {strides = array<i32: 2, 1>} : memref<200x128xf32, #tpu.memory_space<vmem>>, vector<4x128xf32>
    %794 = arith.truncf %793 : vector<4x128xf32> to vector<4x128xbf16>
    %c20_821 = arith.constant 20 : index
    %c256_822 = arith.constant 256 : index
    %795 = vector.load %arg19[%c20_821, %c256_822] : memref<128x1152xbf16, #tpu.memory_space<vmem>>, vector<4x128xbf16>
    tpu.vector_store %arg19[%c20_821, %c256_822], %794 {strides = array<i32>} : memref<128x1152xbf16, #tpu.memory_space<vmem>>, vector<4x128xbf16>,
    %c130 = arith.constant 130 : index
    %c0_823 = arith.constant 0 : index
    %796 = tpu.strided_load %arg17[%c130, %c0_823] {strides = array<i32: 2, 1>} : memref<200x128xf32, #tpu.memory_space<vmem>>, vector<4x128xf32>
    %797 = arith.truncf %796 : vector<4x128xf32> to vector<4x128xbf16>
    %c20_824 = arith.constant 20 : index
    %c384_825 = arith.constant 384 : index
    %798 = vector.load %arg19[%c20_824, %c384_825] : memref<128x1152xbf16, #tpu.memory_space<vmem>>, vector<4x128xbf16>
    tpu.vector_store %arg19[%c20_824, %c384_825], %797 {strides = array<i32>} : memref<128x1152xbf16, #tpu.memory_space<vmem>>, vector<4x128xbf16>,
    %c131_826 = arith.constant 131 : index
    %c0_827 = arith.constant 0 : index
    %799 = tpu.strided_load %arg17[%c131_826, %c0_827] {strides = array<i32: 2, 1>} : memref<200x128xf32, #tpu.memory_space<vmem>>, vector<4x128xf32>
    %800 = arith.truncf %799 : vector<4x128xf32> to vector<4x128xbf16>
    %c20_828 = arith.constant 20 : index
    %c512_829 = arith.constant 512 : index
    %801 = vector.load %arg19[%c20_828, %c512_829] : memref<128x1152xbf16, #tpu.memory_space<vmem>>, vector<4x128xbf16>
    tpu.vector_store %arg19[%c20_828, %c512_829], %800 {strides = array<i32>} : memref<128x1152xbf16, #tpu.memory_space<vmem>>, vector<4x128xbf16>,
    %c132 = arith.constant 132 : index
    %c0_830 = arith.constant 0 : index
    %802 = tpu.strided_load %arg17[%c132, %c0_830] {strides = array<i32: 2, 1>} : memref<200x128xf32, #tpu.memory_space<vmem>>, vector<4x128xf32>
    %803 = arith.truncf %802 : vector<4x128xf32> to vector<4x128xbf16>
    %c20_831 = arith.constant 20 : index
    %c640_832 = arith.constant 640 : index
    %804 = vector.load %arg19[%c20_831, %c640_832] : memref<128x1152xbf16, #tpu.memory_space<vmem>>, vector<4x128xbf16>
    tpu.vector_store %arg19[%c20_831, %c640_832], %803 {strides = array<i32>} : memref<128x1152xbf16, #tpu.memory_space<vmem>>, vector<4x128xbf16>,
    %c140 = arith.constant 140 : index
    %c0_833 = arith.constant 0 : index
    %805 = tpu.strided_load %arg17[%c140, %c0_833] {strides = array<i32: 2, 1>} : memref<200x128xf32, #tpu.memory_space<vmem>>, vector<4x128xf32>
    %806 = arith.truncf %805 : vector<4x128xf32> to vector<4x128xbf16>
    %c20_834 = arith.constant 20 : index
    %c768_835 = arith.constant 768 : index
    %807 = vector.load %arg19[%c20_834, %c768_835] : memref<128x1152xbf16, #tpu.memory_space<vmem>>, vector<4x128xbf16>
    tpu.vector_store %arg19[%c20_834, %c768_835], %806 {strides = array<i32>} : memref<128x1152xbf16, #tpu.memory_space<vmem>>, vector<4x128xbf16>,
    %c141_836 = arith.constant 141 : index
    %c0_837 = arith.constant 0 : index
    %808 = tpu.strided_load %arg17[%c141_836, %c0_837] {strides = array<i32: 2, 1>} : memref<200x128xf32, #tpu.memory_space<vmem>>, vector<4x128xf32>
    %809 = arith.truncf %808 : vector<4x128xf32> to vector<4x128xbf16>
    %c20_838 = arith.constant 20 : index
    %c896_839 = arith.constant 896 : index
    %810 = vector.load %arg19[%c20_838, %c896_839] : memref<128x1152xbf16, #tpu.memory_space<vmem>>, vector<4x128xbf16>
    tpu.vector_store %arg19[%c20_838, %c896_839], %809 {strides = array<i32>} : memref<128x1152xbf16, #tpu.memory_space<vmem>>, vector<4x128xbf16>,
    %c142 = arith.constant 142 : index
    %c0_840 = arith.constant 0 : index
    %811 = tpu.strided_load %arg17[%c142, %c0_840] {strides = array<i32: 2, 1>} : memref<200x128xf32, #tpu.memory_space<vmem>>, vector<4x128xf32>
    %812 = arith.truncf %811 : vector<4x128xf32> to vector<4x128xbf16>
    %c20_841 = arith.constant 20 : index
    %c1024_842 = arith.constant 1024 : index
    %813 = vector.load %arg19[%c20_841, %c1024_842] : memref<128x1152xbf16, #tpu.memory_space<vmem>>, vector<4x128xbf16>
    tpu.vector_store %arg19[%c20_841, %c1024_842], %812 {strides = array<i32>} : memref<128x1152xbf16, #tpu.memory_space<vmem>>, vector<4x128xbf16>,
    %c140_843 = arith.constant 140 : index
    %c0_844 = arith.constant 0 : index
    %814 = tpu.strided_load %arg17[%c140_843, %c0_844] {strides = array<i32: 2, 1>} : memref<200x128xf32, #tpu.memory_space<vmem>>, vector<4x128xf32>
    %815 = arith.truncf %814 : vector<4x128xf32> to vector<4x128xbf16>
    %c24_845 = arith.constant 24 : index
    %c0_846 = arith.constant 0 : index
    %816 = vector.load %arg19[%c24_845, %c0_846] : memref<128x1152xbf16, #tpu.memory_space<vmem>>, vector<4x128xbf16>
    tpu.vector_store %arg19[%c24_845, %c0_846], %815 {strides = array<i32>} : memref<128x1152xbf16, #tpu.memory_space<vmem>>, vector<4x128xbf16>,
    %c141_847 = arith.constant 141 : index
    %c0_848 = arith.constant 0 : index
    %817 = tpu.strided_load %arg17[%c141_847, %c0_848] {strides = array<i32: 2, 1>} : memref<200x128xf32, #tpu.memory_space<vmem>>, vector<4x128xf32>
    %818 = arith.truncf %817 : vector<4x128xf32> to vector<4x128xbf16>
    %c24_849 = arith.constant 24 : index
    %c128_850 = arith.constant 128 : index
    %819 = vector.load %arg19[%c24_849, %c128_850] : memref<128x1152xbf16, #tpu.memory_space<vmem>>, vector<4x128xbf16>
    tpu.vector_store %arg19[%c24_849, %c128_850], %818 {strides = array<i32>} : memref<128x1152xbf16, #tpu.memory_space<vmem>>, vector<4x128xbf16>,
    %c142_851 = arith.constant 142 : index
    %c0_852 = arith.constant 0 : index
    %820 = tpu.strided_load %arg17[%c142_851, %c0_852] {strides = array<i32: 2, 1>} : memref<200x128xf32, #tpu.memory_space<vmem>>, vector<4x128xf32>
    %821 = arith.truncf %820 : vector<4x128xf32> to vector<4x128xbf16>
    %c24_853 = arith.constant 24 : index
    %c256_854 = arith.constant 256 : index
    %822 = vector.load %arg19[%c24_853, %c256_854] : memref<128x1152xbf16, #tpu.memory_space<vmem>>, vector<4x128xbf16>
    tpu.vector_store %arg19[%c24_853, %c256_854], %821 {strides = array<i32>} : memref<128x1152xbf16, #tpu.memory_space<vmem>>, vector<4x128xbf16>,
    %c150 = arith.constant 150 : index
    %c0_855 = arith.constant 0 : index
    %823 = tpu.strided_load %arg17[%c150, %c0_855] {strides = array<i32: 2, 1>} : memref<200x128xf32, #tpu.memory_space<vmem>>, vector<4x128xf32>
    %824 = arith.truncf %823 : vector<4x128xf32> to vector<4x128xbf16>
    %c24_856 = arith.constant 24 : index
    %c384_857 = arith.constant 384 : index
    %825 = vector.load %arg19[%c24_856, %c384_857] : memref<128x1152xbf16, #tpu.memory_space<vmem>>, vector<4x128xbf16>
    tpu.vector_store %arg19[%c24_856, %c384_857], %824 {strides = array<i32>} : memref<128x1152xbf16, #tpu.memory_space<vmem>>, vector<4x128xbf16>,
    %c151_858 = arith.constant 151 : index
    %c0_859 = arith.constant 0 : index
    %826 = tpu.strided_load %arg17[%c151_858, %c0_859] {strides = array<i32: 2, 1>} : memref<200x128xf32, #tpu.memory_space<vmem>>, vector<4x128xf32>
    %827 = arith.truncf %826 : vector<4x128xf32> to vector<4x128xbf16>
    %c24_860 = arith.constant 24 : index
    %c512_861 = arith.constant 512 : index
    %828 = vector.load %arg19[%c24_860, %c512_861] : memref<128x1152xbf16, #tpu.memory_space<vmem>>, vector<4x128xbf16>
    tpu.vector_store %arg19[%c24_860, %c512_861], %827 {strides = array<i32>} : memref<128x1152xbf16, #tpu.memory_space<vmem>>, vector<4x128xbf16>,
    %c152 = arith.constant 152 : index
    %c0_862 = arith.constant 0 : index
    %829 = tpu.strided_load %arg17[%c152, %c0_862] {strides = array<i32: 2, 1>} : memref<200x128xf32, #tpu.memory_space<vmem>>, vector<4x128xf32>
    %830 = arith.truncf %829 : vector<4x128xf32> to vector<4x128xbf16>
    %c24_863 = arith.constant 24 : index
    %c640_864 = arith.constant 640 : index
    %831 = vector.load %arg19[%c24_863, %c640_864] : memref<128x1152xbf16, #tpu.memory_space<vmem>>, vector<4x128xbf16>
    tpu.vector_store %arg19[%c24_863, %c640_864], %830 {strides = array<i32>} : memref<128x1152xbf16, #tpu.memory_space<vmem>>, vector<4x128xbf16>,
    %c160 = arith.constant 160 : index
    %c0_865 = arith.constant 0 : index
    %832 = tpu.strided_load %arg17[%c160, %c0_865] {strides = array<i32: 2, 1>} : memref<200x128xf32, #tpu.memory_space<vmem>>, vector<4x128xf32>
    %833 = arith.truncf %832 : vector<4x128xf32> to vector<4x128xbf16>
    %c24_866 = arith.constant 24 : index
    %c768_867 = arith.constant 768 : index
    %834 = vector.load %arg19[%c24_866, %c768_867] : memref<128x1152xbf16, #tpu.memory_space<vmem>>, vector<4x128xbf16>
    tpu.vector_store %arg19[%c24_866, %c768_867], %833 {strides = array<i32>} : memref<128x1152xbf16, #tpu.memory_space<vmem>>, vector<4x128xbf16>,
    %c161_868 = arith.constant 161 : index
    %c0_869 = arith.constant 0 : index
    %835 = tpu.strided_load %arg17[%c161_868, %c0_869] {strides = array<i32: 2, 1>} : memref<200x128xf32, #tpu.memory_space<vmem>>, vector<4x128xf32>
    %836 = arith.truncf %835 : vector<4x128xf32> to vector<4x128xbf16>
    %c24_870 = arith.constant 24 : index
    %c896_871 = arith.constant 896 : index
    %837 = vector.load %arg19[%c24_870, %c896_871] : memref<128x1152xbf16, #tpu.memory_space<vmem>>, vector<4x128xbf16>
    tpu.vector_store %arg19[%c24_870, %c896_871], %836 {strides = array<i32>} : memref<128x1152xbf16, #tpu.memory_space<vmem>>, vector<4x128xbf16>,
    %c162_872 = arith.constant 162 : index
    %c0_873 = arith.constant 0 : index
    %838 = tpu.strided_load %arg17[%c162_872, %c0_873] {strides = array<i32: 2, 1>} : memref<200x128xf32, #tpu.memory_space<vmem>>, vector<4x128xf32>
    %839 = arith.truncf %838 : vector<4x128xf32> to vector<4x128xbf16>
    %c24_874 = arith.constant 24 : index
    %c1024_875 = arith.constant 1024 : index
    %840 = vector.load %arg19[%c24_874, %c1024_875] : memref<128x1152xbf16, #tpu.memory_space<vmem>>, vector<4x128xbf16>
    tpu.vector_store %arg19[%c24_874, %c1024_875], %839 {strides = array<i32>} : memref<128x1152xbf16, #tpu.memory_space<vmem>>, vector<4x128xbf16>,
    %c160_876 = arith.constant 160 : index
    %c0_877 = arith.constant 0 : index
    %841 = tpu.strided_load %arg17[%c160_876, %c0_877] {strides = array<i32: 2, 1>} : memref<200x128xf32, #tpu.memory_space<vmem>>, vector<4x128xf32>
    %842 = arith.truncf %841 : vector<4x128xf32> to vector<4x128xbf16>
    %c28 = arith.constant 28 : index
    %c0_878 = arith.constant 0 : index
    %843 = vector.load %arg19[%c28, %c0_878] : memref<128x1152xbf16, #tpu.memory_space<vmem>>, vector<4x128xbf16>
    tpu.vector_store %arg19[%c28, %c0_878], %842 {strides = array<i32>} : memref<128x1152xbf16, #tpu.memory_space<vmem>>, vector<4x128xbf16>,
    %c161_879 = arith.constant 161 : index
    %c0_880 = arith.constant 0 : index
    %844 = tpu.strided_load %arg17[%c161_879, %c0_880] {strides = array<i32: 2, 1>} : memref<200x128xf32, #tpu.memory_space<vmem>>, vector<4x128xf32>
    %845 = arith.truncf %844 : vector<4x128xf32> to vector<4x128xbf16>
    %c28_881 = arith.constant 28 : index
    %c128_882 = arith.constant 128 : index
    %846 = vector.load %arg19[%c28_881, %c128_882] : memref<128x1152xbf16, #tpu.memory_space<vmem>>, vector<4x128xbf16>
    tpu.vector_store %arg19[%c28_881, %c128_882], %845 {strides = array<i32>} : memref<128x1152xbf16, #tpu.memory_space<vmem>>, vector<4x128xbf16>,
    %c162_883 = arith.constant 162 : index
    %c0_884 = arith.constant 0 : index
    %847 = tpu.strided_load %arg17[%c162_883, %c0_884] {strides = array<i32: 2, 1>} : memref<200x128xf32, #tpu.memory_space<vmem>>, vector<4x128xf32>
    %848 = arith.truncf %847 : vector<4x128xf32> to vector<4x128xbf16>
    %c28_885 = arith.constant 28 : index
    %c256_886 = arith.constant 256 : index
    %849 = vector.load %arg19[%c28_885, %c256_886] : memref<128x1152xbf16, #tpu.memory_space<vmem>>, vector<4x128xbf16>
    tpu.vector_store %arg19[%c28_885, %c256_886], %848 {strides = array<i32>} : memref<128x1152xbf16, #tpu.memory_space<vmem>>, vector<4x128xbf16>,
    %c170 = arith.constant 170 : index
    %c0_887 = arith.constant 0 : index
    %850 = tpu.strided_load %arg17[%c170, %c0_887] {strides = array<i32: 2, 1>} : memref<200x128xf32, #tpu.memory_space<vmem>>, vector<4x128xf32>
    %851 = arith.truncf %850 : vector<4x128xf32> to vector<4x128xbf16>
    %c28_888 = arith.constant 28 : index
    %c384_889 = arith.constant 384 : index
    %852 = vector.load %arg19[%c28_888, %c384_889] : memref<128x1152xbf16, #tpu.memory_space<vmem>>, vector<4x128xbf16>
    tpu.vector_store %arg19[%c28_888, %c384_889], %851 {strides = array<i32>} : memref<128x1152xbf16, #tpu.memory_space<vmem>>, vector<4x128xbf16>,
    %c171_890 = arith.constant 171 : index
    %c0_891 = arith.constant 0 : index
    %853 = tpu.strided_load %arg17[%c171_890, %c0_891] {strides = array<i32: 2, 1>} : memref<200x128xf32, #tpu.memory_space<vmem>>, vector<4x128xf32>
    %854 = arith.truncf %853 : vector<4x128xf32> to vector<4x128xbf16>
    %c28_892 = arith.constant 28 : index
    %c512_893 = arith.constant 512 : index
    %855 = vector.load %arg19[%c28_892, %c512_893] : memref<128x1152xbf16, #tpu.memory_space<vmem>>, vector<4x128xbf16>
    tpu.vector_store %arg19[%c28_892, %c512_893], %854 {strides = array<i32>} : memref<128x1152xbf16, #tpu.memory_space<vmem>>, vector<4x128xbf16>,
    %c172 = arith.constant 172 : index
    %c0_894 = arith.constant 0 : index
    %856 = tpu.strided_load %arg17[%c172, %c0_894] {strides = array<i32: 2, 1>} : memref<200x128xf32, #tpu.memory_space<vmem>>, vector<4x128xf32>
    %857 = arith.truncf %856 : vector<4x128xf32> to vector<4x128xbf16>
    %c28_895 = arith.constant 28 : index
    %c640_896 = arith.constant 640 : index
    %858 = vector.load %arg19[%c28_895, %c640_896] : memref<128x1152xbf16, #tpu.memory_space<vmem>>, vector<4x128xbf16>
    tpu.vector_store %arg19[%c28_895, %c640_896], %857 {strides = array<i32>} : memref<128x1152xbf16, #tpu.memory_space<vmem>>, vector<4x128xbf16>,
    %c180_897 = arith.constant 180 : index
    %c0_898 = arith.constant 0 : index
    %859 = tpu.strided_load %arg17[%c180_897, %c0_898] {strides = array<i32: 2, 1>} : memref<200x128xf32, #tpu.memory_space<vmem>>, vector<4x128xf32>
    %860 = arith.truncf %859 : vector<4x128xf32> to vector<4x128xbf16>
    %c28_899 = arith.constant 28 : index
    %c768_900 = arith.constant 768 : index
    %861 = vector.load %arg19[%c28_899, %c768_900] : memref<128x1152xbf16, #tpu.memory_space<vmem>>, vector<4x128xbf16>
    tpu.vector_store %arg19[%c28_899, %c768_900], %860 {strides = array<i32>} : memref<128x1152xbf16, #tpu.memory_space<vmem>>, vector<4x128xbf16>,
    %c181_901 = arith.constant 181 : index
    %c0_902 = arith.constant 0 : index
    %862 = tpu.strided_load %arg17[%c181_901, %c0_902] {strides = array<i32: 2, 1>} : memref<200x128xf32, #tpu.memory_space<vmem>>, vector<4x128xf32>
    %863 = arith.truncf %862 : vector<4x128xf32> to vector<4x128xbf16>
    %c28_903 = arith.constant 28 : index
    %c896_904 = arith.constant 896 : index
    %864 = vector.load %arg19[%c28_903, %c896_904] : memref<128x1152xbf16, #tpu.memory_space<vmem>>, vector<4x128xbf16>
    tpu.vector_store %arg19[%c28_903, %c896_904], %863 {strides = array<i32>} : memref<128x1152xbf16, #tpu.memory_space<vmem>>, vector<4x128xbf16>,
    %c182_905 = arith.constant 182 : index
    %c0_906 = arith.constant 0 : index
    %865 = tpu.strided_load %arg17[%c182_905, %c0_906] {strides = array<i32: 2, 1>} : memref<200x128xf32, #tpu.memory_space<vmem>>, vector<4x128xf32>
    %866 = arith.truncf %865 : vector<4x128xf32> to vector<4x128xbf16>
    %c28_907 = arith.constant 28 : index
    %c1024_908 = arith.constant 1024 : index
    %867 = vector.load %arg19[%c28_907, %c1024_908] : memref<128x1152xbf16, #tpu.memory_space<vmem>>, vector<4x128xbf16>
    tpu.vector_store %arg19[%c28_907, %c1024_908], %866 {strides = array<i32>} : memref<128x1152xbf16, #tpu.memory_space<vmem>>, vector<4x128xbf16>,
    %c0_909 = arith.constant 0 : index
    %c0_910 = arith.constant 0 : index
    %868 = vector.load %arg19[%c0_909, %c0_910] : memref<128x1152xbf16, #tpu.memory_space<vmem>>, vector<32x1152xbf16>
    %c0_911 = arith.constant 0 : index
    %c0_912 = arith.constant 0 : index
    %869 = vector.load %arg7[%c0_911, %c0_912] : memref<1152x128xbf16, #tpu.memory_space<vmem>>, vector<1152x128xbf16>
    %cst_913 = arith.constant dense<0.000000e+00> : vector<32x128xf32>
    %870 = tpu.matmul %868, %869, %cst_913 {dimension_numbers = #tpu.dot_dimension_numbers<[1], [0], [0], [1], [0, 0, 1, 1], [], []>} : vector<32x1152xbf16>, vector<1152x128xbf16>, vector<32x128xf32> -> vector<32x128xf32>
    %cst_914 = arith.constant dense<0.000000e+00> : vector<128xf32>
    %871 = vector.multi_reduction <add>, %870, %cst_914 [0] : vector<32x128xf32> to vector<128xf32>
    %872 = vector.shape_cast %871 : vector<128xf32> to vector<1x128xf32>
    %873 = arith.mulf %870, %870 : vector<32x128xf32>
    %cst_915 = arith.constant dense<0.000000e+00> : vector<128xf32>
    %874 = vector.multi_reduction <add>, %873, %cst_915 [0] : vector<32x128xf32> to vector<128xf32>
    %875 = vector.shape_cast %874 : vector<128xf32> to vector<1x128xf32>
    %cst_916 = arith.constant 3.125000e-02 : f32
    %876 = vector.broadcast %cst_916 : f32 to vector<1x128xf32>
    %877 = arith.mulf %872, %876 : vector<1x128xf32>
    %cst_917 = arith.constant 3.125000e-02 : f32
    %878 = vector.broadcast %cst_917 : f32 to vector<1x128xf32>
    %879 = arith.mulf %875, %878 : vector<1x128xf32>
    %880 = arith.mulf %877, %877 : vector<1x128xf32>
    %881 = arith.subf %879, %880 : vector<1x128xf32>
    %c0_918 = arith.constant 0 : index
    %c0_919 = arith.constant 0 : index
    %882 = vector.load %arg8[%c0_918, %c0_919] : memref<1x128xf32, #tpu.memory_space<vmem>>, vector<1x128xf32>
    %cst_920 = arith.constant 9.99999974E-6 : f32
    %883 = vector.broadcast %cst_920 : f32 to vector<1x128xf32>
    %884 = arith.addf %881, %883 : vector<1x128xf32>
    %885 = math.rsqrt %884 : vector<1x128xf32>
    %886 = arith.mulf %882, %885 : vector<1x128xf32>
    %c0_921 = arith.constant 0 : index
    %c0_922 = arith.constant 0 : index
    %887 = vector.load %arg9[%c0_921, %c0_922] : memref<1x128xf32, #tpu.memory_space<vmem>>, vector<1x128xf32>
    %888 = arith.mulf %877, %886 : vector<1x128xf32>
    %889 = arith.subf %887, %888 : vector<1x128xf32>
    %890 = vector.broadcast %886 : vector<1x128xf32> to vector<32x128xf32>
    %891 = arith.mulf %870, %890 : vector<32x128xf32>
    %892 = vector.broadcast %889 : vector<1x128xf32> to vector<32x128xf32>
    %893 = arith.addf %891, %892 : vector<32x128xf32>
    %cst_923 = arith.constant 0.000000e+00 : f32
    %894 = vector.broadcast %cst_923 : f32 to vector<32x128xf32>
    %895 = arith.maximumf %893, %894 : vector<32x128xf32>
    %896 = vector.extract_strided_slice %895 {offsets = [0, 0], sizes = [4, 128], strides = [1, 1]} : vector<32x128xf32> to vector<4x128xf32>
    %c7 = arith.constant 7 : index
    %c0_924 = arith.constant 0 : index
    %897 = vector.load %arg18[%c7, %c0_924] : memref<72x128xf32, #tpu.memory_space<vmem>>, vector<4x128xf32>
    tpu.vector_store %arg18[%c7, %c0_924], %896 {strides = array<i32>} : memref<72x128xf32, #tpu.memory_space<vmem>>, vector<4x128xf32>,
    %898 = vector.extract_strided_slice %895 {offsets = [4, 0], sizes = [4, 128], strides = [1, 1]} : vector<32x128xf32> to vector<4x128xf32>
    %c13 = arith.constant 13 : index
    %c0_925 = arith.constant 0 : index
    %899 = vector.load %arg18[%c13, %c0_925] : memref<72x128xf32, #tpu.memory_space<vmem>>, vector<4x128xf32>
    tpu.vector_store %arg18[%c13, %c0_925], %898 {strides = array<i32>} : memref<72x128xf32, #tpu.memory_space<vmem>>, vector<4x128xf32>,
    %900 = vector.extract_strided_slice %895 {offsets = [8, 0], sizes = [4, 128], strides = [1, 1]} : vector<32x128xf32> to vector<4x128xf32>
    %c19_926 = arith.constant 19 : index
    %c0_927 = arith.constant 0 : index
    %901 = vector.load %arg18[%c19_926, %c0_927] : memref<72x128xf32, #tpu.memory_space<vmem>>, vector<4x128xf32>
    tpu.vector_store %arg18[%c19_926, %c0_927], %900 {strides = array<i32>} : memref<72x128xf32, #tpu.memory_space<vmem>>, vector<4x128xf32>,
    %902 = vector.extract_strided_slice %895 {offsets = [12, 0], sizes = [4, 128], strides = [1, 1]} : vector<32x128xf32> to vector<4x128xf32>
    %c25 = arith.constant 25 : index
    %c0_928 = arith.constant 0 : index
    %903 = vector.load %arg18[%c25, %c0_928] : memref<72x128xf32, #tpu.memory_space<vmem>>, vector<4x128xf32>
    tpu.vector_store %arg18[%c25, %c0_928], %902 {strides = array<i32>} : memref<72x128xf32, #tpu.memory_space<vmem>>, vector<4x128xf32>,
    %904 = vector.extract_strided_slice %895 {offsets = [16, 0], sizes = [4, 128], strides = [1, 1]} : vector<32x128xf32> to vector<4x128xf32>
    %c43 = arith.constant 43 : index
    %c0_929 = arith.constant 0 : index
    %905 = vector.load %arg18[%c43, %c0_929] : memref<72x128xf32, #tpu.memory_space<vmem>>, vector<4x128xf32>
    tpu.vector_store %arg18[%c43, %c0_929], %904 {strides = array<i32>} : memref<72x128xf32, #tpu.memory_space<vmem>>, vector<4x128xf32>,
    %906 = vector.extract_strided_slice %895 {offsets = [20, 0], sizes = [4, 128], strides = [1, 1]} : vector<32x128xf32> to vector<4x128xf32>
    %c49_930 = arith.constant 49 : index
    %c0_931 = arith.constant 0 : index
    %907 = vector.load %arg18[%c49_930, %c0_931] : memref<72x128xf32, #tpu.memory_space<vmem>>, vector<4x128xf32>
    tpu.vector_store %arg18[%c49_930, %c0_931], %906 {strides = array<i32>} : memref<72x128xf32, #tpu.memory_space<vmem>>, vector<4x128xf32>,
    %908 = vector.extract_strided_slice %895 {offsets = [24, 0], sizes = [4, 128], strides = [1, 1]} : vector<32x128xf32> to vector<4x128xf32>
    %c55_932 = arith.constant 55 : index
    %c0_933 = arith.constant 0 : index
    %909 = vector.load %arg18[%c55_932, %c0_933] : memref<72x128xf32, #tpu.memory_space<vmem>>, vector<4x128xf32>
    tpu.vector_store %arg18[%c55_932, %c0_933], %908 {strides = array<i32>} : memref<72x128xf32, #tpu.memory_space<vmem>>, vector<4x128xf32>,
    %910 = vector.extract_strided_slice %895 {offsets = [28, 0], sizes = [4, 128], strides = [1, 1]} : vector<32x128xf32> to vector<4x128xf32>
    %c61_934 = arith.constant 61 : index
    %c0_935 = arith.constant 0 : index
    %911 = vector.load %arg18[%c61_934, %c0_935] : memref<72x128xf32, #tpu.memory_space<vmem>>, vector<4x128xf32>
    tpu.vector_store %arg18[%c61_934, %c0_935], %910 {strides = array<i32>} : memref<72x128xf32, #tpu.memory_space<vmem>>, vector<4x128xf32>,
    %c0_936 = arith.constant 0 : index
    %c0_937 = arith.constant 0 : index
    %912 = tpu.strided_load %arg18[%c0_936, %c0_937] {strides = array<i32: 2, 1>} : memref<72x128xf32, #tpu.memory_space<vmem>>, vector<2x128xf32>
    %913 = arith.truncf %912 : vector<2x128xf32> to vector<2x128xbf16>
    %c0_938 = arith.constant 0 : index
    %c0_939 = arith.constant 0 : index
    %914 = vector.load %arg19[%c0_938, %c0_939] : memref<128x1152xbf16, #tpu.memory_space<vmem>>, vector<2x128xbf16>
    tpu.vector_store %arg19[%c0_938, %c0_939], %913 {strides = array<i32>} : memref<128x1152xbf16, #tpu.memory_space<vmem>>, vector<2x128xbf16>,
    %c1_940 = arith.constant 1 : index
    %c0_941 = arith.constant 0 : index
    %915 = tpu.strided_load %arg18[%c1_940, %c0_941] {strides = array<i32: 2, 1>} : memref<72x128xf32, #tpu.memory_space<vmem>>, vector<2x128xf32>
    %916 = arith.truncf %915 : vector<2x128xf32> to vector<2x128xbf16>
    %c0_942 = arith.constant 0 : index
    %c128_943 = arith.constant 128 : index
    %917 = vector.load %arg19[%c0_942, %c128_943] : memref<128x1152xbf16, #tpu.memory_space<vmem>>, vector<2x128xbf16>
    tpu.vector_store %arg19[%c0_942, %c128_943], %916 {strides = array<i32>} : memref<128x1152xbf16, #tpu.memory_space<vmem>>, vector<2x128xbf16>,
    %c2_944 = arith.constant 2 : index
    %c0_945 = arith.constant 0 : index
    %918 = tpu.strided_load %arg18[%c2_944, %c0_945] {strides = array<i32: 2, 1>} : memref<72x128xf32, #tpu.memory_space<vmem>>, vector<2x128xf32>
    %919 = arith.truncf %918 : vector<2x128xf32> to vector<2x128xbf16>
    %c0_946 = arith.constant 0 : index
    %c256_947 = arith.constant 256 : index
    %920 = vector.load %arg19[%c0_946, %c256_947] : memref<128x1152xbf16, #tpu.memory_space<vmem>>, vector<2x128xbf16>
    tpu.vector_store %arg19[%c0_946, %c256_947], %919 {strides = array<i32>} : memref<128x1152xbf16, #tpu.memory_space<vmem>>, vector<2x128xbf16>,
    %c6 = arith.constant 6 : index
    %c0_948 = arith.constant 0 : index
    %921 = tpu.strided_load %arg18[%c6, %c0_948] {strides = array<i32: 2, 1>} : memref<72x128xf32, #tpu.memory_space<vmem>>, vector<2x128xf32>
    %922 = arith.truncf %921 : vector<2x128xf32> to vector<2x128xbf16>
    %c0_949 = arith.constant 0 : index
    %c384_950 = arith.constant 384 : index
    %923 = vector.load %arg19[%c0_949, %c384_950] : memref<128x1152xbf16, #tpu.memory_space<vmem>>, vector<2x128xbf16>
    tpu.vector_store %arg19[%c0_949, %c384_950], %922 {strides = array<i32>} : memref<128x1152xbf16, #tpu.memory_space<vmem>>, vector<2x128xbf16>,
    %c7_951 = arith.constant 7 : index
    %c0_952 = arith.constant 0 : index
    %924 = tpu.strided_load %arg18[%c7_951, %c0_952] {strides = array<i32: 2, 1>} : memref<72x128xf32, #tpu.memory_space<vmem>>, vector<2x128xf32>
    %925 = arith.truncf %924 : vector<2x128xf32> to vector<2x128xbf16>
    %c0_953 = arith.constant 0 : index
    %c512_954 = arith.constant 512 : index
    %926 = vector.load %arg19[%c0_953, %c512_954] : memref<128x1152xbf16, #tpu.memory_space<vmem>>, vector<2x128xbf16>
    tpu.vector_store %arg19[%c0_953, %c512_954], %925 {strides = array<i32>} : memref<128x1152xbf16, #tpu.memory_space<vmem>>, vector<2x128xbf16>,
    %c8_955 = arith.constant 8 : index
    %c0_956 = arith.constant 0 : index
    %927 = tpu.strided_load %arg18[%c8_955, %c0_956] {strides = array<i32: 2, 1>} : memref<72x128xf32, #tpu.memory_space<vmem>>, vector<2x128xf32>
    %928 = arith.truncf %927 : vector<2x128xf32> to vector<2x128xbf16>
    %c0_957 = arith.constant 0 : index
    %c640_958 = arith.constant 640 : index
    %929 = vector.load %arg19[%c0_957, %c640_958] : memref<128x1152xbf16, #tpu.memory_space<vmem>>, vector<2x128xbf16>
    tpu.vector_store %arg19[%c0_957, %c640_958], %928 {strides = array<i32>} : memref<128x1152xbf16, #tpu.memory_space<vmem>>, vector<2x128xbf16>,
    %c12_959 = arith.constant 12 : index
    %c0_960 = arith.constant 0 : index
    %930 = tpu.strided_load %arg18[%c12_959, %c0_960] {strides = array<i32: 2, 1>} : memref<72x128xf32, #tpu.memory_space<vmem>>, vector<2x128xf32>
    %931 = arith.truncf %930 : vector<2x128xf32> to vector<2x128xbf16>
    %c0_961 = arith.constant 0 : index
    %c768_962 = arith.constant 768 : index
    %932 = vector.load %arg19[%c0_961, %c768_962] : memref<128x1152xbf16, #tpu.memory_space<vmem>>, vector<2x128xbf16>
    tpu.vector_store %arg19[%c0_961, %c768_962], %931 {strides = array<i32>} : memref<128x1152xbf16, #tpu.memory_space<vmem>>, vector<2x128xbf16>,
    %c13_963 = arith.constant 13 : index
    %c0_964 = arith.constant 0 : index
    %933 = tpu.strided_load %arg18[%c13_963, %c0_964] {strides = array<i32: 2, 1>} : memref<72x128xf32, #tpu.memory_space<vmem>>, vector<2x128xf32>
    %934 = arith.truncf %933 : vector<2x128xf32> to vector<2x128xbf16>
    %c0_965 = arith.constant 0 : index
    %c896_966 = arith.constant 896 : index
    %935 = vector.load %arg19[%c0_965, %c896_966] : memref<128x1152xbf16, #tpu.memory_space<vmem>>, vector<2x128xbf16>
    tpu.vector_store %arg19[%c0_965, %c896_966], %934 {strides = array<i32>} : memref<128x1152xbf16, #tpu.memory_space<vmem>>, vector<2x128xbf16>,
    %c14 = arith.constant 14 : index
    %c0_967 = arith.constant 0 : index
    %936 = tpu.strided_load %arg18[%c14, %c0_967] {strides = array<i32: 2, 1>} : memref<72x128xf32, #tpu.memory_space<vmem>>, vector<2x128xf32>
    %937 = arith.truncf %936 : vector<2x128xf32> to vector<2x128xbf16>
    %c0_968 = arith.constant 0 : index
    %c1024_969 = arith.constant 1024 : index
    %938 = vector.load %arg19[%c0_968, %c1024_969] : memref<128x1152xbf16, #tpu.memory_space<vmem>>, vector<2x128xbf16>
    tpu.vector_store %arg19[%c0_968, %c1024_969], %937 {strides = array<i32>} : memref<128x1152xbf16, #tpu.memory_space<vmem>>, vector<2x128xbf16>,
    %c12_970 = arith.constant 12 : index
    %c0_971 = arith.constant 0 : index
    %939 = tpu.strided_load %arg18[%c12_970, %c0_971] {strides = array<i32: 2, 1>} : memref<72x128xf32, #tpu.memory_space<vmem>>, vector<2x128xf32>
    %940 = arith.truncf %939 : vector<2x128xf32> to vector<2x128xbf16>
    %c2_972 = arith.constant 2 : index
    %c0_973 = arith.constant 0 : index
    %941 = vector.load %arg19[%c2_972, %c0_973] : memref<128x1152xbf16, #tpu.memory_space<vmem>>, vector<2x128xbf16>
    tpu.vector_store %arg19[%c2_972, %c0_973], %940 {strides = array<i32>} : memref<128x1152xbf16, #tpu.memory_space<vmem>>, vector<2x128xbf16>,
    %c13_974 = arith.constant 13 : index
    %c0_975 = arith.constant 0 : index
    %942 = tpu.strided_load %arg18[%c13_974, %c0_975] {strides = array<i32: 2, 1>} : memref<72x128xf32, #tpu.memory_space<vmem>>, vector<2x128xf32>
    %943 = arith.truncf %942 : vector<2x128xf32> to vector<2x128xbf16>
    %c2_976 = arith.constant 2 : index
    %c128_977 = arith.constant 128 : index
    %944 = vector.load %arg19[%c2_976, %c128_977] : memref<128x1152xbf16, #tpu.memory_space<vmem>>, vector<2x128xbf16>
    tpu.vector_store %arg19[%c2_976, %c128_977], %943 {strides = array<i32>} : memref<128x1152xbf16, #tpu.memory_space<vmem>>, vector<2x128xbf16>,
    %c14_978 = arith.constant 14 : index
    %c0_979 = arith.constant 0 : index
    %945 = tpu.strided_load %arg18[%c14_978, %c0_979] {strides = array<i32: 2, 1>} : memref<72x128xf32, #tpu.memory_space<vmem>>, vector<2x128xf32>
    %946 = arith.truncf %945 : vector<2x128xf32> to vector<2x128xbf16>
    %c2_980 = arith.constant 2 : index
    %c256_981 = arith.constant 256 : index
    %947 = vector.load %arg19[%c2_980, %c256_981] : memref<128x1152xbf16, #tpu.memory_space<vmem>>, vector<2x128xbf16>
    tpu.vector_store %arg19[%c2_980, %c256_981], %946 {strides = array<i32>} : memref<128x1152xbf16, #tpu.memory_space<vmem>>, vector<2x128xbf16>,
    %c18_982 = arith.constant 18 : index
    %c0_983 = arith.constant 0 : index
    %948 = tpu.strided_load %arg18[%c18_982, %c0_983] {strides = array<i32: 2, 1>} : memref<72x128xf32, #tpu.memory_space<vmem>>, vector<2x128xf32>
    %949 = arith.truncf %948 : vector<2x128xf32> to vector<2x128xbf16>
    %c2_984 = arith.constant 2 : index
    %c384_985 = arith.constant 384 : index
    %950 = vector.load %arg19[%c2_984, %c384_985] : memref<128x1152xbf16, #tpu.memory_space<vmem>>, vector<2x128xbf16>
    tpu.vector_store %arg19[%c2_984, %c384_985], %949 {strides = array<i32>} : memref<128x1152xbf16, #tpu.memory_space<vmem>>, vector<2x128xbf16>,
    %c19_986 = arith.constant 19 : index
    %c0_987 = arith.constant 0 : index
    %951 = tpu.strided_load %arg18[%c19_986, %c0_987] {strides = array<i32: 2, 1>} : memref<72x128xf32, #tpu.memory_space<vmem>>, vector<2x128xf32>
    %952 = arith.truncf %951 : vector<2x128xf32> to vector<2x128xbf16>
    %c2_988 = arith.constant 2 : index
    %c512_989 = arith.constant 512 : index
    %953 = vector.load %arg19[%c2_988, %c512_989] : memref<128x1152xbf16, #tpu.memory_space<vmem>>, vector<2x128xbf16>
    tpu.vector_store %arg19[%c2_988, %c512_989], %952 {strides = array<i32>} : memref<128x1152xbf16, #tpu.memory_space<vmem>>, vector<2x128xbf16>,
    %c20_990 = arith.constant 20 : index
    %c0_991 = arith.constant 0 : index
    %954 = tpu.strided_load %arg18[%c20_990, %c0_991] {strides = array<i32: 2, 1>} : memref<72x128xf32, #tpu.memory_space<vmem>>, vector<2x128xf32>
    %955 = arith.truncf %954 : vector<2x128xf32> to vector<2x128xbf16>
    %c2_992 = arith.constant 2 : index
    %c640_993 = arith.constant 640 : index
    %956 = vector.load %arg19[%c2_992, %c640_993] : memref<128x1152xbf16, #tpu.memory_space<vmem>>, vector<2x128xbf16>
    tpu.vector_store %arg19[%c2_992, %c640_993], %955 {strides = array<i32>} : memref<128x1152xbf16, #tpu.memory_space<vmem>>, vector<2x128xbf16>,
    %c24_994 = arith.constant 24 : index
    %c0_995 = arith.constant 0 : index
    %957 = tpu.strided_load %arg18[%c24_994, %c0_995] {strides = array<i32: 2, 1>} : memref<72x128xf32, #tpu.memory_space<vmem>>, vector<2x128xf32>
    %958 = arith.truncf %957 : vector<2x128xf32> to vector<2x128xbf16>
    %c2_996 = arith.constant 2 : index
    %c768_997 = arith.constant 768 : index
    %959 = vector.load %arg19[%c2_996, %c768_997] : memref<128x1152xbf16, #tpu.memory_space<vmem>>, vector<2x128xbf16>
    tpu.vector_store %arg19[%c2_996, %c768_997], %958 {strides = array<i32>} : memref<128x1152xbf16, #tpu.memory_space<vmem>>, vector<2x128xbf16>,
    %c25_998 = arith.constant 25 : index
    %c0_999 = arith.constant 0 : index
    %960 = tpu.strided_load %arg18[%c25_998, %c0_999] {strides = array<i32: 2, 1>} : memref<72x128xf32, #tpu.memory_space<vmem>>, vector<2x128xf32>
    %961 = arith.truncf %960 : vector<2x128xf32> to vector<2x128xbf16>
    %c2_1000 = arith.constant 2 : index
    %c896_1001 = arith.constant 896 : index
    %962 = vector.load %arg19[%c2_1000, %c896_1001] : memref<128x1152xbf16, #tpu.memory_space<vmem>>, vector<2x128xbf16>
    tpu.vector_store %arg19[%c2_1000, %c896_1001], %961 {strides = array<i32>} : memref<128x1152xbf16, #tpu.memory_space<vmem>>, vector<2x128xbf16>,
    %c26 = arith.constant 26 : index
    %c0_1002 = arith.constant 0 : index
    %963 = tpu.strided_load %arg18[%c26, %c0_1002] {strides = array<i32: 2, 1>} : memref<72x128xf32, #tpu.memory_space<vmem>>, vector<2x128xf32>
    %964 = arith.truncf %963 : vector<2x128xf32> to vector<2x128xbf16>
    %c2_1003 = arith.constant 2 : index
    %c1024_1004 = arith.constant 1024 : index
    %965 = vector.load %arg19[%c2_1003, %c1024_1004] : memref<128x1152xbf16, #tpu.memory_space<vmem>>, vector<2x128xbf16>
    tpu.vector_store %arg19[%c2_1003, %c1024_1004], %964 {strides = array<i32>} : memref<128x1152xbf16, #tpu.memory_space<vmem>>, vector<2x128xbf16>,
    %c36_1005 = arith.constant 36 : index
    %c0_1006 = arith.constant 0 : index
    %966 = tpu.strided_load %arg18[%c36_1005, %c0_1006] {strides = array<i32: 2, 1>} : memref<72x128xf32, #tpu.memory_space<vmem>>, vector<2x128xf32>
    %967 = arith.truncf %966 : vector<2x128xf32> to vector<2x128xbf16>
    %c4_1007 = arith.constant 4 : index
    %c0_1008 = arith.constant 0 : index
    %968 = vector.load %arg19[%c4_1007, %c0_1008] : memref<128x1152xbf16, #tpu.memory_space<vmem>>, vector<2x128xbf16>
    tpu.vector_store %arg19[%c4_1007, %c0_1008], %967 {strides = array<i32>} : memref<128x1152xbf16, #tpu.memory_space<vmem>>, vector<2x128xbf16>,
    %c37_1009 = arith.constant 37 : index
    %c0_1010 = arith.constant 0 : index
    %969 = tpu.strided_load %arg18[%c37_1009, %c0_1010] {strides = array<i32: 2, 1>} : memref<72x128xf32, #tpu.memory_space<vmem>>, vector<2x128xf32>
    %970 = arith.truncf %969 : vector<2x128xf32> to vector<2x128xbf16>
    %c4_1011 = arith.constant 4 : index
    %c128_1012 = arith.constant 128 : index
    %971 = vector.load %arg19[%c4_1011, %c128_1012] : memref<128x1152xbf16, #tpu.memory_space<vmem>>, vector<2x128xbf16>
    tpu.vector_store %arg19[%c4_1011, %c128_1012], %970 {strides = array<i32>} : memref<128x1152xbf16, #tpu.memory_space<vmem>>, vector<2x128xbf16>,
    %c38_1013 = arith.constant 38 : index
    %c0_1014 = arith.constant 0 : index
    %972 = tpu.strided_load %arg18[%c38_1013, %c0_1014] {strides = array<i32: 2, 1>} : memref<72x128xf32, #tpu.memory_space<vmem>>, vector<2x128xf32>
    %973 = arith.truncf %972 : vector<2x128xf32> to vector<2x128xbf16>
    %c4_1015 = arith.constant 4 : index
    %c256_1016 = arith.constant 256 : index
    %974 = vector.load %arg19[%c4_1015, %c256_1016] : memref<128x1152xbf16, #tpu.memory_space<vmem>>, vector<2x128xbf16>
    tpu.vector_store %arg19[%c4_1015, %c256_1016], %973 {strides = array<i32>} : memref<128x1152xbf16, #tpu.memory_space<vmem>>, vector<2x128xbf16>,
    %c42_1017 = arith.constant 42 : index
    %c0_1018 = arith.constant 0 : index
    %975 = tpu.strided_load %arg18[%c42_1017, %c0_1018] {strides = array<i32: 2, 1>} : memref<72x128xf32, #tpu.memory_space<vmem>>, vector<2x128xf32>
    %976 = arith.truncf %975 : vector<2x128xf32> to vector<2x128xbf16>
    %c4_1019 = arith.constant 4 : index
    %c384_1020 = arith.constant 384 : index
    %977 = vector.load %arg19[%c4_1019, %c384_1020] : memref<128x1152xbf16, #tpu.memory_space<vmem>>, vector<2x128xbf16>
    tpu.vector_store %arg19[%c4_1019, %c384_1020], %976 {strides = array<i32>} : memref<128x1152xbf16, #tpu.memory_space<vmem>>, vector<2x128xbf16>,
    %c43_1021 = arith.constant 43 : index
    %c0_1022 = arith.constant 0 : index
    %978 = tpu.strided_load %arg18[%c43_1021, %c0_1022] {strides = array<i32: 2, 1>} : memref<72x128xf32, #tpu.memory_space<vmem>>, vector<2x128xf32>
    %979 = arith.truncf %978 : vector<2x128xf32> to vector<2x128xbf16>
    %c4_1023 = arith.constant 4 : index
    %c512_1024 = arith.constant 512 : index
    %980 = vector.load %arg19[%c4_1023, %c512_1024] : memref<128x1152xbf16, #tpu.memory_space<vmem>>, vector<2x128xbf16>
    tpu.vector_store %arg19[%c4_1023, %c512_1024], %979 {strides = array<i32>} : memref<128x1152xbf16, #tpu.memory_space<vmem>>, vector<2x128xbf16>,
    %c44 = arith.constant 44 : index
    %c0_1025 = arith.constant 0 : index
    %981 = tpu.strided_load %arg18[%c44, %c0_1025] {strides = array<i32: 2, 1>} : memref<72x128xf32, #tpu.memory_space<vmem>>, vector<2x128xf32>
    %982 = arith.truncf %981 : vector<2x128xf32> to vector<2x128xbf16>
    %c4_1026 = arith.constant 4 : index
    %c640_1027 = arith.constant 640 : index
    %983 = vector.load %arg19[%c4_1026, %c640_1027] : memref<128x1152xbf16, #tpu.memory_space<vmem>>, vector<2x128xbf16>
    tpu.vector_store %arg19[%c4_1026, %c640_1027], %982 {strides = array<i32>} : memref<128x1152xbf16, #tpu.memory_space<vmem>>, vector<2x128xbf16>,
    %c48_1028 = arith.constant 48 : index
    %c0_1029 = arith.constant 0 : index
    %984 = tpu.strided_load %arg18[%c48_1028, %c0_1029] {strides = array<i32: 2, 1>} : memref<72x128xf32, #tpu.memory_space<vmem>>, vector<2x128xf32>
    %985 = arith.truncf %984 : vector<2x128xf32> to vector<2x128xbf16>
    %c4_1030 = arith.constant 4 : index
    %c768_1031 = arith.constant 768 : index
    %986 = vector.load %arg19[%c4_1030, %c768_1031] : memref<128x1152xbf16, #tpu.memory_space<vmem>>, vector<2x128xbf16>
    tpu.vector_store %arg19[%c4_1030, %c768_1031], %985 {strides = array<i32>} : memref<128x1152xbf16, #tpu.memory_space<vmem>>, vector<2x128xbf16>,
    %c49_1032 = arith.constant 49 : index
    %c0_1033 = arith.constant 0 : index
    %987 = tpu.strided_load %arg18[%c49_1032, %c0_1033] {strides = array<i32: 2, 1>} : memref<72x128xf32, #tpu.memory_space<vmem>>, vector<2x128xf32>
    %988 = arith.truncf %987 : vector<2x128xf32> to vector<2x128xbf16>
    %c4_1034 = arith.constant 4 : index
    %c896_1035 = arith.constant 896 : index
    %989 = vector.load %arg19[%c4_1034, %c896_1035] : memref<128x1152xbf16, #tpu.memory_space<vmem>>, vector<2x128xbf16>
    tpu.vector_store %arg19[%c4_1034, %c896_1035], %988 {strides = array<i32>} : memref<128x1152xbf16, #tpu.memory_space<vmem>>, vector<2x128xbf16>,
    %c50_1036 = arith.constant 50 : index
    %c0_1037 = arith.constant 0 : index
    %990 = tpu.strided_load %arg18[%c50_1036, %c0_1037] {strides = array<i32: 2, 1>} : memref<72x128xf32, #tpu.memory_space<vmem>>, vector<2x128xf32>
    %991 = arith.truncf %990 : vector<2x128xf32> to vector<2x128xbf16>
    %c4_1038 = arith.constant 4 : index
    %c1024_1039 = arith.constant 1024 : index
    %992 = vector.load %arg19[%c4_1038, %c1024_1039] : memref<128x1152xbf16, #tpu.memory_space<vmem>>, vector<2x128xbf16>
    tpu.vector_store %arg19[%c4_1038, %c1024_1039], %991 {strides = array<i32>} : memref<128x1152xbf16, #tpu.memory_space<vmem>>, vector<2x128xbf16>,
    %c48_1040 = arith.constant 48 : index
    %c0_1041 = arith.constant 0 : index
    %993 = tpu.strided_load %arg18[%c48_1040, %c0_1041] {strides = array<i32: 2, 1>} : memref<72x128xf32, #tpu.memory_space<vmem>>, vector<2x128xf32>
    %994 = arith.truncf %993 : vector<2x128xf32> to vector<2x128xbf16>
    %c6_1042 = arith.constant 6 : index
    %c0_1043 = arith.constant 0 : index
    %995 = vector.load %arg19[%c6_1042, %c0_1043] : memref<128x1152xbf16, #tpu.memory_space<vmem>>, vector<2x128xbf16>
    tpu.vector_store %arg19[%c6_1042, %c0_1043], %994 {strides = array<i32>} : memref<128x1152xbf16, #tpu.memory_space<vmem>>, vector<2x128xbf16>,
    %c49_1044 = arith.constant 49 : index
    %c0_1045 = arith.constant 0 : index
    %996 = tpu.strided_load %arg18[%c49_1044, %c0_1045] {strides = array<i32: 2, 1>} : memref<72x128xf32, #tpu.memory_space<vmem>>, vector<2x128xf32>
    %997 = arith.truncf %996 : vector<2x128xf32> to vector<2x128xbf16>
    %c6_1046 = arith.constant 6 : index
    %c128_1047 = arith.constant 128 : index
    %998 = vector.load %arg19[%c6_1046, %c128_1047] : memref<128x1152xbf16, #tpu.memory_space<vmem>>, vector<2x128xbf16>
    tpu.vector_store %arg19[%c6_1046, %c128_1047], %997 {strides = array<i32>} : memref<128x1152xbf16, #tpu.memory_space<vmem>>, vector<2x128xbf16>,
    %c50_1048 = arith.constant 50 : index
    %c0_1049 = arith.constant 0 : index
    %999 = tpu.strided_load %arg18[%c50_1048, %c0_1049] {strides = array<i32: 2, 1>} : memref<72x128xf32, #tpu.memory_space<vmem>>, vector<2x128xf32>
    %1000 = arith.truncf %999 : vector<2x128xf32> to vector<2x128xbf16>
    %c6_1050 = arith.constant 6 : index
    %c256_1051 = arith.constant 256 : index
    %1001 = vector.load %arg19[%c6_1050, %c256_1051] : memref<128x1152xbf16, #tpu.memory_space<vmem>>, vector<2x128xbf16>
    tpu.vector_store %arg19[%c6_1050, %c256_1051], %1000 {strides = array<i32>} : memref<128x1152xbf16, #tpu.memory_space<vmem>>, vector<2x128xbf16>,
    %c54_1052 = arith.constant 54 : index
    %c0_1053 = arith.constant 0 : index
    %1002 = tpu.strided_load %arg18[%c54_1052, %c0_1053] {strides = array<i32: 2, 1>} : memref<72x128xf32, #tpu.memory_space<vmem>>, vector<2x128xf32>
    %1003 = arith.truncf %1002 : vector<2x128xf32> to vector<2x128xbf16>
    %c6_1054 = arith.constant 6 : index
    %c384_1055 = arith.constant 384 : index
    %1004 = vector.load %arg19[%c6_1054, %c384_1055] : memref<128x1152xbf16, #tpu.memory_space<vmem>>, vector<2x128xbf16>
    tpu.vector_store %arg19[%c6_1054, %c384_1055], %1003 {strides = array<i32>} : memref<128x1152xbf16, #tpu.memory_space<vmem>>, vector<2x128xbf16>,
    %c55_1056 = arith.constant 55 : index
    %c0_1057 = arith.constant 0 : index
    %1005 = tpu.strided_load %arg18[%c55_1056, %c0_1057] {strides = array<i32: 2, 1>} : memref<72x128xf32, #tpu.memory_space<vmem>>, vector<2x128xf32>
    %1006 = arith.truncf %1005 : vector<2x128xf32> to vector<2x128xbf16>
    %c6_1058 = arith.constant 6 : index
    %c512_1059 = arith.constant 512 : index
    %1007 = vector.load %arg19[%c6_1058, %c512_1059] : memref<128x1152xbf16, #tpu.memory_space<vmem>>, vector<2x128xbf16>
    tpu.vector_store %arg19[%c6_1058, %c512_1059], %1006 {strides = array<i32>} : memref<128x1152xbf16, #tpu.memory_space<vmem>>, vector<2x128xbf16>,
    %c56_1060 = arith.constant 56 : index
    %c0_1061 = arith.constant 0 : index
    %1008 = tpu.strided_load %arg18[%c56_1060, %c0_1061] {strides = array<i32: 2, 1>} : memref<72x128xf32, #tpu.memory_space<vmem>>, vector<2x128xf32>
    %1009 = arith.truncf %1008 : vector<2x128xf32> to vector<2x128xbf16>
    %c6_1062 = arith.constant 6 : index
    %c640_1063 = arith.constant 640 : index
    %1010 = vector.load %arg19[%c6_1062, %c640_1063] : memref<128x1152xbf16, #tpu.memory_space<vmem>>, vector<2x128xbf16>
    tpu.vector_store %arg19[%c6_1062, %c640_1063], %1009 {strides = array<i32>} : memref<128x1152xbf16, #tpu.memory_space<vmem>>, vector<2x128xbf16>,
    %c60_1064 = arith.constant 60 : index
    %c0_1065 = arith.constant 0 : index
    %1011 = tpu.strided_load %arg18[%c60_1064, %c0_1065] {strides = array<i32: 2, 1>} : memref<72x128xf32, #tpu.memory_space<vmem>>, vector<2x128xf32>
    %1012 = arith.truncf %1011 : vector<2x128xf32> to vector<2x128xbf16>
    %c6_1066 = arith.constant 6 : index
    %c768_1067 = arith.constant 768 : index
    %1013 = vector.load %arg19[%c6_1066, %c768_1067] : memref<128x1152xbf16, #tpu.memory_space<vmem>>, vector<2x128xbf16>
    tpu.vector_store %arg19[%c6_1066, %c768_1067], %1012 {strides = array<i32>} : memref<128x1152xbf16, #tpu.memory_space<vmem>>, vector<2x128xbf16>,
    %c61_1068 = arith.constant 61 : index
    %c0_1069 = arith.constant 0 : index
    %1014 = tpu.strided_load %arg18[%c61_1068, %c0_1069] {strides = array<i32: 2, 1>} : memref<72x128xf32, #tpu.memory_space<vmem>>, vector<2x128xf32>
    %1015 = arith.truncf %1014 : vector<2x128xf32> to vector<2x128xbf16>
    %c6_1070 = arith.constant 6 : index
    %c896_1071 = arith.constant 896 : index
    %1016 = vector.load %arg19[%c6_1070, %c896_1071] : memref<128x1152xbf16, #tpu.memory_space<vmem>>, vector<2x128xbf16>
    tpu.vector_store %arg19[%c6_1070, %c896_1071], %1015 {strides = array<i32>} : memref<128x1152xbf16, #tpu.memory_space<vmem>>, vector<2x128xbf16>,
    %c62_1072 = arith.constant 62 : index
    %c0_1073 = arith.constant 0 : index
    %1017 = tpu.strided_load %arg18[%c62_1072, %c0_1073] {strides = array<i32: 2, 1>} : memref<72x128xf32, #tpu.memory_space<vmem>>, vector<2x128xf32>
    %1018 = arith.truncf %1017 : vector<2x128xf32> to vector<2x128xbf16>
    %c6_1074 = arith.constant 6 : index
    %c1024_1075 = arith.constant 1024 : index
    %1019 = vector.load %arg19[%c6_1074, %c1024_1075] : memref<128x1152xbf16, #tpu.memory_space<vmem>>, vector<2x128xbf16>
    tpu.vector_store %arg19[%c6_1074, %c1024_1075], %1018 {strides = array<i32>} : memref<128x1152xbf16, #tpu.memory_space<vmem>>, vector<2x128xbf16>,
    %c0_1076 = arith.constant 0 : index
    %c0_1077 = arith.constant 0 : index
    %1020 = vector.load %arg19[%c0_1076, %c0_1077] : memref<128x1152xbf16, #tpu.memory_space<vmem>>, vector<8x1152xbf16>
    %c0_1078 = arith.constant 0 : index
    %c0_1079 = arith.constant 0 : index
    %1021 = vector.load %arg10[%c0_1078, %c0_1079] : memref<1152x256xbf16, #tpu.memory_space<vmem>>, vector<1152x256xbf16>
    %cst_1080 = arith.constant dense<0.000000e+00> : vector<8x256xf32>
    %1022 = tpu.matmul %1020, %1021, %cst_1080 {dimension_numbers = #tpu.dot_dimension_numbers<[1], [0], [0], [1], [0, 0, 1, 1], [], []>} : vector<8x1152xbf16>, vector<1152x256xbf16>, vector<8x256xf32> -> vector<8x256xf32>
    %cst_1081 = arith.constant dense<0.000000e+00> : vector<256xf32>
    %1023 = vector.multi_reduction <add>, %1022, %cst_1081 [0] : vector<8x256xf32> to vector<256xf32>
    %1024 = vector.shape_cast %1023 : vector<256xf32> to vector<1x256xf32>
    %1025 = arith.mulf %1022, %1022 : vector<8x256xf32>
    %cst_1082 = arith.constant dense<0.000000e+00> : vector<256xf32>
    %1026 = vector.multi_reduction <add>, %1025, %cst_1082 [0] : vector<8x256xf32> to vector<256xf32>
    %1027 = vector.shape_cast %1026 : vector<256xf32> to vector<1x256xf32>
    %cst_1083 = arith.constant 1.250000e-01 : f32
    %1028 = vector.broadcast %cst_1083 : f32 to vector<1x256xf32>
    %1029 = arith.mulf %1024, %1028 : vector<1x256xf32>
    %cst_1084 = arith.constant 1.250000e-01 : f32
    %1030 = vector.broadcast %cst_1084 : f32 to vector<1x256xf32>
    %1031 = arith.mulf %1027, %1030 : vector<1x256xf32>
    %1032 = arith.mulf %1029, %1029 : vector<1x256xf32>
    %1033 = arith.subf %1031, %1032 : vector<1x256xf32>
    %c0_1085 = arith.constant 0 : index
    %c0_1086 = arith.constant 0 : index
    %1034 = vector.load %arg11[%c0_1085, %c0_1086] : memref<1x256xf32, #tpu.memory_space<vmem>>, vector<1x256xf32>
    %cst_1087 = arith.constant 9.99999974E-6 : f32
    %1035 = vector.broadcast %cst_1087 : f32 to vector<1x256xf32>
    %1036 = arith.addf %1033, %1035 : vector<1x256xf32>
    %1037 = math.rsqrt %1036 : vector<1x256xf32>
    %1038 = arith.mulf %1034, %1037 : vector<1x256xf32>
    %c0_1088 = arith.constant 0 : index
    %c0_1089 = arith.constant 0 : index
    %1039 = vector.load %arg12[%c0_1088, %c0_1089] : memref<1x256xf32, #tpu.memory_space<vmem>>, vector<1x256xf32>
    %1040 = arith.mulf %1029, %1038 : vector<1x256xf32>
    %1041 = arith.subf %1039, %1040 : vector<1x256xf32>
    %1042 = vector.broadcast %1038 : vector<1x256xf32> to vector<8x256xf32>
    %1043 = arith.mulf %1022, %1042 : vector<8x256xf32>
    %1044 = vector.broadcast %1041 : vector<1x256xf32> to vector<8x256xf32>
    %1045 = arith.addf %1043, %1044 : vector<8x256xf32>
    %cst_1090 = arith.constant 0.000000e+00 : f32
    %1046 = vector.broadcast %cst_1090 : f32 to vector<8x256xf32>
    %1047 = arith.maximumf %1045, %1046 : vector<8x256xf32>
    %1048 = vector.extract_strided_slice %1047 {offsets = [0, 0], sizes = [1, 256], strides = [1, 1]} : vector<8x256xf32> to vector<1x256xf32>
    %c0_1091 = arith.constant 0 : index
    %c0_1092 = arith.constant 0 : index
    %1049 = vector.load %arg20[%c0_1091, %c0_1092] : memref<2x1024xf32, #tpu.memory_space<vmem>>, vector<1x256xf32>
    tpu.vector_store %arg20[%c0_1091, %c0_1092], %1048 {strides = array<i32>} : memref<2x1024xf32, #tpu.memory_space<vmem>>, vector<1x256xf32>,
    %1050 = vector.extract_strided_slice %1047 {offsets = [1, 0], sizes = [1, 256], strides = [1, 1]} : vector<8x256xf32> to vector<1x256xf32>
    %c0_1093 = arith.constant 0 : index
    %c256_1094 = arith.constant 256 : index
    %1051 = vector.load %arg20[%c0_1093, %c256_1094] : memref<2x1024xf32, #tpu.memory_space<vmem>>, vector<1x256xf32>
    tpu.vector_store %arg20[%c0_1093, %c256_1094], %1050 {strides = array<i32>} : memref<2x1024xf32, #tpu.memory_space<vmem>>, vector<1x256xf32>,
    %1052 = vector.extract_strided_slice %1047 {offsets = [2, 0], sizes = [1, 256], strides = [1, 1]} : vector<8x256xf32> to vector<1x256xf32>
    %c0_1095 = arith.constant 0 : index
    %c512_1096 = arith.constant 512 : index
    %1053 = vector.load %arg20[%c0_1095, %c512_1096] : memref<2x1024xf32, #tpu.memory_space<vmem>>, vector<1x256xf32>
    tpu.vector_store %arg20[%c0_1095, %c512_1096], %1052 {strides = array<i32>} : memref<2x1024xf32, #tpu.memory_space<vmem>>, vector<1x256xf32>,
    %1054 = vector.extract_strided_slice %1047 {offsets = [3, 0], sizes = [1, 256], strides = [1, 1]} : vector<8x256xf32> to vector<1x256xf32>
    %c0_1097 = arith.constant 0 : index
    %c768_1098 = arith.constant 768 : index
    %1055 = vector.load %arg20[%c0_1097, %c768_1098] : memref<2x1024xf32, #tpu.memory_space<vmem>>, vector<1x256xf32>
    tpu.vector_store %arg20[%c0_1097, %c768_1098], %1054 {strides = array<i32>} : memref<2x1024xf32, #tpu.memory_space<vmem>>, vector<1x256xf32>,
    %1056 = vector.extract_strided_slice %1047 {offsets = [4, 0], sizes = [1, 256], strides = [1, 1]} : vector<8x256xf32> to vector<1x256xf32>
    %c1_1099 = arith.constant 1 : index
    %c0_1100 = arith.constant 0 : index
    %1057 = vector.load %arg20[%c1_1099, %c0_1100] : memref<2x1024xf32, #tpu.memory_space<vmem>>, vector<1x256xf32>
    tpu.vector_store %arg20[%c1_1099, %c0_1100], %1056 {strides = array<i32>} : memref<2x1024xf32, #tpu.memory_space<vmem>>, vector<1x256xf32>,
    %1058 = vector.extract_strided_slice %1047 {offsets = [5, 0], sizes = [1, 256], strides = [1, 1]} : vector<8x256xf32> to vector<1x256xf32>
    %c1_1101 = arith.constant 1 : index
    %c256_1102 = arith.constant 256 : index
    %1059 = vector.load %arg20[%c1_1101, %c256_1102] : memref<2x1024xf32, #tpu.memory_space<vmem>>, vector<1x256xf32>
    tpu.vector_store %arg20[%c1_1101, %c256_1102], %1058 {strides = array<i32>} : memref<2x1024xf32, #tpu.memory_space<vmem>>, vector<1x256xf32>,
    %1060 = vector.extract_strided_slice %1047 {offsets = [6, 0], sizes = [1, 256], strides = [1, 1]} : vector<8x256xf32> to vector<1x256xf32>
    %c1_1103 = arith.constant 1 : index
    %c512_1104 = arith.constant 512 : index
    %1061 = vector.load %arg20[%c1_1103, %c512_1104] : memref<2x1024xf32, #tpu.memory_space<vmem>>, vector<1x256xf32>
    tpu.vector_store %arg20[%c1_1103, %c512_1104], %1060 {strides = array<i32>} : memref<2x1024xf32, #tpu.memory_space<vmem>>, vector<1x256xf32>,
    %1062 = vector.extract_strided_slice %1047 {offsets = [7, 0], sizes = [1, 256], strides = [1, 1]} : vector<8x256xf32> to vector<1x256xf32>
    %c1_1105 = arith.constant 1 : index
    %c768_1106 = arith.constant 768 : index
    %1063 = vector.load %arg20[%c1_1105, %c768_1106] : memref<2x1024xf32, #tpu.memory_space<vmem>>, vector<1x256xf32>
    tpu.vector_store %arg20[%c1_1105, %c768_1106], %1062 {strides = array<i32>} : memref<2x1024xf32, #tpu.memory_space<vmem>>, vector<1x256xf32>,
    %c0_1107 = arith.constant 0 : index
    %c0_1108 = arith.constant 0 : index
    %1064 = vector.load %arg20[%c0_1107, %c0_1108] : memref<2x1024xf32, #tpu.memory_space<vmem>>, vector<2x1024xf32>
    %1065 = arith.truncf %1064 : vector<2x1024xf32> to vector<2x1024xbf16>
    %c0_1109 = arith.constant 0 : index
    %c0_1110 = arith.constant 0 : index
    %1066 = vector.load %arg13[%c0_1109, %c0_1110] : memref<1024x128xbf16, #tpu.memory_space<vmem>>, vector<1024x128xbf16>
    %cst_1111 = arith.constant dense<0.000000e+00> : vector<2x128xf32>
    %1067 = tpu.matmul %1065, %1066, %cst_1111 {dimension_numbers = #tpu.dot_dimension_numbers<[1], [0], [0], [1], [0, 0, 1, 1], [], []>} : vector<2x1024xbf16>, vector<1024x128xbf16>, vector<2x128xf32> -> vector<2x128xf32>
    %c0_1112 = arith.constant 0 : index
    %c0_1113 = arith.constant 0 : index
    %1068 = vector.load %arg14[%c0_1112, %c0_1113] : memref<1x128xf32, #tpu.memory_space<vmem>>, vector<1x128xf32>
    %1069 = vector.broadcast %1068 : vector<1x128xf32> to vector<2x128xf32>
    %1070 = arith.addf %1067, %1069 : vector<2x128xf32>
    %c0_1114 = arith.constant 0 : index
    %c0_1115 = arith.constant 0 : index
    %1071 = vector.load %arg15[%c0_1114, %c0_1115] : memref<2x128xf32, #tpu.memory_space<vmem>>, vector<2x128xf32>
    tpu.vector_store %arg15[%c0_1114, %c0_1115], %1070 {strides = array<i32>} : memref<2x128xf32, #tpu.memory_space<vmem>>, vector<2x128xf32>,
    return
  }
}

</mosaic_0001>

<bundles_post_ra>
// kernel: encoder_forward.1
= control target key start
LH: loop header
LB: loop body
LE: loop exit
PB: predicated region body
PF: predicated region fallthrough
CT: control target
= control target key end

     0   :  { %20 = vsyncpa [#allocation8], 0  ;;  %s10516_s0 = inlined_call_operand.vmem [shape: bf16[512,128], index: 0, kind: input, shape index: {}]   ;;  %s10517_s1 = inlined_call_operand.vmem [shape: bf16[128,128], index: 1, kind: input, shape index: {}]   ;;  %s10518_s2 = inlined_call_operand.vmem [shape: f32[1,128], index: 2, kind: input, shape index: {}]   ;;  %s10519_s3 = inlined_call_operand.vmem [shape: f32[1,128], index: 3, kind: input, shape index: {}]   ;;  %s10520_s4 = inlined_call_operand.hbm [shape: bf16[1152,128], index: 4, kind: input, shape index: {}]   ;;  %s10521_s5 = inlined_call_operand.vmem [shape: f32[1,128], index: 5, kind: input, shape index: {}]   ;;  %s10522_s6 = inlined_call_operand.vmem [shape: f32[1,128], index: 6, kind: input, shape index: {}]   ;;  %s10523_s7 = inlined_call_operand.hbm [shape: bf16[1152,128], index: 7, kind: input, shape index: {}]   ;;  %s10524_s8 = inlined_call_operand.vmem [shape: f32[1,128], index: 8, kind: input, shape index: {}]   ;;  %s10525_s9 = inlined_call_operand.vmem [shape: f32[1,128], index: 9, kind: input, shape index: {}]   ;;  %s10526_s10 = inlined_call_operand.vmem [shape: bf16[1152,256], index: 10, kind: input, shape index: {}]   ;;  %s10527_s11 = inlined_call_operand.vmem [shape: f32[1,256], index: 11, kind: input, shape index: {}]   ;;  %s10528_s12 = inlined_call_operand.vmem [shape: f32[1,256], index: 12, kind: input, shape index: {}]   ;;  %s10529_s13 = inlined_call_operand.hbm [shape: bf16[1024,128], index: 13, kind: input, shape index: {}]   ;;  %s10530_s14 = inlined_call_operand.vmem [shape: f32[1,128], index: 14, kind: input, shape index: {}]   ;;  %s10531_s15 = inlined_call_operand.hbm [shape: f32[2,128], index: 15, kind: output, shape index: {}]  }
   0x1   :  { %21 = vsyncpa [#allocation11], 0 }
   0x2   :  { %22 = vsyncpa [#allocation9], 0  ;;  %s8511_s18 = smov [#allocation10]   ;;  %s8512_s20 = smov [#allocation7]  }
   0x3   :  { %s52_s19 = sshll.u32 %s8511_s18, 4  ;;  %s36_s21 = sshll.u32 %s8512_s20, 4  ;;  %s53_s19 = int_to_ptr.vmem [resolvable:$true] %s52_s19  ;;  %s8601_s21 = int_to_ptr.vmem [resolvable:$true] %s36_s21 }
   0x4   :  { %s8417_s24 = scalar_lea.hbm %s10523_s7, 9216 }
   0x5   :  { %p8418_p0 = scmp.ne.s32.totalorder %s10523_s7, %s8417_s24  ;;  %p8421_p1 = scmp.lt.u32.totalorder %s8417_s24, %s10523_s7 }
   0x7   :  { %p8423_p2 = pnand %p8421_p1, %p8418_p0 }
   0x9   :  { %8426 = shalt.err (!%p8423_p2)
}
   0xa   :  { %s8427_s29 = scalar_lea.vmem %s53_s19, 9216  ;;  %p8432_p4 = scmp.lt.s32.totalorder %s53_s19, %s53_s19 }
   0xb   :  { %p8428_p3 = scmp.ne.s32.totalorder %s53_s19, %s8427_s29  ;;  %p8433_p5 = scmp.lt.s32.totalorder %s8427_s29, %s8427_s29 }
   0xd   :  { %p8434_p6 = por %p8433_p5, %p8432_p4 }
   0xf   :  { %p8435_p7 = pnand %p8434_p6, %p8428_p3 }
  0x11   :  { %8438 = shalt.err (!%p8435_p7)
}
  0x12   :  { %s8513_s30 = smov 64   ;;  %s8514_s16 = smov 4  }
  0x13   :  { %58 = dma.hbm_to_vmem [thread:$0]  %s10523_s7, 9216, %s53_s19, [#allocation11], %s8513_s30, %s8513_s30, %s8514_s16  }
  0x14   :  { %s8439_s23 = scalar_lea.hbm %s10520_s4, 9216 }
  0x15   :  { %p8440_p8 = scmp.ne.s32.totalorder %s10520_s4, %s8439_s23  ;;  %p8443_p9 = scmp.lt.u32.totalorder %s8439_s23, %s10520_s4 }
  0x17   :  { %p8445_p10 = pnand %p8443_p9, %p8440_p8 }
  0x19   :  { %8448 = shalt.err (!%p8445_p10)
}
  0x1a   :  { %s8449_s28 = scalar_lea.vmem %s8601_s21, 9216  ;;  %p8454_p12 = scmp.lt.s32.totalorder %s8601_s21, %s8601_s21 }
  0x1b   :  { %p8450_p11 = scmp.ne.s32.totalorder %s8601_s21, %s8449_s28  ;;  %p8455_p13 = scmp.lt.s32.totalorder %s8449_s28, %s8449_s28 }
  0x1d   :  { %p8456_p0 = por %p8455_p13, %p8454_p12 }
  0x1f   :  { %p8457_p1 = pnand %p8456_p0, %p8450_p11 }
  0x21   :  { %8460 = shalt.err (!%p8457_p1)
}
  0x22   :  { %42 = dma.hbm_to_vmem [thread:$0]  %s10520_s4, 9216, %s8601_s21, [#allocation8], %s8513_s30, %s8513_s30, %s8514_s16  }
  0x23   :  { %s8515_s29 = smov [#allocation12]   ;;  %s8461_s22 = scalar_lea.hbm %s10529_s13, 8192 }
  0x24   :  { %s74_s17 = sshll.u32 %s8515_s29, 4  ;;  %p8462_p2 = scmp.ne.s32.totalorder %s10529_s13, %s8461_s22  ;;  %s75_s17 = int_to_ptr.vmem [resolvable:$true] %s74_s17 }
  0x25   :  { %p8465_p3 = scmp.lt.u32.totalorder %s8461_s22, %s10529_s13 }
  0x27   :  { %p8467_p4 = pnand %p8465_p3, %p8462_p2 }
  0x29   :  { %8470 = shalt.err (!%p8467_p4)
}
  0x2a   :  { %s8471_s27 = scalar_lea.vmem %s75_s17, 8192  ;;  %p8476_p6 = scmp.lt.s32.totalorder %s75_s17, %s75_s17 }
  0x2b   :  { %p8472_p5 = scmp.ne.s32.totalorder %s75_s17, %s8471_s27  ;;  %p8477_p7 = scmp.lt.s32.totalorder %s8471_s27, %s8471_s27 }
  0x2d   :  { %p8478_p8 = por %p8477_p7, %p8476_p6 }
  0x2f   :  { %p8479_p9 = pnand %p8478_p8, %p8472_p5 }
  0x31   :  { %8482 = shalt.err (!%p8479_p9)
}
  0x32   :  { %80 = dma.hbm_to_vmem [thread:$0]  %s10529_s13, 8192, %s75_s17, [#allocation11], %s8513_s30, %s8513_s30, %s8514_s16  }
  0x33   :  { %8505 = dma.done.wait [#allocation8], 9216  }
  0x34   :  { %8506 = vsyncadd [#allocation8], 4294958080 }
  0x35   :  { %8507 = dma.done.wait [#allocation11], 17408  }
  0x36   :  { %8508 = vsyncadd [#allocation11], 4294949888  ;;  %v8516_v0 = vmov 0.0   ;;  %v7941_v1 = vld [vmem:[%s10517_s1] sm:$0xff]   ;;  %v7942_v2 = vld [vmem:[%s10517_s1 + $0x8] sm:$0xff]   ;;  %s8520_s16 = smov [#allocation13]  }
  0x37   :  { %93 = vst [vmem:[#allocation2] sm:$0xff] %v8516_v0  ;;  %94 = vst [vmem:[#allocation2 + $0x8] sm:$0xff] %v8516_v0  ;;  %7767 = vmatprep.subr.bf16.mxu0 %v7941_v1  ;;  %7899 = vmatprep.subr.bf16.mxu1 %v7941_v1  ;;  %v7943_v3 = vld [vmem:[%s10517_s1 + $0x10] sm:$0xff]   ;;  %v7944_v4 = vld [vmem:[%s10517_s1 + $0x18] sm:$0xff]   ;;  %s6842_s28 = sshll.u32 %s8520_s16, 4  ;;  %s6843_s28 = int_to_ptr.vmem [resolvable:$true] %s6842_s28 }
  0x38   :  { %95 = vst [vmem:[#allocation2 + $0x10] sm:$0x7] %v8516_v0  ;;  %99 = vst [vmem:[#allocation2 + $0x23] sm:$0x3] %v8516_v0  ;;  %7768 = vmatpush3.bf16.msra.mxu0 %v7941_v1  ;;  %7907 = vmatpush3.bf16.msra.mxu1 %v7941_v1  ;;  %v7949_v5 = vld [vmem:[%s10516_s0] sm:$0xff]   ;;  %v7946_v7 = vld [vmem:[%s10517_s1 + $0x28] sm:$0xff]   ;;  %p8488_p11 = scmp.lt.s32.totalorder %s6843_s28, %s6843_s28 }
  0x39   :  { %100 = vst [vmem:[#allocation2 + $0x35] sm:$0x3] %v8516_v0  ;;  %101 = vst [vmem:[#allocation2 + $0x47] sm:$0x3] %v8516_v0  ;;  %7769 = vmatprep.subr.bf16.mxu0 %v7942_v2  ;;  %7900 = vmatprep.subr.bf16.mxu1 %v7942_v2  ;;  %v7945_v6 = vld [vmem:[%s10517_s1 + $0x20] sm:$0xff]   ;;  %v7947_v8 = vld [vmem:[%s10517_s1 + $0x30] sm:$0xff]  }
  0x3a   :  { %102 = vst [vmem:[#allocation2 + $0x59] sm:$0x3] %v8516_v0  ;;  %103 = vst [vmem:[#allocation2 + $0x6b] sm:$0x3] %v8516_v0  ;;  %7783 = vmatprep.mubr.bf16.mxu0 %v7949_v5  ;;  %v7961_v9 = vld [vmem:[%s10516_s0 + $0x60] sm:$0xff]   ;;  %v7948_v10 = vld [vmem:[%s10517_s1 + $0x38] sm:$0xff]  }
  0x3b   :  { %104 = vst [vmem:[#allocation2 + $0x7d] sm:$0x3] %v8516_v0  ;;  %105 = vst [vmem:[#allocation2 + $0x8f] sm:$0x3] %v8516_v0  ;;  %7807 = vmatprep.mubr.bf16.mxu1 %v7961_v9  ;;  %v7950_v11 = vld [vmem:[%s10516_s0 + $0x8] sm:$0xff]   ;;  %v7951_v12 = vld [vmem:[%s10516_s0 + $0x10] sm:$0xff]  }
  0x3c   :  { %106 = vst [vmem:[#allocation2 + $0xa1] sm:$0x3] %v8516_v0  ;;  %107 = vst [vmem:[#allocation2 + $0xb3] sm:$0x3] %v8516_v0  ;;  %7770 = vmatpush3.bf16.msra.mxu0 %v7942_v2  ;;  %7908 = vmatpush3.bf16.msra.mxu1 %v7942_v2  ;;  %v7962_v13 = vld [vmem:[%s10516_s0 + $0x68] sm:$0xff]   ;;  %v7963_v14 = vld [vmem:[%s10516_s0 + $0x70] sm:$0xff]  }
  0x3d   :  { %108 = vst [vmem:[#allocation2 + $0xc5] sm:$0x3] %v8516_v0  ;;  %109 = vst [vmem:[#allocation2 + $0xd7] sm:$0x3] %v8516_v0  ;;  %7771 = vmatprep.subr.bf16.mxu0 %v7943_v3  ;;  %7901 = vmatprep.subr.bf16.mxu1 %v7943_v3  ;;  %v7952_v15 = vld [vmem:[%s10516_s0 + $0x18] sm:$0xff]   ;;  %v7953_v16 = vld [vmem:[%s10516_s0 + $0x20] sm:$0xff]  }
  0x3e   :  { %110 = vst [vmem:[#allocation2 + $0xe9] sm:$0x3] %v8516_v0  ;;  %111 = vst [vmem:[#allocation2 + $0xfb] sm:$0x3] %v8516_v0  ;;  %v7964_v17 = vld [vmem:[%s10516_s0 + $0x78] sm:$0xff]   ;;  %v7965_v18 = vld [vmem:[%s10516_s0 + $0x80] sm:$0xff]  }
  0x3f   :  { %112 = vst [vmem:[#allocation2 + $0x10d] sm:$0x3] %v8516_v0  ;;  %113 = vst [vmem:[#allocation2 + $0x11f] sm:$0x3] %v8516_v0  ;;  %v7954_v19 = vld [vmem:[%s10516_s0 + $0x28] sm:$0xff]   ;;  %v7955_v21 = vld [vmem:[%s10516_s0 + $0x30] sm:$0xff]  }
  0x40   :  { %114 = vst [vmem:[#allocation2 + $0x144] sm:$0xff] %v8516_v0  ;;  %115 = vst [vmem:[#allocation2 + $0x14c] sm:$0xff] %v8516_v0  ;;  %7772 = vmatpush3.bf16.msra.mxu0 %v7943_v3  ;;  %7909 = vmatpush3.bf16.msra.mxu1 %v7943_v3  ;;  %v7966_v20 = vld [vmem:[%s10516_s0 + $0x88] sm:$0xff]   ;;  %v7967_v22 = vld [vmem:[%s10516_s0 + $0x90] sm:$0xff]  }
  0x41   :  { %116 = vst [vmem:[#allocation2 + $0x154] sm:$0x7] %v8516_v0  ;;  %120 = vst [vmem:[#allocation2 + $0x167] sm:$0x3] %v8516_v0  ;;  %7773 = vmatprep.subr.bf16.mxu0 %v7944_v4  ;;  %7902 = vmatprep.subr.bf16.mxu1 %v7944_v4  ;;  %v7956_v23 = vld [vmem:[%s10516_s0 + $0x38] sm:$0xff]   ;;  %v7957_v25 = vld [vmem:[%s10516_s0 + $0x40] sm:$0xff]  }
  0x42   :  { %121 = vst [vmem:[#allocation2 + $0x179] sm:$0x3] %v8516_v0  ;;  %122 = vst [vmem:[#allocation2 + $0x18b] sm:$0x3] %v8516_v0  ;;  %v7968_v24 = vld [vmem:[%s10516_s0 + $0x98] sm:$0xff]   ;;  %v7969_v26 = vld [vmem:[%s10516_s0 + $0xa0] sm:$0xff]  }
  0x43   :  { %123 = vst [vmem:[#allocation2 + $0x19d] sm:$0x3] %v8516_v0  ;;  %124 = vst [vmem:[#allocation2 + $0x1af] sm:$0x3] %v8516_v0  ;;  %v7958_v27 = vld [vmem:[%s10516_s0 + $0x48] sm:$0xff]   ;;  %v7959_v29 = vld [vmem:[%s10516_s0 + $0x50] sm:$0xff]  }
  0x44   :  { %125 = vst [vmem:[#allocation2 + $0x1c1] sm:$0x3] %v8516_v0  ;;  %126 = vst [vmem:[#allocation2 + $0x1d3] sm:$0x3] %v8516_v0  ;;  %7774 = vmatpush3.bf16.msra.mxu0 %v7944_v4  ;;  %7910 = vmatpush3.bf16.msra.mxu1 %v7944_v4  ;;  %v7970_v28 = vld [vmem:[%s10516_s0 + $0xa8] sm:$0xff]   ;;  %v7971_v30 = vld [vmem:[%s10516_s0 + $0xb0] sm:$0xff]  }
  0x45   :  { %127 = vst [vmem:[#allocation2 + $0x1e5] sm:$0x3] %v8516_v0  ;;  %128 = vst [vmem:[#allocation2 + $0x1f7] sm:$0x3] %v8516_v0  ;;  %7775 = vmatprep.subr.bf16.mxu0 %v7945_v6  ;;  %7903 = vmatprep.subr.bf16.mxu1 %v7945_v6  ;;  %v7960_v31 = vld [vmem:[%s10516_s0 + $0x58] sm:$0xff]   ;;  %v7973_v33 = vld [vmem:[%s10516_s0 + $0xc0] sm:$0xff]  }
  0x46   :  { %129 = vst [vmem:[#allocation2 + $0x209] sm:$0x3] %v8516_v0  ;;  %130 = vst [vmem:[#allocation2 + $0x21b] sm:$0x3] %v8516_v0  ;;  %v7972_v32 = vld [vmem:[%s10516_s0 + $0xb8] sm:$0xff]   ;;  %v7974_v34 = vld [vmem:[%s10516_s0 + $0xc8] sm:$0xff]  }
  0x47   :  { %131 = vst [vmem:[#allocation2 + $0x22d] sm:$0x3] %v8516_v0  ;;  %132 = vst [vmem:[#allocation2 + $0x23f] sm:$0x3] %v8516_v0  ;;  %v7975_v35 = vld [vmem:[%s10516_s0 + $0xd0] sm:$0xff]   ;;  %v7976_v36 = vld [vmem:[%s10516_s0 + $0xd8] sm:$0xff]  }
  0x48   :  { %133 = vst [vmem:[#allocation2 + $0x251] sm:$0x3] %v8516_v0  ;;  %134 = vst [vmem:[#allocation2 + $0x263] sm:$0x3] %v8516_v0  ;;  %7776 = vmatpush3.bf16.msra.mxu0 %v7945_v6  ;;  %7911 = vmatpush3.bf16.msra.mxu1 %v7945_v6  ;;  %v7977_v37 = vld [vmem:[%s10516_s0 + $0xe0] sm:$0xff]   ;;  %v7978_v38 = vld [vmem:[%s10516_s0 + $0xe8] sm:$0xff]  }
  0x49   :  { %135 = vst [vmem:[#allocation3] sm:$0xff] %v8516_v0  ;;  %136 = vst [vmem:[#allocation3 + $0x8] sm:$0x7] %v8516_v0  ;;  %7777 = vmatprep.subr.bf16.mxu0 %v7946_v7  ;;  %7904 = vmatprep.subr.bf16.mxu1 %v7946_v7  ;;  %v7979_v39 = vld [vmem:[%s10516_s0 + $0xf0] sm:$0xff]   ;;  %v7980_v40 = vld [vmem:[%s10516_s0 + $0xf8] sm:$0xff]  }
  0x4a   :  { %139 = vst [vmem:[#allocation3 + $0x13] sm:$0x3] %v8516_v0  ;;  %140 = vst [vmem:[#allocation3 + $0x1d] sm:$0x3] %v8516_v0  ;;  %v7981_v41 = vld [vmem:[#allocation7 + $0x40] sm:$0xff]  }
  0x4b   :  { %141 = vst [vmem:[#allocation3 + $0x27] sm:$0x3] %v8516_v0  ;;  %142 = vst [vmem:[#allocation3 + $0x31] sm:$0x3] %v8516_v0  ;;  %v7982_v42 = vld [vmem:[#allocation7] sm:$0xff]  }
  0x4c   :  { %143 = vst [vmem:[#allocation3 + $0x3b] sm:$0x3] %v8516_v0  ;;  %144 = vst [vmem:[#allocation3 + $0x45] sm:$0x3] %v8516_v0  ;;  %7778 = vmatpush3.bf16.msra.mxu0 %v7946_v7  ;;  %7912 = vmatpush3.bf16.msra.mxu1 %v7946_v7 }
  0x4d   :  { %145 = vst [vmem:[#allocation3 + $0x4f] sm:$0x3] %v8516_v0  ;;  %146 = vst [vmem:[#allocation3 + $0x64] sm:$0xff] %v8516_v0  ;;  %7779 = vmatprep.subr.bf16.mxu0 %v7947_v8  ;;  %7905 = vmatprep.subr.bf16.mxu1 %v7947_v8 }
  0x4e   :  { %147 = vst [vmem:[#allocation3 + $0x6c] sm:$0x7] %v8516_v0  ;;  %150 = vst [vmem:[#allocation3 + $0x77] sm:$0x3] %v8516_v0 }
  0x4f   :  { %151 = vst [vmem:[#allocation3 + $0x81] sm:$0x3] %v8516_v0  ;;  %152 = vst [vmem:[#allocation3 + $0x8b] sm:$0x3] %v8516_v0 }
  0x50   :  { %153 = vst [vmem:[#allocation3 + $0x95] sm:$0x3] %v8516_v0  ;;  %154 = vst [vmem:[#allocation3 + $0x9f] sm:$0x3] %v8516_v0  ;;  %7780 = vmatpush3.bf16.msra.mxu0 %v7947_v8  ;;  %7913 = vmatpush3.bf16.msra.mxu1 %v7947_v8 }
  0x51   :  { %155 = vst [vmem:[#allocation3 + $0xa9] sm:$0x3] %v8516_v0  ;;  %156 = vst [vmem:[#allocation3 + $0xb3] sm:$0x3] %v8516_v0  ;;  %7781 = vmatprep.subr.bf16.mxu0 %v7948_v10  ;;  %7906 = vmatprep.subr.bf16.mxu1 %v7948_v10 }
  0x52   :  { %157 = vst [vmem:[#allocation4] sm:$0x7f] %v8516_v0  ;;  %159 = vst [vmem:[#allocation4 + $0xb] sm:$0x3] %v8516_v0 }
  0x53   :  { %160 = vst [vmem:[#allocation4 + $0x11] sm:$0x3] %v8516_v0  ;;  %161 = vst [vmem:[#allocation4 + $0x17] sm:$0x3] %v8516_v0 }
  0x54   :  { %162 = vst [vmem:[#allocation4 + $0x24] sm:$0x7f] %v8516_v0  ;;  %164 = vst [vmem:[#allocation4 + $0x2f] sm:$0x3] %v8516_v0  ;;  %7782 = vmatpush3.bf16.msra.mxu0 %v7948_v10  ;;  %7914 = vmatpush3.bf16.msra.mxu1 %v7948_v10 }
  0x55   :  { %165 = vst [vmem:[#allocation4 + $0x35] sm:$0x3] %v8516_v0  ;;  %166 = vst [vmem:[#allocation4 + $0x3b] sm:$0x3] %v8516_v0  ;;  %7285 = vmatprep.subr.bf16.mxu1 %v7981_v41 }
  0x57   :  { %7784 = vmatmul.mubr.bf16.vlgmr.msra.gmra.mrb[0].mxu0 %v7950_v11  ;;  %7808 = vmatmul.mubr.bf16.vlgmr.msra.gmra.mrb[0].mxu1 %v7962_v13 }
  0x58   :  { %7787 = vmatprep.mubr.bf16.mxu0 %v7951_v12  ;;  %7811 = vmatprep.mubr.bf16.mxu1 %v7963_v14 }
  0x59   :  { %7286 = vmatpush3.bf16.msra.mxu1 %v7982_v42 }
  0x5f   :  { %7788 = vmatmul.mubr.bf16.gmra.mrb[4].mxu0 %v7952_v15  ;;  %7812 = vmatmul.mubr.bf16.gmra.mrb[4].mxu1 %v7964_v17 }
  0x60   :  { %7791 = vmatprep.mubr.bf16.mxu0 %v7953_v16  ;;  %7815 = vmatprep.mubr.bf16.mxu1 %v7965_v18 }
  0x67   :  { %7792 = vmatmul.mubr.bf16.gmra.mrb[8].mxu0 %v7954_v19  ;;  %7816 = vmatmul.mubr.bf16.gmra.mrb[8].mxu1 %v7966_v20 }
  0x68   :  { %7795 = vmatprep.mubr.bf16.mxu0 %v7955_v21  ;;  %7819 = vmatprep.mubr.bf16.mxu1 %v7967_v22 }
  0x6f   :  { %7796 = vmatmul.mubr.bf16.gmra.mrb[12].mxu0 %v7956_v23  ;;  %7820 = vmatmul.mubr.bf16.gmra.mrb[12].mxu1 %v7968_v24 }
  0x70   :  { %7799 = vmatprep.mubr.bf16.mxu0 %v7957_v25  ;;  %7823 = vmatprep.mubr.bf16.mxu1 %v7969_v26 }
  0x77   :  { %7800 = vmatmul.mubr.bf16.gmra.mrb[16].mxu0 %v7958_v27  ;;  %7824 = vmatmul.mubr.bf16.gmra.mrb[16].mxu1 %v7970_v28 }
  0x78   :  { %7803 = vmatprep.mubr.bf16.mxu0 %v7959_v29  ;;  %7827 = vmatprep.mubr.bf16.mxu1 %v7971_v30 }
  0x7f   :  { %7804 = vmatmul.mubr.bf16.gmra.mrb[20].mxu0 %v7960_v31  ;;  %7828 = vmatmul.mubr.bf16.gmra.mrb[20].mxu1 %v7972_v32 }
  0x80   :  { %7831 = vmatprep.mubr.bf16.mxu1 %v7973_v33 }
  0x87   :  { %7832 = vmatmul.mubr.bf16.gmra.mrb[24].mxu1 %v7974_v34 }
  0x88   :  { %7835 = vmatprep.mubr.bf16.mxu1 %v7975_v35 }
  0x8f   :  { %7836 = vmatmul.mubr.bf16.gmra.mrb[28].mxu1 %v7976_v36 }
  0x90   :  { %7839 = vmatprep.mubr.bf16.mxu1 %v7977_v37 }
  0x97   :  { %7840 = vmatmul.mubr.bf16.gmra.mrb[32].mxu1 %v7978_v38 }
  0x98   :  { %7843 = vmatprep.mubr.bf16.mxu1 %v7979_v39 }
  0x9f   :  { %7844 = vmatmul.mubr.bf16.gmra.mrb[36].mxu1 %v7980_v40 }
 0x12a   :  { %v8773_v43 = vpop.f32.mrb[0].mxu0  ;;  %v8775_v44 = vpop.f32.mrb[0].mxu1 }
 0x12b   :  { %10559 = vst [vmem:[#allocation17_spill] sm:$0xff] %v8775_v44  ;;  %v8777_v45 = vpop.f32.mrb[1].mxu0  ;;  %v8779_v46 = vpop.f32.mrb[1].mxu1  ;;  %v847_v54 = vmul.f32 %v8773_v43, %v8773_v43 }
 0x12c   :  { %10560 = vst [vmem:[#allocation18_spill] sm:$0xff] %v8779_v46  ;;  %v8781_v47 = vpop.f32.mrb[2].mxu0  ;;  %v8783_v48 = vpop.f32.mrb[2].mxu1  ;;  %v845_v51 = vmul.f32 %v8777_v45, %v8777_v45 }
 0x12d   :  { %10561 = vst [vmem:[#allocation19_spill] sm:$0xff] %v8783_v48  ;;  %v8785_v49 = vpop.f32.mrb[3].mxu0  ;;  %v8787_v50 = vpop.f32.mrb[3].mxu1  ;;  %v848_v57 = vmul.f32 %v8781_v47, %v8781_v47 }
 0x12e   :  { %10562 = vst [vmem:[#allocation20_spill] sm:$0xff] %v8787_v50  ;;  %v776_v52 = vadd.f32 %v8785_v49, %v8777_v45  ;;  %v846_v53 = vmul.f32 %v8785_v49, %v8785_v49 }
 0x130   :  { %v777_v55 = vadd.f32 %v8773_v43, %v776_v52  ;;  %v909_v56 = vadd.f32 %v846_v53, %v845_v51 }
 0x132   :  { %v910_v58 = vadd.f32 %v909_v56, %v847_v54  ;;  %v8800_v59 = vpop.f32.mrb[4].mxu0  ;;  %v778_v60 = vadd.f32 %v8781_v47, %v777_v55  ;;  %v8803_v61 = vpop.f32.mrb[4].mxu1 }
 0x133   :  { %10563 = vst [vmem:[#allocation21_spill] sm:$0xff] %v8803_v61  ;;  %v8805_v62 = vpop.f32.mrb[5].mxu0  ;;  %v8807_v63 = vpop.f32.mrb[5].mxu1  ;;  %v851_v10 = vmul.f32 %v8800_v59, %v8800_v59 }
 0x134   :  { %10564 = vst [vmem:[#allocation22_spill] sm:$0xff] %v8807_v63  ;;  %v779_v0 = vadd.f32 %v778_v60, %v8805_v62  ;;  %v849_v1 = vmul.f32 %v8805_v62, %v8805_v62  ;;  %v911_v2 = vadd.f32 %v910_v58, %v848_v57  ;;  %v8812_v3 = vpop.f32.mrb[6].mxu0  ;;  %v8814_v4 = vpop.f32.mrb[6].mxu1 }
 0x135   :  { %10565 = vst [vmem:[#allocation23_spill] sm:$0xff] %v8814_v4  ;;  %v8816_v5 = vpop.f32.mrb[7].mxu0  ;;  %v8818_v6 = vpop.f32.mrb[7].mxu1  ;;  %v852_v13 = vmul.f32 %v8812_v3, %v8812_v3 }
 0x136   :  { %10566 = vst [vmem:[#allocation24_spill] sm:$0xff] %v8818_v6  ;;  %v912_v7 = vadd.f32 %v911_v2, %v849_v1  ;;  %v780_v8 = vadd.f32 %v779_v0, %v8816_v5  ;;  %v850_v9 = vmul.f32 %v8816_v5, %v8816_v5 }
 0x138   :  { %v781_v11 = vadd.f32 %v8800_v59, %v780_v8  ;;  %v913_v12 = vadd.f32 %v912_v7, %v850_v9 }
 0x13a   :  { %v914_v14 = vadd.f32 %v913_v12, %v851_v10  ;;  %v8828_v15 = vpop.f32.mrb[8].mxu0  ;;  %v782_v16 = vadd.f32 %v8812_v3, %v781_v11  ;;  %v8831_v17 = vpop.f32.mrb[8].mxu1 }
 0x13b   :  { %10567 = vst [vmem:[#allocation25_spill] sm:$0xff] %v8831_v17  ;;  %v8833_v18 = vpop.f32.mrb[9].mxu0  ;;  %v8835_v19 = vpop.f32.mrb[9].mxu1  ;;  %v855_v30 = vmul.f32 %v8828_v15, %v8828_v15 }
 0x13c   :  { %10568 = vst [vmem:[#allocation26_spill] sm:$0xff] %v8835_v19  ;;  %v783_v20 = vadd.f32 %v782_v16, %v8833_v18  ;;  %v853_v21 = vmul.f32 %v8833_v18, %v8833_v18  ;;  %v915_v22 = vadd.f32 %v914_v14, %v852_v13  ;;  %v8840_v23 = vpop.f32.mrb[10].mxu0  ;;  %v8842_v24 = vpop.f32.mrb[10].mxu1 }
 0x13d   :  { %10569 = vst [vmem:[#allocation27_spill] sm:$0xff] %v8842_v24  ;;  %v8844_v25 = vpop.f32.mrb[11].mxu0  ;;  %v8846_v26 = vpop.f32.mrb[11].mxu1  ;;  %v856_v33 = vmul.f32 %v8840_v23, %v8840_v23 }
 0x13e   :  { %10570 = vst [vmem:[#allocation28_spill] sm:$0xff] %v8846_v26  ;;  %v916_v27 = vadd.f32 %v915_v22, %v853_v21  ;;  %v784_v28 = vadd.f32 %v783_v20, %v8844_v25  ;;  %v854_v29 = vmul.f32 %v8844_v25, %v8844_v25 }
 0x140   :  { %v785_v31 = vadd.f32 %v8828_v15, %v784_v28  ;;  %v917_v32 = vadd.f32 %v916_v27, %v854_v29 }
 0x142   :  { %v918_v34 = vadd.f32 %v917_v32, %v855_v30  ;;  %v8856_v35 = vpop.f32.mrb[12].mxu0  ;;  %v786_v36 = vadd.f32 %v8840_v23, %v785_v31  ;;  %v8859_v37 = vpop.f32.mrb[12].mxu1 }
 0x143   :  { %10571 = vst [vmem:[#allocation29_spill] sm:$0xff] %v8859_v37  ;;  %v8861_v38 = vpop.f32.mrb[13].mxu0  ;;  %v8863_v39 = vpop.f32.mrb[13].mxu1  ;;  %v859_v58 = vmul.f32 %v8856_v35, %v8856_v35 }
 0x144   :  { %10572 = vst [vmem:[#allocation30_spill] sm:$0xff] %v8863_v39  ;;  %v787_v40 = vadd.f32 %v786_v36, %v8861_v38  ;;  %v857_v41 = vmul.f32 %v8861_v38, %v8861_v38  ;;  %v919_v42 = vadd.f32 %v918_v34, %v856_v33  ;;  %v8868_v51 = vpop.f32.mrb[14].mxu0  ;;  %v8870_v52 = vpop.f32.mrb[14].mxu1 }
 0x145   :  { %v8872_v53 = vpop.f32.mrb[15].mxu0  ;;  %v8874_v54 = vpop.f32.mrb[15].mxu1  ;;  %v860_v1 = vmul.f32 %v8868_v51, %v8868_v51 }
 0x146   :  { %10573 = vst [vmem:[#allocation31_spill] sm:$0xff] %v8874_v54  ;;  %v920_v55 = vadd.f32 %v919_v42, %v857_v41  ;;  %v788_v56 = vadd.f32 %v787_v40, %v8872_v53  ;;  %v858_v57 = vmul.f32 %v8872_v53, %v8872_v53 }
 0x148   :  { %v789_v60 = vadd.f32 %v8856_v35, %v788_v56  ;;  %v921_v0 = vadd.f32 %v920_v55, %v858_v57 }
 0x14a   :  { %v922_v2 = vadd.f32 %v921_v0, %v859_v58  ;;  %v8884_v7 = vpop.f32.mrb[16].mxu0  ;;  %v790_v8 = vadd.f32 %v8868_v51, %v789_v60  ;;  %v8887_v9 = vpop.f32.mrb[16].mxu1 }
 0x14b   :  { %v8889_v10 = vpop.f32.mrb[17].mxu0  ;;  %v8891_v11 = vpop.f32.mrb[17].mxu1  ;;  %v863_v30 = vmul.f32 %v8884_v7, %v8884_v7 }
 0x14c   :  { %v791_v12 = vadd.f32 %v790_v8, %v8889_v10  ;;  %v861_v13 = vmul.f32 %v8889_v10, %v8889_v10  ;;  %v923_v14 = vadd.f32 %v922_v2, %v860_v1  ;;  %v8896_v16 = vpop.f32.mrb[18].mxu0  ;;  %v8898_v20 = vpop.f32.mrb[18].mxu1 }
 0x14d   :  { %v8900_v21 = vpop.f32.mrb[19].mxu0  ;;  %v8902_v22 = vpop.f32.mrb[19].mxu1  ;;  %v864_v33 = vmul.f32 %v8896_v16, %v8896_v16 }
 0x14e   :  { %v924_v27 = vadd.f32 %v923_v14, %v861_v13  ;;  %v792_v28 = vadd.f32 %v791_v12, %v8900_v21  ;;  %v862_v29 = vmul.f32 %v8900_v21, %v8900_v21 }
 0x150   :  { %v793_v31 = vadd.f32 %v8884_v7, %v792_v28  ;;  %v925_v32 = vadd.f32 %v924_v27, %v862_v29 }
 0x152   :  { %v926_v34 = vadd.f32 %v925_v32, %v863_v30  ;;  %v8912_v36 = vpop.f32.mrb[20].mxu0  ;;  %v794_v40 = vadd.f32 %v8896_v16, %v793_v31  ;;  %v8915_v41 = vpop.f32.mrb[20].mxu1  ;;  %v869_v32 = vmul.f32 %v8779_v46, %v8779_v46 }
 0x153   :  { %10574 = vst [vmem:[#allocation32_spill] sm:$0xff] %v8912_v36  ;;  %10575 = vst [vmem:[#allocation33_spill] sm:$0xff] %v8915_v41  ;;  %v8917_v42 = vpop.f32.mrb[21].mxu0  ;;  %v8919_v55 = vpop.f32.mrb[21].mxu1  ;;  %v867_v14 = vmul.f32 %v8912_v36, %v8912_v36 }
 0x154   :  { %10576 = vst [vmem:[#allocation34_spill] sm:$0xff] %v8917_v42  ;;  %v795_v56 = vadd.f32 %v794_v40, %v8917_v42  ;;  %v865_v57 = vmul.f32 %v8917_v42, %v8917_v42  ;;  %v927_v58 = vadd.f32 %v926_v34, %v864_v33  ;;  %v8924_v60 = vpop.f32.mrb[22].mxu0  ;;  %v8926_v0 = vpop.f32.mrb[22].mxu1 }
 0x155   :  { %10577 = vst [vmem:[#allocation35_spill] sm:$0xff] %v8924_v60  ;;  %10578 = vst [vmem:[#allocation36_spill] sm:$0xff] %v8926_v0  ;;  %v8928_v1 = vpop.f32.mrb[23].mxu0  ;;  %v8930_v2 = vpop.f32.mrb[23].mxu1  ;;  %v868_v29 = vmul.f32 %v8924_v60, %v8924_v60 }
 0x156   :  { %10579 = vst [vmem:[#allocation37_spill] sm:$0xff] %v8928_v1  ;;  %v928_v8 = vadd.f32 %v927_v58, %v865_v57  ;;  %v796_v12 = vadd.f32 %v795_v56, %v8928_v1  ;;  %v866_v13 = vmul.f32 %v8928_v1, %v8928_v1 }
 0x158   :  { %v797_v27 = vadd.f32 %v8912_v36, %v796_v12  ;;  %v929_v28 = vadd.f32 %v928_v8, %v866_v13  ;;  %v870_v13 = vmul.f32 %v8787_v50, %v8787_v50  ;;  %v7984_v36 = vld [vmem:[#allocation7 + $0x8] sm:$0xff]  }
 0x15a   :  { %v930_v30 = vadd.f32 %v929_v28, %v867_v14  ;;  %v798_v31 = vadd.f32 %v8924_v60, %v797_v27  ;;  %v8943_v33 = vpop.f32.mrb[24].mxu1  ;;  %v871_v14 = vmul.f32 %v8775_v44, %v8775_v44 }
 0x15b   :  { %v8945_v34 = vpop.f32.mrb[25].mxu1 }
 0x15c   :  { %v799_v40 = vadd.f32 %v798_v31, %v8779_v46  ;;  %v931_v56 = vadd.f32 %v930_v30, %v868_v29  ;;  %v8948_v57 = vpop.f32.mrb[26].mxu1  ;;  %v872_v31 = vmul.f32 %v8783_v48, %v8783_v48 }
 0x15d   :  { %v8950_v58 = vpop.f32.mrb[27].mxu1 }
 0x15e   :  { %v932_v8 = vadd.f32 %v931_v56, %v869_v32  ;;  %v800_v12 = vadd.f32 %v799_v40, %v8787_v50  ;;  %v873_v32 = vmul.f32 %v8807_v63, %v8807_v63 }
 0x160   :  { %v801_v27 = vadd.f32 %v8775_v44, %v800_v12  ;;  %v933_v28 = vadd.f32 %v932_v8, %v870_v13 }
 0x162   :  { %v934_v29 = vadd.f32 %v933_v28, %v871_v14  ;;  %v802_v30 = vadd.f32 %v8783_v48, %v801_v27  ;;  %v8963_v56 = vpop.f32.mrb[28].mxu1  ;;  %v874_v14 = vmul.f32 %v8818_v6, %v8818_v6  ;;  %v875_v27 = vmul.f32 %v8803_v61, %v8803_v61 }
 0x163   :  { %v8965_v40 = vpop.f32.mrb[29].mxu1 }
 0x164   :  { %v803_v50 = vadd.f32 %v802_v30, %v8807_v63  ;;  %v935_v46 = vadd.f32 %v934_v29, %v872_v31  ;;  %v8968_v60 = vpop.f32.mrb[30].mxu1  ;;  %v876_v30 = vmul.f32 %v8814_v4, %v8814_v4 }
 0x165   :  { %v8970_v12 = vpop.f32.mrb[31].mxu1 }
 0x166   :  { %v936_v8 = vadd.f32 %v935_v46, %v873_v32  ;;  %v804_v13 = vadd.f32 %v803_v50, %v8818_v6  ;;  %v877_v46 = vmul.f32 %v8835_v19, %v8835_v19 }
 0x168   :  { %v805_v28 = vadd.f32 %v8803_v61, %v804_v13  ;;  %v937_v48 = vadd.f32 %v936_v8, %v874_v14 }
 0x16a   :  { %v938_v31 = vadd.f32 %v937_v48, %v875_v27  ;;  %v806_v29 = vadd.f32 %v8814_v4, %v805_v28  ;;  %v8983_v32 = vpop.f32.mrb[32].mxu1  ;;  %v878_v48 = vmul.f32 %v8846_v26, %v8846_v26  ;;  %v879_v27 = vmul.f32 %v8831_v17, %v8831_v17 }
 0x16b   :  { %v8985_v50 = vpop.f32.mrb[33].mxu1 }
 0x16c   :  { %v807_v6 = vadd.f32 %v806_v29, %v8835_v19  ;;  %v939_v63 = vadd.f32 %v938_v31, %v876_v30  ;;  %v8988_v44 = vpop.f32.mrb[34].mxu1  ;;  %v880_v29 = vmul.f32 %v8842_v24, %v8842_v24 }
 0x16d   :  { %v8990_v13 = vpop.f32.mrb[35].mxu1 }
 0x16e   :  { %v940_v8 = vadd.f32 %v939_v63, %v877_v46  ;;  %v808_v14 = vadd.f32 %v807_v6, %v8846_v26  ;;  %v881_v63 = vmul.f32 %v8863_v39, %v8863_v39 }
 0x170   :  { %v809_v28 = vadd.f32 %v8831_v17, %v808_v14  ;;  %v941_v4 = vadd.f32 %v940_v8, %v878_v48  ;;  %v7991_v14 = vld [vmem:[#allocation7 + $0x140] sm:$0xff]  }
 0x171   :  { %v7993_v48 = vld [vmem:[#allocation7 + $0x100] sm:$0xff]   ;;  %7413 = vmatprep.subr.bf16.mxu0 %v7991_v14  ;;  %v885_v14 = vmul.f32 %v8891_v11, %v8891_v11 }
 0x172   :  { %v942_v30 = vadd.f32 %v941_v4, %v879_v27  ;;  %v810_v31 = vadd.f32 %v8842_v24, %v809_v28  ;;  %v9003_v46 = vpop.f32.mrb[36].mxu1  ;;  %v882_v27 = vmul.f32 %v8874_v54, %v8874_v54  ;;  %7414 = vmatpush3.bf16.msra.mxu0 %v7993_v48  ;;  %v883_v28 = vmul.f32 %v8859_v37, %v8859_v37 }
 0x173   :  { %v9005_v6 = vpop.f32.mrb[37].mxu1  ;;  %v884_v24 = vmul.f32 %v8870_v52, %v8870_v52 }
 0x174   :  { %v811_v26 = vadd.f32 %v810_v31, %v8863_v39  ;;  %v943_v19 = vadd.f32 %v942_v30, %v880_v29  ;;  %v9008_v61 = vpop.f32.mrb[38].mxu1  ;;  %v7983_v30 = vld [vmem:[#allocation7 + $0x48] sm:$0xff]  }
 0x175   :  { %v9010_v8 = vpop.f32.mrb[39].mxu1  ;;  %v7995_v39 = vld [vmem:[#allocation7 + $0x148] sm:$0xff]   ;;  %7287 = vmatprep.subr.bf16.mxu1 %v7983_v30  ;;  %v888_v30 = vmul.f32 %v8898_v20, %v8898_v20 }
 0x176   :  { %v944_v17 = vadd.f32 %v943_v19, %v881_v63  ;;  %v812_v4 = vadd.f32 %v811_v26, %v8874_v54  ;;  %v7996_v19 = vld [vmem:[#allocation7 + $0x108] sm:$0xff]   ;;  %7415 = vmatprep.subr.bf16.mxu0 %v7995_v39  ;;  %7288 = vmatpush3.bf16.msra.mxu1 %v7984_v36  ;;  %v7998_v54 = vld [vmem:[#allocation7 + $0x110] sm:$0xff]   ;;  %v887_v39 = vmul.f32 %v8887_v9, %v8887_v9 }
 0x177   :  { %7416 = vmatpush3.bf16.msra.mxu0 %v7996_v19  ;;  %v7988_v19 = vld [vmem:[#allocation7 + $0x18] sm:$0xff]  }
 0x178   :  { %v813_v31 = vadd.f32 %v8859_v37, %v812_v4  ;;  %v945_v29 = vadd.f32 %v944_v17, %v882_v27  ;;  %v7985_v4 = vld [vmem:[#allocation7 + $0x50] sm:$0xff]  }
 0x179   :  { %v7997_v27 = vld [vmem:[#allocation7 + $0x150] sm:$0xff]   ;;  %7289 = vmatprep.subr.bf16.mxu1 %v7985_v4  ;;  %v8004_v4 = vld [vmem:[#allocation7 + $0x120] sm:$0xff]  }
 0x17a   :  { %v946_v63 = vadd.f32 %v945_v29, %v883_v28  ;;  %v814_v26 = vadd.f32 %v8870_v52, %v813_v31  ;;  %v7986_v37 = vld [vmem:[#allocation7 + $0x10] sm:$0xff]   ;;  %v886_v28 = vmul.f32 %v8902_v22, %v8902_v22  ;;  %7417 = vmatprep.subr.bf16.mxu0 %v7997_v27  ;;  %v7987_v31 = vld [vmem:[#allocation7 + $0x58] sm:$0xff]  }
 0x17b   :  { %7290 = vmatpush3.bf16.msra.mxu1 %v7986_v37  ;;  %7418 = vmatpush3.bf16.msra.mxu0 %v7998_v54  ;;  %v8001_v29 = vld [vmem:[#allocation7 + $0x158] sm:$0xff]   ;;  %v889_v37 = vmul.f32 %v8919_v55, %v8919_v55 }
 0x17c   :  { %v815_v48 = vadd.f32 %v814_v26, %v8891_v11  ;;  %v947_v17 = vadd.f32 %v946_v63, %v884_v24  ;;  %v8002_v63 = vld [vmem:[#allocation7 + $0x118] sm:$0xff]   ;;  %7291 = vmatprep.subr.bf16.mxu1 %v7987_v31  ;;  %7419 = vmatprep.subr.bf16.mxu0 %v8001_v29  ;;  %v7992_v29 = vld [vmem:[#allocation7 + $0x68] sm:$0xff]  }
 0x17e   :  { %v948_v1 = vadd.f32 %v947_v17, %v885_v14  ;;  %v816_v42 = vadd.f32 %v815_v48, %v8902_v22  ;;  %v8003_v48 = vld [vmem:[#allocation7 + $0x160] sm:$0xff]  }
 0x17f   :  { %7292 = vmatpush3.bf16.msra.mxu1 %v7988_v19  ;;  %7420 = vmatpush3.bf16.msra.mxu0 %v8002_v63  ;;  %v7990_v17 = vld [vmem:[#allocation7 + $0x20] sm:$0xff]   ;;  %v892_v19 = vmul.f32 %v8926_v0, %v8926_v0  ;;  %v7994_v63 = vld [vmem:[#allocation7 + $0x28] sm:$0xff]  }
 0x180   :  { %v817_v36 = vadd.f32 %v8887_v9, %v816_v42  ;;  %v949_v24 = vadd.f32 %v948_v1, %v886_v28  ;;  %v7989_v1 = vld [vmem:[#allocation7 + $0x60] sm:$0xff]   ;;  %7421 = vmatprep.subr.bf16.mxu0 %v8003_v48  ;;  %v8006_v48 = vld [vmem:[#allocation7 + $0x78] sm:$0xff]  }
 0x181   :  { %7293 = vmatprep.subr.bf16.mxu1 %v7989_v1  ;;  %v8000_v1 = vld [vmem:[#allocation7 + $0x30] sm:$0xff]  }
 0x182   :  { %v950_v26 = vadd.f32 %v949_v24, %v887_v39  ;;  %v818_v14 = vadd.f32 %v8898_v20, %v817_v36  ;;  %v890_v39 = vmul.f32 %v8930_v2, %v8930_v2  ;;  %v891_v36 = vmul.f32 %v8915_v41, %v8915_v41 }
 0x183   :  { %7294 = vmatpush3.bf16.msra.mxu1 %v7990_v17  ;;  %7422 = vmatpush3.bf16.msra.mxu0 %v8004_v4  ;;  %v8009_v17 = vld [vmem:[#allocation7 + $0x170] sm:$0xff]  }
 0x184   :  { %v819_v54 = vadd.f32 %v818_v14, %v8919_v55  ;;  %v951_v42 = vadd.f32 %v950_v26, %v888_v30  ;;  %v8005_v30 = vld [vmem:[#allocation7 + $0x168] sm:$0xff]   ;;  %v7999_v26 = vld [vmem:[#allocation7 + $0x70] sm:$0xff]   ;;  %7295 = vmatprep.subr.bf16.mxu1 %v7992_v29 }
 0x185   :  { %7423 = vmatprep.subr.bf16.mxu0 %v8005_v30  ;;  %v894_v30 = vmul.f32 %v8950_v58, %v8950_v58 }
 0x186   :  { %v952_v27 = vadd.f32 %v951_v42, %v889_v37  ;;  %v820_v28 = vadd.f32 %v819_v54, %v8930_v2  ;;  %v893_v54 = vmul.f32 %v8945_v34, %v8945_v34  ;;  %v8007_v42 = vld [vmem:[#allocation7 + $0x128] sm:$0xff]  }
 0x187   :  { %7296 = vmatpush3.bf16.msra.mxu1 %v7994_v63  ;;  %7424 = vmatpush3.bf16.msra.mxu0 %v8007_v42  ;;  %v8008_v63 = vld [vmem:[#allocation7 + $0x38] sm:$0xff]   ;;  %v8013_v42 = vld [vmem:[#allocation7 + $0xc0] sm:$0xff]  }
 0x188   :  { %v821_v24 = vadd.f32 %v8915_v41, %v820_v28  ;;  %v953_v31 = vadd.f32 %v952_v27, %v890_v39  ;;  %7297 = vmatprep.subr.bf16.mxu1 %v7999_v26  ;;  %v8010_v28 = vld [vmem:[#allocation7 + $0x130] sm:$0xff]   ;;  %v1261_v39 = vld [vmem:[#allocation2 + $0x1] ss:$2 sm:$0xff]  ;;  %7425 = vmatprep.subr.bf16.mxu0 %v8009_v17 }
 0x18a   :  { %v954_v14 = vadd.f32 %v953_v31, %v891_v36  ;;  %v822_v37 = vadd.f32 %v8926_v0, %v821_v24  ;;  %v1257_v36 = vld [vmem:[#allocation2] ss:$2 sm:$0xff]  ;;  %v1262_v31 = vpack.c.bf16 %v1261_v39, %v1261_v39 }
 0x18b   :  { %v8011_v24 = vld [vmem:[#allocation7 + $0x178] sm:$0xff]   ;;  %v1258_v0 = vpack.c.bf16 %v1257_v36, %v1257_v36  ;;  %7298 = vmatpush3.bf16.msra.mxu1 %v8000_v1  ;;  %7426 = vmatpush3.bf16.msra.mxu0 %v8010_v28 }
 0x18c   :  { %v823_v4 = vadd.f32 %v822_v37, %v8945_v34  ;;  %v955_v27 = vadd.f32 %v954_v14, %v892_v19  ;;  %1263 = vst [vmem:[#allocation5 + $0x8] sm:$0xf] %v1262_v31  ;;  %v895_v19 = vmul.f32 %v8943_v33, %v8943_v33  ;;  %7299 = vmatprep.subr.bf16.mxu1 %v8006_v48  ;;  %v8012_v37 = vld [vmem:[#allocation7 + $0x138] sm:$0xff]  }
 0x18d   :  { %1259 = vst [vmem:[#allocation5] sm:$0xf] %v1258_v0  ;;  %7427 = vmatprep.subr.bf16.mxu0 %v8011_v24  ;;  %v897_v0 = vmul.f32 %v8965_v40, %v8965_v40  ;;  %v1632_v48 = vld [vmem:[#allocation2 + $0x144] ss:$2 sm:$0xff]  ;;  %v898_v31 = vmul.f32 %v8970_v12, %v8970_v12 }
 0x18e   :  { %v956_v41 = vadd.f32 %v955_v27, %v893_v54  ;;  %v824_v29 = vadd.f32 %v823_v4, %v8950_v58  ;;  %v896_v54 = vmul.f32 %v8948_v57, %v8948_v57  ;;  %v1636_v4 = vld [vmem:[#allocation2 + $0x145] ss:$2 sm:$0xff]  ;;  %v1633_v28 = vpack.c.bf16 %v1632_v48, %v1632_v48 }
 0x18f   :  { %7300 = vmatpush3.bf16.msra.mxu1 %v8008_v63  ;;  %v1637_v27 = vpack.c.bf16 %v1636_v4, %v1636_v4  ;;  %7428 = vmatpush3.bf16.msra.mxu0 %v8012_v37  ;;  %v901_v37 = vmul.f32 %v8985_v50, %v8985_v50  ;;  %v903_v4 = vmul.f32 %v8983_v32, %v8983_v32 }
 0x190   :  { %v825_v26 = vadd.f32 %v8943_v33, %v824_v29  ;;  %v957_v14 = vadd.f32 %v956_v41, %v894_v30  ;;  %7349 = vmatprep.subr.bf16.mxu1 %v8013_v42  ;;  %1634 = vst [vmem:[#allocation5 + $0x120] sm:$0xf] %v1633_v28  ;;  %v899_v29 = vmul.f32 %v8963_v56, %v8963_v56 }
 0x191   :  { %1638 = vst [vmem:[#allocation5 + $0x128] sm:$0xf] %v1637_v27 }
 0x192   :  { %v958_v17 = vadd.f32 %v957_v14, %v895_v19  ;;  %v826_v1 = vadd.f32 %v8948_v57, %v825_v26  ;;  %v900_v19 = vmul.f32 %v8968_v60, %v8968_v60 }
 0x194   :  { %v827_v39 = vadd.f32 %v826_v1, %v8965_v40  ;;  %v959_v41 = vadd.f32 %v958_v17, %v896_v54 }
 0x196   :  { %v960_v36 = vadd.f32 %v959_v41, %v897_v0  ;;  %v828_v24 = vadd.f32 %v827_v39, %v8970_v12  ;;  %v902_v0 = vmul.f32 %v8990_v13, %v8990_v13  ;;  %v904_v41 = vmul.f32 %v8988_v44, %v8988_v44 }
 0x198   :  { %v829_v30 = vadd.f32 %v8963_v56, %v828_v24  ;;  %v961_v63 = vadd.f32 %v960_v36, %v898_v31  ;;  %v905_v36 = vmul.f32 %v9005_v6, %v9005_v6  ;;  %v1265_v24 = vld [vmem:[#allocation2 + $0x2] ss:$2 sm:$0xff] }
 0x199   :  { %v1266_v31 = vpack.c.bf16 %v1265_v24, %v1265_v24 }
 0x19a   :  { %v962_v26 = vadd.f32 %v961_v63, %v899_v29  ;;  %v830_v14 = vadd.f32 %v8968_v60, %v829_v30 }
 0x19b   :  { %1267 = vst [vmem:[#allocation5 + $0x10] sm:$0xf] %v1266_v31 }
 0x19c   :  { %v831_v42 = vadd.f32 %v830_v14, %v8985_v50  ;;  %v963_v54 = vadd.f32 %v962_v26, %v900_v19  ;;  %v906_v26 = vmul.f32 %v9010_v8, %v9010_v8  ;;  %v907_v14 = vmul.f32 %v9003_v46, %v9003_v46 }
 0x19e   :  { %v964_v17 = vadd.f32 %v963_v54, %v901_v37  ;;  %v832_v1 = vadd.f32 %v831_v42, %v8990_v13  ;;  %v908_v54 = vmul.f32 %v9008_v61, %v9008_v61 }
 0x1a0   :  { %v833_v27 = vadd.f32 %v8983_v32, %v832_v1  ;;  %v965_v39 = vadd.f32 %v964_v17, %v902_v0 }
 0x1a2   :  { %v966_v48 = vadd.f32 %v965_v39, %v903_v4  ;;  %v834_v28 = vadd.f32 %v8988_v44, %v833_v27 }
 0x1a4   :  { %v835_v29 = vadd.f32 %v834_v28, %v9005_v6  ;;  %v967_v30 = vadd.f32 %v966_v48, %v904_v41  ;;  %v9093_v41 = vld [vmem:[#allocation7 + $0x200] sm:$0xff]  }
 0x1a5   :  { %10580 = vst [vmem:[#allocation38_spill] sm:$0xff] %v9093_v41  ;;  %7847 = vmatprep.subr.bf16.mxu0 %v9093_v41  ;;  %v10601_v41 = vld [vmem:[#allocation25_spill] sm:$0xff] }
 0x1a6   :  { %v968_v63 = vadd.f32 %v967_v30, %v905_v36  ;;  %v836_v19 = vadd.f32 %v835_v29, %v9010_v8  ;;  %v1640_v36 = vld [vmem:[#allocation2 + $0x146] ss:$2 sm:$0xff] }
 0x1a7   :  { %v1641_v24 = vpack.c.bf16 %v1640_v36, %v1640_v36  ;;  %v986_v36 = vld [vmem:[%s10519_s3] sm:$0x1] }
 0x1a8   :  { %v837_v37 = vadd.f32 %v9003_v46, %v836_v19  ;;  %v969_v42 = vadd.f32 %v968_v63, %v906_v26 }
 0x1a9   :  { %1642 = vst [vmem:[#allocation5 + $0x130] sm:$0xf] %v1641_v24 }
 0x1aa   :  { %v838_v17 = vadd.f32 %v9008_v61, %v837_v37  ;;  %v970_v1 = vadd.f32 %v969_v42, %v907_v14 }
 0x1ac   :  { %v839_v0 = vrot.slane %v838_v17, 4  ;;  %v971_v4 = vadd.f32 %v970_v1, %v908_v54 }
 0x1ae   :  { %v840_v27 = vadd.f32 %v839_v0, %v838_v17  ;;  %v972_v39 = vrot.slane %v971_v4, 4  ;;  %v10553_v0 = vlaneseq }
 0x1b0   :  { %v841_v48 = vrot.slane %v840_v27, 2  ;;  %v973_v28 = vadd.f32 %v972_v39, %v971_v4  ;;  %v9097_v4 = vshrl.u32 %v10553_v0, 7 }
 0x1b2   :  { %v842_v31 = vadd.f32 %v841_v48, %v840_v27  ;;  %v974_v29 = vrot.slane %v973_v28, 2  ;;  %10581 = vst [vmem:[#allocation39_spill] sm:$0xff] %v9097_v4  ;;  %v982_v27 = vld [vmem:[%s10518_s2] sm:$0x1]  ;;  %v9103_v39 = vsub.s32 0, %v9097_v4 }
 0x1b4   :  { %v843_v30 = vrot.slane %v842_v31, 1  ;;  %v975_v63 = vadd.f32 %v974_v29, %v973_v28  ;;  %10582 = vst [vmem:[#allocation40_spill] sm:$0xff] %v9103_v39 }
 0x1b6   :  { %v844_v19 = vadd.f32 %v843_v30, %v842_v31  ;;  %v976_v26 = vrot.slane %v975_v63, 1 }
 0x1b8   :  { %v977_v14 = vadd.f32 %v976_v26, %v975_v63  ;;  %v978_v37 = vmul.f32 0.001953125, %v844_v19 }
 0x1ba   :  { %v979_v42 = vmul.f32 0.001953125, %v977_v14  ;;  %v980_v54 = vmul.f32 %v978_v37, %v978_v37 }
 0x1bc   :  { %v981_v17 = vsub.f32 %v979_v42, %v980_v54 }
 0x1be   :  { %v983_v1 = vadd.f32 1e-05, %v981_v17  ;;  %v10583_v17 = vld [vmem:[#allocation34_spill] sm:$0xff] }
 0x1c0   :  { %8407 = vrsqrt.f32 %v983_v1  ;;  %v10584_v1 = vld [vmem:[#allocation37_spill] sm:$0xff] }
 0x1ca   :  { %v8408_v48 = vpop.eup %8407 }
 0x1cb   :  { %v985_v28 = vmul.f32 %v8408_v48, %v982_v27 }
 0x1cd   :  { %v987_v24 = vmul.f32 %v985_v28, %v978_v37  ;;  %v9109_v31 = vrot.slane %v985_v28, %v9103_v39  ;;  %v10587_v28 = vld [vmem:[#allocation18_spill] sm:$0xff] }
 0x1cf   :  { %v988_v29 = vsub.f32 %v986_v36, %v987_v24  ;;  %v1056_v30 = vmul.f32 %v9109_v31, %v9010_v8  ;;  %v9115_v63 = vmul.f32 %v9109_v31, %v8777_v45  ;;  %v9119_v19 = vmul.f32 %v9109_v31, %v8785_v49  ;;  %v10588_v36 = vld [vmem:[#allocation20_spill] sm:$0xff] }
 0x1d0   :  { %v9123_v26 = vmul.f32 %v8773_v43, %v9109_v31  ;;  %v9127_v14 = vmul.f32 %v8781_v47, %v9109_v31  ;;  %v9131_v37 = vmul.f32 %v9109_v31, %v8805_v62  ;;  %v9135_v45 = vmul.f32 %v9109_v31, %v8816_v5 }
 0x1d1   :  { %v9138_v8 = vrot.slane %v988_v29, %v9103_v39  ;;  %v9142_v49 = vmul.f32 %v8800_v59, %v9109_v31  ;;  %v9146_v43 = vmul.f32 %v8812_v3, %v9109_v31  ;;  %v9150_v47 = vmul.f32 %v9109_v31, %v8833_v18  ;;  %v10589_v29 = vld [vmem:[#allocation17_spill] sm:$0xff]  ;;  %v10600_v39 = vld [vmem:[#allocation28_spill] sm:$0xff] }
 0x1d2   :  { %v9154_v62 = vmul.f32 %v9109_v31, %v8844_v25  ;;  %v9158_v5 = vmul.f32 %v8828_v15, %v9109_v31  ;;  %v9162_v59 = vmul.f32 %v8840_v23, %v9109_v31  ;;  %v9166_v3 = vmul.f32 %v9109_v31, %v8861_v38 }
 0x1d3   :  { %v1126_v42 = vadd.f32 %v9138_v8, %v1056_v30  ;;  %v9171_v18 = vmul.f32 %v9109_v31, %v8872_v53  ;;  %v9175_v25 = vmul.f32 %v8856_v35, %v9109_v31  ;;  %v9179_v15 = vmul.f32 %v8868_v51, %v9109_v31 }
 0x1d4   :  { %v9183_v23 = vmul.f32 %v9109_v31, %v8889_v10  ;;  %v9187_v38 = vmul.f32 %v9109_v31, %v8900_v21  ;;  %v9191_v53 = vmul.f32 %v8884_v7, %v9109_v31  ;;  %v9195_v35 = vmul.f32 %v8896_v16, %v9109_v31  ;;  %v10585_v21 = vld [vmem:[#allocation32_spill] sm:$0xff]  ;;  %v10586_v7 = vld [vmem:[#allocation35_spill] sm:$0xff] }
 0x1d5   :  { %v1190_v54 = vmax.f32 %v1126_v42, 0.0  ;;  %v9199_v51 = vmul.f32 %v9109_v31, %v10583_v17  ;;  %v9203_v10 = vmul.f32 %v9109_v31, %v10584_v1  ;;  %v9207_v27 = vmul.f32 %v10585_v21, %v9109_v31  ;;  %v10590_v42 = vld [vmem:[#allocation19_spill] sm:$0xff]  ;;  %v10591_v1 = vld [vmem:[#allocation22_spill] sm:$0xff] }
 0x1d6   :  { %v9211_v48 = vmul.f32 %v10586_v7, %v9109_v31  ;;  %v9215_v16 = vmul.f32 %v9109_v31, %v10587_v28  ;;  %v9219_v24 = vmul.f32 %v9109_v31, %v10588_v36  ;;  %v9223_v30 = vmul.f32 %v10589_v29, %v9109_v31  ;;  %v10592_v7 = vld [vmem:[#allocation24_spill] sm:$0xff]  ;;  %v10594_v36 = vld [vmem:[#allocation21_spill] sm:$0xff]  ;;  %v10596_v29 = vld [vmem:[#allocation23_spill] sm:$0xff] }
 0x1d7   :  { %1254 = vst [vmem:[#allocation2 + $0x25b] sm:$0xff] %v1190_v54  ;;  %v9227_v17 = vmul.f32 %v10590_v42, %v9109_v31  ;;  %v9231_v21 = vmul.f32 %v9109_v31, %v10591_v1  ;;  %v9235_v28 = vmul.f32 %v9109_v31, %v10592_v7  ;;  %v9239_v0 = vmul.f32 %v10594_v36, %v9109_v31  ;;  %v10598_v54 = vld [vmem:[#allocation26_spill] sm:$0xff] }
 0x1d8   :  { %v9243_v4 = vmul.f32 %v10596_v29, %v9109_v31  ;;  %v9247_v42 = vmul.f32 %v9109_v31, %v10598_v54  ;;  %v9251_v1 = vmul.f32 %v9109_v31, %v10600_v39  ;;  %v9255_v7 = vmul.f32 %v10601_v41, %v9109_v31 }
 0x1d9   :  { %10593 = vst [vmem:[#allocation34_spill] sm:$0xff] %v9235_v28  ;;  %10595 = vst [vmem:[#allocation37_spill] sm:$0xff] %v9239_v0  ;;  %v10602_v28 = vld [vmem:[#allocation27_spill] sm:$0xff]  ;;  %v10603_v0 = vld [vmem:[#allocation30_spill] sm:$0xff]  ;;  %v9275_v41 = vmul.f32 %v8870_v52, %v9109_v31  ;;  %v9295_v52 = vmul.f32 %v9109_v31, %v8919_v55  ;;  %v9315_v55 = vmul.f32 %v9109_v31, %v8950_v58 }
 0x1da   :  { %10597 = vst [vmem:[#allocation32_spill] sm:$0xff] %v9243_v4  ;;  %10599 = vst [vmem:[#allocation35_spill] sm:$0xff] %v9247_v42  ;;  %v9259_v36 = vmul.f32 %v10602_v28, %v9109_v31  ;;  %v9263_v29 = vmul.f32 %v9109_v31, %v10603_v0  ;;  %v10604_v4 = vld [vmem:[#allocation31_spill] sm:$0xff]  ;;  %v10605_v42 = vld [vmem:[#allocation29_spill] sm:$0xff]  ;;  %v9279_v28 = vmul.f32 %v9109_v31, %v8891_v11 }
 0x1db   :  { %v9267_v54 = vmul.f32 %v9109_v31, %v10604_v4  ;;  %v9271_v39 = vmul.f32 %v10605_v42, %v9109_v31  ;;  %v9283_v0 = vmul.f32 %v9109_v31, %v8902_v22  ;;  %v9287_v4 = vmul.f32 %v8887_v9, %v9109_v31 }
 0x1dc   :  { %10606 = vst [vmem:[#allocation18_spill] sm:$0xff] %v9279_v28  ;;  %v9291_v42 = vmul.f32 %v8898_v20, %v9109_v31  ;;  %v9299_v11 = vmul.f32 %v9109_v31, %v8930_v2  ;;  %v10608_v28 = vld [vmem:[#allocation33_spill] sm:$0xff]  ;;  %v9311_v20 = vmul.f32 %v9109_v31, %v8945_v34  ;;  %v9319_v2 = vmul.f32 %v8943_v33, %v9109_v31 }
 0x1dd   :  { %10607 = vst [vmem:[#allocation20_spill] sm:$0xff] %v9283_v0  ;;  %v9303_v22 = vmul.f32 %v10608_v28, %v9109_v31  ;;  %v10609_v0 = vld [vmem:[#allocation36_spill] sm:$0xff]  ;;  %v9323_v28 = vmul.f32 %v8948_v57, %v9109_v31  ;;  %v9331_v34 = vmul.f32 %v9109_v31, %v8970_v12  ;;  %v9335_v58 = vmul.f32 %v8963_v56, %v9109_v31 }
 0x1de   :  { %v9307_v9 = vmul.f32 %v10609_v0, %v9109_v31  ;;  %v9327_v0 = vmul.f32 %v9109_v31, %v8965_v40  ;;  %v9339_v33 = vmul.f32 %v8968_v60, %v9109_v31  ;;  %v9343_v57 = vmul.f32 %v9109_v31, %v8985_v50 }
 0x1df   :  { %v9347_v40 = vmul.f32 %v9109_v31, %v8990_v13  ;;  %v9351_v12 = vmul.f32 %v8983_v32, %v9109_v31  ;;  %v9355_v56 = vmul.f32 %v8988_v44, %v9109_v31  ;;  %v9359_v60 = vmul.f32 %v9109_v31, %v9005_v6 }
 0x1e0   :  { %v9363_v50 = vmul.f32 %v9003_v46, %v9109_v31  ;;  %v9367_v13 = vmul.f32 %v9008_v61, %v9109_v31  ;;  %v9371_v32 = vadd.f32 %v9138_v8, %v9115_v63  ;;  %v9375_v44 = vadd.f32 %v9138_v8, %v9119_v19 }
 0x1e1   :  { %v9379_v6 = vadd.f32 %v9138_v8, %v9123_v26  ;;  %v9383_v46 = vadd.f32 %v9138_v8, %v9127_v14  ;;  %v9387_v61 = vadd.f32 %v9138_v8, %v9131_v37  ;;  %v9391_v31 = vadd.f32 %v9138_v8, %v9135_v45 }
 0x1e2   :  { %v9395_v63 = vadd.f32 %v9138_v8, %v9142_v49  ;;  %v9399_v19 = vadd.f32 %v9138_v8, %v9146_v43  ;;  %v9403_v26 = vadd.f32 %v9138_v8, %v9150_v47  ;;  %v9407_v14 = vadd.f32 %v9138_v8, %v9154_v62 }
 0x1e3   :  { %v9411_v37 = vadd.f32 %v9138_v8, %v9158_v5  ;;  %v9415_v45 = vadd.f32 %v9138_v8, %v9162_v59  ;;  %v9419_v49 = vadd.f32 %v9138_v8, %v9166_v3  ;;  %v9423_v43 = vadd.f32 %v9138_v8, %v9171_v18 }
 0x1e4   :  { %v9427_v47 = vadd.f32 %v9138_v8, %v9175_v25  ;;  %v9431_v62 = vadd.f32 %v9138_v8, %v9179_v15  ;;  %v9435_v5 = vadd.f32 %v9138_v8, %v9183_v23  ;;  %v9439_v59 = vadd.f32 %v9138_v8, %v9187_v38 }
 0x1e5   :  { %v9443_v3 = vadd.f32 %v9138_v8, %v9191_v53  ;;  %v9447_v18 = vadd.f32 %v9138_v8, %v9195_v35  ;;  %v9451_v25 = vadd.f32 %v9138_v8, %v9199_v51  ;;  %v9455_v15 = vadd.f32 %v9138_v8, %v9203_v10 }
 0x1e6   :  { %v9459_v23 = vadd.f32 %v9138_v8, %v9207_v27  ;;  %v9463_v38 = vadd.f32 %v9138_v8, %v9211_v48  ;;  %v9467_v53 = vadd.f32 %v9138_v8, %v9215_v16  ;;  %v9471_v35 = vadd.f32 %v9138_v8, %v9219_v24  ;;  %v10613_v48 = vld [vmem:[#allocation34_spill] sm:$0xff] }
 0x1e7   :  { %v9475_v51 = vadd.f32 %v9138_v8, %v9223_v30  ;;  %v9479_v10 = vadd.f32 %v9138_v8, %v9227_v17  ;;  %v9483_v27 = vadd.f32 %v9138_v8, %v9231_v21  ;;  %v9487_v16 = vadd.f32 %v9138_v8, %v10613_v48 }
 0x1e8   :  { %10610 = vst [vmem:[#allocation17_spill] sm:$0xff] %v9467_v53  ;;  %10611 = vst [vmem:[#allocation19_spill] sm:$0xff] %v9471_v35  ;;  %v10614_v53 = vld [vmem:[#allocation37_spill] sm:$0xff]  ;;  %v10615_v35 = vld [vmem:[#allocation32_spill] sm:$0xff]  ;;  %v9503_v21 = vadd.f32 %v9138_v8, %v9251_v1  ;;  %v9507_v48 = vadd.f32 %v9138_v8, %v9255_v7  ;;  %v9523_v1 = vadd.f32 %v9138_v8, %v9271_v39 }
 0x1e9   :  { %10612 = vst [vmem:[#allocation22_spill] sm:$0xff] %v9475_v51  ;;  %v9491_v24 = vadd.f32 %v9138_v8, %v10614_v53  ;;  %v9495_v30 = vadd.f32 %v9138_v8, %v10615_v35  ;;  %v10616_v51 = vld [vmem:[#allocation35_spill] sm:$0xff]  ;;  %v9511_v53 = vadd.f32 %v9138_v8, %v9259_v36  ;;  %v9515_v35 = vadd.f32 %v9138_v8, %v9263_v29 }
 0x1ea   :  { %v9499_v17 = vadd.f32 %v9138_v8, %v10616_v51  ;;  %10617 = vst [vmem:[#allocation24_spill] sm:$0xff] %v9507_v48  ;;  %v9519_v51 = vadd.f32 %v9138_v8, %v9267_v54  ;;  %v9527_v7 = vadd.f32 %v9138_v8, %v9275_v41  ;;  %v10619_v48 = vld [vmem:[#allocation18_spill] sm:$0xff]  ;;  %v9539_v54 = vadd.f32 %v9138_v8, %v9287_v4 }
 0x1eb   :  { %10618 = vst [vmem:[#allocation21_spill] sm:$0xff] %v9511_v53  ;;  %v9531_v36 = vadd.f32 %v9138_v8, %v10619_v48  ;;  %v10620_v53 = vld [vmem:[#allocation20_spill] sm:$0xff]  ;;  %v9543_v39 = vadd.f32 %v9138_v8, %v9291_v42  ;;  %v9547_v41 = vadd.f32 %v9138_v8, %v9295_v52  ;;  %v9551_v48 = vadd.f32 %v9138_v8, %v9299_v11 }
 0x1ec   :  { %v9535_v29 = vadd.f32 %v9138_v8, %v10620_v53  ;;  %v9555_v53 = vadd.f32 %v9138_v8, %v9303_v22  ;;  %v9559_v4 = vadd.f32 %v9138_v8, %v9307_v9  ;;  %v9563_v42 = vadd.f32 %v9138_v8, %v9311_v20 }
 0x1ed   :  { %v9567_v52 = vadd.f32 %v9138_v8, %v9315_v55  ;;  %v9571_v11 = vadd.f32 %v9138_v8, %v9319_v2  ;;  %v9575_v22 = vadd.f32 %v9138_v8, %v9323_v28  ;;  %v9579_v9 = vadd.f32 %v9138_v8, %v9327_v0 }
 0x1ee   :  { %v9583_v20 = vadd.f32 %v9138_v8, %v9331_v34  ;;  %v9587_v55 = vadd.f32 %v9138_v8, %v9335_v58  ;;  %v9591_v2 = vadd.f32 %v9138_v8, %v9339_v33  ;;  %v9595_v28 = vadd.f32 %v9138_v8, %v9343_v57 }
 0x1ef   :  { %v9599_v0 = vadd.f32 %v9138_v8, %v9347_v40  ;;  %v9603_v34 = vadd.f32 %v9138_v8, %v9351_v12  ;;  %v9607_v58 = vadd.f32 %v9138_v8, %v9355_v56  ;;  %v9611_v33 = vadd.f32 %v9138_v8, %v9359_v60 }
 0x1f0   :  { %v9615_v57 = vadd.f32 %v9138_v8, %v9363_v50  ;;  %v9619_v40 = vadd.f32 %v9138_v8, %v9367_v13  ;;  %v1130_v12 = vmax.f32 %v9375_v44, 0.0  ;;  %v1132_v56 = vmax.f32 %v9383_v46, 0.0 }
 0x1f1   :  { %10621 = vst [vmem:[#allocation23_spill] sm:$0xff] %v9599_v0  ;;  %10622 = vst [vmem:[#allocation26_spill] sm:$0xff] %v9603_v34  ;;  %v1129_v0 = vmax.f32 %v9371_v32, 0.0  ;;  %v1131_v34 = vmax.f32 %v9379_v6, 0.0  ;;  %v1134_v60 = vmax.f32 %v9391_v31, 0.0  ;;  %v1136_v50 = vmax.f32 %v9399_v19, 0.0 }
 0x1f2   :  { %10623 = vst [vmem:[#allocation28_spill] sm:$0xff] %v9607_v58  ;;  %10624 = vst [vmem:[#allocation25_spill] sm:$0xff] %v9611_v33  ;;  %v1133_v58 = vmax.f32 %v9387_v61, 0.0  ;;  %v1135_v33 = vmax.f32 %v9395_v63, 0.0  ;;  %v1138_v8 = vmax.f32 %v9407_v14, 0.0  ;;  %v1139_v13 = vmax.f32 %v9411_v37, 0.0 }
 0x1f3   :  { %10625 = vst [vmem:[#allocation27_spill] sm:$0xff] %v9615_v57  ;;  %v1137_v57 = vmax.f32 %v9403_v26, 0.0  ;;  %1193 = vst [vmem:[#allocation2 + $0x13] sm:$0xff] %v1129_v0  ;;  %v1140_v32 = vmax.f32 %v9415_v45, 0.0  ;;  %v1141_v44 = vmax.f32 %v9419_v49, 0.0  ;;  %v1142_v6 = vmax.f32 %v9423_v43, 0.0 }
 0x1f4   :  { %1194 = vst [vmem:[#allocation2 + $0x1b] sm:$0xff] %v1130_v12  ;;  %1195 = vst [vmem:[#allocation2 + $0x25] sm:$0xff] %v1131_v34  ;;  %v1143_v46 = vmax.f32 %v9427_v47, 0.0  ;;  %v1144_v61 = vmax.f32 %v9431_v62, 0.0  ;;  %v1145_v31 = vmax.f32 %v9435_v5, 0.0  ;;  %v1146_v63 = vmax.f32 %v9439_v59, 0.0 }
 0x1f5   :  { %1196 = vst [vmem:[#allocation2 + $0x2d] sm:$0xff] %v1132_v56  ;;  %1197 = vst [vmem:[#allocation2 + $0x37] sm:$0xff] %v1133_v58  ;;  %v1147_v19 = vmax.f32 %v9443_v3, 0.0  ;;  %v1148_v26 = vmax.f32 %v9447_v18, 0.0  ;;  %v1149_v14 = vmax.f32 %v9451_v25, 0.0  ;;  %v1150_v37 = vmax.f32 %v9455_v15, 0.0 }
 0x1f6   :  { %1198 = vst [vmem:[#allocation2 + $0x3f] sm:$0xff] %v1134_v60  ;;  %1199 = vst [vmem:[#allocation2 + $0x49] sm:$0xff] %v1135_v33  ;;  %v1151_v45 = vmax.f32 %v9459_v23, 0.0  ;;  %v1152_v49 = vmax.f32 %v9463_v38, 0.0  ;;  %v10626_v43 = vld [vmem:[#allocation17_spill] sm:$0xff]  ;;  %v10627_v62 = vld [vmem:[#allocation19_spill] sm:$0xff] }
 0x1f7   :  { %1200 = vst [vmem:[#allocation2 + $0x51] sm:$0xff] %v1136_v50  ;;  %1201 = vst [vmem:[#allocation2 + $0x5b] sm:$0xff] %v1137_v57  ;;  %v1153_v47 = vmax.f32 %v10626_v43, 0.0  ;;  %v1154_v5 = vmax.f32 %v10627_v62, 0.0  ;;  %v10628_v59 = vld [vmem:[#allocation22_spill] sm:$0xff]  ;;  %v1156_v18 = vmax.f32 %v9479_v10, 0.0 }
 0x1f8   :  { %1202 = vst [vmem:[#allocation2 + $0x63] sm:$0xff] %v1138_v8  ;;  %1203 = vst [vmem:[#allocation2 + $0x6d] sm:$0xff] %v1139_v13  ;;  %v1155_v3 = vmax.f32 %v10628_v59, 0.0  ;;  %v1157_v25 = vmax.f32 %v9483_v27, 0.0  ;;  %v1158_v15 = vmax.f32 %v9487_v16, 0.0  ;;  %v1159_v23 = vmax.f32 %v9491_v24, 0.0 }
 0x1f9   :  { %1204 = vst [vmem:[#allocation2 + $0x75] sm:$0xff] %v1140_v32  ;;  %1205 = vst [vmem:[#allocation2 + $0x7f] sm:$0xff] %v1141_v44  ;;  %v1160_v38 = vmax.f32 %v9495_v30, 0.0  ;;  %v1161_v0 = vmax.f32 %v9499_v17, 0.0  ;;  %v1162_v10 = vmax.f32 %v9503_v21, 0.0  ;;  %v10629_v34 = vld [vmem:[#allocation24_spill] sm:$0xff] }
 0x1fa   :  { %1206 = vst [vmem:[#allocation2 + $0x87] sm:$0xff] %v1142_v6  ;;  %1207 = vst [vmem:[#allocation2 + $0x91] sm:$0xff] %v1143_v46  ;;  %v1163_v27 = vmax.f32 %v10629_v34, 0.0  ;;  %v10630_v58 = vld [vmem:[#allocation21_spill] sm:$0xff]  ;;  %v1165_v57 = vmax.f32 %v9515_v35, 0.0  ;;  %v1166_v16 = vmax.f32 %v9519_v51, 0.0 }
 0x1fb   :  { %1208 = vst [vmem:[#allocation2 + $0x99] sm:$0xff] %v1144_v61  ;;  %1209 = vst [vmem:[#allocation2 + $0xa3] sm:$0xff] %v1145_v31  ;;  %v1164_v33 = vmax.f32 %v10630_v58, 0.0  ;;  %v1167_v24 = vmax.f32 %v9523_v1, 0.0  ;;  %v1168_v30 = vmax.f32 %v9527_v7, 0.0  ;;  %v1169_v17 = vmax.f32 %v9531_v36, 0.0 }
 0x1fc   :  { %1210 = vst [vmem:[#allocation2 + $0xab] sm:$0xff] %v1146_v63  ;;  %1211 = vst [vmem:[#allocation2 + $0xb5] sm:$0xff] %v1147_v19  ;;  %v1170_v21 = vmax.f32 %v9535_v29, 0.0  ;;  %v1171_v35 = vmax.f32 %v9539_v54, 0.0  ;;  %v1172_v12 = vmax.f32 %v9543_v39, 0.0  ;;  %v1173_v56 = vmax.f32 %v9547_v41, 0.0 }
 0x1fd   :  { %1212 = vst [vmem:[#allocation2 + $0xbd] sm:$0xff] %v1148_v26  ;;  %1213 = vst [vmem:[#allocation2 + $0xc7] sm:$0xff] %v1149_v14  ;;  %v1269_v51 = vld [vmem:[#allocation2 + $0x12] ss:$2 sm:$0xff]  ;;  %v1273_v1 = vld [vmem:[#allocation2 + $0x13] ss:$2 sm:$0xff] }
 0x1fe   :  { %1214 = vst [vmem:[#allocation2 + $0xcf] sm:$0xff] %v1150_v37  ;;  %1215 = vst [vmem:[#allocation2 + $0xd9] sm:$0xff] %v1151_v45  ;;  %v1174_v7 = vmax.f32 %v9551_v48, 0.0  ;;  %v1175_v36 = vmax.f32 %v9555_v53, 0.0  ;;  %v1176_v60 = vmax.f32 %v9559_v4, 0.0  ;;  %v1177_v29 = vmax.f32 %v9563_v42, 0.0 }
 0x1ff   :  { %1216 = vst [vmem:[#allocation2 + $0xe1] sm:$0xff] %v1152_v49  ;;  %1217 = vst [vmem:[#allocation2 + $0xeb] sm:$0xff] %v1153_v47  ;;  %v1277_v54 = vld [vmem:[#allocation2 + $0x14] ss:$2 sm:$0xff]  ;;  %v1178_v39 = vmax.f32 %v9567_v52, 0.0  ;;  %v1179_v41 = vmax.f32 %v9571_v11, 0.0  ;;  %v1270_v31 = vpack.c.bf16 %v1269_v51, %v1269_v51  ;;  %v1274_v63 = vpack.c.bf16 %v1273_v1, %v1273_v1 }
 0x200   :  { %1218 = vst [vmem:[#allocation2 + $0xf3] sm:$0xff] %v1154_v5  ;;  %1219 = vst [vmem:[#allocation2 + $0xfd] sm:$0xff] %v1155_v3  ;;  %v1180_v50 = vmax.f32 %v9575_v22, 0.0  ;;  %v1181_v8 = vmax.f32 %v9579_v9, 0.0  ;;  %v1281_v48 = vld [vmem:[#allocation2 + $0x24] ss:$2 sm:$0xff]  ;;  %v1278_v14 = vpack.c.bf16 %v1277_v54, %v1277_v54 }
 0x201   :  { %1220 = vst [vmem:[#allocation2 + $0x105] sm:$0xff] %v1156_v18  ;;  %1221 = vst [vmem:[#allocation2 + $0x10f] sm:$0xff] %v1157_v25  ;;  %v1182_v53 = vmax.f32 %v9583_v20, 0.0  ;;  %v1183_v4 = vmax.f32 %v9587_v55, 0.0  ;;  %v1184_v42 = vmax.f32 %v9591_v2, 0.0  ;;  %v1185_v13 = vmax.f32 %v9595_v28, 0.0 }
 0x202   :  { %1222 = vst [vmem:[#allocation2 + $0x117] sm:$0xff] %v1158_v15  ;;  %1223 = vst [vmem:[#allocation2 + $0x121] sm:$0xff] %v1159_v23  ;;  %v1285_v52 = vld [vmem:[#allocation2 + $0x25] ss:$2 sm:$0xff]  ;;  %v10631_v11 = vld [vmem:[#allocation23_spill] sm:$0xff]  ;;  %v1192_v28 = vmax.f32 %v9619_v40, 0.0  ;;  %v1282_v37 = vpack.c.bf16 %v1281_v48, %v1281_v48 }
 0x203   :  { %1224 = vst [vmem:[#allocation2 + $0x129] sm:$0xff] %v1160_v38  ;;  %1225 = vst [vmem:[#allocation2 + $0x157] sm:$0xff] %v1161_v0  ;;  %v1186_v22 = vmax.f32 %v10631_v11, 0.0  ;;  %v10632_v9 = vld [vmem:[#allocation26_spill] sm:$0xff]  ;;  %v10633_v44 = vld [vmem:[#allocation28_spill] sm:$0xff]  ;;  %v1286_v45 = vpack.c.bf16 %v1285_v52, %v1285_v52 }
 0x204   :  { %1226 = vst [vmem:[#allocation2 + $0x15f] sm:$0xff] %v1162_v10  ;;  %1227 = vst [vmem:[#allocation2 + $0x169] sm:$0xff] %v1163_v27  ;;  %v1187_v32 = vmax.f32 %v10632_v9, 0.0  ;;  %v1188_v6 = vmax.f32 %v10633_v44, 0.0  ;;  %v10634_v46 = vld [vmem:[#allocation25_spill] sm:$0xff]  ;;  %v10635_v55 = vld [vmem:[#allocation27_spill] sm:$0xff] }
 0x205   :  { %1228 = vst [vmem:[#allocation2 + $0x171] sm:$0xff] %v1164_v33  ;;  %1229 = vst [vmem:[#allocation2 + $0x17b] sm:$0xff] %v1165_v57  ;;  %v1189_v61 = vmax.f32 %v10634_v46, 0.0  ;;  %v1289_v20 = vld [vmem:[#allocation2 + $0x26] ss:$2 sm:$0xff]  ;;  %v1191_v2 = vmax.f32 %v10635_v55, 0.0 }
 0x206   :  { %1230 = vst [vmem:[#allocation2 + $0x183] sm:$0xff] %v1166_v16  ;;  %1231 = vst [vmem:[#allocation2 + $0x18d] sm:$0xff] %v1167_v24  ;;  %v1292_v19 = vld [vmem:[#allocation2 + $0x24] ss:$2 sm:$0xff]  ;;  %v1298_v26 = vld [vmem:[#allocation2 + $0x25] ss:$2 sm:$0xff]  ;;  %v1290_v49 = vpack.c.bf16 %v1289_v20, %v1289_v20 }
 0x207   :  { %1232 = vst [vmem:[#allocation2 + $0x195] sm:$0xff] %v1168_v30  ;;  %1233 = vst [vmem:[#allocation2 + $0x19f] sm:$0xff] %v1169_v17  ;;  %v1304_v43 = vld [vmem:[#allocation2 + $0x26] ss:$2 sm:$0xff]  ;;  %v1311_v47 = vld [vmem:[#allocation2 + $0x36] ss:$2 sm:$0xff]  ;;  %v1293_v40 = vpack.c.bf16 %v1292_v19, %v1292_v19  ;;  %v1299_v5 = vpack.c.bf16 %v1298_v26, %v1298_v26 }
 0x208   :  { %1234 = vst [vmem:[#allocation2 + $0x1a7] sm:$0xff] %v1170_v21  ;;  %1235 = vst [vmem:[#allocation2 + $0x1b1] sm:$0xff] %v1171_v35  ;;  %v1318_v62 = vld [vmem:[#allocation2 + $0x37] ss:$2 sm:$0xff]  ;;  %v1305_v59 = vpack.c.bf16 %v1304_v43, %v1304_v43  ;;  %v1312_v3 = vpack.c.bf16 %v1311_v47, %v1311_v47  ;;  %v1325_v18 = vld [vmem:[#allocation2 + $0x38] ss:$2 sm:$0xff] }
 0x209   :  { %1236 = vst [vmem:[#allocation2 + $0x1b9] sm:$0xff] %v1172_v12  ;;  %1237 = vst [vmem:[#allocation2 + $0x1c3] sm:$0xff] %v1173_v56  ;;  %v1332_v25 = vld [vmem:[#allocation2 + $0x48] ss:$2 sm:$0xff]  ;;  %v1339_v15 = vld [vmem:[#allocation2 + $0x49] ss:$2 sm:$0xff]  ;;  %v1319_v23 = vpack.c.bf16 %v1318_v62, %v1318_v62  ;;  %v1326_v38 = vpack.c.bf16 %v1325_v18, %v1325_v18 }
 0x20a   :  { %1238 = vst [vmem:[#allocation2 + $0x1cb] sm:$0xff] %v1174_v7  ;;  %1239 = vst [vmem:[#allocation2 + $0x1d5] sm:$0xff] %v1175_v36  ;;  %v1333_v0 = vpack.c.bf16 %v1332_v25, %v1332_v25  ;;  %v1340_v10 = vpack.c.bf16 %v1339_v15, %v1339_v15  ;;  %v1346_v34 = vld [vmem:[#allocation2 + $0x4a] ss:$2 sm:$0xff]  ;;  %v1391_v58 = vld [vmem:[#allocation2 + $0x6d] ss:$2 sm:$0xff] }
 0x20b   :  { %1240 = vst [vmem:[#allocation2 + $0x1dd] sm:$0xff] %v1176_v60  ;;  %1241 = vst [vmem:[#allocation2 + $0x1e7] sm:$0xff] %v1177_v29  ;;  %v1385_v27 = vld [vmem:[#allocation2 + $0x6c] ss:$2 sm:$0xff]  ;;  %v1295_v33 = vrot.slane %v1293_v40, 4  ;;  %v1301_v57 = vrot.slane %v1299_v5, 4  ;;  %v1347_v12 = vpack.c.bf16 %v1346_v34, %v1346_v34  ;;  %v1392_v1 = vpack.c.bf16 %v1391_v58, %v1391_v58 }
 0x20c   :  { %1242 = vst [vmem:[#allocation2 + $0x1ef] sm:$0xff] %v1178_v39  ;;  %1243 = vst [vmem:[#allocation2 + $0x1f9] sm:$0xff] %v1179_v41  ;;  %v1307_v16 = vrot.slane %v1305_v59, 4  ;;  %v1314_v24 = vrot.slane %v1312_v3, 4  ;;  %v1321_v30 = vrot.slane %v1319_v23, 4  ;;  %v1328_v17 = vrot.slane %v1326_v38, 4 }
 0x20d   :  { %1244 = vst [vmem:[#allocation2 + $0x201] sm:$0xff] %v1180_v50  ;;  %1245 = vst [vmem:[#allocation2 + $0x20b] sm:$0xff] %v1181_v8  ;;  %v1335_v21 = vrot.slane %v1333_v0, 4  ;;  %v1342_v35 = vrot.slane %v1340_v10, 4  ;;  %v1411_v56 = vld [vmem:[#allocation2 + $0x7f] ss:$2 sm:$0xff]  ;;  %v1386_v36 = vpack.c.bf16 %v1385_v27, %v1385_v27 }
 0x20e   :  { %1246 = vst [vmem:[#allocation2 + $0x213] sm:$0xff] %v1182_v53  ;;  %1247 = vst [vmem:[#allocation2 + $0x21d] sm:$0xff] %v1183_v4  ;;  %v1418_v51 = vld [vmem:[#allocation2 + $0x80] ss:$2 sm:$0xff]  ;;  %v1355_v54 = vld [vmem:[#allocation2 + $0x49] ss:$2 sm:$0xff]  ;;  %v1412_v41 = vpack.c.bf16 %v1411_v56, %v1411_v56 }
 0x20f   :  { %1248 = vst [vmem:[#allocation2 + $0x225] sm:$0xff] %v1184_v42  ;;  %1249 = vst [vmem:[#allocation2 + $0x22f] sm:$0xff] %v1185_v13  ;;  %v9684_v7 = vld [vmem:[#allocation3 + $0x65] ss:$2 sm:$0xf]  ;;  %v1419_v39 = vpack.c.bf16 %v1418_v51, %v1418_v51  ;;  %v1349_v50 = vrot.slane %v1347_v12, 4  ;;  %v1356_v8 = vpack.c.bf16 %v1355_v54, %v1355_v54 }
 0x210   :  { %1250 = vst [vmem:[#allocation2 + $0x237] sm:$0xff] %v1186_v22  ;;  %1251 = vst [vmem:[#allocation2 + $0x241] sm:$0xff] %v1187_v32  ;;  %v9686_v60 = vld [vmem:[#allocation2 + $0x7e] ss:$2 sm:$0xff]  ;;  %v1394_v48 = vrot.slane %v1392_v1, 4  ;;  %v1388_v9 = vrot.slane %v1386_v36, 4 }
 0x211   :  { %1252 = vst [vmem:[#allocation2 + $0x249] sm:$0xff] %v1188_v6  ;;  %1253 = vst [vmem:[#allocation2 + $0x253] sm:$0xff] %v1189_v61  ;;  %v1439_v29 = vld [vmem:[#allocation2 + $0x92] ss:$2 sm:$0xff]  ;;  %v1421_v11 = vrot.slane %v1419_v39, 4  ;;  %v8014_v6 = vld [vmem:[#allocation7 + $0x80] sm:$0xff]   ;;  %v1405_v18 = vpack.c.bf16 %v9686_v60, %v9686_v60 }
 0x212   :  { %1255 = vst [vmem:[#allocation2 + $0x265] sm:$0xff] %v1191_v2  ;;  %1256 = vst [vmem:[#allocation2 + $0x26d] sm:$0xff] %v1192_v28  ;;  %v1370_v53 = vld [vmem:[#allocation2 + $0x5c] ss:$2 sm:$0xff]  ;;  %v1440_v42 = vpack.c.bf16 %v1439_v29, %v1439_v29  ;;  %v1366_v32 = vld [vmem:[#allocation2 + $0x5b] ss:$2 sm:$0xff] }
 0x213   :  { %1271 = vst [vmem:[#allocation5 + $0x18] sm:$0xf] %v1270_v31  ;;  %1275 = vst [vmem:[#allocation5 + $0x20] sm:$0xf] %v1274_v63  ;;  %v1352_v4 = vld [vmem:[#allocation2 + $0x48] ss:$2 sm:$0xff]  ;;  %v1371_v52 = vpack.c.bf16 %v1370_v53, %v1370_v53  ;;  %v1367_v61 = vpack.c.bf16 %v1366_v32, %v1366_v32  ;;  %v3505_v63 = vpack.c.bf16 %v9684_v7, %v9684_v7 }
 0x214   :  { %1279 = vst [vmem:[#allocation5 + $0x28] sm:$0xf] %v1278_v14  ;;  %1283 = vst [vmem:[#allocation5 + $0x30] sm:$0xf] %v1282_v37  ;;  %v9688_v13 = vld [vmem:[#allocation2 + $0x6e] ss:$2 sm:$0xff]  ;;  %v1353_v22 = vpack.c.bf16 %v1352_v4, %v1352_v4 }
 0x215   :  { %1287 = vst [vmem:[#allocation5 + $0x38] sm:$0xf] %v1286_v45  ;;  %1291 = vst [vmem:[#allocation5 + $0x40] sm:$0xf] %v1290_v49  ;;  %v1448_v44 = vld [vmem:[#allocation2 + $0x91] ss:$2 sm:$0xff] }
 0x216   :  { %1297 = vst [vmem:[#allocation5] sm:$0xf0] %v1295_v33  ;;  %1303 = vst [vmem:[#allocation5 + $0x8] sm:$0xf0] %v1301_v57  ;;  %v1414_v20 = vrot.slane %v1412_v41, 4  ;;  %v1449_v55 = vpack.c.bf16 %v1448_v44, %v1448_v44  ;;  %v1442_v31 = vrot.slane %v1440_v42, 4 }
 0x217   :  { %1309 = vst [vmem:[#allocation5 + $0x10] sm:$0xf0] %v1307_v16  ;;  %1316 = vst [vmem:[#allocation5 + $0x18] sm:$0xf0] %v1314_v24  ;;  %v1484_v2 = vld [vmem:[#allocation2 + $0xb5] ss:$2 sm:$0xff] }
 0x218   :  { %1323 = vst [vmem:[#allocation5 + $0x20] sm:$0xf0] %v1321_v30  ;;  %1330 = vst [vmem:[#allocation5 + $0x28] sm:$0xf0] %v1328_v17  ;;  %v1463_v28 = vld [vmem:[#allocation2 + $0xa4] ss:$2 sm:$0xff]  ;;  %v1485_v26 = vpack.c.bf16 %v1484_v2, %v1484_v2 }
 0x219   :  { %1337 = vst [vmem:[#allocation5 + $0x30] sm:$0xf0] %v1335_v21  ;;  %1344 = vst [vmem:[#allocation5 + $0x38] sm:$0xf0] %v1342_v35  ;;  %v8015_v19 = vld [vmem:[#allocation7 + $0xc8] sm:$0xff]   ;;  %v1464_v14 = vpack.c.bf16 %v1463_v28, %v1463_v28  ;;  %v1398_v21 = vpack.c.bf16 %v9688_v13, %v9688_v13  ;;  %v8017_v12 = vld [vmem:[#allocation7 + $0xd0] sm:$0xff]  }
 0x21a   :  { %1351 = vst [vmem:[#allocation5 + $0x40] sm:$0xf0] %v1349_v50  ;;  %1357 = vst [vmem:[#allocation5 + $0x50] sm:$0xf] %v1356_v8  ;;  %v1511_v37 = vld [vmem:[#allocation2 + $0xc8] ss:$2 sm:$0xff] }
 0x21b   :  { %1396 = vst [vmem:[#allocation5 + $0x50] sm:$0xf0] %v1394_v48  ;;  %v9690_v46 = vld [vmem:[#allocation3 + $0x64] ss:$2 sm:$0xf]  ;;  %v1512_v43 = vpack.c.bf16 %v1511_v37, %v1511_v37  ;;  %v1487_v23 = vrot.slane %v1485_v26, 4 }
 0x21c   :  { %1372 = vst [vmem:[#allocation5 + $0x70] sm:$0xf] %v1371_v52  ;;  %1423 = vst [vmem:[#allocation5 + $0x70] sm:$0xf0] %v1421_v11  ;;  %v1445_v45 = vld [vmem:[#allocation2 + $0x90] ss:$2 sm:$0xff]  ;;  %v3501_v35 = vpack.c.bf16 %v9690_v46, %v9690_v46 }
 0x21d   :  { %1354 = vst [vmem:[#allocation5 + $0x48] sm:$0xf] %v1353_v22  ;;  %1390 = vst [vmem:[#allocation5 + $0x48] sm:$0xf0] %v1388_v9  ;;  %v1478_v49 = vld [vmem:[#allocation2 + $0xb4] ss:$2 sm:$0xff]  ;;  %v1446_v47 = vpack.c.bf16 %v1445_v45, %v1445_v45 }
 0x21e   :  { %1368 = vst [vmem:[#allocation5 + $0x68] sm:$0xf] %v1367_v61  ;;  %1416 = vst [vmem:[#allocation5 + $0x68] sm:$0xf0] %v1414_v20  ;;  %v1479_v62 = vpack.c.bf16 %v1478_v49, %v1478_v49  ;;  %v1459_v40 = vld [vmem:[#allocation2 + $0xa3] ss:$2 sm:$0xff] }
 0x21f   :  { %1450 = vst [vmem:[#allocation5 + $0x98] sm:$0xf] %v1449_v55  ;;  %v1504_v5 = vld [vmem:[#allocation2 + $0xc7] ss:$2 sm:$0xff]  ;;  %1444 = vst [vmem:[#allocation5 + $0x88] sm:$0xf0] %v1442_v31  ;;  %v1460_v38 = vpack.c.bf16 %v1459_v40, %v1459_v40 }
 0x220   :  { %v1541_v59 = vld [vmem:[#allocation2 + $0xd9] ss:$2 sm:$0xff]  ;;  %v9694_v3 = vld [vmem:[#allocation7 + $0x208] sm:$0xff]   ;;  %1465 = vst [vmem:[#allocation5 + $0xb8] sm:$0xf] %v1464_v14  ;;  %v1505_v0 = vpack.c.bf16 %v1504_v5, %v1504_v5  ;;  %v1514_v16 = vrot.slane %v1512_v43, 4 }
 0x221   :  { %v2007_v25 = vld [vmem:[#allocation5 + $0x8] sm:$0xff]  ;;  %v2006_v15 = vld [vmem:[#allocation5] sm:$0xff]  ;;  %v1542_v10 = vpack.c.bf16 %v1541_v59, %v1541_v59  ;;  %v8016_v57 = vld [vmem:[#allocation7 + $0x88] sm:$0xff]   ;;  %1447 = vst [vmem:[#allocation5 + $0x90] sm:$0xf] %v1446_v47  ;;  %v1481_v24 = vrot.slane %v1479_v62, 4 }
 0x222   :  { %v1577_v34 = vld [vmem:[#allocation2 + $0xfd] ss:$2 sm:$0xff]  ;;  %2686 = vmatprep.mubr.bf16.mxu1 %v2007_v25  ;;  %v1556_v17 = vld [vmem:[#allocation2 + $0xec] ss:$2 sm:$0xff]  ;;  %1489 = vst [vmem:[#allocation5 + $0x98] sm:$0xf0] %v1487_v23 }
 0x223   :  { %v9698_v27 = vld [vmem:[#allocation2 + $0x91] ss:$2 sm:$0xff]  ;;  %v2011_v58 = vld [vmem:[#allocation5 + $0x28] sm:$0xff]  ;;  %v1578_v30 = vpack.c.bf16 %v1577_v34, %v1577_v34  ;;  %2687 = vmatmul.mubr.bf16.vlgmr.msra.gmra.mrb[40].mxu1 %v2006_v15  ;;  %1461 = vst [vmem:[#allocation5 + $0xb0] sm:$0xf] %v1460_v38  ;;  %v1507_v56 = vrot.slane %v1505_v0, 4  ;;  %v1557_v51 = vpack.c.bf16 %v1556_v17, %v1556_v17 }
 0x224   :  { %v2010_v33 = vld [vmem:[#allocation5 + $0x20] sm:$0xff]  ;;  %2880 = vmatprep.mubr.bf16.mxu0 %v2011_v58  ;;  %1543 = vst [vmem:[#allocation5 + $0xe0] sm:$0xf] %v1542_v10  ;;  %7350 = vmatpush3.bf16.msra.mxu1 %v8014_v6  ;;  %1516 = vst [vmem:[#allocation5 + $0xb8] sm:$0xf0] %v1514_v16  ;;  %v2016_v8 = vld [vmem:[#allocation5 + $0x50] sm:$0xff]  ;;  %v1433_v28 = vpack.c.bf16 %v9698_v27, %v9698_v27 }
 0x225   :  { %v1604_v1 = vld [vmem:[#allocation2 + $0x110] ss:$2 sm:$0xff]  ;;  %2881 = vmatmul.mubr.bf16.vlgmr.msra.gmra.mrb[24].mxu0 %v2010_v33  ;;  %1483 = vst [vmem:[#allocation5 + $0x90] sm:$0xf0] %v1481_v24  ;;  %v1580_v60 = vrot.slane %v1578_v30, 4  ;;  %7351 = vmatprep.subr.bf16.mxu1 %v8015_v19  ;;  %v1407_v52 = vrot.slane %v1405_v18, 4 }
 0x226   :  { %v1538_v36 = vld [vmem:[#allocation2 + $0xd8] ss:$2 sm:$0xff]  ;;  %v1605_v29 = vpack.c.bf16 %v1604_v1, %v1604_v1  ;;  %v1552_v41 = vld [vmem:[#allocation2 + $0xeb] ss:$2 sm:$0xff]  ;;  %1509 = vst [vmem:[#allocation5 + $0xb0] sm:$0xf0] %v1507_v56  ;;  %2694 = vmatprep.mubr.bf16.mxu1 %v2016_v8 }
 0x227   :  { %v1539_v54 = vpack.c.bf16 %v1538_v36, %v1538_v36  ;;  %v1571_v39 = vld [vmem:[#allocation2 + $0xfc] ss:$2 sm:$0xff]  ;;  %1558 = vst [vmem:[#allocation5 + $0x100] sm:$0xf] %v1557_v51  ;;  %v1553_v53 = vpack.c.bf16 %v1552_v41, %v1552_v41  ;;  %v1597_v4 = vld [vmem:[#allocation2 + $0x10f] ss:$2 sm:$0xff] }
 0x228   :  { %v9704_v50 = vld [vmem:[#allocation7 + $0x210] sm:$0xff]   ;;  %v1572_v48 = vpack.c.bf16 %v1571_v39, %v1571_v39  ;;  %v1673_v42 = vld [vmem:[#allocation2 + $0x169] ss:$2 sm:$0xff]  ;;  %3506 = vst [vmem:[#allocation5 + $0x50] sm:$0x3] %v3505_v63  ;;  %v2015_v22 = vld [vmem:[#allocation5 + $0x48] sm:$0xff]  ;;  %v1598_v32 = vpack.c.bf16 %v1597_v4, %v1597_v4  ;;  %7352 = vmatpush3.bf16.msra.mxu1 %v8016_v57 }
 0x229   :  { %v10636_v13 = vld [vmem:[#allocation38_spill] sm:$0xff]  ;;  %v2020_v11 = vld [vmem:[#allocation5 + $0x70] sm:$0xff]  ;;  %1582 = vst [vmem:[#allocation5 + $0xe0] sm:$0xf0] %v1580_v60  ;;  %v1607_v9 = vrot.slane %v1605_v29, 4  ;;  %v1674_v44 = vpack.c.bf16 %v1673_v42, %v1673_v42  ;;  %v1400_v46 = vrot.slane %v1398_v21, 4  ;;  %7353 = vmatprep.subr.bf16.mxu1 %v8017_v12 }
 0x22a   :  { %7848 = vmatpush3.bf16.msra.mxu0 %v10636_v13  ;;  %1540 = vst [vmem:[#allocation5 + $0xd8] sm:$0xf] %v1539_v54  ;;  %v1652_v6 = vld [vmem:[#allocation2 + $0x158] ss:$2 sm:$0xff]  ;;  %2888 = vmatprep.mubr.bf16.mxu0 %v2020_v11  ;;  %3502 = vst [vmem:[#allocation5 + $0x48] sm:$0x3] %v3501_v35 }
 0x22b   :  { %7849 = vmatprep.subr.bf16.mxu0 %v9694_v3  ;;  %v8018_v61 = vld [vmem:[#allocation7 + $0x90] sm:$0xff]   ;;  %v1574_v20 = vrot.slane %v1572_v48, 4  ;;  %1554 = vst [vmem:[#allocation5 + $0xf8] sm:$0xf] %v1553_v53  ;;  %v1653_v55 = vpack.c.bf16 %v1652_v6, %v1652_v6  ;;  %v1667_v7 = vld [vmem:[#allocation2 + $0x168] ss:$2 sm:$0xff]  ;;  %2695 = vmatmul.mubr.bf16.gmra.mrb[44].mxu1 %v2015_v22 }
 0x22c   :  { %v1700_v2 = vld [vmem:[#allocation2 + $0x17c] ss:$2 sm:$0xff]  ;;  %1409 = vst [vmem:[#allocation5 + $0x60] sm:$0xf0] %v1407_v52  ;;  %1609 = vst [vmem:[#allocation5 + $0x100] sm:$0xf0] %v1607_v9  ;;  %v1668_v14 = vpack.c.bf16 %v1667_v7, %v1667_v7  ;;  %7354 = vmatpush3.bf16.msra.mxu1 %v8018_v61 }
 0x22d   :  { %v8019_v31 = vld [vmem:[#allocation7 + $0xd8] sm:$0xff]   ;;  %v1600_v63 = vrot.slane %v1598_v32, 4  ;;  %v1676_v19 = vrot.slane %v1674_v44, 4  ;;  %v1701_v26 = vpack.c.bf16 %v1700_v2, %v1700_v2  ;;  %1402 = vst [vmem:[#allocation5 + $0x58] sm:$0xf0] %v1400_v46  ;;  %v2025_v10 = vld [vmem:[#allocation5 + $0x98] sm:$0xff] }
 0x22e   :  { %v1648_v37 = vld [vmem:[#allocation2 + $0x157] ss:$2 sm:$0xff]  ;;  %1576 = vst [vmem:[#allocation5 + $0xd8] sm:$0xf0] %v1574_v20  ;;  %1654 = vst [vmem:[#allocation5 + $0x148] sm:$0xf] %v1653_v55  ;;  %7850 = vmatpush3.bf16.msra.mxu0 %v9694_v3  ;;  %2702 = vmatprep.mubr.bf16.mxu1 %v2025_v10 }
 0x22f   :  { %v1693_v45 = vld [vmem:[#allocation2 + $0x17b] ss:$2 sm:$0xff]  ;;  %v1649_v49 = vpack.c.bf16 %v1648_v37, %v1648_v37  ;;  %v1745_v40 = vld [vmem:[#allocation2 + $0x1a0] ss:$2 sm:$0xff]  ;;  %v9716_v59 = vld [vmem:[#allocation2 + $0x90] ss:$2 sm:$0xff]  ;;  %7851 = vmatprep.subr.bf16.mxu0 %v9704_v50  ;;  %7355 = vmatprep.subr.bf16.mxu1 %v8019_v31 }
 0x230   :  { %v1694_v43 = vpack.c.bf16 %v1693_v45, %v1693_v45  ;;  %v1730_v47 = vld [vmem:[#allocation2 + $0x18d] ss:$2 sm:$0xff]  ;;  %v9714_v5 = vld [vmem:[#allocation7 + $0x218] sm:$0xff]   ;;  %1602 = vst [vmem:[#allocation5 + $0xf8] sm:$0xf0] %v1600_v63  ;;  %v1703_v18 = vrot.slane %v1701_v26, 4  ;;  %v1746_v3 = vpack.c.bf16 %v1745_v40, %v1745_v40  ;;  %v1426_v8 = vpack.c.bf16 %v9716_v59, %v9716_v59 }
 0x231   :  { %v1766_v62 = vld [vmem:[#allocation2 + $0x1b1] ss:$2 sm:$0xff]  ;;  %1678 = vst [vmem:[#allocation5 + $0x128] sm:$0xf0] %v1676_v19  ;;  %v1670_v25 = vrot.slane %v1668_v14, 4  ;;  %v1731_v15 = vpack.c.bf16 %v1730_v47, %v1730_v47  ;;  %v2019_v0 = vld [vmem:[#allocation5 + $0x68] sm:$0xff] }
 0x232   :  { %v1767_v23 = vpack.c.bf16 %v1766_v62, %v1766_v62  ;;  %v1793_v38 = vld [vmem:[#allocation2 + $0x1c4] ss:$2 sm:$0xff]  ;;  %1650 = vst [vmem:[#allocation5 + $0x140] sm:$0xf] %v1649_v49  ;;  %v1696_v27 = vrot.slane %v1694_v43, 4  ;;  %v1435_v57 = vrot.slane %v1433_v28, 4  ;;  %2889 = vmatmul.mubr.bf16.gmra.mrb[28].mxu0 %v2019_v0 }
 0x233   :  { %v8020_v34 = vld [vmem:[#allocation7 + $0x98] sm:$0xff]   ;;  %v1794_v58 = vpack.c.bf16 %v1793_v38, %v1793_v38  ;;  %v1727_v33 = vld [vmem:[#allocation2 + $0x18c] ss:$2 sm:$0xff]  ;;  %1705 = vst [vmem:[#allocation5 + $0x148] sm:$0xf0] %v1703_v18  ;;  %7852 = vmatpush3.bf16.msra.mxu0 %v9704_v50  ;;  %v1428_v40 = vrot.slane %v1426_v8, 4 }
 0x234   :  { %v2029_v16 = vld [vmem:[#allocation5 + $0xb8] sm:$0xff]  ;;  %1672 = vst [vmem:[#allocation5 + $0x120] sm:$0xf0] %v1670_v25  ;;  %1732 = vst [vmem:[#allocation5 + $0x170] sm:$0xf] %v1731_v15  ;;  %v1769_v24 = vrot.slane %v1767_v23, 4  ;;  %v1728_v30 = vpack.c.bf16 %v1727_v33, %v1727_v33  ;;  %7853 = vmatprep.subr.bf16.mxu0 %v9714_v5  ;;  %7356 = vmatpush3.bf16.msra.mxu1 %v8020_v34 }
 0x235   :  { %v1760_v17 = vld [vmem:[#allocation2 + $0x1b0] ss:$2 sm:$0xff]  ;;  %v1741_v21 = vld [vmem:[#allocation2 + $0x19f] ss:$2 sm:$0xff]  ;;  %2896 = vmatprep.mubr.bf16.mxu0 %v2029_v16  ;;  %1698 = vst [vmem:[#allocation5 + $0x140] sm:$0xf0] %v1696_v27 }
 0x236   :  { %v8021_v35 = vld [vmem:[#allocation7 + $0xe0] sm:$0xff]   ;;  %1747 = vst [vmem:[#allocation5 + $0x190] sm:$0xf] %v1746_v3  ;;  %v1796_v12 = vrot.slane %v1794_v58, 4  ;;  %v1761_v56 = vpack.c.bf16 %v1760_v17, %v1760_v17  ;;  %v1742_v51 = vpack.c.bf16 %v1741_v21, %v1741_v21  ;;  %v1823_v36 = vld [vmem:[#allocation2 + $0x1d5] ss:$2 sm:$0xff] }
 0x237   :  { %v1786_v1 = vld [vmem:[#allocation2 + $0x1c3] ss:$2 sm:$0xff]  ;;  %1437 = vst [vmem:[#allocation5 + $0x80] sm:$0xf0] %v1435_v57  ;;  %1771 = vst [vmem:[#allocation5 + $0x170] sm:$0xf0] %v1769_v24  ;;  %v1824_v29 = vpack.c.bf16 %v1823_v36, %v1823_v36  ;;  %7357 = vmatprep.subr.bf16.mxu1 %v8021_v35  ;;  %7854 = vmatpush3.bf16.msra.mxu0 %v9714_v5 }
 0x238   :  { %1729 = vst [vmem:[#allocation5 + $0x168] sm:$0xf] %v1728_v30  ;;  %v1787_v60 = vpack.c.bf16 %v1786_v1, %v1786_v1  ;;  %v1859_v54 = vld [vmem:[#allocation2 + $0x1f9] ss:$2 sm:$0xff]  ;;  %v1838_v39 = vld [vmem:[#allocation2 + $0x1e8] ss:$2 sm:$0xff] }
 0x239   :  { %v1886_v41 = vld [vmem:[#allocation2 + $0x20c] ss:$2 sm:$0xff]  ;;  %1798 = vst [vmem:[#allocation5 + $0x190] sm:$0xf0] %v1796_v12  ;;  %v1763_v48 = vrot.slane %v1761_v56, 4  ;;  %v1860_v53 = vpack.c.bf16 %v1859_v54, %v1859_v54  ;;  %v1839_v4 = vpack.c.bf16 %v1838_v39, %v1838_v39  ;;  %v9727_v39 = vld [vmem:[#allocation7 + $0x238] sm:$0xff]  }
 0x23a   :  { %1743 = vst [vmem:[#allocation5 + $0x188] sm:$0xf] %v1742_v51  ;;  %v1887_v42 = vpack.c.bf16 %v1886_v41, %v1886_v41  ;;  %v1820_v13 = vld [vmem:[#allocation2 + $0x1d4] ss:$2 sm:$0xff]  ;;  %v8031_v11 = vld [vmem:[#allocation7 + $0x220] sm:$0xff]   ;;  %v1789_v9 = vrot.slane %v1787_v60, 4 }
 0x23b   :  { %v1853_v52 = vld [vmem:[#allocation2 + $0x1f8] ss:$2 sm:$0xff]  ;;  %v8022_v22 = vld [vmem:[#allocation7 + $0xa0] sm:$0xff]   ;;  %1825 = vst [vmem:[#allocation5 + $0x1b8] sm:$0xf] %v1824_v29  ;;  %v1821_v32 = vpack.c.bf16 %v1820_v13, %v1820_v13  ;;  %v8025_v46 = vld [vmem:[#allocation7 + $0xe8] sm:$0xff]   ;;  %7855 = vmatprep.subr.bf16.mxu0 %v8031_v11 }
 0x23c   :  { %v1854_v44 = vpack.c.bf16 %v1853_v52, %v1853_v52  ;;  %v1834_v50 = vld [vmem:[#allocation2 + $0x1e7] ss:$2 sm:$0xff]  ;;  %1765 = vst [vmem:[#allocation5 + $0x168] sm:$0xf0] %v1763_v48  ;;  %v1862_v61 = vrot.slane %v1860_v53, 4  ;;  %v1889_v20 = vrot.slane %v1887_v42, 4  ;;  %7358 = vmatpush3.bf16.msra.mxu1 %v8022_v22  ;;  %7856 = vmatpush3.bf16.msra.mxu0 %v8031_v11 }
 0x23d   :  { %v1879_v6 = vld [vmem:[#allocation2 + $0x20b] ss:$2 sm:$0xff]  ;;  %1840 = vst [vmem:[#allocation5 + $0x1d8] sm:$0xf] %v1839_v4  ;;  %v1835_v55 = vpack.c.bf16 %v1834_v50, %v1834_v50  ;;  %1791 = vst [vmem:[#allocation5 + $0x188] sm:$0xf0] %v1789_v9  ;;  %7359 = vmatprep.subr.bf16.mxu1 %v8025_v46 }
 0x23e   :  { %v1880_v2 = vpack.c.bf16 %v1879_v6, %v1879_v6  ;;  %v1916_v7 = vld [vmem:[#allocation2 + $0x21d] ss:$2 sm:$0xff]  ;;  %v9723_v28 = vld [vmem:[#allocation7 + $0x228] sm:$0xff]   ;;  %1822 = vst [vmem:[#allocation5 + $0x1b0] sm:$0xf] %v1821_v32  ;;  %v1856_v63 = vrot.slane %v1854_v44, 4 }
 0x23f   :  { %v2024_v31 = vld [vmem:[#allocation5 + $0x90] sm:$0xff]  ;;  %v1917_v19 = vpack.c.bf16 %v1916_v7, %v1916_v7  ;;  %v1931_v14 = vld [vmem:[#allocation2 + $0x230] ss:$2 sm:$0xff]  ;;  %1864 = vst [vmem:[#allocation5 + $0x1b8] sm:$0xf0] %v1862_v61  ;;  %7857 = vmatprep.subr.bf16.mxu0 %v9723_v28  ;;  %v8033_v51 = vld [vmem:[#allocation7 + $0xf8] sm:$0xff]  }
 0x240   :  { %v1952_v26 = vld [vmem:[#allocation2 + $0x241] ss:$2 sm:$0xff]  ;;  %2703 = vmatmul.mubr.bf16.gmra.mrb[48].mxu1 %v2024_v31  ;;  %v2034_v45 = vld [vmem:[#allocation5 + $0xe0] sm:$0xff]  ;;  %1891 = vst [vmem:[#allocation5 + $0x1d8] sm:$0xf0] %v1889_v20  ;;  %v1882_v49 = vrot.slane %v1880_v2, 4  ;;  %v1932_v47 = vpack.c.bf16 %v1931_v14, %v1931_v14  ;;  %7858 = vmatpush3.bf16.msra.mxu0 %v9723_v28 }
 0x241   :  { %v2028_v37 = vld [vmem:[#allocation5 + $0xb0] sm:$0xff]  ;;  %1836 = vst [vmem:[#allocation5 + $0x1d0] sm:$0xf] %v1835_v55  ;;  %v1953_v43 = vpack.c.bf16 %v1952_v26, %v1952_v26  ;;  %v1979_v62 = vld [vmem:[#allocation2 + $0x254] ss:$2 sm:$0xff]  ;;  %2710 = vmatprep.mubr.bf16.mxu1 %v2034_v45 }
 0x242   :  { %2897 = vmatmul.mubr.bf16.gmra.mrb[32].mxu0 %v2028_v37  ;;  %v2038_v5 = vld [vmem:[#allocation5 + $0x100] sm:$0xff]  ;;  %1858 = vst [vmem:[#allocation5 + $0x1b0] sm:$0xf0] %v1856_v63  ;;  %1918 = vst [vmem:[#allocation5 + $0x200] sm:$0xf] %v1917_v19  ;;  %v1980_v59 = vpack.c.bf16 %v1979_v62, %v1979_v62  ;;  %v8026_v15 = vld [vmem:[#allocation7 + $0xa8] sm:$0xff]  }
 0x243   :  { %v1913_v18 = vld [vmem:[#allocation2 + $0x21c] ss:$2 sm:$0xff]  ;;  %2904 = vmatprep.mubr.bf16.mxu0 %v2038_v5  ;;  %1884 = vst [vmem:[#allocation5 + $0x1d0] sm:$0xf0] %v1882_v49  ;;  %v1955_v23 = vrot.slane %v1953_v43, 4  ;;  %7360 = vmatpush3.bf16.msra.mxu1 %v8026_v15  ;;  %v2033_v4 = vld [vmem:[#allocation5 + $0xd8] sm:$0xff] }
 0x244   :  { %v1946_v25 = vld [vmem:[#allocation2 + $0x240] ss:$2 sm:$0xff]  ;;  %1933 = vst [vmem:[#allocation5 + $0x220] sm:$0xf] %v1932_v47  ;;  %v1914_v38 = vpack.c.bf16 %v1913_v18, %v1913_v18  ;;  %v1927_v10 = vld [vmem:[#allocation2 + $0x22f] ss:$2 sm:$0xff] }
 0x245   :  { %v1947_v0 = vpack.c.bf16 %v1946_v25, %v1946_v25  ;;  %v1972_v34 = vld [vmem:[#allocation2 + $0x253] ss:$2 sm:$0xff]  ;;  %1430 = vst [vmem:[#allocation5 + $0x78] sm:$0xf0] %v1428_v40  ;;  %v1982_v3 = vrot.slane %v1980_v59, 4  ;;  %v1928_v58 = vpack.c.bf16 %v1927_v10, %v1927_v10  ;;  %v8037_v37 = vld [vmem:[#allocation7 + $0x1c0] sm:$0xff]  }
 0x246   :  { %v8029_v27 = vld [vmem:[#allocation7 + $0xf0] sm:$0xff]   ;;  %v1973_v33 = vpack.c.bf16 %v1972_v34, %v1972_v34  ;;  %1957 = vst [vmem:[#allocation5 + $0x200] sm:$0xf0] %v1955_v23  ;;  %1915 = vst [vmem:[#allocation5 + $0x1f8] sm:$0xf] %v1914_v38  ;;  %v2037_v42 = vld [vmem:[#allocation5 + $0xf8] sm:$0xff] }
 0x247   :  { %v1382_v57 = vld [vmem:[#allocation2 + $0x6e] ss:$2 sm:$0xff]  ;;  %v1949_v30 = vrot.slane %v1947_v0, 4  ;;  %1984 = vst [vmem:[#allocation5 + $0x220] sm:$0xf0] %v1982_v3  ;;  %7361 = vmatprep.subr.bf16.mxu1 %v8029_v27  ;;  %v2043_v32 = vld [vmem:[#allocation5 + $0x128] sm:$0xff] }
 0x248   :  { %v1362_v16 = vld [vmem:[#allocation2 + $0x5a] ss:$2 sm:$0xff]  ;;  %v1383_v21 = vpack.c.bf16 %v1382_v57, %v1382_v57  ;;  %1929 = vst [vmem:[#allocation5 + $0x218] sm:$0xf] %v1928_v58  ;;  %v1975_v1 = vrot.slane %v1973_v33, 4  ;;  %2711 = vmatmul.mubr.bf16.gmra.mrb[52].mxu1 %v2033_v4 }
 0x249   :  { %v8030_v24 = vld [vmem:[#allocation7 + $0xb0] sm:$0xff]   ;;  %v1363_v35 = vpack.c.bf16 %v1362_v16, %v1362_v16  ;;  %1951 = vst [vmem:[#allocation5 + $0x1f8] sm:$0xf0] %v1949_v30  ;;  %v1625_v48 = vld [vmem:[#allocation2 + $0x122] ss:$2 sm:$0xff]  ;;  %2718 = vmatprep.mubr.bf16.mxu1 %v2043_v32 }
 0x24a   :  { %v8035_v17 = vld [vmem:[#allocation7 + $0x230] sm:$0xff]   ;;  %1384 = vst [vmem:[#allocation5 + $0x88] sm:$0xf] %v1383_v21  ;;  %v1455_v53 = vld [vmem:[#allocation2 + $0xa2] ss:$2 sm:$0xff]  ;;  %v1626_v11 = vpack.c.bf16 %v1625_v48, %v1625_v48  ;;  %2905 = vmatmul.mubr.bf16.gmra.mrb[36].mxu0 %v2037_v42  ;;  %7362 = vmatpush3.bf16.msra.mxu1 %v8030_v24 }
 0x24b   :  { %v1475_v12 = vld [vmem:[#allocation2 + $0xb6] ss:$2 sm:$0xff]  ;;  %1364 = vst [vmem:[#allocation5 + $0x60] sm:$0xf] %v1363_v35  ;;  %1977 = vst [vmem:[#allocation5 + $0x218] sm:$0xf0] %v1975_v1  ;;  %v1456_v22 = vpack.c.bf16 %v1455_v53, %v1455_v53  ;;  %7859 = vmatprep.subr.bf16.mxu0 %v8035_v17  ;;  %7363 = vmatprep.subr.bf16.mxu1 %v8033_v51 }
 0x24c   :  { %v1532_v56 = vld [vmem:[#allocation2 + $0xda] ss:$2 sm:$0xff]  ;;  %v1476_v36 = vpack.c.bf16 %v1475_v12, %v1475_v12  ;;  %v1358_v29 = vld [vmem:[#allocation2 + $0x4a] ss:$2 sm:$0xff]  ;;  %v1628_v61 = vrot.slane %v1626_v11, 4  ;;  %7860 = vmatpush3.bf16.msra.mxu0 %v8035_v17 }
 0x24d   :  { %v1533_v60 = vpack.c.bf16 %v1532_v56, %v1532_v56  ;;  %v1568_v54 = vld [vmem:[#allocation2 + $0xfe] ss:$2 sm:$0xff]  ;;  %v1359_v41 = vpack.c.bf16 %v1358_v29, %v1358_v29  ;;  %v9730_v52 = vld [vmem:[#allocation3 + $0x66] ss:$2 sm:$0xf]  ;;  %7861 = vmatprep.subr.bf16.mxu0 %v9727_v39 }
 0x24e   :  { %v1569_v8 = vpack.c.bf16 %v1568_v54, %v1568_v54  ;;  %1477 = vst [vmem:[#allocation5 + $0xd0] sm:$0xf] %v1476_v36  ;;  %v1497_v9 = vld [vmem:[#allocation2 + $0xc6] ss:$2 sm:$0xff]  ;;  %1457 = vst [vmem:[#allocation5 + $0xa8] sm:$0xf] %v1456_v22  ;;  %v3509_v40 = vpack.c.bf16 %v9730_v52, %v9730_v52 }
 0x24f   :  { %v1535_v13 = vrot.slane %v1533_v60, 4  ;;  %1360 = vst [vmem:[#allocation5 + $0x58] sm:$0xf] %v1359_v41  ;;  %v1498_v44 = vpack.c.bf16 %v1497_v9, %v1497_v9  ;;  %v1664_v50 = vld [vmem:[#allocation2 + $0x16a] ss:$2 sm:$0xff]  ;;  %v2047_v46 = vld [vmem:[#allocation5 + $0x148] sm:$0xff] }
 0x250   :  { %1570 = vst [vmem:[#allocation5 + $0x118] sm:$0xf] %v1569_v8  ;;  %v1721_v6 = vld [vmem:[#allocation2 + $0x18e] ss:$2 sm:$0xff]  ;;  %v1665_v20 = vpack.c.bf16 %v1664_v50, %v1664_v50  ;;  %2912 = vmatprep.mubr.bf16.mxu0 %v2047_v46  ;;  %v8034_v28 = vld [vmem:[#allocation7 + $0xb8] sm:$0xff]   ;;  %7862 = vmatpush3.bf16.msra.mxu0 %v9727_v39 }
 0x251   :  { %1537 = vst [vmem:[#allocation5 + $0xd0] sm:$0xf0] %v1535_v13  ;;  %v1722_v55 = vpack.c.bf16 %v1721_v6, %v1721_v6  ;;  %v1451_v2 = vld [vmem:[#allocation2 + $0x92] ss:$2 sm:$0xff]  ;;  %v1500_v31 = vrot.slane %v1498_v44, 4  ;;  %7364 = vmatpush3.bf16.msra.mxu1 %v8034_v28  ;;  %v2052_v21 = vld [vmem:[#allocation5 + $0x170] sm:$0xff] }
 0x252   :  { %v1490_v7 = vld [vmem:[#allocation2 + $0xb6] ss:$2 sm:$0xff]  ;;  %v1452_v63 = vpack.c.bf16 %v1451_v2, %v1451_v2  ;;  %1630 = vst [vmem:[#allocation5 + $0x118] sm:$0xf0] %v1628_v61  ;;  %1666 = vst [vmem:[#allocation5 + $0x160] sm:$0xf] %v1665_v20  ;;  %7477 = vmatprep.subr.bf16.mxu1 %v8037_v37 }
 0x253   :  { %v1491_v19 = vpack.c.bf16 %v1490_v7, %v1490_v7  ;;  %v1757_v26 = vld [vmem:[#allocation2 + $0x1b2] ss:$2 sm:$0xff]  ;;  %v1724_v45 = vrot.slane %v1722_v55, 4  ;;  %1502 = vst [vmem:[#allocation5 + $0xa8] sm:$0xf0] %v1500_v31  ;;  %v2056_v1 = vld [vmem:[#allocation5 + $0x190] sm:$0xff] }
 0x254   :  { %v1814_v14 = vld [vmem:[#allocation2 + $0x1d6] ss:$2 sm:$0xff]  ;;  %v1758_v49 = vpack.c.bf16 %v1757_v26, %v1757_v26  ;;  %1453 = vst [vmem:[#allocation5 + $0xa0] sm:$0xf] %v1452_v63  ;;  %v2000_v17 = vld [vmem:[#allocation2 + $0x266] ss:$2 sm:$0xff] }
 0x255   :  { %v1815_v43 = vpack.c.bf16 %v1814_v14, %v1814_v14  ;;  %v1548_v47 = vld [vmem:[#allocation2 + $0xea] ss:$2 sm:$0xff]  ;;  %v1493_v5 = vrot.slane %v1491_v19, 4  ;;  %v1850_v25 = vld [vmem:[#allocation2 + $0x1fa] ss:$2 sm:$0xff]  ;;  %v2001_v12 = vpack.c.bf16 %v2000_v17, %v2000_v17 }
 0x256   :  { %v1590_v62 = vld [vmem:[#allocation2 + $0x10e] ss:$2 sm:$0xff]  ;;  %v1549_v59 = vpack.c.bf16 %v1548_v47, %v1548_v47  ;;  %v1907_v15 = vld [vmem:[#allocation2 + $0x21e] ss:$2 sm:$0xff]  ;;  %1726 = vst [vmem:[#allocation5 + $0x160] sm:$0xf0] %v1724_v45  ;;  %v1851_v0 = vpack.c.bf16 %v1850_v25, %v1850_v25 }
 0x257   :  { %v1591_v18 = vpack.c.bf16 %v1590_v62, %v1590_v62  ;;  %v2042_v23 = vld [vmem:[#allocation5 + $0x120] sm:$0xff]  ;;  %1759 = vst [vmem:[#allocation5 + $0x1a8] sm:$0xf] %v1758_v49  ;;  %v1817_v38 = vrot.slane %v1815_v43, 4  ;;  %v1908_v10 = vpack.c.bf16 %v1907_v15, %v1907_v15  ;;  %1495 = vst [vmem:[#allocation5 + $0xa0] sm:$0xf0] %v1493_v5 }
 0x258   :  { %v2046_v34 = vld [vmem:[#allocation5 + $0x140] sm:$0xff]  ;;  %1550 = vst [vmem:[#allocation5 + $0xf0] sm:$0xf] %v1549_v59  ;;  %v9736_v33 = vld [vmem:[#allocation5 + $0x58] sm:$0xff]  ;;  %1852 = vst [vmem:[#allocation5 + $0x1f0] sm:$0xf] %v1851_v0  ;;  %2719 = vmatmul.mubr.bf16.gmra.mrb[56].mxu1 %v2042_v23 }
 0x259   :  { %v1593_v27 = vrot.slane %v1591_v18, 4  ;;  %v1544_v3 = vld [vmem:[#allocation2 + $0xda] ss:$2 sm:$0xff]  ;;  %1819 = vst [vmem:[#allocation5 + $0x1a8] sm:$0xf0] %v1817_v38  ;;  %v1910_v57 = vrot.slane %v1908_v10, 4  ;;  %2913 = vmatmul.mubr.bf16.gmra.mrb[40].mxu0 %v2046_v34  ;;  %2726 = vmatprep.mubr.bf16.mxu1 %v2052_v21 }
 0x25a   :  { %v1583_v58 = vld [vmem:[#allocation2 + $0xfe] ss:$2 sm:$0xff]  ;;  %v1545_v16 = vpack.c.bf16 %v1544_v3, %v1544_v3  ;;  %3510 = vst [vmem:[#allocation5 + $0x58] sm:$0x3] %v3509_v40  ;;  %2920 = vmatprep.mubr.bf16.mxu0 %v2056_v1  ;;  %v2003_v41 = vrot.slane %v2001_v12, 4  ;;  %v2061_v47 = vld [vmem:[#allocation5 + $0x1b8] sm:$0xff] }
 0x25b   :  { %v1584_v24 = vpack.c.bf16 %v1583_v58, %v1583_v58  ;;  %v1943_v30 = vld [vmem:[#allocation2 + $0x242] ss:$2 sm:$0xff]  ;;  %1595 = vst [vmem:[#allocation5 + $0xf0] sm:$0xf0] %v1593_v27  ;;  %1912 = vst [vmem:[#allocation5 + $0x1f0] sm:$0xf0] %v1910_v57 }
 0x25c   :  { %v1944_v35 = vpack.c.bf16 %v1943_v30, %v1943_v30  ;;  %v1644_v56 = vld [vmem:[#allocation2 + $0x156] ss:$2 sm:$0xff]  ;;  %1546 = vst [vmem:[#allocation5 + $0xe8] sm:$0xf] %v1545_v16  ;;  %v1830_v22 = vld [vmem:[#allocation2 + $0x1e6] ss:$2 sm:$0xff] }
 0x25d   :  { %v1686_v51 = vld [vmem:[#allocation2 + $0x17a] ss:$2 sm:$0xff]  ;;  %v1586_v36 = vrot.slane %v1584_v24, 4  ;;  %v1645_v60 = vpack.c.bf16 %v1644_v56, %v1644_v56  ;;  %v1679_v54 = vld [vmem:[#allocation2 + $0x16a] ss:$2 sm:$0xff]  ;;  %v1831_v44 = vpack.c.bf16 %v1830_v22, %v1830_v22 }
 0x25e   :  { %v1687_v29 = vpack.c.bf16 %v1686_v51, %v1686_v51  ;;  %v1737_v39 = vld [vmem:[#allocation2 + $0x19e] ss:$2 sm:$0xff]  ;;  %1945 = vst [vmem:[#allocation5 + $0x238] sm:$0xf] %v1944_v35  ;;  %v1680_v8 = vpack.c.bf16 %v1679_v54, %v1679_v54  ;;  %v1733_v4 = vld [vmem:[#allocation2 + $0x18e] ss:$2 sm:$0xff] }
 0x25f   :  { %v1738_v48 = vpack.c.bf16 %v1737_v39, %v1737_v39  ;;  %v1779_v53 = vld [vmem:[#allocation2 + $0x1c2] ss:$2 sm:$0xff]  ;;  %1588 = vst [vmem:[#allocation5 + $0xe8] sm:$0xf0] %v1586_v36  ;;  %1646 = vst [vmem:[#allocation5 + $0x138] sm:$0xf] %v1645_v60  ;;  %v1734_v52 = vpack.c.bf16 %v1733_v4, %v1733_v4 }
 0x260   :  { %v1689_v42 = vrot.slane %v1687_v29, 4  ;;  %v1780_v13 = vpack.c.bf16 %v1779_v53, %v1779_v53  ;;  %v1772_v11 = vld [vmem:[#allocation2 + $0x1b2] ss:$2 sm:$0xff]  ;;  %2005 = vst [vmem:[#allocation5 + $0x238] sm:$0xf0] %v2003_v41  ;;  %v1682_v9 = vrot.slane %v1680_v8, 4 }
 0x261   :  { %1739 = vst [vmem:[#allocation5 + $0x180] sm:$0xf] %v1738_v48  ;;  %v1773_v32 = vpack.c.bf16 %v1772_v11, %v1772_v11  ;;  %v1872_v50 = vld [vmem:[#allocation2 + $0x20a] ss:$2 sm:$0xff]  ;;  %1735 = vst [vmem:[#allocation5 + $0x178] sm:$0xf] %v1734_v52 }
 0x262   :  { %v1826_v6 = vld [vmem:[#allocation2 + $0x1d6] ss:$2 sm:$0xff]  ;;  %1691 = vst [vmem:[#allocation5 + $0x138] sm:$0xf0] %v1689_v42  ;;  %v1782_v46 = vrot.slane %v1780_v13, 4  ;;  %v1873_v61 = vpack.c.bf16 %v1872_v50, %v1872_v50  ;;  %v2060_v54 = vld [vmem:[#allocation5 + $0x1b0] sm:$0xff] }
 0x263   :  { %v1827_v20 = vpack.c.bf16 %v1826_v6, %v1826_v6  ;;  %v1865_v55 = vld [vmem:[#allocation2 + $0x1fa] ss:$2 sm:$0xff]  ;;  %1684 = vst [vmem:[#allocation5 + $0x130] sm:$0xf0] %v1682_v9  ;;  %v1775_v7 = vrot.slane %v1773_v32, 4  ;;  %v2065_v18 = vld [vmem:[#allocation5 + $0x1d8] sm:$0xff] }
 0x264   :  { %v1923_v2 = vld [vmem:[#allocation2 + $0x22e] ss:$2 sm:$0xff]  ;;  %1832 = vst [vmem:[#allocation5 + $0x1c8] sm:$0xf] %v1831_v44  ;;  %v1866_v28 = vpack.c.bf16 %v1865_v55, %v1865_v55  ;;  %v1919_v19 = vld [vmem:[#allocation2 + $0x21e] ss:$2 sm:$0xff] }
 0x265   :  { %v1924_v31 = vpack.c.bf16 %v1923_v2, %v1923_v2  ;;  %v1965_v63 = vld [vmem:[#allocation2 + $0x252] ss:$2 sm:$0xff]  ;;  %1784 = vst [vmem:[#allocation5 + $0x180] sm:$0xf0] %v1782_v46  ;;  %v1875_v37 = vrot.slane %v1873_v61, 4  ;;  %v1920_v49 = vpack.c.bf16 %v1919_v19, %v1919_v19  ;;  %v2064_v4 = vld [vmem:[#allocation5 + $0x1d0] sm:$0xff] }
 0x266   :  { %v2051_v26 = vld [vmem:[#allocation5 + $0x168] sm:$0xff]  ;;  %1828 = vst [vmem:[#allocation5 + $0x1c0] sm:$0xf] %v1827_v20  ;;  %v1966_v45 = vpack.c.bf16 %v1965_v63, %v1965_v63  ;;  %1777 = vst [vmem:[#allocation5 + $0x178] sm:$0xf0] %v1775_v7  ;;  %v1868_v62 = vrot.slane %v1866_v28, 4 }
 0x267   :  { %v2055_v14 = vld [vmem:[#allocation5 + $0x188] sm:$0xff]  ;;  %2727 = vmatmul.mubr.bf16.gmra.mrb[60].mxu1 %v2051_v26  ;;  %1925 = vst [vmem:[#allocation5 + $0x210] sm:$0xf] %v1924_v31  ;;  %v1378_v5 = vld [vmem:[#allocation2 + $0x6d] ss:$2 sm:$0xff] }
 0x268   :  { %v1958_v43 = vld [vmem:[#allocation2 + $0x242] ss:$2 sm:$0xff]  ;;  %2921 = vmatmul.mubr.bf16.gmra.mrb[44].mxu0 %v2055_v14  ;;  %2734 = vmatprep.mubr.bf16.mxu1 %v2061_v47  ;;  %1877 = vst [vmem:[#allocation5 + $0x1c8] sm:$0xf0] %v1875_v37  ;;  %v1968_v25 = vrot.slane %v1966_v45, 4  ;;  %v1379_v15 = vpack.c.bf16 %v1378_v5, %v1378_v5  ;;  %v2070_v9 = vld [vmem:[#allocation5 + $0x200] sm:$0xff] }
 0x269   :  { %v1959_v40 = vpack.c.bf16 %v1958_v43, %v1958_v43  ;;  %v1374_v59 = vld [vmem:[#allocation2 + $0x6c] ss:$2 sm:$0xff]  ;;  %1921 = vst [vmem:[#allocation5 + $0x208] sm:$0xf] %v1920_v49  ;;  %v1471_v38 = vld [vmem:[#allocation2 + $0xb5] ss:$2 sm:$0xff]  ;;  %2928 = vmatprep.mubr.bf16.mxu0 %v2065_v18 }
 0x26a   :  { %v1375_v23 = vpack.c.bf16 %v1374_v59, %v1374_v59  ;;  %v1525_v0 = vld [vmem:[#allocation2 + $0xd9] ss:$2 sm:$0xff]  ;;  %1870 = vst [vmem:[#allocation5 + $0x1c0] sm:$0xf0] %v1868_v62  ;;  %v1472_v34 = vpack.c.bf16 %v1471_v38, %v1471_v38  ;;  %v1467_v3 = vld [vmem:[#allocation2 + $0xb4] ss:$2 sm:$0xff] }
 0x26b   :  { %v1961_v10 = vrot.slane %v1959_v40, 4  ;;  %v1526_v27 = vpack.c.bf16 %v1525_v0, %v1525_v0  ;;  %v1518_v58 = vld [vmem:[#allocation2 + $0xd8] ss:$2 sm:$0xff]  ;;  %1970 = vst [vmem:[#allocation5 + $0x210] sm:$0xf0] %v1968_v25  ;;  %v1468_v57 = vpack.c.bf16 %v1467_v3, %v1467_v3  ;;  %v2069_v38 = vld [vmem:[#allocation5 + $0x1f8] sm:$0xff] }
 0x26c   :  { %1380 = vst [vmem:[#allocation5 + $0x80] sm:$0xf] %v1379_v15  ;;  %1376 = vst [vmem:[#allocation5 + $0x78] sm:$0xf] %v1375_v23  ;;  %v1519_v16 = vpack.c.bf16 %v1518_v58, %v1518_v58  ;;  %v1564_v24 = vld [vmem:[#allocation2 + $0xfd] ss:$2 sm:$0xff] }
 0x26d   :  { %v1618_v30 = vld [vmem:[#allocation2 + $0x121] ss:$2 sm:$0xff]  ;;  %1963 = vst [vmem:[#allocation5 + $0x208] sm:$0xf0] %v1961_v10  ;;  %1473 = vst [vmem:[#allocation5 + $0xc8] sm:$0xf] %v1472_v34  ;;  %v1565_v21 = vpack.c.bf16 %v1564_v24, %v1564_v24 }
 0x26e   :  { %v1528_v17 = vrot.slane %v1526_v27, 4  ;;  %v1619_v35 = vpack.c.bf16 %v1618_v30, %v1618_v30  ;;  %v1560_v12 = vld [vmem:[#allocation2 + $0xfc] ss:$2 sm:$0xff]  ;;  %1469 = vst [vmem:[#allocation5 + $0xc0] sm:$0xf] %v1468_v57  ;;  %v1521_v51 = vrot.slane %v1519_v16, 4 }
 0x26f   :  { %v1611_v56 = vld [vmem:[#allocation2 + $0x120] ss:$2 sm:$0xff]  ;;  %v1561_v1 = vpack.c.bf16 %v1560_v12, %v1560_v12  ;;  %v1660_v60 = vld [vmem:[#allocation2 + $0x169] ss:$2 sm:$0xff]  ;;  %1566 = vst [vmem:[#allocation5 + $0x110] sm:$0xf] %v1565_v21  ;;  %2735 = vmatmul.mubr.bf16.gmra.mrb[64].mxu1 %v2060_v54 }
 0x270   :  { %v1612_v36 = vpack.c.bf16 %v1611_v56, %v1611_v56  ;;  %v1714_v29 = vld [vmem:[#allocation2 + $0x18d] ss:$2 sm:$0xff]  ;;  %1530 = vst [vmem:[#allocation5 + $0xc8] sm:$0xf0] %v1528_v17  ;;  %v1621_v39 = vrot.slane %v1619_v35, 4  ;;  %v1661_v41 = vpack.c.bf16 %v1660_v60, %v1660_v60  ;;  %2929 = vmatmul.mubr.bf16.gmra.mrb[48].mxu0 %v2064_v4  ;;  %2742 = vmatprep.mubr.bf16.mxu1 %v2070_v9  ;;  %v2023_v24 = vld [vmem:[#allocation5 + $0x88] sm:$0xff] }
 0x271   :  { %v1715_v8 = vpack.c.bf16 %v1714_v29, %v1714_v29  ;;  %v1656_v48 = vld [vmem:[#allocation2 + $0x168] ss:$2 sm:$0xff]  ;;  %1523 = vst [vmem:[#allocation5 + $0xc0] sm:$0xf0] %v1521_v51  ;;  %1562 = vst [vmem:[#allocation5 + $0x108] sm:$0xf] %v1561_v1 }
 0x272   :  { %v1707_v53 = vld [vmem:[#allocation2 + $0x18c] ss:$2 sm:$0xff]  ;;  %v1614_v42 = vrot.slane %v1612_v36, 4  ;;  %v1657_v13 = vpack.c.bf16 %v1656_v48, %v1656_v48  ;;  %v1753_v11 = vld [vmem:[#allocation2 + $0x1b1] ss:$2 sm:$0xff]  ;;  %v8043_v56 = vld [vmem:[#allocation7 + $0x1d8] sm:$0xff]  }
 0x273   :  { %v1708_v52 = vpack.c.bf16 %v1707_v53, %v1707_v53  ;;  %v1807_v22 = vld [vmem:[#allocation2 + $0x1d5] ss:$2 sm:$0xff]  ;;  %1623 = vst [vmem:[#allocation5 + $0x110] sm:$0xf0] %v1621_v39  ;;  %1662 = vst [vmem:[#allocation5 + $0x158] sm:$0xf] %v1661_v41  ;;  %v1754_v44 = vpack.c.bf16 %v1753_v11, %v1753_v11 }
 0x274   :  { %v1717_v32 = vrot.slane %v1715_v8, 4  ;;  %v1808_v50 = vpack.c.bf16 %v1807_v22, %v1807_v22  ;;  %v1749_v6 = vld [vmem:[#allocation2 + $0x1b0] ss:$2 sm:$0xff]  ;;  %1616 = vst [vmem:[#allocation5 + $0x108] sm:$0xf0] %v1614_v42  ;;  %v8038_v58 = vld [vmem:[#allocation7 + $0x180] sm:$0xff]  }
 0x275   :  { %v1800_v46 = vld [vmem:[#allocation2 + $0x1d4] ss:$2 sm:$0xff]  ;;  %1658 = vst [vmem:[#allocation5 + $0x150] sm:$0xf] %v1657_v13  ;;  %v1710_v20 = vrot.slane %v1708_v52, 4  ;;  %v1750_v55 = vpack.c.bf16 %v1749_v6, %v1749_v6  ;;  %v2008_v57 = vld [vmem:[#allocation5 + $0x10] sm:$0xff] }
 0x276   :  { %v2074_v61 = vld [vmem:[#allocation5 + $0x220] sm:$0xff]  ;;  %v1801_v2 = vpack.c.bf16 %v1800_v46, %v1800_v46  ;;  %1719 = vst [vmem:[#allocation5 + $0x158] sm:$0xf0] %v1717_v32  ;;  %1755 = vst [vmem:[#allocation5 + $0x1a0] sm:$0xf] %v1754_v44  ;;  %v1810_v31 = vrot.slane %v1808_v50, 4 }
 0x277   :  { %v1846_v7 = vld [vmem:[#allocation2 + $0x1f9] ss:$2 sm:$0xff]  ;;  %2936 = vmatprep.mubr.bf16.mxu0 %v2074_v61  ;;  %1712 = vst [vmem:[#allocation5 + $0x150] sm:$0xf0] %v1710_v20  ;;  %1751 = vst [vmem:[#allocation5 + $0x198] sm:$0xf] %v1750_v55  ;;  %2743 = vmatmul.mubr.bf16.gmra.mrb[68].mxu1 %v2069_v38 }
 0x278   :  { %v1900_v28 = vld [vmem:[#allocation2 + $0x21d] ss:$2 sm:$0xff]  ;;  %v1847_v63 = vpack.c.bf16 %v1846_v7, %v1846_v7  ;;  %v1803_v26 = vrot.slane %v1801_v2, 4  ;;  %v1842_v14 = vld [vmem:[#allocation2 + $0x1f8] ss:$2 sm:$0xff]  ;;  %v2073_v10 = vld [vmem:[#allocation5 + $0x218] sm:$0xff] }
 0x279   :  { %v1901_v19 = vpack.c.bf16 %v1900_v28, %v1900_v28  ;;  %v1893_v37 = vld [vmem:[#allocation2 + $0x21c] ss:$2 sm:$0xff]  ;;  %1812 = vst [vmem:[#allocation5 + $0x1a0] sm:$0xf0] %v1810_v31  ;;  %v1843_v49 = vpack.c.bf16 %v1842_v14, %v1842_v14  ;;  %v1939_v47 = vld [vmem:[#allocation2 + $0x241] ss:$2 sm:$0xff]  ;;  %2937 = vmatmul.mubr.bf16.gmra.mrb[52].mxu0 %v2073_v10 }
 0x27a   :  { %1848 = vst [vmem:[#allocation5 + $0x1e8] sm:$0xf] %v1847_v63  ;;  %v1894_v43 = vpack.c.bf16 %v1893_v37, %v1893_v37  ;;  %v1993_v62 = vld [vmem:[#allocation2 + $0x265] ss:$2 sm:$0xff]  ;;  %1805 = vst [vmem:[#allocation5 + $0x198] sm:$0xf0] %v1803_v26  ;;  %v1940_v40 = vpack.c.bf16 %v1939_v47, %v1939_v47 }
 0x27b   :  { %v1903_v45 = vrot.slane %v1901_v19, 4  ;;  %v1994_v5 = vpack.c.bf16 %v1993_v62, %v1993_v62  ;;  %v1935_v59 = vld [vmem:[#allocation2 + $0x240] ss:$2 sm:$0xff]  ;;  %1844 = vst [vmem:[#allocation5 + $0x1e0] sm:$0xf] %v1843_v49  ;;  %v2009_v34 = vld [vmem:[#allocation5 + $0x18] sm:$0xff] }
 0x27c   :  { %v1986_v18 = vld [vmem:[#allocation2 + $0x264] ss:$2 sm:$0xff]  ;;  %v1896_v25 = vrot.slane %v1894_v43, 4  ;;  %v1936_v15 = vpack.c.bf16 %v1935_v59, %v1935_v59  ;;  %1941 = vst [vmem:[#allocation5 + $0x230] sm:$0xf] %v1940_v40  ;;  %2783 = vmatprep.mubr.bf16.mxu1 %v2009_v34  ;;  %v2014_v3 = vld [vmem:[#allocation5 + $0x40] sm:$0xff] }
 0x27d   :  { %1905 = vst [vmem:[#allocation5 + $0x1e8] sm:$0xf0] %v1903_v45  ;;  %v1987_v23 = vpack.c.bf16 %v1986_v18, %v1986_v18  ;;  %v1996_v0 = vrot.slane %v1994_v5, 4  ;;  %7863 = vmatprep.mubr.bf16.mxu0 %v2014_v3  ;;  %v8039_v16 = vld [vmem:[#allocation7 + $0x1c8] sm:$0xff]   ;;  %v2018_v30 = vld [vmem:[#allocation5 + $0x60] sm:$0xff]  ;;  %v2032_v17 = vld [vmem:[#allocation5 + $0xd0] sm:$0xff] }
 0x27e   :  { %1898 = vst [vmem:[#allocation5 + $0x1e0] sm:$0xf0] %v1896_v25  ;;  %1937 = vst [vmem:[#allocation5 + $0x228] sm:$0xf] %v1936_v15  ;;  %v8040_v21 = vld [vmem:[#allocation7 + $0x188] sm:$0xff]   ;;  %v8041_v35 = vld [vmem:[#allocation7 + $0x1d0] sm:$0xff]  }
 0x27f   :  { %v1989_v27 = vrot.slane %v1987_v23, 4  ;;  %1998 = vst [vmem:[#allocation5 + $0x230] sm:$0xf0] %v1996_v0  ;;  %2784 = vmatmul.mubr.bf16.vlgmr.msra.gmra.mrb[72].mxu1 %v2008_v57  ;;  %v8042_v12 = vld [vmem:[#allocation7 + $0x190] sm:$0xff]   ;;  %v2041_v51 = vld [vmem:[#allocation5 + $0x118] sm:$0xff]  ;;  %v2027_v1 = vld [vmem:[#allocation5 + $0xa8] sm:$0xff] }
 0x280   :  { %7478 = vmatpush3.bf16.msra.mxu1 %v8038_v58  ;;  %2791 = vmatprep.mubr.bf16.mxu1 %v2018_v30  ;;  %v2050_v36 = vld [vmem:[#allocation5 + $0x160] sm:$0xff]  ;;  %v8044_v60 = vld [vmem:[#allocation7 + $0x198] sm:$0xff]   ;;  %v8045_v29 = vld [vmem:[#allocation7 + $0x1e0] sm:$0xff]  }
 0x281   :  { %1991 = vst [vmem:[#allocation5 + $0x228] sm:$0xf0] %v1989_v27  ;;  %7864 = vmatmul.mubr.bf16.vlgmr.msra.gmra.mrb[56].mxu0 %v2023_v24  ;;  %7479 = vmatprep.subr.bf16.mxu1 %v8039_v16  ;;  %v8046_v54 = vld [vmem:[#allocation7 + $0x1a0] sm:$0xff]   ;;  %v2026_v39 = vld [vmem:[#allocation5 + $0xa0] sm:$0xff]  ;;  %v8047_v41 = vld [vmem:[#allocation7 + $0x1e8] sm:$0xff]  }
 0x282   :  { %7867 = vmatprep.mubr.bf16.mxu0 %v2032_v17  ;;  %v2059_v8 = vld [vmem:[#allocation5 + $0x1a8] sm:$0xff]  ;;  %v2036_v48 = vld [vmem:[#allocation5 + $0xf0] sm:$0xff]  ;;  %v8048_v53 = vld [vmem:[#allocation7 + $0x1a8] sm:$0xff]  }
 0x283   :  { %v8049_v4 = vld [vmem:[#allocation7 + $0x1f0] sm:$0xff]   ;;  %v2035_v13 = vld [vmem:[#allocation5 + $0xe8] sm:$0xff]  ;;  %v2077_v11 = vld [vmem:[#allocation5 + $0x238] sm:$0xff] }
 0x284   :  { %7480 = vmatpush3.bf16.msra.mxu1 %v8040_v21  ;;  %v8050_v42 = vld [vmem:[#allocation7 + $0x1b0] sm:$0xff]   ;;  %v8051_v52 = vld [vmem:[#allocation7 + $0x1f8] sm:$0xff]   ;;  %v2045_v22 = vld [vmem:[#allocation5 + $0x138] sm:$0xff] }
 0x285   :  { %7481 = vmatprep.subr.bf16.mxu1 %v8041_v35  ;;  %v8052_v9 = vld [vmem:[#allocation7 + $0x1b8] sm:$0xff]   ;;  %v2044_v32 = vld [vmem:[#allocation5 + $0x130] sm:$0xff]  ;;  %v2054_v44 = vld [vmem:[#allocation5 + $0x180] sm:$0xff] }
 0x286   :  { %v2053_v50 = vld [vmem:[#allocation5 + $0x178] sm:$0xff]  ;;  %v2063_v6 = vld [vmem:[#allocation5 + $0x1c8] sm:$0xff]  ;;  %v2062_v46 = vld [vmem:[#allocation5 + $0x1c0] sm:$0xff] }
 0x287   :  { %2792 = vmatmul.mubr.bf16.gmra.mrb[76].mxu1 %v9736_v33  ;;  %v2068_v33 = vld [vmem:[#allocation5 + $0x1f0] sm:$0xff]  ;;  %v2071_v20 = vld [vmem:[#allocation5 + $0x208] sm:$0xff]  ;;  %v2013_v55 = vld [vmem:[#allocation5 + $0x38] sm:$0xff] }
 0x288   :  { %2799 = vmatprep.mubr.bf16.mxu1 %v2027_v1  ;;  %7482 = vmatpush3.bf16.msra.mxu1 %v8042_v12  ;;  %v2072_v61 = vld [vmem:[#allocation5 + $0x210] sm:$0xff]  ;;  %v2022_v7 = vld [vmem:[#allocation5 + $0x80] sm:$0xff]  ;;  %v2021_v28 = vld [vmem:[#allocation5 + $0x78] sm:$0xff] }
 0x289   :  { %7868 = vmatmul.mubr.bf16.gmra.mrb[60].mxu0 %v2041_v51  ;;  %7483 = vmatprep.subr.bf16.mxu1 %v8043_v56  ;;  %v2012_v2 = vld [vmem:[#allocation5 + $0x30] sm:$0xff]  ;;  %v2031_v31 = vld [vmem:[#allocation5 + $0xc8] sm:$0xff]  ;;  %v2030_v63 = vld [vmem:[#allocation5 + $0xc0] sm:$0xff] }
 0x28a   :  { %7871 = vmatprep.mubr.bf16.mxu0 %v2050_v36  ;;  %v2040_v19 = vld [vmem:[#allocation5 + $0x110] sm:$0xff]  ;;  %v2039_v26 = vld [vmem:[#allocation5 + $0x108] sm:$0xff]  ;;  %v2049_v14 = vld [vmem:[#allocation5 + $0x158] sm:$0xff] }
 0x28b   :  { %v2048_v37 = vld [vmem:[#allocation5 + $0x150] sm:$0xff]  ;;  %v2058_v45 = vld [vmem:[#allocation5 + $0x1a0] sm:$0xff]  ;;  %v2057_v49 = vld [vmem:[#allocation5 + $0x198] sm:$0xff] }
 0x28c   :  { %7484 = vmatpush3.bf16.msra.mxu1 %v8044_v60  ;;  %v2067_v43 = vld [vmem:[#allocation5 + $0x1e8] sm:$0xff]  ;;  %v2066_v47 = vld [vmem:[#allocation5 + $0x1e0] sm:$0xff]  ;;  %v2076_v62 = vld [vmem:[#allocation5 + $0x230] sm:$0xff] }
 0x28d   :  { %7485 = vmatprep.subr.bf16.mxu1 %v8045_v29  ;;  %v2075_v40 = vld [vmem:[#allocation5 + $0x228] sm:$0xff] }
 0x28f   :  { %2800 = vmatmul.mubr.bf16.gmra.mrb[80].mxu1 %v2026_v39 }
 0x290   :  { %2807 = vmatprep.mubr.bf16.mxu1 %v2036_v48  ;;  %7486 = vmatpush3.bf16.msra.mxu1 %v8046_v54 }
 0x291   :  { %7872 = vmatmul.mubr.bf16.gmra.mrb[64].mxu0 %v2059_v8  ;;  %7487 = vmatprep.subr.bf16.mxu1 %v8047_v41 }
 0x292   :  { %7875 = vmatprep.mubr.bf16.mxu0 %v2068_v33 }
 0x294   :  { %7488 = vmatpush3.bf16.msra.mxu1 %v8048_v53 }
 0x295   :  { %7489 = vmatprep.subr.bf16.mxu1 %v8049_v4 }
 0x297   :  { %2808 = vmatmul.mubr.bf16.gmra.mrb[84].mxu1 %v2035_v13 }
 0x298   :  { %2815 = vmatprep.mubr.bf16.mxu1 %v2045_v22  ;;  %7490 = vmatpush3.bf16.msra.mxu1 %v8050_v42 }
 0x299   :  { %7876 = vmatmul.mubr.bf16.gmra.mrb[68].mxu0 %v2077_v11  ;;  %7491 = vmatprep.subr.bf16.mxu1 %v8051_v52 }
 0x29c   :  { %7492 = vmatpush3.bf16.msra.mxu1 %v8052_v9 }
 0x29f   :  { %2816 = vmatmul.mubr.bf16.gmra.mrb[88].mxu1 %v2044_v32 }
 0x2a0   :  { %2823 = vmatprep.mubr.bf16.mxu1 %v2054_v44 }
 0x2a7   :  { %2824 = vmatmul.mubr.bf16.gmra.mrb[92].mxu1 %v2053_v50 }
 0x2a8   :  { %2831 = vmatprep.mubr.bf16.mxu1 %v2063_v6 }
 0x2af   :  { %2832 = vmatmul.mubr.bf16.gmra.mrb[96].mxu1 %v2062_v46 }
 0x2b0   :  { %2839 = vmatprep.mubr.bf16.mxu1 %v2072_v61 }
 0x2b7   :  { %2840 = vmatmul.mubr.bf16.gmra.mrb[100].mxu1 %v2071_v20 }
 0x2b8   :  { %2977 = vmatprep.mubr.bf16.mxu1 %v2013_v55 }
 0x2bf   :  { %2978 = vmatmul.mubr.bf16.vlgmr.msra.gmra.mrb[104].mxu1 %v2012_v2 }
 0x2c0   :  { %2985 = vmatprep.mubr.bf16.mxu1 %v2022_v7 }
 0x2c7   :  { %2986 = vmatmul.mubr.bf16.gmra.mrb[108].mxu1 %v2021_v28 }
 0x2c8   :  { %2993 = vmatprep.mubr.bf16.mxu1 %v2031_v31 }
 0x2cf   :  { %2994 = vmatmul.mubr.bf16.gmra.mrb[112].mxu1 %v2030_v63 }
 0x2d0   :  { %3001 = vmatprep.mubr.bf16.mxu1 %v2040_v19 }
 0x2d7   :  { %3002 = vmatmul.mubr.bf16.gmra.mrb[116].mxu1 %v2039_v26 }
 0x2d8   :  { %3009 = vmatprep.mubr.bf16.mxu1 %v2049_v14 }
 0x2df   :  { %3010 = vmatmul.mubr.bf16.gmra.mrb[120].mxu1 %v2048_v37 }
 0x2e0   :  { %3017 = vmatprep.mubr.bf16.mxu1 %v2058_v45 }
 0x2e7   :  { %3018 = vmatmul.mubr.bf16.gmra.mrb[124].mxu1 %v2057_v49 }
 0x2e8   :  { %3025 = vmatprep.mubr.bf16.mxu1 %v2067_v43 }
 0x2ef   :  { %3026 = vmatmul.mubr.bf16.gmra.mrb[128].mxu1 %v2066_v47 }
 0x2f0   :  { %3033 = vmatprep.mubr.bf16.mxu1 %v2076_v62 }
 0x2f6   :  { %v7301_v5 = vpop.f32.mrb[40].mxu1 }
 0x2f7   :  { %3034 = vmatmul.mubr.bf16.gmra.mrb[132].mxu1 %v2075_v40  ;;  %v7302_v18 = vpop.f32.mrb[41].mxu1 }
 0x2f8   :  { %v7429_v59 = vpop.f32.mrb[24].mxu0  ;;  %v9739_v25 = vadd.f32 %v7302_v18, %v7301_v5  ;;  %v7304_v23 = vpop.f32.mrb[42].mxu1 }
 0x2f9   :  { %v7430_v15 = vpop.f32.mrb[25].mxu0  ;;  %v7305_v10 = vpop.f32.mrb[43].mxu1 }
 0x2fa   :  { %v9741_v38 = vadd.f32 %v7430_v15, %v7429_v59  ;;  %v7432_v0 = vpop.f32.mrb[26].mxu0  ;;  %v9743_v34 = vadd.f32 %v7305_v10, %v7304_v23 }
 0x2fb   :  { %v7433_v27 = vpop.f32.mrb[27].mxu0 }
 0x2fc   :  { %v9745_v3 = vadd.f32 %v7433_v27, %v7432_v0 }
 0x2fe   :  { %v7307_v58 = vpop.f32.mrb[44].mxu1 }
 0x2ff   :  { %v7308_v16 = vpop.f32.mrb[45].mxu1 }
 0x300   :  { %v9747_v24 = vadd.f32 %v7308_v16, %v7307_v58  ;;  %v7310_v17 = vpop.f32.mrb[46].mxu1 }
 0x301   :  { %v7311_v12 = vpop.f32.mrb[47].mxu1 }
 0x302   :  { %v9751_v56 = vadd.f32 %v7311_v12, %v7310_v17 }
 0x305   :  { %v7435_v57 = vpop.f32.mrb[28].mxu0 }
 0x306   :  { %v7436_v30 = vpop.f32.mrb[29].mxu0 }
 0x307   :  { %v9749_v21 = vadd.f32 %v7436_v30, %v7435_v57  ;;  %v7438_v35 = vpop.f32.mrb[30].mxu0 }
 0x308   :  { %v7439_v51 = vpop.f32.mrb[31].mxu0 }
 0x309   :  { %v9753_v1 = vadd.f32 %v7439_v51, %v7438_v35 }
 0x313   :  { %v7313_v36 = vpop.f32.mrb[48].mxu1 }
 0x314   :  { %v7314_v29 = vpop.f32.mrb[49].mxu1 }
 0x315   :  { %v7441_v60 = vpop.f32.mrb[32].mxu0  ;;  %v9755_v54 = vadd.f32 %v7314_v29, %v7313_v36  ;;  %v7316_v41 = vpop.f32.mrb[50].mxu1 }
 0x316   :  { %v7442_v39 = vpop.f32.mrb[33].mxu0  ;;  %v7317_v33 = vpop.f32.mrb[51].mxu1 }
 0x317   :  { %v9757_v8 = vadd.f32 %v7442_v39, %v7441_v60  ;;  %v7444_v48 = vpop.f32.mrb[34].mxu0  ;;  %v9759_v53 = vadd.f32 %v7317_v33, %v7316_v41 }
 0x318   :  { %v7445_v4 = vpop.f32.mrb[35].mxu0 }
 0x319   :  { %v9761_v42 = vadd.f32 %v7445_v4, %v7444_v48 }
 0x31b   :  { %v7319_v13 = vpop.f32.mrb[52].mxu1 }
 0x31c   :  { %v7320_v11 = vpop.f32.mrb[53].mxu1 }
 0x31d   :  { %v7447_v52 = vpop.f32.mrb[36].mxu0  ;;  %v9763_v22 = vadd.f32 %v7320_v11, %v7319_v13  ;;  %v7322_v32 = vpop.f32.mrb[54].mxu1 }
 0x31e   :  { %v7448_v9 = vpop.f32.mrb[37].mxu0  ;;  %v7323_v6 = vpop.f32.mrb[55].mxu1 }
 0x31f   :  { %v9765_v44 = vadd.f32 %v7448_v9, %v7447_v52  ;;  %v7450_v50 = vpop.f32.mrb[38].mxu0  ;;  %v9767_v46 = vadd.f32 %v7323_v6, %v7322_v32 }
 0x320   :  { %v7451_v61 = vpop.f32.mrb[39].mxu0 }
 0x321   :  { %v9769_v20 = vadd.f32 %v7451_v61, %v7450_v50 }
 0x32b   :  { %v7325_v55 = vpop.f32.mrb[56].mxu1 }
 0x32c   :  { %v7453_v2 = vpop.f32.mrb[40].mxu0  ;;  %v7326_v7 = vpop.f32.mrb[57].mxu1 }
 0x32d   :  { %v9771_v28 = vadd.f32 %v7326_v7, %v7325_v55  ;;  %v7454_v31 = vpop.f32.mrb[41].mxu0  ;;  %v7328_v63 = vpop.f32.mrb[58].mxu1 }
 0x32e   :  { %v9773_v19 = vadd.f32 %v7454_v31, %v7453_v2  ;;  %v7456_v26 = vpop.f32.mrb[42].mxu0  ;;  %v7329_v14 = vpop.f32.mrb[59].mxu1 }
 0x32f   :  { %v9775_v37 = vadd.f32 %v7329_v14, %v7328_v63  ;;  %v7457_v45 = vpop.f32.mrb[43].mxu0 }
 0x330   :  { %v9777_v49 = vadd.f32 %v7457_v45, %v7456_v26 }
 0x33a   :  { %v7331_v43 = vpop.f32.mrb[60].mxu1 }
 0x33b   :  { %v7459_v47 = vpop.f32.mrb[44].mxu0  ;;  %v7332_v62 = vpop.f32.mrb[61].mxu1 }
 0x33c   :  { %v9779_v40 = vadd.f32 %v7332_v62, %v7331_v43  ;;  %v7460_v5 = vpop.f32.mrb[45].mxu0  ;;  %v7334_v59 = vpop.f32.mrb[62].mxu1 }
 0x33d   :  { %v9781_v18 = vadd.f32 %v7460_v5, %v7459_v47  ;;  %v7462_v15 = vpop.f32.mrb[46].mxu0  ;;  %v7335_v23 = vpop.f32.mrb[63].mxu1 }
 0x33e   :  { %v9783_v0 = vadd.f32 %v7335_v23, %v7334_v59  ;;  %v7463_v10 = vpop.f32.mrb[47].mxu0 }
 0x33f   :  { %v9785_v27 = vadd.f32 %v7463_v10, %v7462_v15 }
 0x342   :  { %v7337_v58 = vpop.f32.mrb[64].mxu1 }
 0x343   :  { %v7465_v57 = vpop.f32.mrb[48].mxu0  ;;  %v7338_v16 = vpop.f32.mrb[65].mxu1 }
 0x344   :  { %v9787_v30 = vadd.f32 %v7338_v16, %v7337_v58  ;;  %v7466_v17 = vpop.f32.mrb[49].mxu0  ;;  %v7340_v35 = vpop.f32.mrb[66].mxu1 }
 0x345   :  { %v9789_v12 = vadd.f32 %v7466_v17, %v7465_v57  ;;  %v7468_v51 = vpop.f32.mrb[50].mxu0  ;;  %v7341_v36 = vpop.f32.mrb[67].mxu1 }
 0x346   :  { %v9791_v60 = vadd.f32 %v7341_v36, %v7340_v35  ;;  %v7469_v29 = vpop.f32.mrb[51].mxu0 }
 0x347   :  { %v9793_v39 = vadd.f32 %v7469_v29, %v7468_v51 }
 0x34a   :  { %v7343_v41 = vpop.f32.mrb[68].mxu1 }
 0x34b   :  { %v7344_v33 = vpop.f32.mrb[69].mxu1 }
 0x34c   :  { %v7471_v48 = vpop.f32.mrb[52].mxu0  ;;  %v9795_v4 = vadd.f32 %v7344_v33, %v7343_v41  ;;  %v7346_v52 = vpop.f32.mrb[70].mxu1 }
 0x34d   :  { %v7472_v13 = vpop.f32.mrb[53].mxu0  ;;  %v7347_v32 = vpop.f32.mrb[71].mxu1 }
 0x34e   :  { %v9797_v11 = vadd.f32 %v7472_v13, %v7471_v48  ;;  %v7474_v9 = vpop.f32.mrb[54].mxu0  ;;  %v9799_v50 = vadd.f32 %v7347_v32, %v7346_v52 }
 0x34f   :  { %v7475_v6 = vpop.f32.mrb[55].mxu0 }
 0x350   :  { %v9801_v61 = vadd.f32 %v7475_v6, %v7474_v9 }
 0x352   :  { %v7365_v55 = vpop.f32.mrb[72].mxu1 }
 0x353   :  { %v7366_v7 = vpop.f32.mrb[73].mxu1 }
 0x354   :  { %v9803_v2 = vpop.f32.mrb[56].mxu0  ;;  %v7367_v31 = vadd.f32 %v7366_v7, %v7365_v55  ;;  %v7368_v26 = vpop.f32.mrb[74].mxu1 }
 0x355   :  { %v9805_v63 = vpop.f32.mrb[57].mxu0  ;;  %v7369_v45 = vpop.f32.mrb[75].mxu1 }
 0x356   :  { %v9807_v14 = vpop.f32.mrb[58].mxu0  ;;  %v2786_v43 = vadd.f32 %v7367_v31, %v9739_v25  ;;  %v7370_v47 = vadd.f32 %v7369_v45, %v7368_v26 }
 0x357   :  { %v9810_v62 = vpop.f32.mrb[59].mxu0 }
 0x358   :  { %v2789_v5 = vadd.f32 %v7370_v47, %v9743_v34  ;;  %v9814_v59 = vadd.f32 %v9741_v38, %v2786_v43 }
 0x35a   :  { %v7371_v15 = vpop.f32.mrb[76].mxu1  ;;  %v9817_v23 = vadd.f32 %v9745_v3, %v2789_v5 }
 0x35b   :  { %v7372_v58 = vpop.f32.mrb[77].mxu1 }
 0x35c   :  { %v9819_v10 = vpop.f32.mrb[60].mxu0  ;;  %v7373_v57 = vadd.f32 %v7372_v58, %v7371_v15  ;;  %v7374_v17 = vpop.f32.mrb[78].mxu1 }
 0x35d   :  { %v9821_v16 = vpop.f32.mrb[61].mxu0  ;;  %v7375_v35 = vpop.f32.mrb[79].mxu1 }
 0x35e   :  { %v9823_v25 = vpop.f32.mrb[62].mxu0  ;;  %v2794_v51 = vadd.f32 %v7373_v57, %v9747_v24  ;;  %v7376_v34 = vadd.f32 %v7375_v35, %v7374_v17 }
 0x35f   :  { %v9826_v36 = vpop.f32.mrb[63].mxu0 }
 0x360   :  { %v2797_v38 = vadd.f32 %v7376_v34, %v9751_v56  ;;  %v9830_v3 = vadd.f32 %v9749_v21, %v2794_v51 }
 0x362   :  { %v7377_v29 = vpop.f32.mrb[80].mxu1  ;;  %v9833_v41 = vadd.f32 %v9753_v1, %v2797_v38 }
 0x363   :  { %v7378_v33 = vpop.f32.mrb[81].mxu1 }
 0x364   :  { %v9835_v48 = vpop.f32.mrb[64].mxu0  ;;  %v7379_v13 = vadd.f32 %v7378_v33, %v7377_v29  ;;  %v7380_v9 = vpop.f32.mrb[82].mxu1 }
 0x365   :  { %v9837_v52 = vpop.f32.mrb[65].mxu0  ;;  %v7381_v32 = vpop.f32.mrb[83].mxu1 }
 0x366   :  { %v9839_v24 = vpop.f32.mrb[66].mxu0  ;;  %v2802_v6 = vadd.f32 %v7379_v13, %v9755_v54  ;;  %v7382_v56 = vadd.f32 %v7381_v32, %v7380_v9 }
 0x367   :  { %v9842_v55 = vpop.f32.mrb[67].mxu0 }
 0x368   :  { %v2805_v21 = vadd.f32 %v7382_v56, %v9759_v53  ;;  %v9846_v1 = vadd.f32 %v9757_v8, %v2802_v6 }
 0x36a   :  { %v7383_v7 = vpop.f32.mrb[84].mxu1  ;;  %v9849_v31 = vadd.f32 %v9761_v42, %v2805_v21 }
 0x36b   :  { %v7384_v45 = vpop.f32.mrb[85].mxu1 }
 0x36c   :  { %v9851_v26 = vpop.f32.mrb[68].mxu0  ;;  %v7385_v43 = vadd.f32 %v7384_v45, %v7383_v7  ;;  %v7386_v5 = vpop.f32.mrb[86].mxu1 }
 0x36d   :  { %v9853_v47 = vpop.f32.mrb[69].mxu0  ;;  %v7387_v15 = vpop.f32.mrb[87].mxu1 }
 0x36e   :  { %v9855_v54 = vpop.f32.mrb[70].mxu0  ;;  %v2810_v58 = vadd.f32 %v7385_v43, %v9763_v22  ;;  %v7388_v53 = vadd.f32 %v7387_v15, %v7386_v5 }
 0x36f   :  { %v9858_v57 = vpop.f32.mrb[71].mxu0 }
 0x370   :  { %v2813_v8 = vadd.f32 %v7388_v53, %v9767_v46  ;;  %v9862_v42 = vadd.f32 %v9765_v44, %v2810_v58 }
 0x372   :  { %v7389_v17 = vpop.f32.mrb[88].mxu1  ;;  %v9865_v35 = vadd.f32 %v9769_v20, %v2813_v8 }
 0x373   :  { %v7390_v51 = vpop.f32.mrb[89].mxu1 }
 0x374   :  { %v7391_v34 = vadd.f32 %v7390_v51, %v7389_v17  ;;  %v7392_v38 = vpop.f32.mrb[90].mxu1  ;;  %v8054_v17 = vld [vmem:[#allocation10] sm:$0xff]  }
 0x375   :  { %v7393_v29 = vpop.f32.mrb[91].mxu1 }
 0x376   :  { %v2818_v33 = vadd.f32 %v7391_v34, %v9771_v28  ;;  %v7394_v13 = vadd.f32 %v7393_v29, %v7392_v38 }
 0x378   :  { %v2821_v22 = vadd.f32 %v7394_v13, %v9775_v37  ;;  %v9870_v9 = vadd.f32 %v9773_v19, %v2818_v33  ;;  %v8056_v33 = vld [vmem:[#allocation10 + $0x8] sm:$0xff]   ;;  %v8064_v13 = vld [vmem:[#allocation10 + $0x80] sm:$0xff]  }
 0x37a   :  { %v7395_v46 = vpop.f32.mrb[92].mxu1  ;;  %v9873_v44 = vadd.f32 %v9777_v49, %v2821_v22 }
 0x37b   :  { %v7396_v32 = vpop.f32.mrb[93].mxu1 }
 0x37c   :  { %v7397_v6 = vadd.f32 %v7396_v32, %v7395_v46  ;;  %v7398_v20 = vpop.f32.mrb[94].mxu1 }
 0x37d   :  { %v7399_v56 = vpop.f32.mrb[95].mxu1 }
 0x37e   :  { %v2826_v21 = vadd.f32 %v7397_v6, %v9779_v40  ;;  %v7400_v7 = vadd.f32 %v7399_v56, %v7398_v20  ;;  %v8066_v6 = vld [vmem:[#allocation10 + $0x88] sm:$0xff]   ;;  %v8058_v56 = vld [vmem:[#allocation10 + $0x10] sm:$0xff]  }
 0x380   :  { %v2829_v45 = vadd.f32 %v7400_v7, %v9783_v0  ;;  %v9878_v28 = vadd.f32 %v9781_v18, %v2826_v21  ;;  %v8053_v0 = vld [vmem:[#allocation10 + $0x40] sm:$0xff]   ;;  %v8055_v18 = vld [vmem:[#allocation10 + $0x48] sm:$0xff]   ;;  %v8068_v21 = vld [vmem:[#allocation10 + $0xd0] sm:$0xff]  }
 0x381   :  { %7557 = vmatprep.subr.bf16.mxu1 %v8053_v0  ;;  %v8059_v7 = vld [vmem:[#allocation10 + $0x58] sm:$0xff]  }
 0x382   :  { %v7401_v37 = vpop.f32.mrb[96].mxu1  ;;  %v9881_v19 = vadd.f32 %v9785_v27, %v2829_v45  ;;  %7558 = vmatpush3.bf16.msra.mxu1 %v8054_v17 }
 0x383   :  { %v7402_v43 = vpop.f32.mrb[97].mxu1  ;;  %7559 = vmatprep.subr.bf16.mxu1 %v8055_v18 }
 0x384   :  { %v7403_v5 = vadd.f32 %v7402_v43, %v7401_v37  ;;  %v7404_v49 = vpop.f32.mrb[98].mxu1  ;;  %v8070_v43 = vld [vmem:[#allocation10 + $0x90] sm:$0xff]  }
 0x385   :  { %v7405_v15 = vpop.f32.mrb[99].mxu1 }
 0x386   :  { %v2834_v58 = vadd.f32 %v7403_v5, %v9787_v30  ;;  %v7406_v53 = vadd.f32 %v7405_v15, %v7404_v49  ;;  %v8062_v30 = vld [vmem:[#allocation10 + $0xc0] sm:$0xff]   ;;  %7560 = vmatpush3.bf16.msra.mxu1 %v8056_v33 }
 0x387   :  { %7585 = vmatprep.subr.bf16.mxu0 %v8062_v30  ;;  %v3288_v5 = vld [vmem:[#allocation3 + $0x1] ss:$2 sm:$0xf]  ;;  %v3284_v33 = vld [vmem:[#allocation3] ss:$2 sm:$0xf] }
 0x388   :  { %v2837_v8 = vadd.f32 %v7406_v53, %v9791_v60  ;;  %v9886_v40 = vadd.f32 %v9789_v12, %v2834_v58  ;;  %v8057_v60 = vld [vmem:[#allocation10 + $0x50] sm:$0xff]   ;;  %v8065_v12 = vld [vmem:[#allocation10 + $0xc8] sm:$0xff]   ;;  %7586 = vmatpush3.bf16.msra.mxu0 %v8064_v13  ;;  %v3289_v58 = vpack.c.bf16 %v3288_v5, %v3288_v5  ;;  %v3285_v13 = vpack.c.bf16 %v3284_v33, %v3284_v33 }
 0x389   :  { %7587 = vmatprep.subr.bf16.mxu0 %v8065_v12  ;;  %7561 = vmatprep.subr.bf16.mxu1 %v8057_v60  ;;  %v8076_v60 = vld [vmem:[#allocation10 + $0xa0] sm:$0xff]   ;;  %v8075_v5 = vld [vmem:[#allocation10 + $0x30] sm:$0xff]  }
 0x38a   :  { %v7407_v51 = vpop.f32.mrb[100].mxu1  ;;  %v9889_v34 = vadd.f32 %v9793_v39, %v2837_v8  ;;  %7562 = vmatpush3.bf16.msra.mxu1 %v8058_v56  ;;  %v8061_v8 = vld [vmem:[#allocation10 + $0x60] sm:$0xff]   ;;  %3290 = vst [vmem:[#allocation5 + $0x8] sm:$0x3] %v3289_v58  ;;  %3286 = vst [vmem:[#allocation5] sm:$0x3] %v3285_v13 }
 0x38b   :  { %v7408_v27 = vpop.f32.mrb[101].mxu1  ;;  %7563 = vmatprep.subr.bf16.mxu1 %v8059_v7 }
 0x38c   :  { %v7409_v38 = vadd.f32 %v7408_v27, %v7407_v51  ;;  %v7410_v29 = vpop.f32.mrb[102].mxu1  ;;  %7588 = vmatpush3.bf16.msra.mxu0 %v8066_v6  ;;  %v8063_v27 = vld [vmem:[#allocation10 + $0x20] sm:$0xff]   ;;  %v8073_v6 = vld [vmem:[#allocation10 + $0x70] sm:$0xff]  }
 0x38d   :  { %v7411_v22 = vpop.f32.mrb[103].mxu1  ;;  %7589 = vmatprep.subr.bf16.mxu0 %v8068_v21  ;;  %v8078_v21 = vld [vmem:[#allocation10 + $0xa8] sm:$0xff]  }
 0x38e   :  { %v2842_v46 = vadd.f32 %v7409_v38, %v9795_v4  ;;  %v7412_v32 = vadd.f32 %v7411_v22, %v7410_v29  ;;  %v8074_v38 = vld [vmem:[#allocation10 + $0xe0] sm:$0xff]   ;;  %v8067_v29 = vld [vmem:[#allocation10 + $0x68] sm:$0xff]  }
 0x390   :  { %v2845_v39 = vadd.f32 %v7412_v32, %v9799_v50  ;;  %v9894_v20 = vadd.f32 %v9797_v11, %v2842_v46  ;;  %v8060_v50 = vld [vmem:[#allocation10 + $0x18] sm:$0xff]   ;;  %7590 = vmatpush3.bf16.msra.mxu0 %v8070_v43  ;;  %v8069_v46 = vld [vmem:[#allocation10 + $0x28] sm:$0xff]  }
 0x391   :  { %v8071_v11 = vld [vmem:[#allocation10 + $0xd8] sm:$0xff]   ;;  %7564 = vmatpush3.bf16.msra.mxu1 %v8060_v50 }
 0x392   :  { %v7493_v45 = vpop.f32.mrb[104].mxu1  ;;  %v9897_v37 = vadd.f32 %v9801_v61, %v2845_v39  ;;  %v8072_v61 = vld [vmem:[#allocation10 + $0x98] sm:$0xff]   ;;  %7591 = vmatprep.subr.bf16.mxu0 %v8071_v11  ;;  %7565 = vmatprep.subr.bf16.mxu1 %v8061_v8 }
 0x393   :  { %v7494_v4 = vpop.f32.mrb[105].mxu1 }
 0x394   :  { %v7495_v49 = vadd.f32 %v7494_v4, %v7493_v45  ;;  %v7496_v15 = vpop.f32.mrb[106].mxu1  ;;  %7592 = vmatpush3.bf16.msra.mxu0 %v8072_v61 }
 0x395   :  { %v7497_v53 = vpop.f32.mrb[107].mxu1  ;;  %7566 = vmatpush3.bf16.msra.mxu1 %v8063_v27  ;;  %7593 = vmatprep.subr.bf16.mxu0 %v8074_v38  ;;  %v8083_v27 = vld [vmem:[#allocation10 + $0xf8] sm:$0xff]  }
 0x396   :  { %v2980_v0 = vadd.f32 %v7495_v49, %v9814_v59  ;;  %v7498_v17 = vadd.f32 %v7497_v53, %v7496_v15  ;;  %7567 = vmatprep.subr.bf16.mxu1 %v8067_v29  ;;  %v8079_v49 = vld [vmem:[#allocation10 + $0x78] sm:$0xff]   ;;  %v8080_v15 = vld [vmem:[#allocation10 + $0xf0] sm:$0xff]   ;;  %v8085_v29 = vld [vmem:[#allocation10 + $0x140] sm:$0xff]  }
 0x397   :  { %v8082_v53 = vld [vmem:[#allocation10 + $0xb0] sm:$0xff]  }
 0x398   :  { %v9901_v18 = vadd.f32 %v9805_v63, %v2980_v0  ;;  %v2983_v51 = vadd.f32 %v7498_v17, %v9817_v23  ;;  %v8077_v23 = vld [vmem:[#allocation10 + $0xe8] sm:$0xff]   ;;  %7594 = vmatpush3.bf16.msra.mxu0 %v8076_v60 }
 0x399   :  { %7568 = vmatpush3.bf16.msra.mxu1 %v8069_v46  ;;  %7595 = vmatprep.subr.bf16.mxu0 %v8077_v23  ;;  %v8086_v46 = vld [vmem:[#allocation10 + $0x1c0] sm:$0xff]  }
 0x39a   :  { %v9905_v30 = vadd.f32 %v9810_v62, %v2983_v51  ;;  %v7499_v59 = vpop.f32.mrb[108].mxu1  ;;  %v3292_v62 = vld [vmem:[#allocation3 + $0x2] ss:$2 sm:$0xf]  ;;  %7569 = vmatprep.subr.bf16.mxu1 %v8073_v6  ;;  %v8081_v51 = vld [vmem:[#allocation10 + $0x38] sm:$0xff]  }
 0x39b   :  { %v7500_v22 = vpop.f32.mrb[109].mxu1  ;;  %v3293_v7 = vpack.c.bf16 %v3292_v62, %v3292_v62 }
 0x39c   :  { %v7501_v12 = vadd.f32 %v7500_v22, %v7499_v59  ;;  %v7502_v63 = vpop.f32.mrb[110].mxu1  ;;  %v3161_v45 = vmul.f32 %v9905_v30, %v9905_v30  ;;  %v3139_v50 = vadd.f32 %v9905_v30, %v9901_v18  ;;  %7596 = vmatpush3.bf16.msra.mxu0 %v8078_v21  ;;  %v8084_v22 = vld [vmem:[#allocation10 + $0xb8] sm:$0xff]  }
 0x39d   :  { %v7503_v32 = vpop.f32.mrb[111].mxu1  ;;  %3294 = vst [vmem:[#allocation5 + $0x10] sm:$0x3] %v3293_v7  ;;  %7570 = vmatpush3.bf16.msra.mxu1 %v8075_v5  ;;  %7597 = vmatprep.subr.bf16.mxu0 %v8080_v15 }
 0x39e   :  { %v2988_v39 = vadd.f32 %v7501_v12, %v9830_v3  ;;  %v7504_v56 = vadd.f32 %v7503_v32, %v7502_v63  ;;  %v3160_v3 = vmul.f32 %v9901_v18, %v9901_v18  ;;  %7571 = vmatprep.subr.bf16.mxu1 %v8079_v49 }
 0x3a0   :  { %v9911_v4 = vadd.f32 %v9803_v2, %v2988_v39  ;;  %v2991_v43 = vadd.f32 %v7504_v56, %v9833_v41  ;;  %v3176_v8 = vadd.f32 %v3161_v45, %v3160_v3  ;;  %7598 = vmatpush3.bf16.msra.mxu0 %v8082_v53 }
 0x3a1   :  { %7572 = vmatpush3.bf16.msra.mxu1 %v8081_v51  ;;  %7599 = vmatprep.subr.bf16.mxu0 %v8083_v27 }
 0x3a2   :  { %v3162_v11 = vmul.f32 %v9911_v4, %v9911_v4  ;;  %v9921_v2 = vadd.f32 %v9807_v14, %v2991_v43  ;;  %v7505_v41 = vpop.f32.mrb[112].mxu1  ;;  %v3140_v0 = vadd.f32 %v3139_v50, %v9911_v4  ;;  %7613 = vmatprep.subr.bf16.mxu1 %v8085_v29 }
 0x3a3   :  { %v7506_v58 = vpop.f32.mrb[113].mxu1 }
 0x3a4   :  { %v7507_v17 = vadd.f32 %v7506_v58, %v7505_v41  ;;  %v7508_v61 = vpop.f32.mrb[114].mxu1  ;;  %v3177_v33 = vadd.f32 %v3176_v8, %v3162_v11  ;;  %v3163_v14 = vmul.f32 %v9921_v2, %v9921_v2  ;;  %v3141_v60 = vadd.f32 %v3140_v0, %v9921_v2  ;;  %7600 = vmatpush3.bf16.msra.mxu0 %v8084_v22 }
 0x3a5   :  { %v7509_v38 = vpop.f32.mrb[115].mxu1  ;;  %7641 = vmatprep.subr.bf16.mxu0 %v8086_v46 }
 0x3a6   :  { %v2996_v59 = vadd.f32 %v7507_v17, %v9846_v1  ;;  %v7510_v13 = vadd.f32 %v7509_v38, %v7508_v61  ;;  %v3178_v23 = vadd.f32 %v3177_v33, %v3163_v14 }
 0x3a8   :  { %v9929_v12 = vadd.f32 %v9821_v16, %v2996_v59  ;;  %v2999_v63 = vadd.f32 %v7510_v13, %v9849_v31 }
 0x3aa   :  { %v3142_v32 = vadd.f32 %v3141_v60, %v9929_v12  ;;  %v3164_v1 = vmul.f32 %v9929_v12, %v9929_v12  ;;  %v9936_v6 = vadd.f32 %v9826_v36, %v2999_v63  ;;  %v7511_v39 = vpop.f32.mrb[116].mxu1 }
 0x3ab   :  { %v7512_v56 = vpop.f32.mrb[117].mxu1 }
 0x3ac   :  { %v3179_v16 = vadd.f32 %v3178_v23, %v3164_v1  ;;  %v3143_v62 = vadd.f32 %v3142_v32, %v9936_v6  ;;  %v3165_v31 = vmul.f32 %v9936_v6, %v9936_v6  ;;  %v7513_v21 = vadd.f32 %v7512_v56, %v7511_v39  ;;  %v7514_v7 = vpop.f32.mrb[118].mxu1 }
 0x3ad   :  { %v7515_v45 = vpop.f32.mrb[119].mxu1 }
 0x3ae   :  { %v3180_v43 = vadd.f32 %v3179_v16, %v3165_v31  ;;  %v3004_v5 = vadd.f32 %v7513_v21, %v9862_v42  ;;  %v7516_v49 = vadd.f32 %v7515_v45, %v7514_v7 }
 0x3b0   :  { %v9943_v36 = vadd.f32 %v9819_v10, %v3004_v5  ;;  %v3007_v15 = vadd.f32 %v7516_v49, %v9865_v35 }
 0x3b2   :  { %v3144_v3 = vadd.f32 %v3143_v62, %v9943_v36  ;;  %v3166_v50 = vmul.f32 %v9943_v36, %v9943_v36  ;;  %v9950_v11 = vadd.f32 %v9823_v25, %v3007_v15  ;;  %v7517_v41 = vpop.f32.mrb[120].mxu1 }
 0x3b3   :  { %v7518_v58 = vpop.f32.mrb[121].mxu1 }
 0x3b4   :  { %v3181_v53 = vadd.f32 %v3180_v43, %v3166_v50  ;;  %v3145_v8 = vadd.f32 %v3144_v3, %v9950_v11  ;;  %v3167_v42 = vmul.f32 %v9950_v11, %v9950_v11  ;;  %v7519_v10 = vadd.f32 %v7518_v58, %v7517_v41  ;;  %v7520_v0 = vpop.f32.mrb[122].mxu1 }
 0x3b5   :  { %v7521_v17 = vpop.f32.mrb[123].mxu1 }
 0x3b6   :  { %v3182_v35 = vadd.f32 %v3181_v53, %v3167_v42  ;;  %v3012_v61 = vadd.f32 %v7519_v10, %v9870_v9  ;;  %v7522_v51 = vadd.f32 %v7521_v17, %v7520_v0 }
 0x3b8   :  { %v9957_v27 = vadd.f32 %v9837_v52, %v3012_v61  ;;  %v3015_v25 = vadd.f32 %v7522_v51, %v9873_v44 }
 0x3ba   :  { %v3146_v38 = vadd.f32 %v3145_v8, %v9957_v27  ;;  %v3168_v29 = vmul.f32 %v9957_v27, %v9957_v27  ;;  %v9964_v33 = vadd.f32 %v9842_v55, %v3015_v25  ;;  %v7523_v14 = vpop.f32.mrb[124].mxu1 }
 0x3bb   :  { %v7524_v59 = vpop.f32.mrb[125].mxu1 }
 0x3bc   :  { %v3183_v13 = vadd.f32 %v3182_v35, %v3168_v29  ;;  %v3147_v22 = vadd.f32 %v3146_v38, %v9964_v33  ;;  %v3169_v9 = vmul.f32 %v9964_v33, %v9964_v33  ;;  %v7525_v52 = vadd.f32 %v7524_v59, %v7523_v14  ;;  %v7526_v60 = vpop.f32.mrb[126].mxu1 }
 0x3bd   :  { %v7527_v63 = vpop.f32.mrb[127].mxu1 }
 0x3be   :  { %v3184_v44 = vadd.f32 %v3183_v13, %v3169_v9  ;;  %v3020_v46 = vadd.f32 %v7525_v52, %v9878_v28  ;;  %v7528_v23 = vadd.f32 %v7527_v63, %v7526_v60 }
 0x3c0   :  { %v9971_v32 = vadd.f32 %v9835_v48, %v3020_v46  ;;  %v3023_v55 = vadd.f32 %v7528_v23, %v9881_v19 }
 0x3c2   :  { %v3148_v1 = vadd.f32 %v3147_v22, %v9971_v32  ;;  %v3170_v39 = vmul.f32 %v9971_v32, %v9971_v32  ;;  %v9978_v56 = vadd.f32 %v9839_v24, %v3023_v55  ;;  %v7529_v16 = vpop.f32.mrb[128].mxu1 }
 0x3c3   :  { %v7530_v62 = vpop.f32.mrb[129].mxu1 }
 0x3c4   :  { %v3185_v31 = vadd.f32 %v3184_v44, %v3170_v39  ;;  %v3149_v21 = vadd.f32 %v3148_v1, %v9978_v56  ;;  %v3171_v28 = vmul.f32 %v9978_v56, %v9978_v56  ;;  %v7531_v48 = vadd.f32 %v7530_v62, %v7529_v16  ;;  %v7532_v7 = vpop.f32.mrb[130].mxu1  ;;  %v3201_v62 = vld [vmem:[%s10521_s5] sm:$0x1] }
 0x3c5   :  { %v7533_v45 = vpop.f32.mrb[131].mxu1 }
 0x3c6   :  { %v3186_v19 = vadd.f32 %v3185_v31, %v3171_v28  ;;  %v3028_v43 = vadd.f32 %v7531_v48, %v9886_v40  ;;  %v7534_v5 = vadd.f32 %v7533_v45, %v7532_v7  ;;  %v3205_v28 = vld [vmem:[%s10522_s6] sm:$0x1]  ;;  %v10637_v7 = vld [vmem:[#allocation40_spill] sm:$0xff] }
 0x3c8   :  { %v9985_v49 = vadd.f32 %v9853_v47, %v3028_v43  ;;  %v3031_v24 = vadd.f32 %v7534_v5, %v9889_v34 }
 0x3ca   :  { %v3150_v15 = vadd.f32 %v3149_v21, %v9985_v49  ;;  %v3172_v3 = vmul.f32 %v9985_v49, %v9985_v49  ;;  %v3128_v50 = vadd.f32 %v9858_v57, %v3031_v24  ;;  %v7535_v41 = vpop.f32.mrb[132].mxu1 }
 0x3cb   :  { %v7536_v58 = vpop.f32.mrb[133].mxu1 }
 0x3cc   :  { %v3187_v53 = vadd.f32 %v3186_v19, %v3172_v3  ;;  %v3151_v8 = vadd.f32 %v3150_v15, %v3128_v50  ;;  %v3173_v42 = vmul.f32 %v3128_v50, %v3128_v50  ;;  %v7537_v10 = vadd.f32 %v7536_v58, %v7535_v41  ;;  %v7538_v40 = vpop.f32.mrb[134].mxu1 }
 0x3cd   :  { %v7539_v0 = vpop.f32.mrb[135].mxu1 }
 0x3ce   :  { %v3188_v17 = vadd.f32 %v3187_v53, %v3173_v42  ;;  %v3036_v47 = vadd.f32 %v7537_v10, %v9894_v20  ;;  %v7540_v35 = vadd.f32 %v7539_v0, %v7538_v40 }
 0x3d0   :  { %v9994_v34 = vadd.f32 %v9851_v26, %v3036_v47  ;;  %v3039_v61 = vadd.f32 %v7540_v35, %v9897_v37 }
 0x3d2   :  { %v3152_v51 = vadd.f32 %v3151_v8, %v9994_v34  ;;  %v3174_v57 = vmul.f32 %v9994_v34, %v9994_v34  ;;  %v3136_v25 = vadd.f32 %v9855_v54, %v3039_v61 }
 0x3d4   :  { %v3189_v38 = vadd.f32 %v3188_v17, %v3174_v57  ;;  %v3153_v29 = vadd.f32 %v3152_v51, %v3136_v25  ;;  %v3175_v14 = vmul.f32 %v3136_v25, %v3136_v25 }
 0x3d6   :  { %v3154_v59 = vrot.slane %v3153_v29, 4  ;;  %v3190_v13 = vadd.f32 %v3189_v38, %v3175_v14 }
 0x3d8   :  { %v3155_v22 = vadd.f32 %v3154_v59, %v3153_v29  ;;  %v3191_v20 = vrot.slane %v3190_v13, 4 }
 0x3da   :  { %v3156_v9 = vrot.slane %v3155_v22, 2  ;;  %v3192_v52 = vadd.f32 %v3191_v20, %v3190_v13 }
 0x3dc   :  { %v3157_v26 = vadd.f32 %v3156_v9, %v3155_v22  ;;  %v3193_v60 = vrot.slane %v3192_v52, 2 }
 0x3de   :  { %v3158_v63 = vrot.slane %v3157_v26, 1  ;;  %v3194_v37 = vadd.f32 %v3193_v60, %v3192_v52 }
 0x3e0   :  { %v3159_v44 = vadd.f32 %v3158_v63, %v3157_v26  ;;  %v3195_v46 = vrot.slane %v3194_v37, 1 }
 0x3e2   :  { %v3196_v23 = vadd.f32 %v3195_v46, %v3194_v37  ;;  %v3197_v55 = vmul.f32 0.0078125, %v3159_v44 }
 0x3e4   :  { %v3198_v1 = vmul.f32 0.0078125, %v3196_v23  ;;  %v3199_v39 = vmul.f32 %v3197_v55, %v3197_v55 }
 0x3e6   :  { %v3200_v54 = vsub.f32 %v3198_v1, %v3199_v39 }
 0x3e8   :  { %v3202_v16 = vadd.f32 1e-05, %v3200_v54 }
 0x3ea   :  { %8409 = vrsqrt.f32 %v3202_v16  ;;  %v4722_v16 = vld [vmem:[#allocation4 + $0x25] ss:$2 sm:$0x3] }
 0x3f4   :  { %v8410_v31 = vpop.eup %8409 }
 0x3f5   :  { %v3204_v21 = vmul.f32 %v8410_v31, %v3201_v62 }
 0x3f7   :  { %v3206_v48 = vmul.f32 %v3204_v21, %v3197_v55  ;;  %v3212_v45 = vrot.slane %v3204_v21, %v10637_v7 }
 0x3f9   :  { %v3207_v19 = vsub.f32 %v3205_v28, %v3206_v48  ;;  %v3229_v43 = vmul.f32 %v3212_v45, %v3136_v25  ;;  %v3215_v5 = vmul.f32 %v3212_v45, %v9905_v30  ;;  %v3217_v24 = vmul.f32 %v3212_v45, %v9921_v2 }
 0x3fa   :  { %v3219_v15 = vmul.f32 %v3212_v45, %v9936_v6  ;;  %v3214_v3 = vmul.f32 %v3212_v45, %v9901_v18  ;;  %v3216_v41 = vmul.f32 %v3212_v45, %v9911_v4  ;;  %v3218_v58 = vmul.f32 %v3212_v45, %v9929_v12 }
 0x3fb   :  { %v3234_v53 = vrot.slane %v3207_v19, %v10637_v7  ;;  %v3220_v8 = vmul.f32 %v3212_v45, %v9943_v36  ;;  %v3223_v42 = vmul.f32 %v3212_v45, %v9964_v33  ;;  %v3225_v10 = vmul.f32 %v3212_v45, %v9978_v56 }
 0x3fc   :  { %v3227_v40 = vmul.f32 %v3212_v45, %v3128_v50  ;;  %v3222_v30 = vmul.f32 %v3212_v45, %v9957_v27  ;;  %v3224_v2 = vmul.f32 %v3212_v45, %v9971_v32  ;;  %v3226_v6 = vmul.f32 %v3212_v45, %v9985_v49 }
 0x3fd   :  { %v3251_v18 = vadd.f32 %v3234_v53, %v3229_v43  ;;  %v3237_v0 = vadd.f32 %v3234_v53, %v3215_v5  ;;  %v3239_v4 = vadd.f32 %v3234_v53, %v3217_v24  ;;  %v3241_v17 = vadd.f32 %v3234_v53, %v3219_v15 }
 0x3fe   :  { %v3236_v12 = vadd.f32 %v3234_v53, %v3214_v3  ;;  %v3238_v47 = vadd.f32 %v3234_v53, %v3216_v41  ;;  %v3240_v35 = vadd.f32 %v3234_v53, %v3218_v58  ;;  %v3242_v61 = vadd.f32 %v3234_v53, %v3220_v8  ;;  %v4623_v58 = vld [vmem:[#allocation4 + $0x1] ss:$2 sm:$0x3] }
 0x3ff   :  { %v3267_v36 = vmax.f32 %v3251_v18, 0.0  ;;  %v3253_v51 = vmax.f32 %v3237_v0, 0.0  ;;  %v3255_v33 = vmax.f32 %v3239_v4, 0.0  ;;  %v3257_v57 = vmax.f32 %v3241_v17, 0.0 }
 0x400   :  { %v3252_v56 = vmax.f32 %v3236_v12, 0.0  ;;  %v3254_v50 = vmax.f32 %v3238_v47, 0.0  ;;  %v3256_v25 = vmax.f32 %v3240_v35, 0.0  ;;  %v3258_v27 = vmax.f32 %v3242_v61, 0.0 }
 0x401   :  { %3283 = vst [vmem:[#allocation3 + $0xb5] sm:$0xff] %v3267_v36  ;;  %3269 = vst [vmem:[#allocation3 + $0x15] sm:$0xff] %v3253_v51  ;;  %v3245_v32 = vadd.f32 %v3234_v53, %v3223_v42  ;;  %v3247_v49 = vadd.f32 %v3234_v53, %v3225_v10  ;;  %v3249_v38 = vadd.f32 %v3234_v53, %v3227_v40 }
 0x402   :  { %3271 = vst [vmem:[#allocation3 + $0x29] sm:$0xff] %v3255_v33  ;;  %3273 = vst [vmem:[#allocation3 + $0x3d] sm:$0xff] %v3257_v57  ;;  %v3228_v29 = vmul.f32 %v3212_v45, %v9994_v34  ;;  %v3244_v14 = vadd.f32 %v3234_v53, %v3222_v30  ;;  %v3246_v59 = vadd.f32 %v3234_v53, %v3224_v2 }
 0x403   :  { %3268 = vst [vmem:[#allocation3 + $0xb] sm:$0xff] %v3252_v56  ;;  %3270 = vst [vmem:[#allocation3 + $0x1f] sm:$0xff] %v3254_v50  ;;  %v3248_v13 = vadd.f32 %v3234_v53, %v3226_v6  ;;  %v3221_v22 = vmul.f32 %v3212_v45, %v9950_v11  ;;  %v3261_v20 = vmax.f32 %v3245_v32, 0.0  ;;  %v3263_v9 = vmax.f32 %v3247_v49, 0.0 }
 0x404   :  { %3272 = vst [vmem:[#allocation3 + $0x33] sm:$0xff] %v3256_v25  ;;  %3274 = vst [vmem:[#allocation3 + $0x47] sm:$0xff] %v3258_v27  ;;  %v3265_v52 = vmax.f32 %v3249_v38, 0.0  ;;  %v3250_v26 = vadd.f32 %v3234_v53, %v3228_v29  ;;  %v3260_v60 = vmax.f32 %v3244_v14, 0.0  ;;  %v3262_v63 = vmax.f32 %v3246_v59, 0.0 }
 0x405   :  { %v3264_v37 = vmax.f32 %v3248_v13, 0.0  ;;  %v3243_v44 = vadd.f32 %v3234_v53, %v3221_v22  ;;  %3277 = vst [vmem:[#allocation3 + $0x79] sm:$0xff] %v3261_v20  ;;  %3279 = vst [vmem:[#allocation3 + $0x8d] sm:$0xff] %v3263_v9  ;;  %v4723_v10 = vpack.c.bf16 %v4722_v16, %v4722_v16  ;;  %v4715_v6 = vld [vmem:[#allocation4 + $0x24] ss:$2 sm:$0x3]  ;;  %v4624_v51 = vpack.c.bf16 %v4623_v58, %v4623_v58 }
 0x406   :  { %3281 = vst [vmem:[#allocation3 + $0xa1] sm:$0xff] %v3265_v52  ;;  %v3266_v34 = vmax.f32 %v3250_v26, 0.0  ;;  %3276 = vst [vmem:[#allocation3 + $0x6f] sm:$0xff] %v3260_v60  ;;  %v4729_v25 = vld [vmem:[#allocation4 + $0x26] ss:$2 sm:$0x3]  ;;  %v4716_v32 = vpack.c.bf16 %v4715_v6, %v4715_v6 }
 0x407   :  { %3278 = vst [vmem:[#allocation3 + $0x83] sm:$0xff] %v3262_v63  ;;  %3280 = vst [vmem:[#allocation3 + $0x97] sm:$0xff] %v3264_v37  ;;  %v3259_v46 = vmax.f32 %v3243_v44, 0.0  ;;  %v4725_v33 = vrot.slane %v4723_v10, 6  ;;  %v8091_v6 = vld [vmem:[#allocation10 + $0x108] sm:$0xff]  }
 0x408   :  { %3282 = vst [vmem:[#allocation3 + $0xab] sm:$0xff] %v3266_v34  ;;  %v3709_v23 = vld [vmem:[#allocation3 + $0xb6] ss:$2 sm:$0xf]  ;;  %v4718_v44 = vrot.slane %v4716_v32, 6  ;;  %v4730_v34 = vpack.c.bf16 %v4729_v25, %v4729_v25 }
 0x409   :  { %v3325_v55 = vld [vmem:[#allocation3 + $0x15] ss:$2 sm:$0xf]  ;;  %3275 = vst [vmem:[#allocation3 + $0x51] sm:$0xff] %v3259_v46  ;;  %v3710_v11 = vpack.c.bf16 %v3709_v23, %v3709_v23 }
 0x40a   :  { %v3326_v1 = vpack.c.bf16 %v3325_v55, %v3325_v55  ;;  %v3385_v39 = vld [vmem:[#allocation3 + $0x29] ss:$2 sm:$0xf]  ;;  %v3445_v54 = vld [vmem:[#allocation3 + $0x3d] ss:$2 sm:$0xf] }
 0x40b   :  { %v3386_v62 = vpack.c.bf16 %v3385_v39, %v3385_v39  ;;  %v3446_v31 = vpack.c.bf16 %v3445_v54, %v3445_v54  ;;  %v3296_v21 = vld [vmem:[#allocation3 + $0xa] ss:$2 sm:$0xf]  ;;  %v3338_v28 = vld [vmem:[#allocation3 + $0x1e] ss:$2 sm:$0xf] }
 0x40c   :  { %v3328_v48 = vrot.slane %v3326_v1, 6  ;;  %v3297_v45 = vpack.c.bf16 %v3296_v21, %v3296_v21  ;;  %v3339_v19 = vpack.c.bf16 %v3338_v28, %v3338_v28  ;;  %v3398_v43 = vld [vmem:[#allocation3 + $0x32] ss:$2 sm:$0xf]  ;;  %v3712_v5 = vrot.slane %v3710_v11, 2  ;;  %v8087_v39 = vld [vmem:[#allocation10 + $0x100] sm:$0xff]  }
 0x40d   :  { %v3388_v24 = vrot.slane %v3386_v62, 4  ;;  %v3448_v15 = vrot.slane %v3446_v31, 2  ;;  %v3399_v3 = vpack.c.bf16 %v3398_v43, %v3398_v43  ;;  %v3458_v41 = vld [vmem:[#allocation3 + $0x46] ss:$2 sm:$0xf]  ;;  %v8095_v25 = vld [vmem:[#allocation10 + $0x110] sm:$0xff]  }
 0x40e   :  { %3330 = vst [vmem:[#allocation5 + $0x8] sm:$0xc] %v3328_v48  ;;  %3298 = vst [vmem:[#allocation5 + $0x18] sm:$0x3] %v3297_v45  ;;  %v3341_v53 = vrot.slane %v3339_v19, 6  ;;  %v3459_v8 = vpack.c.bf16 %v3458_v41, %v3458_v41  ;;  %v8089_v19 = vld [vmem:[#allocation10 + $0x148] sm:$0xff]  }
 0x40f   :  { %v3319_v42 = vld [vmem:[#allocation3 + $0x14] ss:$2 sm:$0xf]  ;;  %3714 = vst [vmem:[#allocation5 + $0x88] sm:$0xc0] %v3712_v5  ;;  %v3401_v40 = vrot.slane %v3399_v3, 4 }
 0x410   :  { %3390 = vst [vmem:[#allocation5 + $0x8] sm:$0x30] %v3388_v24  ;;  %3450 = vst [vmem:[#allocation5 + $0x8] sm:$0xc0] %v3448_v15  ;;  %v3320_v30 = vpack.c.bf16 %v3319_v42, %v3319_v42  ;;  %v3461_v18 = vrot.slane %v3459_v8, 2  ;;  %v4732_v3 = vrot.slane %v4730_v34, 6 }
 0x411   :  { %v3379_v2 = vld [vmem:[#allocation3 + $0x28] ss:$2 sm:$0xf]  ;;  %3343 = vst [vmem:[#allocation5 + $0x18] sm:$0xc] %v3341_v53  ;;  %v8088_v8 = vld [vmem:[#allocation10 + $0x180] sm:$0xff]  }
 0x412   :  { %v3380_v0 = vpack.c.bf16 %v3379_v2, %v3379_v2  ;;  %v3439_v4 = vld [vmem:[#allocation3 + $0x3c] ss:$2 sm:$0xf]  ;;  %3403 = vst [vmem:[#allocation5 + $0x18] sm:$0x30] %v3401_v40  ;;  %v3322_v17 = vrot.slane %v3320_v30, 6 }
 0x413   :  { %v3440_v12 = vpack.c.bf16 %v3439_v4, %v3439_v4  ;;  %v3331_v47 = vld [vmem:[#allocation3 + $0x16] ss:$2 sm:$0xf]  ;;  %3463 = vst [vmem:[#allocation5 + $0x18] sm:$0xc0] %v3461_v18  ;;  %v8090_v2 = vld [vmem:[#allocation10 + $0x1c8] sm:$0xff]  }
 0x414   :  { %v3382_v35 = vrot.slane %v3380_v0, 4  ;;  %v3332_v61 = vpack.c.bf16 %v3331_v47, %v3331_v47  ;;  %v3391_v36 = vld [vmem:[#allocation3 + $0x2a] ss:$2 sm:$0xf]  ;;  %3324 = vst [vmem:[#allocation5] sm:$0xc] %v3322_v17 }
 0x415   :  { %v3442_v57 = vrot.slane %v3440_v12, 2  ;;  %v3392_v56 = vpack.c.bf16 %v3391_v36, %v3391_v36  ;;  %v3451_v50 = vld [vmem:[#allocation3 + $0x3e] ss:$2 sm:$0xf]  ;;  %v8093_v12 = vld [vmem:[#allocation10 + $0x150] sm:$0xff]   ;;  %v8092_v36 = vld [vmem:[#allocation10 + $0x188] sm:$0xff]  }
 0x416   :  { %3384 = vst [vmem:[#allocation5] sm:$0x30] %v3382_v35  ;;  %v4619_v27 = vld [vmem:[#allocation4] ss:$2 sm:$0x3]  ;;  %v3334_v49 = vrot.slane %v3332_v61, 6  ;;  %v3452_v38 = vpack.c.bf16 %v3451_v50, %v3451_v50 }
 0x417   :  { %v3541_v29 = vld [vmem:[#allocation3 + $0x79] ss:$2 sm:$0xf]  ;;  %3444 = vst [vmem:[#allocation5] sm:$0xc0] %v3442_v57  ;;  %v3394_v14 = vrot.slane %v3392_v56, 4  ;;  %v4620_v1 = vpack.c.bf16 %v4619_v27, %v4619_v27 }
 0x418   :  { %v3542_v59 = vpack.c.bf16 %v3541_v29, %v3541_v29  ;;  %v3601_v13 = vld [vmem:[#allocation3 + $0x8d] ss:$2 sm:$0xf]  ;;  %v3716_v22 = vld [vmem:[#allocation5 + $0x8] sm:$0xff]  ;;  %3336 = vst [vmem:[#allocation5 + $0x10] sm:$0xc] %v3334_v49 }
 0x419   :  { %v3454_v20 = vrot.slane %v3452_v38, 2  ;;  %v3602_v9 = vpack.c.bf16 %v3601_v13, %v3601_v13  ;;  %v3661_v52 = vld [vmem:[#allocation3 + $0xa1] ss:$2 sm:$0xf]  ;;  %4341 = vmatprep.mubr.bf16.mxu1 %v3716_v22  ;;  %4625 = vst [vmem:[#allocation5 + $0x8] sm:$0x1] %v4624_v51 }
 0x41a   :  { %4727 = vst [vmem:[#allocation5 + $0x8] sm:$0x4] %v4725_v33  ;;  %3396 = vst [vmem:[#allocation5 + $0x10] sm:$0x30] %v3394_v14  ;;  %v3544_v60 = vrot.slane %v3542_v59, 6  ;;  %v3662_v63 = vpack.c.bf16 %v3661_v52, %v3661_v52  ;;  %v3718_v11 = vld [vmem:[#allocation5 + $0x18] sm:$0xff] }
 0x41b   :  { %v4627_v26 = vld [vmem:[#allocation4 + $0x2] ss:$2 sm:$0x3]  ;;  %v3512_v37 = vld [vmem:[#allocation3 + $0x6e] ss:$2 sm:$0xf]  ;;  %4390 = vmatprep.mubr.bf16.mxu0 %v3718_v11 }
 0x41c   :  { %3456 = vst [vmem:[#allocation5 + $0x10] sm:$0xc0] %v3454_v20  ;;  %v3604_v46 = vrot.slane %v3602_v9, 4  ;;  %v3513_v23 = vpack.c.bf16 %v3512_v37, %v3512_v37  ;;  %v3554_v55 = vld [vmem:[#allocation3 + $0x82] ss:$2 sm:$0xf]  ;;  %v4628_v15 = vpack.c.bf16 %v4627_v26, %v4627_v26 }
 0x41d   :  { %3546 = vst [vmem:[#allocation5 + $0x50] sm:$0xc] %v3544_v60  ;;  %v3664_v54 = vrot.slane %v3662_v63, 2  ;;  %v3555_v16 = vpack.c.bf16 %v3554_v55, %v3554_v55  ;;  %v3614_v62 = vld [vmem:[#allocation3 + $0x96] ss:$2 sm:$0xf] }
 0x41e   :  { %3606 = vst [vmem:[#allocation5 + $0x50] sm:$0x30] %v3604_v46  ;;  %3514 = vst [vmem:[#allocation5 + $0x60] sm:$0x3] %v3513_v23  ;;  %v3615_v31 = vpack.c.bf16 %v3614_v62, %v3614_v62  ;;  %v3715_v24 = vld [vmem:[#allocation5] sm:$0xff]  ;;  %v8097_v59 = vld [vmem:[#allocation10 + $0x158] sm:$0xff]  }
 0x41f   :  { %v3674_v21 = vld [vmem:[#allocation3 + $0xaa] ss:$2 sm:$0xf]  ;;  %v3535_v28 = vld [vmem:[#allocation3 + $0x78] ss:$2 sm:$0xf]  ;;  %4342 = vmatmul.mubr.bf16.vlgmr.msra.gmra.mrb[136].mxu1 %v3715_v24 }
 0x420   :  { %3666 = vst [vmem:[#allocation5 + $0x50] sm:$0xc0] %v3664_v54  ;;  %v3557_v48 = vrot.slane %v3555_v16, 6  ;;  %v3675_v45 = vpack.c.bf16 %v3674_v21, %v3674_v21  ;;  %v3536_v43 = vpack.c.bf16 %v3535_v28, %v3535_v28  ;;  %v3595_v5 = vld [vmem:[#allocation3 + $0x8c] ss:$2 sm:$0xf]  ;;  %7614 = vmatpush3.bf16.msra.mxu1 %v8087_v39 }
 0x421   :  { %v3617_v41 = vrot.slane %v3615_v31, 4  ;;  %v3596_v58 = vpack.c.bf16 %v3595_v5, %v3595_v5  ;;  %v3655_v53 = vld [vmem:[#allocation3 + $0xa0] ss:$2 sm:$0xf]  ;;  %4621 = vst [vmem:[#allocation5] sm:$0x1] %v4620_v1  ;;  %7615 = vmatprep.subr.bf16.mxu1 %v8089_v19 }
 0x422   :  { %4720 = vst [vmem:[#allocation5] sm:$0x4] %v4718_v44  ;;  %3559 = vst [vmem:[#allocation5 + $0x60] sm:$0xc] %v3557_v48  ;;  %v3677_v42 = vrot.slane %v3675_v45, 2  ;;  %v3538_v10 = vrot.slane %v3536_v43, 6  ;;  %v3656_v40 = vpack.c.bf16 %v3655_v53, %v3655_v53 }
 0x423   :  { %v3547_v30 = vld [vmem:[#allocation3 + $0x7a] ss:$2 sm:$0xf]  ;;  %3619 = vst [vmem:[#allocation5 + $0x60] sm:$0x30] %v3617_v41  ;;  %v3598_v18 = vrot.slane %v3596_v58, 4 }
 0x424   :  { %v3548_v0 = vpack.c.bf16 %v3547_v30, %v3547_v30  ;;  %v3607_v4 = vld [vmem:[#allocation3 + $0x8e] ss:$2 sm:$0xf]  ;;  %v3717_v17 = vld [vmem:[#allocation5 + $0x10] sm:$0xff]  ;;  %3679 = vst [vmem:[#allocation5 + $0x60] sm:$0xc0] %v3677_v42  ;;  %7616 = vmatpush3.bf16.msra.mxu1 %v8091_v6 }
 0x425   :  { %3540 = vst [vmem:[#allocation5 + $0x48] sm:$0xc] %v3538_v10  ;;  %v3658_v47 = vrot.slane %v3656_v40, 2  ;;  %v3608_v35 = vpack.c.bf16 %v3607_v4, %v3607_v4  ;;  %v3667_v61 = vld [vmem:[#allocation3 + $0xa2] ss:$2 sm:$0xf]  ;;  %4391 = vmatmul.mubr.bf16.vlgmr.msra.gmra.mrb[72].mxu0 %v3717_v17  ;;  %7617 = vmatprep.subr.bf16.mxu1 %v8093_v12 }
 0x426   :  { %4629 = vst [vmem:[#allocation5 + $0x10] sm:$0x1] %v4628_v15  ;;  %4734 = vst [vmem:[#allocation5 + $0x10] sm:$0x4] %v4732_v3  ;;  %v3550_v51 = vrot.slane %v3548_v0, 6  ;;  %v3668_v33 = vpack.c.bf16 %v3667_v61, %v3667_v61  ;;  %7642 = vmatpush3.bf16.msra.mxu0 %v8088_v8  ;;  %v8094_v56 = vld [vmem:[#allocation10 + $0x1d0] sm:$0xff]  }
 0x427   :  { %3600 = vst [vmem:[#allocation5 + $0x48] sm:$0x30] %v3598_v18  ;;  %v3304_v57 = vld [vmem:[#allocation3 + $0xc] ss:$2 sm:$0xf]  ;;  %v3610_v50 = vrot.slane %v3608_v35, 4  ;;  %7643 = vmatprep.subr.bf16.mxu0 %v8090_v2 }
 0x428   :  { %3660 = vst [vmem:[#allocation5 + $0x48] sm:$0xc0] %v3658_v47  ;;  %v3305_v27 = vpack.c.bf16 %v3304_v57, %v3304_v57  ;;  %v3352_v32 = vld [vmem:[#allocation3 + $0x20] ss:$2 sm:$0xf]  ;;  %v3670_v38 = vrot.slane %v3668_v33, 2  ;;  %7618 = vmatpush3.bf16.msra.mxu1 %v8095_v25 }
 0x429   :  { %v3725_v49 = vld [vmem:[#allocation5 + $0x50] sm:$0xff]  ;;  %3552 = vst [vmem:[#allocation5 + $0x58] sm:$0xc] %v3550_v51  ;;  %v3353_v29 = vpack.c.bf16 %v3352_v32, %v3352_v32  ;;  %v3412_v14 = vld [vmem:[#allocation3 + $0x34] ss:$2 sm:$0xf]  ;;  %7619 = vmatprep.subr.bf16.mxu1 %v8097_v59 }
 0x42a   :  { %4349 = vmatprep.mubr.bf16.mxu1 %v3725_v49  ;;  %3612 = vst [vmem:[#allocation5 + $0x58] sm:$0x30] %v3610_v50  ;;  %3306 = vst [vmem:[#allocation5 + $0x28] sm:$0x3] %v3305_v27  ;;  %v3413_v13 = vpack.c.bf16 %v3412_v14, %v3412_v14  ;;  %7644 = vmatpush3.bf16.msra.mxu0 %v8092_v36  ;;  %v8096_v63 = vld [vmem:[#allocation10 + $0x190] sm:$0xff]   ;;  %v8098_v46 = vld [vmem:[#allocation10 + $0x1d8] sm:$0xff]  }
 0x42b   :  { %v3472_v22 = vld [vmem:[#allocation3 + $0x48] ss:$2 sm:$0xf]  ;;  %v3312_v20 = vld [vmem:[#allocation3 + $0x15] ss:$2 sm:$0xf]  ;;  %7645 = vmatprep.subr.bf16.mxu0 %v8094_v56 }
 0x42c   :  { %3672 = vst [vmem:[#allocation5 + $0x58] sm:$0xc0] %v3670_v38  ;;  %v3355_v9 = vrot.slane %v3353_v29, 6  ;;  %v3473_v52 = vpack.c.bf16 %v3472_v22, %v3472_v22  ;;  %v3313_v26 = vpack.c.bf16 %v3312_v20, %v3312_v20  ;;  %v3366_v60 = vld [vmem:[#allocation3 + $0x29] ss:$2 sm:$0xf] }
 0x42d   :  { %v3415_v37 = vrot.slane %v3413_v13, 4  ;;  %v3367_v44 = vpack.c.bf16 %v3366_v60, %v3366_v60  ;;  %v3426_v34 = vld [vmem:[#allocation3 + $0x3d] ss:$2 sm:$0xf]  ;;  %v3727_v23 = vld [vmem:[#allocation5 + $0x60] sm:$0xff]  ;;  %v8105_v42 = vld [vmem:[#allocation10 + $0x168] sm:$0xff]  }
 0x42e   :  { %3357 = vst [vmem:[#allocation5 + $0x28] sm:$0xc] %v3355_v9  ;;  %v3475_v55 = vrot.slane %v3473_v52, 2  ;;  %3314 = vst [vmem:[#allocation5 + $0x38] sm:$0x3] %v3313_v26  ;;  %v3427_v11 = vpack.c.bf16 %v3426_v34, %v3426_v34  ;;  %v8099_v39 = vld [vmem:[#allocation10 + $0x118] sm:$0xff]   ;;  %4398 = vmatprep.mubr.bf16.mxu0 %v3727_v23  ;;  %7646 = vmatpush3.bf16.msra.mxu0 %v8096_v63 }
 0x42f   :  { %v3486_v1 = vld [vmem:[#allocation3 + $0x51] ss:$2 sm:$0xf]  ;;  %3417 = vst [vmem:[#allocation5 + $0x28] sm:$0x30] %v3415_v37  ;;  %v3369_v54 = vrot.slane %v3367_v44, 6  ;;  %7647 = vmatprep.subr.bf16.mxu0 %v8098_v46  ;;  %7620 = vmatpush3.bf16.msra.mxu1 %v8099_v39 }
 0x430   :  { %v3487_v16 = vpack.c.bf16 %v3486_v1, %v3486_v1  ;;  %v8101_v62 = vld [vmem:[#allocation10 + $0x160] sm:$0xff]   ;;  %v3300_v31 = vld [vmem:[#allocation3 + $0xb] ss:$2 sm:$0xf]  ;;  %v3724_v21 = vld [vmem:[#allocation5 + $0x48] sm:$0xff]  ;;  %v3429_v28 = vrot.slane %v3427_v11, 4 }
 0x431   :  { %3477 = vst [vmem:[#allocation5 + $0x28] sm:$0xc0] %v3475_v55  ;;  %v8100_v48 = vld [vmem:[#allocation10 + $0x198] sm:$0xff]   ;;  %v3301_v45 = vpack.c.bf16 %v3300_v31, %v3300_v31  ;;  %4350 = vmatmul.mubr.bf16.gmra.mrb[140].mxu1 %v3724_v21  ;;  %3371 = vst [vmem:[#allocation5 + $0x38] sm:$0xc] %v3369_v54  ;;  %v8102_v5 = vld [vmem:[#allocation10 + $0x1e0] sm:$0xff]   ;;  %7621 = vmatprep.subr.bf16.mxu1 %v8101_v62 }
 0x432   :  { %v3345_v19 = vld [vmem:[#allocation3 + $0x1f] ss:$2 sm:$0xf]  ;;  %v3489_v43 = vrot.slane %v3487_v16, 2  ;;  %3431 = vst [vmem:[#allocation5 + $0x38] sm:$0x30] %v3429_v28  ;;  %7648 = vmatpush3.bf16.msra.mxu0 %v8100_v48 }
 0x433   :  { %v8103_v24 = vld [vmem:[#allocation10 + $0x120] sm:$0xff]   ;;  %v3346_v15 = vpack.c.bf16 %v3345_v19, %v3345_v19  ;;  %v3405_v3 = vld [vmem:[#allocation3 + $0x33] ss:$2 sm:$0xf]  ;;  %3302 = vst [vmem:[#allocation5 + $0x20] sm:$0x3] %v3301_v45  ;;  %7649 = vmatprep.subr.bf16.mxu0 %v8102_v5 }
 0x434   :  { %v3406_v41 = vpack.c.bf16 %v3405_v3, %v3405_v3  ;;  %v3465_v58 = vld [vmem:[#allocation3 + $0x47] ss:$2 sm:$0xf]  ;;  %v3308_v53 = vld [vmem:[#allocation3 + $0x14] ss:$2 sm:$0xf]  ;;  %7622 = vmatpush3.bf16.msra.mxu1 %v8103_v24 }
 0x435   :  { %v3726_v8 = vld [vmem:[#allocation5 + $0x58] sm:$0xff]  ;;  %3491 = vst [vmem:[#allocation5 + $0x38] sm:$0xc0] %v3489_v43  ;;  %v3348_v10 = vrot.slane %v3346_v15, 6  ;;  %v3466_v40 = vpack.c.bf16 %v3465_v58, %v3465_v58  ;;  %v3309_v30 = vpack.c.bf16 %v3308_v53, %v3308_v53  ;;  %v8104_v4 = vld [vmem:[#allocation10 + $0x1a0] sm:$0xff]   ;;  %7623 = vmatprep.subr.bf16.mxu1 %v8105_v42  ;;  %v8109_v56 = vld [vmem:[#allocation10 + $0x170] sm:$0xff]  }
 0x436   :  { %v3359_v2 = vld [vmem:[#allocation3 + $0x28] ss:$2 sm:$0xf]  ;;  %4399 = vmatmul.mubr.bf16.gmra.mrb[76].mxu0 %v3726_v8  ;;  %v3408_v6 = vrot.slane %v3406_v41, 4  ;;  %v8110_v49 = vld [vmem:[#allocation10 + $0x1f0] sm:$0xff]   ;;  %v8113_v37 = vld [vmem:[#allocation10 + $0x178] sm:$0xff]  }
 0x437   :  { %v3360_v18 = vpack.c.bf16 %v3359_v2, %v3359_v2  ;;  %v3419_v0 = vld [vmem:[#allocation3 + $0x3c] ss:$2 sm:$0xf]  ;;  %3350 = vst [vmem:[#allocation5 + $0x20] sm:$0xc] %v3348_v10  ;;  %v3468_v17 = vrot.slane %v3466_v40, 2  ;;  %7650 = vmatpush3.bf16.msra.mxu0 %v8104_v4 }
 0x438   :  { %3310 = vst [vmem:[#allocation5 + $0x30] sm:$0x3] %v3309_v30  ;;  %v3420_v12 = vpack.c.bf16 %v3419_v0, %v3419_v0  ;;  %v3479_v47 = vld [vmem:[#allocation3 + $0x50] ss:$2 sm:$0xf]  ;;  %v8106_v35 = vld [vmem:[#allocation10 + $0x1e8] sm:$0xff]  }
 0x439   :  { %v8107_v61 = vld [vmem:[#allocation10 + $0x128] sm:$0xff]   ;;  %3410 = vst [vmem:[#allocation5 + $0x20] sm:$0x30] %v3408_v6  ;;  %v3362_v36 = vrot.slane %v3360_v18, 6  ;;  %v3480_v51 = vpack.c.bf16 %v3479_v47, %v3479_v47  ;;  %v3720_v57 = vld [vmem:[#allocation5 + $0x28] sm:$0xff]  ;;  %7651 = vmatprep.subr.bf16.mxu0 %v8106_v35  ;;  %v8111_v9 = vld [vmem:[#allocation10 + $0x130] sm:$0xff]  }
 0x43a   :  { %v3520_v33 = vld [vmem:[#allocation3 + $0x70] ss:$2 sm:$0xf]  ;;  %3470 = vst [vmem:[#allocation5 + $0x20] sm:$0xc0] %v3468_v17  ;;  %v3422_v50 = vrot.slane %v3420_v12, 4  ;;  %4439 = vmatprep.mubr.bf16.mxu1 %v3720_v57  ;;  %7624 = vmatpush3.bf16.msra.mxu1 %v8107_v61 }
 0x43b   :  { %v3521_v25 = vpack.c.bf16 %v3520_v33, %v3520_v33  ;;  %v3568_v27 = vld [vmem:[#allocation3 + $0x84] ss:$2 sm:$0xf]  ;;  %3364 = vst [vmem:[#allocation5 + $0x30] sm:$0xc] %v3362_v36  ;;  %v3482_v38 = vrot.slane %v3480_v51, 2  ;;  %7625 = vmatprep.subr.bf16.mxu1 %v8109_v56 }
 0x43c   :  { %v8108_v32 = vld [vmem:[#allocation10 + $0x1a8] sm:$0xff]   ;;  %v3569_v29 = vpack.c.bf16 %v3568_v27, %v3568_v27  ;;  %v3628_v14 = vld [vmem:[#allocation3 + $0x98] ss:$2 sm:$0xf]  ;;  %3424 = vst [vmem:[#allocation5 + $0x30] sm:$0x30] %v3422_v50 }
 0x43d   :  { %3522 = vst [vmem:[#allocation5 + $0x70] sm:$0x3] %v3521_v25  ;;  %v3629_v59 = vpack.c.bf16 %v3628_v14, %v3628_v14  ;;  %v3688_v13 = vld [vmem:[#allocation3 + $0xac] ss:$2 sm:$0xf]  ;;  %7652 = vmatpush3.bf16.msra.mxu0 %v8108_v32  ;;  %v8114_v62 = vld [vmem:[#allocation10 + $0x1f8] sm:$0xff]  }
 0x43e   :  { %v3528_v22 = vld [vmem:[#allocation3 + $0x79] ss:$2 sm:$0xf]  ;;  %v3722_v20 = vld [vmem:[#allocation5 + $0x38] sm:$0xff]  ;;  %3484 = vst [vmem:[#allocation5 + $0x30] sm:$0xc0] %v3482_v38  ;;  %v3689_v26 = vpack.c.bf16 %v3688_v13, %v3688_v13  ;;  %7653 = vmatprep.subr.bf16.mxu0 %v8110_v49  ;;  %7626 = vmatpush3.bf16.msra.mxu1 %v8111_v9 }
 0x43f   :  { %v3571_v52 = vrot.slane %v3569_v29, 6  ;;  %v3529_v60 = vpack.c.bf16 %v3528_v22, %v3528_v22  ;;  %v3582_v63 = vld [vmem:[#allocation3 + $0x8d] ss:$2 sm:$0xf]  ;;  %4488 = vmatprep.mubr.bf16.mxu0 %v3722_v20  ;;  %v3631_v44 = vrot.slane %v3629_v59, 4  ;;  %v8115_v31 = vld [vmem:[#allocation10 + $0x138] sm:$0xff]   ;;  %7627 = vmatprep.subr.bf16.mxu1 %v8113_v37 }
 0x440   :  { %v3583_v34 = vpack.c.bf16 %v3582_v63, %v3582_v63  ;;  %v3642_v46 = vld [vmem:[#allocation3 + $0xa1] ss:$2 sm:$0xf]  ;;  %v3691_v23 = vrot.slane %v3689_v26, 2  ;;  %v8112_v1 = vld [vmem:[#allocation10 + $0x1b0] sm:$0xff]   ;;  %v8116_v41 = vld [vmem:[#allocation10 + $0x1b8] sm:$0xff]  }
 0x441   :  { %3573 = vst [vmem:[#allocation5 + $0x70] sm:$0xc] %v3571_v52  ;;  %3530 = vst [vmem:[#allocation5 + $0x80] sm:$0x3] %v3529_v60  ;;  %v3643_v55 = vpack.c.bf16 %v3642_v46, %v3642_v46  ;;  %v8117_v45 = vld [vmem:[#allocation10 + $0x200] sm:$0xff]   ;;  %7654 = vmatpush3.bf16.msra.mxu0 %v8112_v1  ;;  %v8118_v2 = vld [vmem:[#allocation10 + $0x208] sm:$0xff]  }
 0x442   :  { %v3702_v11 = vld [vmem:[#allocation3 + $0xb5] ss:$2 sm:$0xf]  ;;  %3633 = vst [vmem:[#allocation5 + $0x70] sm:$0x30] %v3631_v44  ;;  %v3585_v39 = vrot.slane %v3583_v34, 6  ;;  %7655 = vmatprep.subr.bf16.mxu0 %v8114_v62  ;;  %7628 = vmatpush3.bf16.msra.mxu1 %v8115_v31 }
 0x443   :  { %v3703_v54 = vpack.c.bf16 %v3702_v11, %v3702_v11  ;;  %v3516_v16 = vld [vmem:[#allocation3 + $0x6f] ss:$2 sm:$0xf]  ;;  %3693 = vst [vmem:[#allocation5 + $0x70] sm:$0xc0] %v3691_v23  ;;  %v3645_v21 = vrot.slane %v3643_v55, 4  ;;  %7879 = vmatprep.subr.bf16.mxu1 %v8117_v45 }
 0x444   :  { %v3517_v28 = vpack.c.bf16 %v3516_v16, %v3516_v16  ;;  %v3561_v48 = vld [vmem:[#allocation3 + $0x83] ss:$2 sm:$0xf]  ;;  %3587 = vst [vmem:[#allocation5 + $0x80] sm:$0xc] %v3585_v39  ;;  %v3719_v4 = vld [vmem:[#allocation5 + $0x20] sm:$0xff] }
 0x445   :  { %v3705_v19 = vrot.slane %v3703_v54, 2  ;;  %v3562_v43 = vpack.c.bf16 %v3561_v48, %v3561_v48  ;;  %v3621_v5 = vld [vmem:[#allocation3 + $0x97] ss:$2 sm:$0xf]  ;;  %3647 = vst [vmem:[#allocation5 + $0x80] sm:$0x30] %v3645_v21  ;;  %7656 = vmatpush3.bf16.msra.mxu0 %v8116_v41  ;;  %4440 = vmatmul.mubr.bf16.vlgmr.msra.gmra.mrb[144].mxu1 %v3719_v4 }
 0x446   :  { %3518 = vst [vmem:[#allocation5 + $0x68] sm:$0x3] %v3517_v28  ;;  %v3622_v24 = vpack.c.bf16 %v3621_v5, %v3621_v5  ;;  %v3681_v15 = vld [vmem:[#allocation3 + $0xab] ss:$2 sm:$0xf]  ;;  %v3721_v33 = vld [vmem:[#allocation5 + $0x30] sm:$0xff]  ;;  %7880 = vmatpush3.bf16.msra.mxu1 %v8117_v45 }
 0x447   :  { %v3524_v3 = vld [vmem:[#allocation3 + $0x78] ss:$2 sm:$0xf]  ;;  %3707 = vst [vmem:[#allocation5 + $0x80] sm:$0xc0] %v3705_v19  ;;  %v3564_v58 = vrot.slane %v3562_v43, 6  ;;  %v3682_v53 = vpack.c.bf16 %v3681_v15, %v3681_v15  ;;  %7881 = vmatprep.subr.bf16.mxu1 %v8118_v2 }
 0x448   :  { %v3525_v8 = vpack.c.bf16 %v3524_v3, %v3524_v3  ;;  %v3575_v42 = vld [vmem:[#allocation3 + $0x8c] ss:$2 sm:$0xf]  ;;  %v3624_v10 = vrot.slane %v3622_v24, 4  ;;  %4489 = vmatmul.mubr.bf16.vlgmr.msra.gmra.mrb[80].mxu0 %v3721_v33  ;;  %v8120_v60 = vld [vmem:[#allocation10 + $0x218] sm:$0xff]   ;;  %v8121_v46 = vld [vmem:[#allocation10 + $0x220] sm:$0xff]  }
 0x449   :  { %v3576_v40 = vpack.c.bf16 %v3575_v42, %v3575_v42  ;;  %v3635_v30 = vld [vmem:[#allocation3 + $0xa0] ss:$2 sm:$0xf]  ;;  %3566 = vst [vmem:[#allocation5 + $0x68] sm:$0xc] %v3564_v58  ;;  %v3684_v6 = vrot.slane %v3682_v53, 2 }
 0x44a   :  { %3526 = vst [vmem:[#allocation5 + $0x78] sm:$0x3] %v3525_v8  ;;  %v3636_v18 = vpack.c.bf16 %v3635_v30, %v3635_v30  ;;  %v3695_v0 = vld [vmem:[#allocation3 + $0xb4] ss:$2 sm:$0xf]  ;;  %v3729_v35 = vld [vmem:[#allocation5 + $0x70] sm:$0xff]  ;;  %7882 = vmatpush3.bf16.msra.mxu1 %v8118_v2 }
 0x44b   :  { %3626 = vst [vmem:[#allocation5 + $0x68] sm:$0x30] %v3624_v10  ;;  %v3578_v17 = vrot.slane %v3576_v40, 6  ;;  %v3696_v12 = vpack.c.bf16 %v3695_v0, %v3695_v0  ;;  %v3316_v47 = vld [vmem:[#allocation3 + $0x16] ss:$2 sm:$0xf]  ;;  %4447 = vmatprep.mubr.bf16.mxu1 %v3729_v35 }
 0x44c   :  { %3686 = vst [vmem:[#allocation5 + $0x68] sm:$0xc0] %v3684_v6  ;;  %v3638_v61 = vrot.slane %v3636_v18, 4  ;;  %v3317_v36 = vpack.c.bf16 %v3316_v47, %v3316_v47  ;;  %v3373_v51 = vld [vmem:[#allocation3 + $0x2a] ss:$2 sm:$0xf] }
 0x44d   :  { %3580 = vst [vmem:[#allocation5 + $0x78] sm:$0xc] %v3578_v17  ;;  %v3698_v57 = vrot.slane %v3696_v12, 2  ;;  %v8119_v56 = vld [vmem:[#allocation10 + $0x210] sm:$0xff]   ;;  %v3374_v50 = vpack.c.bf16 %v3373_v51, %v3373_v51  ;;  %v8122_v55 = vld [vmem:[#allocation10 + $0x228] sm:$0xff]   ;;  %v8124_v1 = vld [vmem:[#allocation10 + $0x238] sm:$0xff]  }
 0x44e   :  { %v3433_v25 = vld [vmem:[#allocation3 + $0x3e] ss:$2 sm:$0xf]  ;;  %3640 = vst [vmem:[#allocation5 + $0x78] sm:$0x30] %v3638_v61  ;;  %v3731_v38 = vld [vmem:[#allocation5 + $0x80] sm:$0xff]  ;;  %7883 = vmatprep.subr.bf16.mxu1 %v8119_v56 }
 0x44f   :  { %3318 = vst [vmem:[#allocation5 + $0x40] sm:$0x3] %v3317_v36  ;;  %v3434_v27 = vpack.c.bf16 %v3433_v25, %v3433_v25  ;;  %v3493_v32 = vld [vmem:[#allocation3 + $0x52] ss:$2 sm:$0xf]  ;;  %v3376_v29 = vrot.slane %v3374_v50, 6  ;;  %4496 = vmatprep.mubr.bf16.mxu0 %v3731_v38  ;;  %7884 = vmatpush3.bf16.msra.mxu1 %v8119_v56 }
 0x450   :  { %v3532_v49 = vld [vmem:[#allocation3 + $0x7a] ss:$2 sm:$0xf]  ;;  %3700 = vst [vmem:[#allocation5 + $0x78] sm:$0xc0] %v3698_v57  ;;  %v3494_v14 = vpack.c.bf16 %v3493_v32, %v3493_v32  ;;  %7885 = vmatprep.subr.bf16.mxu1 %v8120_v60  ;;  %v8123_v11 = vld [vmem:[#allocation10 + $0x230] sm:$0xff]  }
 0x451   :  { %v3533_v59 = vpack.c.bf16 %v3532_v49, %v3532_v49  ;;  %v3589_v13 = vld [vmem:[#allocation3 + $0x8e] ss:$2 sm:$0xf]  ;;  %v3436_v22 = vrot.slane %v3434_v27, 4  ;;  %3378 = vst [vmem:[#allocation5 + $0x40] sm:$0xc] %v3376_v29 }
 0x452   :  { %v3590_v20 = vpack.c.bf16 %v3589_v13, %v3589_v13  ;;  %v3649_v9 = vld [vmem:[#allocation3 + $0xa2] ss:$2 sm:$0xf]  ;;  %v3496_v52 = vrot.slane %v3494_v14, 2  ;;  %v8130_v3 = vld [vmem:[%s10526_s10 + $0x14] ss:$8 sps:$4 sm:$0xff]  }
 0x453   :  { %3534 = vst [vmem:[#allocation5 + $0x88] sm:$0x3] %v3533_v59  ;;  %v3650_v26 = vpack.c.bf16 %v3649_v9, %v3649_v9  ;;  %3438 = vst [vmem:[#allocation5 + $0x40] sm:$0x30] %v3436_v22  ;;  %v3728_v37 = vld [vmem:[#allocation5 + $0x68] sm:$0xff]  ;;  %7886 = vmatpush3.bf16.msra.mxu1 %v8120_v60 }
 0x454   :  { %v3592_v63 = vrot.slane %v3590_v20, 6  ;;  %3498 = vst [vmem:[#allocation5 + $0x40] sm:$0xc0] %v3496_v52  ;;  %4448 = vmatmul.mubr.bf16.gmra.mrb[148].mxu1 %v3728_v37  ;;  %7887 = vmatprep.subr.bf16.mxu1 %v8121_v46  ;;  %v8125_v5 = vld [vmem:[%s10526_s10] ss:$8 sps:$4 sm:$0xff]  }
 0x455   :  { %v3652_v44 = vrot.slane %v3650_v26, 4  ;;  %v8127_v24 = vld [vmem:[%s10526_s10 + $0x4] ss:$8 sps:$4 sm:$0xff]   ;;  %v8128_v53 = vld [vmem:[%s10526_s10 + $0x10] ss:$8 sps:$4 sm:$0xff]  }
 0x456   :  { %3594 = vst [vmem:[#allocation5 + $0x88] sm:$0xc] %v3592_v63  ;;  %5710 = vmatprep.subr.bf16.mxu0 %v8127_v24  ;;  %v8133_v42 = vld [vmem:[%s10526_s10 + $0x24] ss:$8 sps:$4 sm:$0xff]   ;;  %v8131_v40 = vld [vmem:[%s10526_s10 + $0x20] ss:$8 sps:$4 sm:$0xff]  }
 0x457   :  { %3654 = vst [vmem:[#allocation5 + $0x88] sm:$0x30] %v3652_v44  ;;  %v3730_v34 = vld [vmem:[#allocation5 + $0x78] sm:$0xff]  ;;  %7888 = vmatpush3.bf16.msra.mxu1 %v8121_v46  ;;  %5711 = vmatpush1.bf16.msra.mxu0 %v8125_v5  ;;  %v8139_v36 = vld [vmem:[%s10526_s10 + $0x44] ss:$8 sps:$4 sm:$0xff]  }
 0x458   :  { %4497 = vmatmul.mubr.bf16.gmra.mrb[84].mxu0 %v3730_v34  ;;  %7889 = vmatprep.subr.bf16.mxu1 %v8122_v55  ;;  %v8136_v2 = vld [vmem:[%s10526_s10 + $0x34] ss:$8 sps:$4 sm:$0xff]   ;;  %v8134_v47 = vld [vmem:[%s10526_s10 + $0x30] ss:$8 sps:$4 sm:$0xff]   ;;  %v8137_v56 = vld [vmem:[%s10526_s10 + $0x40] ss:$8 sps:$4 sm:$0xff]  }
 0x459   :  { %5712 = vmatprep.subr.bf16.mxu0 %v8130_v3  ;;  %v8142_v25 = vld [vmem:[%s10526_s10 + $0x54] ss:$8 sps:$4 sm:$0xff]   ;;  %v8140_v27 = vld [vmem:[%s10526_s10 + $0x50] ss:$8 sps:$4 sm:$0xff]   ;;  %v8145_v32 = vld [vmem:[%s10526_s10 + $0x64] ss:$8 sps:$4 sm:$0xff]  }
 0x45a   :  { %v8143_v49 = vld [vmem:[%s10526_s10 + $0x60] ss:$8 sps:$4 sm:$0xff]   ;;  %v8148_v38 = vld [vmem:[%s10526_s10 + $0x74] ss:$8 sps:$4 sm:$0xff]   ;;  %v8146_v14 = vld [vmem:[%s10526_s10 + $0x70] ss:$8 sps:$4 sm:$0xff]  }
 0x45b   :  { %v3723_v23 = vld [vmem:[#allocation5 + $0x40] sm:$0xff]  ;;  %7890 = vmatpush3.bf16.msra.mxu1 %v8122_v55  ;;  %5713 = vmatpush1.bf16.msra.mxu0 %v8128_v53  ;;  %v8151_v13 = vld [vmem:[%s10526_s10 + $0x84] ss:$8 sps:$4 sm:$0xff]   ;;  %v8149_v37 = vld [vmem:[%s10526_s10 + $0x80] ss:$8 sps:$4 sm:$0xff]  }
 0x45c   :  { %7895 = vmatprep.mubr.bf16.mxu1 %v3723_v23  ;;  %7891 = vmatprep.subr.bf16.mxu1 %v8123_v11  ;;  %v8154_v46 = vld [vmem:[%s10526_s10 + $0x94] ss:$8 sps:$4 sm:$0xff]   ;;  %v8155_v24 = vld [vmem:[%s10526_s10 + $0xa0] ss:$8 sps:$4 sm:$0xff]  }
 0x45d   :  { %5714 = vmatprep.subr.bf16.mxu0 %v8133_v42 }
 0x45e   :  { %v3732_v39 = vld [vmem:[#allocation5 + $0x88] sm:$0xff] }
 0x45f   :  { %7892 = vmatpush3.bf16.msra.mxu1 %v8123_v11  ;;  %5715 = vmatpush1.bf16.msra.mxu0 %v8131_v40 }
 0x460   :  { %7893 = vmatprep.subr.bf16.mxu1 %v8124_v1  ;;  %5716 = vmatprep.subr.bf16.mxu0 %v8136_v2  ;;  %v8161_v2 = vld [vmem:[%s10526_s10 + $0xc0] ss:$8 sps:$4 sm:$0xff]  }
 0x463   :  { %7894 = vmatpush3.bf16.msra.mxu1 %v8124_v1  ;;  %5717 = vmatpush1.bf16.msra.mxu0 %v8134_v47  ;;  %v8170_v47 = vld [vmem:[%s10526_s10 + $0xf0] ss:$8 sps:$4 sm:$0xff]  }
 0x464   :  { %5718 = vmatprep.subr.bf16.mxu0 %v8139_v36  ;;  %v8175_v36 = vld [vmem:[%s10526_s10 + $0x104] ss:$8 sps:$4 sm:$0xff]  }
 0x466   :  { %7896 = vmatmul.mubr.bf16.vlgmr.msra.gmra.mrb[152].mxu1 %v3732_v39 }
 0x467   :  { %5719 = vmatpush1.bf16.msra.mxu0 %v8137_v56 }
 0x468   :  { %5720 = vmatprep.subr.bf16.mxu0 %v8142_v25 }
 0x46b   :  { %5721 = vmatpush1.bf16.msra.mxu0 %v8140_v27 }
 0x46c   :  { %5722 = vmatprep.subr.bf16.mxu0 %v8145_v32 }
 0x46f   :  { %5723 = vmatpush1.bf16.msra.mxu0 %v8143_v49 }
 0x470   :  { %5724 = vmatprep.subr.bf16.mxu0 %v8148_v38 }
 0x473   :  { %5725 = vmatpush1.bf16.msra.mxu0 %v8146_v14 }
 0x474   :  { %5726 = vmatprep.subr.bf16.mxu0 %v8151_v13 }
 0x477   :  { %5727 = vmatpush1.bf16.msra.mxu0 %v8149_v37 }
 0x478   :  { %5728 = vmatprep.subr.bf16.mxu0 %v8154_v46 }
 0x4f2   :  { %v7573_v54 = vpop.f32.mrb[136].mxu1 }
 0x4f3   :  { %v7574_v16 = vpop.f32.mrb[137].mxu1 }
 0x4f4   :  { %v7575_v62 = vadd.f32 %v7574_v16, %v7573_v54  ;;  %v7576_v31 = vpop.f32.mrb[138].mxu1  ;;  %v8152_v54 = vld [vmem:[%s10526_s10 + $0x90] ss:$8 sps:$4 sm:$0xff]  }
 0x4f5   :  { %v7577_v28 = vpop.f32.mrb[139].mxu1  ;;  %5729 = vmatpush1.bf16.msra.mxu0 %v8152_v54 }
 0x4f6   :  { %v7578_v45 = vadd.f32 %v7577_v28, %v7576_v31  ;;  %v8157_v31 = vld [vmem:[%s10526_s10 + $0xa4] ss:$8 sps:$4 sm:$0xff]  }
 0x4f7   :  { %5730 = vmatprep.subr.bf16.mxu0 %v8157_v31 }
 0x4f8   :  { %v7601_v21 = vpop.f32.mrb[72].mxu0 }
 0x4f9   :  { %v7602_v48 = vpop.f32.mrb[73].mxu0  ;;  %5731 = vmatpush1.bf16.msra.mxu0 %v8155_v24 }
 0x4fa   :  { %v7603_v19 = vadd.f32 %v7602_v48, %v7601_v21  ;;  %v7604_v43 = vpop.f32.mrb[74].mxu0 }
 0x4fb   :  { %v7605_v15 = vpop.f32.mrb[75].mxu0 }
 0x4fc   :  { %v4393_v41 = vadd.f32 %v7603_v19, %v7575_v62  ;;  %v7606_v58 = vadd.f32 %v7605_v15, %v7604_v43 }
 0x4fe   :  { %v4396_v8 = vadd.f32 %v7606_v58, %v7578_v45 }
 0x504   :  { %v7579_v10 = vpop.f32.mrb[140].mxu1 }
 0x505   :  { %v7580_v30 = vpop.f32.mrb[141].mxu1 }
 0x506   :  { %v7581_v6 = vadd.f32 %v7580_v30, %v7579_v10  ;;  %v7582_v18 = vpop.f32.mrb[142].mxu1  ;;  %v8158_v10 = vld [vmem:[%s10526_s10 + $0xb0] ss:$8 sps:$4 sm:$0xff]   ;;  %v8163_v30 = vld [vmem:[%s10526_s10 + $0xc4] ss:$8 sps:$4 sm:$0xff]  }
 0x507   :  { %v7583_v4 = vpop.f32.mrb[143].mxu1 }
 0x508   :  { %v7584_v12 = vadd.f32 %v7583_v4, %v7582_v18  ;;  %v8164_v18 = vld [vmem:[%s10526_s10 + $0xd0] ss:$8 sps:$4 sm:$0xff]   ;;  %v8167_v4 = vld [vmem:[%s10526_s10 + $0xe0] ss:$8 sps:$4 sm:$0xff]  }
 0x509   :  { %v7607_v0 = vpop.f32.mrb[76].mxu0 }
 0x50a   :  { %v7608_v17 = vpop.f32.mrb[77].mxu0 }
 0x50b   :  { %v7609_v35 = vadd.f32 %v7608_v17, %v7607_v0  ;;  %v7610_v61 = vpop.f32.mrb[78].mxu0  ;;  %v8169_v0 = vld [vmem:[%s10526_s10 + $0xe4] ss:$8 sps:$4 sm:$0xff]   ;;  %v8172_v17 = vld [vmem:[%s10526_s10 + $0xf4] ss:$8 sps:$4 sm:$0xff]  }
 0x50c   :  { %v7611_v51 = vpop.f32.mrb[79].mxu0 }
 0x50d   :  { %v4401_v33 = vadd.f32 %v7609_v35, %v7581_v6  ;;  %v7612_v57 = vadd.f32 %v7611_v51, %v7610_v61  ;;  %v8166_v6 = vld [vmem:[%s10526_s10 + $0xd4] ss:$8 sps:$4 sm:$0xff]  }
 0x50f   :  { %v4404_v50 = vadd.f32 %v7612_v57, %v7584_v12 }
 0x518   :  { %v7629_v29 = vpop.f32.mrb[144].mxu1 }
 0x519   :  { %v7630_v59 = vpop.f32.mrb[145].mxu1 }
 0x51a   :  { %v7631_v22 = vadd.f32 %v7630_v59, %v7629_v29  ;;  %v7632_v20 = vpop.f32.mrb[146].mxu1 }
 0x51b   :  { %v7657_v9 = vpop.f32.mrb[80].mxu0  ;;  %v7633_v52 = vpop.f32.mrb[147].mxu1 }
 0x51c   :  { %v4442_v26 = vadd.f32 %v7631_v22, %v4393_v41  ;;  %v7658_v60 = vpop.f32.mrb[81].mxu0  ;;  %v7634_v63 = vadd.f32 %v7633_v52, %v7632_v20  ;;  %v8160_v41 = vld [vmem:[%s10526_s10 + $0xb4] ss:$8 sps:$4 sm:$0xff]  }
 0x51d   :  { %v7659_v44 = vadd.f32 %v7658_v60, %v7657_v9  ;;  %v7660_v34 = vpop.f32.mrb[82].mxu0  ;;  %5732 = vmatprep.subr.bf16.mxu0 %v8160_v41 }
 0x51e   :  { %v4445_v23 = vadd.f32 %v7634_v63, %v4396_v8  ;;  %v7661_v55 = vpop.f32.mrb[83].mxu0  ;;  %5733 = vmatpush1.bf16.msra.mxu0 %v8158_v10 }
 0x51f   :  { %v7662_v11 = vadd.f32 %v7661_v55, %v7660_v34  ;;  %v4491_v1 = vadd.f32 %v7659_v44, %v4442_v26  ;;  %5734 = vmatprep.subr.bf16.mxu0 %v8163_v30 }
 0x521   :  { %v4494_v62 = vadd.f32 %v7662_v11, %v4445_v23 }
 0x522   :  { %5735 = vmatpush1.bf16.msra.mxu0 %v8161_v2 }
 0x523   :  { %5736 = vmatprep.subr.bf16.mxu0 %v8166_v6 }
 0x526   :  { %5737 = vmatpush1.bf16.msra.mxu0 %v8164_v18 }
 0x527   :  { %v7635_v39 = vpop.f32.mrb[148].mxu1  ;;  %5738 = vmatprep.subr.bf16.mxu0 %v8169_v0 }
 0x528   :  { %v7636_v16 = vpop.f32.mrb[149].mxu1 }
 0x529   :  { %v7637_v21 = vadd.f32 %v7636_v16, %v7635_v39  ;;  %v7638_v28 = vpop.f32.mrb[150].mxu1 }
 0x52a   :  { %v7639_v45 = vpop.f32.mrb[151].mxu1  ;;  %5739 = vmatpush1.bf16.msra.mxu0 %v8167_v4 }
 0x52b   :  { %v7663_v48 = vpop.f32.mrb[84].mxu0  ;;  %v4450_v19 = vadd.f32 %v7637_v21, %v4401_v33  ;;  %v7640_v5 = vadd.f32 %v7639_v45, %v7638_v28  ;;  %5740 = vmatprep.subr.bf16.mxu0 %v8172_v17  ;;  %v4584_v28 = vld [vmem:[%s10525_s9] sm:$0x1] }
 0x52c   :  { %v7664_v43 = vpop.f32.mrb[85].mxu0 }
 0x52d   :  { %v7665_v15 = vadd.f32 %v7664_v43, %v7663_v48  ;;  %v7666_v3 = vpop.f32.mrb[86].mxu0  ;;  %v4453_v58 = vadd.f32 %v7640_v5, %v4404_v50 }
 0x52e   :  { %v7667_v53 = vpop.f32.mrb[87].mxu0  ;;  %5741 = vmatpush1.bf16.msra.mxu0 %v8170_v47 }
 0x52f   :  { %v7668_v8 = vadd.f32 %v7667_v53, %v7666_v3  ;;  %v4499_v42 = vadd.f32 %v7665_v15, %v4450_v19  ;;  %5751 = vmatprep.subr.bf16.mxu0 %v8175_v36 }
 0x531   :  { %v4502_v40 = vadd.f32 %v7668_v8, %v4453_v58 }
 0x539   :  { %v7897_v12 = vpop.f32.mrb[152].mxu1 }
 0x53a   :  { %v4548_v35 = vadd.f32 %v7897_v12, %v4499_v42  ;;  %v4539_v61 = vpop.f32.mrb[153].mxu1 }
 0x53b   :  { %v4540_v51 = vadd.f32 %v4539_v61, %v4491_v1  ;;  %v7898_v33 = vpop.f32.mrb[154].mxu1 }
 0x53c   :  { %v4551_v57 = vadd.f32 %v7898_v33, %v4502_v40  ;;  %v4542_v56 = vpop.f32.mrb[155].mxu1  ;;  %v4565_v49 = vmul.f32 %v4548_v35, %v4548_v35 }
 0x53d   :  { %v4543_v50 = vadd.f32 %v4542_v56, %v4494_v62  ;;  %v4563_v25 = vmul.f32 %v4540_v51, %v4540_v51  ;;  %v4580_v62 = vld [vmem:[%s10524_s8] sm:$0x1] }
 0x53e   :  { %v4566_v14 = vmul.f32 %v4551_v57, %v4551_v57 }
 0x53f   :  { %v4554_v27 = vadd.f32 %v4543_v50, %v4540_v51  ;;  %v4564_v32 = vmul.f32 %v4543_v50, %v4543_v50 }
 0x541   :  { %v4555_v38 = vadd.f32 %v4554_v27, %v4548_v35  ;;  %v4567_v29 = vadd.f32 %v4564_v32, %v4563_v25 }
 0x543   :  { %v4556_v59 = vadd.f32 %v4555_v38, %v4551_v57  ;;  %v4568_v13 = vadd.f32 %v4567_v29, %v4565_v49 }
 0x545   :  { %v4557_v22 = vrot.slane %v4556_v59, 4  ;;  %v4569_v20 = vadd.f32 %v4568_v13, %v4566_v14 }
 0x547   :  { %v4558_v9 = vadd.f32 %v4557_v22, %v4556_v59  ;;  %v4570_v52 = vrot.slane %v4569_v20, 4 }
 0x549   :  { %v4559_v26 = vrot.slane %v4558_v9, 2  ;;  %v4571_v60 = vadd.f32 %v4570_v52, %v4569_v20 }
 0x54b   :  { %v4560_v63 = vadd.f32 %v4559_v26, %v4558_v9  ;;  %v4572_v37 = vrot.slane %v4571_v60, 2 }
 0x54d   :  { %v4561_v44 = vrot.slane %v4560_v63, 1  ;;  %v4573_v34 = vadd.f32 %v4572_v37, %v4571_v60 }
 0x54f   :  { %v4562_v46 = vadd.f32 %v4561_v44, %v4560_v63  ;;  %v4574_v23 = vrot.slane %v4573_v34, 1 }
 0x551   :  { %v4575_v55 = vadd.f32 %v4574_v23, %v4573_v34  ;;  %v4576_v11 = vmul.f32 0.03125, %v4562_v46 }
 0x553   :  { %v4577_v1 = vmul.f32 0.03125, %v4575_v55  ;;  %v4578_v39 = vmul.f32 %v4576_v11, %v4576_v11 }
 0x555   :  { %v4579_v54 = vsub.f32 %v4577_v1, %v4578_v39 }
 0x557   :  { %v4581_v16 = vadd.f32 1e-05, %v4579_v54 }
 0x559   :  { %8411 = vrsqrt.f32 %v4581_v16 }
 0x563   :  { %v8412_v31 = vpop.eup %8411 }
 0x564   :  { %v4583_v21 = vmul.f32 %v8412_v31, %v4580_v62 }
 0x566   :  { %v4585_v48 = vmul.f32 %v4583_v21, %v4576_v11  ;;  %v4591_v45 = vrot.slane %v4583_v21, %v10637_v7 }
 0x568   :  { %v4586_v19 = vsub.f32 %v4584_v28, %v4585_v48  ;;  %v4593_v43 = vmul.f32 %v4591_v45, %v4540_v51  ;;  %v4594_v5 = vmul.f32 %v4591_v45, %v4543_v50  ;;  %v4595_v24 = vmul.f32 %v4591_v45, %v4548_v35 }
 0x569   :  { %v4596_v15 = vmul.f32 %v4591_v45, %v4551_v57 }
 0x56a   :  { %v4601_v3 = vrot.slane %v4586_v19, %v10637_v7  ;;  %v8173_v19 = vld [vmem:[%s10526_s10 + $0x100] ss:$8 sps:$4 sm:$0xff]  }
 0x56c   :  { %v4603_v41 = vadd.f32 %v4601_v3, %v4593_v43  ;;  %v4604_v58 = vadd.f32 %v4601_v3, %v4594_v5  ;;  %v4605_v53 = vadd.f32 %v4601_v3, %v4595_v24  ;;  %v4606_v8 = vadd.f32 %v4601_v3, %v4596_v15  ;;  %v8178_v5 = vld [vmem:[%s10526_s10 + $0x114] ss:$8 sps:$4 sm:$0xff]  }
 0x56e   :  { %v4607_v42 = vmax.f32 %v4603_v41, 0.0  ;;  %v4608_v10 = vmax.f32 %v4604_v58, 0.0  ;;  %v4609_v40 = vmax.f32 %v4605_v53, 0.0  ;;  %v4610_v30 = vmax.f32 %v4606_v8, 0.0 }
 0x570   :  { %4611 = vst [vmem:[#allocation4 + $0x7] ss:$6 sps:$4 sm:$0xff] %v4607_v42   ;;  %4613 = vst [vmem:[#allocation4 + $0x13] ss:$6 sps:$4 sm:$0xff] %v4608_v10  }
 0x571   :  { %4615 = vst [vmem:[#allocation4 + $0x2b] ss:$6 sps:$4 sm:$0xff] %v4609_v40   ;;  %4617 = vst [vmem:[#allocation4 + $0x37] ss:$6 sps:$4 sm:$0xff] %v4610_v30  }
 0x577   :  { %v4673_v2 = vld [vmem:[#allocation4 + $0x12] ss:$2 sm:$0x3]  ;;  %v4680_v6 = vld [vmem:[#allocation4 + $0x13] ss:$2 sm:$0x3] }
 0x578   :  { %v4674_v18 = vpack.c.bf16 %v4673_v2, %v4673_v2  ;;  %v4681_v0 = vpack.c.bf16 %v4680_v6, %v4680_v6  ;;  %v4687_v4 = vld [vmem:[#allocation4 + $0x14] ss:$2 sm:$0x3]  ;;  %v4694_v17 = vld [vmem:[#allocation4 + $0x18] ss:$2 sm:$0x3] }
 0x579   :  { %v4688_v12 = vpack.c.bf16 %v4687_v4, %v4687_v4  ;;  %v4695_v47 = vpack.c.bf16 %v4694_v17, %v4694_v17  ;;  %v4701_v35 = vld [vmem:[#allocation4 + $0x19] ss:$2 sm:$0x3]  ;;  %v4708_v61 = vld [vmem:[#allocation4 + $0x1a] ss:$2 sm:$0x3] }
 0x57a   :  { %v4676_v36 = vrot.slane %v4674_v18, 7  ;;  %v4683_v51 = vrot.slane %v4681_v0, 7  ;;  %v4702_v33 = vpack.c.bf16 %v4701_v35, %v4701_v35  ;;  %v4709_v57 = vpack.c.bf16 %v4708_v61, %v4708_v61  ;;  %v4660_v56 = vld [vmem:[#allocation4 + $0xd] ss:$2 sm:$0x3] }
 0x57b   :  { %v4690_v50 = vrot.slane %v4688_v12, 7  ;;  %v4697_v25 = vrot.slane %v4695_v47, 7  ;;  %v4661_v27 = vpack.c.bf16 %v4660_v56, %v4660_v56  ;;  %v4783_v32 = vld [vmem:[#allocation4 + $0x31] ss:$2 sm:$0x3] }
 0x57c   :  { %v4704_v49 = vrot.slane %v4702_v33, 7  ;;  %v4711_v38 = vrot.slane %v4709_v57, 7  ;;  %4678 = vst [vmem:[#allocation5 + $0x18] sm:$0x2] %v4676_v36  ;;  %4685 = vst [vmem:[#allocation5 + $0x20] sm:$0x2] %v4683_v51  ;;  %v4784_v29 = vpack.c.bf16 %v4783_v32, %v4783_v32 }
 0x57d   :  { %v4654_v14 = vld [vmem:[#allocation4 + $0xc] ss:$2 sm:$0x3]  ;;  %4692 = vst [vmem:[#allocation5 + $0x28] sm:$0x2] %v4690_v50  ;;  %v4663_v59 = vrot.slane %v4661_v27, 7 }
 0x57e   :  { %4699 = vst [vmem:[#allocation5 + $0x30] sm:$0x2] %v4697_v25  ;;  %v4655_v13 = vpack.c.bf16 %v4654_v14, %v4654_v14  ;;  %v4777_v22 = vld [vmem:[#allocation4 + $0x30] ss:$2 sm:$0x3]  ;;  %v4786_v20 = vrot.slane %v4784_v29, 5 }
 0x57f   :  { %4706 = vst [vmem:[#allocation5 + $0x38] sm:$0x2] %v4704_v49  ;;  %4713 = vst [vmem:[#allocation5 + $0x40] sm:$0x2] %v4711_v38  ;;  %v4778_v9 = vpack.c.bf16 %v4777_v22, %v4777_v22  ;;  %v8176_v4 = vld [vmem:[%s10526_s10 + $0x110] ss:$8 sps:$4 sm:$0xff]  }
 0x580   :  { %v4631_v52 = vld [vmem:[#allocation4 + $0x6] ss:$2 sm:$0x3]  ;;  %4665 = vst [vmem:[#allocation5 + $0x8] sm:$0x2] %v4663_v59  ;;  %v4657_v26 = vrot.slane %v4655_v13, 7 }
 0x581   :  { %v4632_v60 = vpack.c.bf16 %v4631_v52, %v4631_v52  ;;  %v4736_v63 = vld [vmem:[#allocation4 + $0x2a] ss:$2 sm:$0x3]  ;;  %4788 = vst [vmem:[#allocation5 + $0x8] sm:$0x8] %v4786_v20  ;;  %v4780_v37 = vrot.slane %v4778_v9, 5 }
 0x582   :  { %v4737_v44 = vpack.c.bf16 %v4736_v63, %v4736_v63  ;;  %v4796_v34 = vld [vmem:[#allocation4 + $0x36] ss:$2 sm:$0x3]  ;;  %4659 = vst [vmem:[#allocation5] sm:$0x2] %v4657_v26 }
 0x583   :  { %4633 = vst [vmem:[#allocation5 + $0x18] sm:$0x1] %v4632_v60  ;;  %v4797_v46 = vpack.c.bf16 %v4796_v34, %v4796_v34  ;;  %v4666_v23 = vld [vmem:[#allocation4 + $0xe] ss:$2 sm:$0x3] }
 0x584   :  { %v4789_v55 = vld [vmem:[#allocation4 + $0x32] ss:$2 sm:$0x3]  ;;  %4782 = vst [vmem:[#allocation5] sm:$0x8] %v4780_v37  ;;  %v4739_v11 = vrot.slane %v4737_v44, 6  ;;  %v4667_v1 = vpack.c.bf16 %v4666_v23, %v4666_v23 }
 0x585   :  { %v4790_v39 = vpack.c.bf16 %v4789_v55, %v4789_v55  ;;  %v4639_v54 = vld [vmem:[#allocation4 + $0x8] ss:$2 sm:$0x3]  ;;  %v4799_v16 = vrot.slane %v4797_v46, 5  ;;  %v8181_v35 = vld [vmem:[%s10526_s10 + $0x124] ss:$8 sps:$4 sm:$0xff]  }
 0x586   :  { %v4640_v62 = vpack.c.bf16 %v4639_v54, %v4639_v54  ;;  %v4750_v31 = vld [vmem:[#allocation4 + $0x2c] ss:$2 sm:$0x3]  ;;  %4741 = vst [vmem:[#allocation5 + $0x18] sm:$0x4] %v4739_v11  ;;  %v4669_v21 = vrot.slane %v4667_v1, 7 }
 0x587   :  { %v4792_v28 = vrot.slane %v4790_v39, 5  ;;  %v4751_v48 = vpack.c.bf16 %v4750_v31, %v4750_v31  ;;  %v4810_v45 = vld [vmem:[#allocation4 + $0x38] ss:$2 sm:$0x3]  ;;  %4801 = vst [vmem:[#allocation5 + $0x18] sm:$0x8] %v4799_v16 }
 0x588   :  { %4641 = vst [vmem:[#allocation5 + $0x28] sm:$0x1] %v4640_v62  ;;  %v4811_v43 = vpack.c.bf16 %v4810_v45, %v4810_v45  ;;  %4671 = vst [vmem:[#allocation5 + $0x10] sm:$0x2] %v4669_v21  ;;  %v4838_v3 = vld [vmem:[#allocation5 + $0x8] sm:$0xf] }
 0x589   :  { %4794 = vst [vmem:[#allocation5 + $0x10] sm:$0x8] %v4792_v28  ;;  %v4753_v24 = vrot.slane %v4751_v48, 6  ;;  %v4635_v15 = vld [vmem:[#allocation4 + $0x7] ss:$2 sm:$0x3]  ;;  %5742 = vmatprep.mubr.bf16.mxu0 %v4838_v3 }
 0x58a   :  { %v4813_v41 = vrot.slane %v4811_v43, 5  ;;  %v4636_v58 = vpack.c.bf16 %v4635_v15, %v4635_v15  ;;  %v4743_v53 = vld [vmem:[#allocation4 + $0x2b] ss:$2 sm:$0x3]  ;;  %v8179_v50 = vld [vmem:[%s10526_s10 + $0x120] ss:$8 sps:$4 sm:$0xff]  }
 0x58b   :  { %4755 = vst [vmem:[#allocation5 + $0x28] sm:$0x4] %v4753_v24  ;;  %v4744_v8 = vpack.c.bf16 %v4743_v53, %v4743_v53  ;;  %v4803_v42 = vld [vmem:[#allocation4 + $0x37] ss:$2 sm:$0x3] }
 0x58c   :  { %v4647_v10 = vld [vmem:[#allocation4 + $0xd] ss:$2 sm:$0x3]  ;;  %v4837_v40 = vld [vmem:[#allocation5] sm:$0xf]  ;;  %v4804_v30 = vpack.c.bf16 %v4803_v42, %v4803_v42 }
 0x58d   :  { %4815 = vst [vmem:[#allocation5 + $0x28] sm:$0x8] %v4813_v41  ;;  %4637 = vst [vmem:[#allocation5 + $0x20] sm:$0x1] %v4636_v58  ;;  %v4648_v2 = vpack.c.bf16 %v4647_v10, %v4647_v10  ;;  %5743 = vmatmul.mubr.bf16.vlgmr.msra.gmra.mrb[88].mxu0 %v4837_v40  ;;  %v4746_v18 = vrot.slane %v4744_v8, 6 }
 0x58e   :  { %v4764_v6 = vld [vmem:[#allocation4 + $0x31] ss:$2 sm:$0x3]  ;;  %5752 = vmatpush1.bf16.msra.mxu0 %v8173_v19  ;;  %v4806_v17 = vrot.slane %v4804_v30, 5  ;;  %v4840_v47 = vld [vmem:[#allocation5 + $0x18] sm:$0xf] }
 0x58f   :  { %v4765_v0 = vpack.c.bf16 %v4764_v6, %v4764_v6  ;;  %4649 = vst [vmem:[#allocation5 + $0x38] sm:$0x1] %v4648_v2  ;;  %v4824_v12 = vld [vmem:[#allocation4 + $0x3d] ss:$2 sm:$0x3]  ;;  %5753 = vmatprep.subr.bf16.mxu0 %v8178_v5  ;;  %5783 = vmatprep.mubr.bf16.mxu0 %v4840_v47 }
 0x590   :  { %4748 = vst [vmem:[#allocation5 + $0x20] sm:$0x4] %v4746_v18  ;;  %v4825_v36 = vpack.c.bf16 %v4824_v12, %v4824_v12  ;;  %4808 = vst [vmem:[#allocation5 + $0x20] sm:$0x8] %v4806_v17  ;;  %v8184_v27 = vld [vmem:[%s10526_s10 + $0x134] ss:$8 sps:$4 sm:$0xff]  }
 0x591   :  { %v4767_v61 = vrot.slane %v4765_v0, 6  ;;  %v4643_v51 = vld [vmem:[#allocation4 + $0xc] ss:$2 sm:$0x3]  ;;  %v8182_v22 = vld [vmem:[%s10526_s10 + $0x130] ss:$8 sps:$4 sm:$0xff]  }
 0x592   :  { %v4827_v33 = vrot.slane %v4825_v36, 5  ;;  %v4644_v57 = vpack.c.bf16 %v4643_v51, %v4643_v51  ;;  %v4757_v56 = vld [vmem:[#allocation4 + $0x30] ss:$2 sm:$0x3]  ;;  %5754 = vmatpush1.bf16.msra.mxu0 %v8176_v4  ;;  %v8187_v26 = vld [vmem:[%s10526_s10 + $0x144] ss:$8 sps:$4 sm:$0xff]  }
 0x593   :  { %4769 = vst [vmem:[#allocation5 + $0x38] sm:$0x4] %v4767_v61  ;;  %v4758_v25 = vpack.c.bf16 %v4757_v56, %v4757_v56  ;;  %5755 = vmatprep.subr.bf16.mxu0 %v8181_v35  ;;  %v4817_v32 = vld [vmem:[#allocation4 + $0x3c] ss:$2 sm:$0x3] }
 0x594   :  { %4829 = vst [vmem:[#allocation5 + $0x38] sm:$0x8] %v4827_v33  ;;  %4645 = vst [vmem:[#allocation5 + $0x30] sm:$0x1] %v4644_v57  ;;  %v4818_v38 = vpack.c.bf16 %v4817_v32, %v4817_v32  ;;  %v8185_v37 = vld [vmem:[%s10526_s10 + $0x140] ss:$8 sps:$4 sm:$0xff]  }
 0x595   :  { %v4760_v49 = vrot.slane %v4758_v25, 6  ;;  %v4651_v29 = vld [vmem:[#allocation4 + $0xe] ss:$2 sm:$0x3]  ;;  %v8188_v34 = vld [vmem:[%s10526_s10 + $0x150] ss:$8 sps:$4 sm:$0xff]  }
 0x596   :  { %v4652_v14 = vpack.c.bf16 %v4651_v29, %v4651_v29  ;;  %v4771_v59 = vld [vmem:[#allocation4 + $0x32] ss:$2 sm:$0x3]  ;;  %v4831_v13 = vld [vmem:[#allocation4 + $0x3e] ss:$2 sm:$0x3]  ;;  %5756 = vmatpush1.bf16.msra.mxu0 %v8179_v50 }
 0x597   :  { %4762 = vst [vmem:[#allocation5 + $0x30] sm:$0x4] %v4760_v49  ;;  %v4820_v20 = vrot.slane %v4818_v38, 5  ;;  %v4772_v9 = vpack.c.bf16 %v4771_v59, %v4771_v59  ;;  %v4832_v52 = vpack.c.bf16 %v4831_v13, %v4831_v13  ;;  %5757 = vmatprep.subr.bf16.mxu0 %v8184_v27  ;;  %v8190_v44 = vld [vmem:[%s10526_s10 + $0x154] ss:$8 sps:$4 sm:$0xff]  }
 0x598   :  { %4653 = vst [vmem:[#allocation5 + $0x40] sm:$0x1] %v4652_v14  ;;  %v8193_v46 = vld [vmem:[%s10526_s10 + $0x164] ss:$8 sps:$4 sm:$0xff]   ;;  %v8191_v23 = vld [vmem:[%s10526_s10 + $0x160] ss:$8 sps:$4 sm:$0xff]  }
 0x599   :  { %4822 = vst [vmem:[#allocation5 + $0x30] sm:$0x8] %v4820_v20  ;;  %v4774_v60 = vrot.slane %v4772_v9, 6  ;;  %v4834_v63 = vrot.slane %v4832_v52, 5  ;;  %v8196_v55 = vld [vmem:[%s10526_s10 + $0x174] ss:$8 sps:$4 sm:$0xff]  }
 0x59a   :  { %5758 = vmatpush1.bf16.msra.mxu0 %v8182_v22  ;;  %v8194_v11 = vld [vmem:[%s10526_s10 + $0x170] ss:$8 sps:$4 sm:$0xff]   ;;  %v8199_v1 = vld [vmem:[%s10526_s10 + $0x184] ss:$8 sps:$4 sm:$0xff]   ;;  %v8197_v39 = vld [vmem:[%s10526_s10 + $0x180] ss:$8 sps:$4 sm:$0xff]  }
 0x59b   :  { %4776 = vst [vmem:[#allocation5 + $0x40] sm:$0x4] %v4774_v60  ;;  %4836 = vst [vmem:[#allocation5 + $0x40] sm:$0x8] %v4834_v63  ;;  %5759 = vmatprep.subr.bf16.mxu0 %v8187_v26  ;;  %v8202_v54 = vld [vmem:[%s10526_s10 + $0x194] ss:$8 sps:$4 sm:$0xff]  }
 0x59c   :  { %v8200_v16 = vld [vmem:[%s10526_s10 + $0x190] ss:$8 sps:$4 sm:$0xff]   ;;  %v8205_v62 = vld [vmem:[%s10526_s10 + $0x1a4] ss:$8 sps:$4 sm:$0xff]   ;;  %v8203_v31 = vld [vmem:[%s10526_s10 + $0x1a0] ss:$8 sps:$4 sm:$0xff]  }
 0x59d   :  { %v8208_v21 = vld [vmem:[%s10526_s10 + $0x1b4] ss:$8 sps:$4 sm:$0xff]   ;;  %v8206_v28 = vld [vmem:[%s10526_s10 + $0x1b0] ss:$8 sps:$4 sm:$0xff]   ;;  %v8211_v48 = vld [vmem:[%s10526_s10 + $0x1c4] ss:$8 sps:$4 sm:$0xff]  }
 0x59e   :  { %5760 = vmatpush1.bf16.msra.mxu0 %v8185_v37  ;;  %v8209_v45 = vld [vmem:[%s10526_s10 + $0x1c0] ss:$8 sps:$4 sm:$0xff]   ;;  %v8214_v19 = vld [vmem:[%s10526_s10 + $0x1d4] ss:$8 sps:$4 sm:$0xff]   ;;  %v8212_v43 = vld [vmem:[%s10526_s10 + $0x1d0] ss:$8 sps:$4 sm:$0xff]  }
 0x59f   :  { %5761 = vmatprep.subr.bf16.mxu0 %v8190_v44  ;;  %v8217_v5 = vld [vmem:[%s10526_s10 + $0x1e4] ss:$8 sps:$4 sm:$0xff]   ;;  %v8215_v24 = vld [vmem:[%s10526_s10 + $0x1e0] ss:$8 sps:$4 sm:$0xff]   ;;  %v8220_v15 = vld [vmem:[%s10526_s10 + $0x1f4] ss:$8 sps:$4 sm:$0xff]  }
 0x5a0   :  { %v8218_v3 = vld [vmem:[%s10526_s10 + $0x1f0] ss:$8 sps:$4 sm:$0xff]   ;;  %v8223_v41 = vld [vmem:[%s10526_s10 + $0x204] ss:$8 sps:$4 sm:$0xff]   ;;  %v8221_v58 = vld [vmem:[%s10526_s10 + $0x200] ss:$8 sps:$4 sm:$0xff]  }
 0x5a1   :  { %v8226_v53 = vld [vmem:[%s10526_s10 + $0x214] ss:$8 sps:$4 sm:$0xff]   ;;  %v4839_v8 = vld [vmem:[#allocation5 + $0x10] sm:$0xf]  ;;  %v4842_v42 = vld [vmem:[#allocation5 + $0x28] sm:$0xf] }
 0x5a2   :  { %5762 = vmatpush1.bf16.msra.mxu0 %v8188_v34  ;;  %v8224_v10 = vld [vmem:[%s10526_s10 + $0x210] ss:$8 sps:$4 sm:$0xff]   ;;  %v8229_v40 = vld [vmem:[%s10526_s10 + $0x224] ss:$8 sps:$4 sm:$0xff]   ;;  %v8227_v30 = vld [vmem:[%s10526_s10 + $0x220] ss:$8 sps:$4 sm:$0xff]  }
 0x5a3   :  { %5763 = vmatprep.subr.bf16.mxu0 %v8193_v46  ;;  %v8232_v2 = vld [vmem:[%s10526_s10 + $0x234] ss:$8 sps:$4 sm:$0xff]   ;;  %v8230_v6 = vld [vmem:[%s10526_s10 + $0x230] ss:$8 sps:$4 sm:$0xff]   ;;  %v8235_v18 = vld [vmem:[%s10526_s10 + $0x244] ss:$8 sps:$4 sm:$0xff]  }
 0x5a4   :  { %v8233_v0 = vld [vmem:[%s10526_s10 + $0x240] ss:$8 sps:$4 sm:$0xff]   ;;  %v8238_v4 = vld [vmem:[%s10526_s10 + $0x254] ss:$8 sps:$4 sm:$0xff]   ;;  %v8236_v17 = vld [vmem:[%s10526_s10 + $0x250] ss:$8 sps:$4 sm:$0xff]  }
 0x5a5   :  { %v8241_v12 = vld [vmem:[%s10526_s10 + $0x264] ss:$8 sps:$4 sm:$0xff]   ;;  %v8239_v47 = vld [vmem:[%s10526_s10 + $0x260] ss:$8 sps:$4 sm:$0xff]   ;;  %v8244_v35 = vld [vmem:[%s10526_s10 + $0x274] ss:$8 sps:$4 sm:$0xff]  }
 0x5a6   :  { %5764 = vmatpush1.bf16.msra.mxu0 %v8191_v23  ;;  %v8242_v61 = vld [vmem:[%s10526_s10 + $0x270] ss:$8 sps:$4 sm:$0xff]   ;;  %v8247_v36 = vld [vmem:[%s10526_s10 + $0x284] ss:$8 sps:$4 sm:$0xff]   ;;  %v8245_v51 = vld [vmem:[%s10526_s10 + $0x280] ss:$8 sps:$4 sm:$0xff]  }
 0x5a7   :  { %5765 = vmatprep.subr.bf16.mxu0 %v8196_v55  ;;  %v8250_v33 = vld [vmem:[%s10526_s10 + $0x294] ss:$8 sps:$4 sm:$0xff]   ;;  %v8248_v57 = vld [vmem:[%s10526_s10 + $0x290] ss:$8 sps:$4 sm:$0xff]   ;;  %v8253_v56 = vld [vmem:[%s10526_s10 + $0x2a4] ss:$8 sps:$4 sm:$0xff]  }
 0x5a8   :  { %v8251_v50 = vld [vmem:[%s10526_s10 + $0x2a0] ss:$8 sps:$4 sm:$0xff]   ;;  %v8256_v25 = vld [vmem:[%s10526_s10 + $0x2b4] ss:$8 sps:$4 sm:$0xff]   ;;  %v8254_v27 = vld [vmem:[%s10526_s10 + $0x2b0] ss:$8 sps:$4 sm:$0xff]  }
 0x5a9   :  { %v8259_v32 = vld [vmem:[%s10526_s10 + $0x2c4] ss:$8 sps:$4 sm:$0xff]   ;;  %v8257_v49 = vld [vmem:[%s10526_s10 + $0x2c0] ss:$8 sps:$4 sm:$0xff]   ;;  %v8262_v38 = vld [vmem:[%s10526_s10 + $0x2d4] ss:$8 sps:$4 sm:$0xff]  }
 0x5aa   :  { %5766 = vmatpush1.bf16.msra.mxu0 %v8194_v11  ;;  %v8260_v29 = vld [vmem:[%s10526_s10 + $0x2d0] ss:$8 sps:$4 sm:$0xff]   ;;  %v8265_v14 = vld [vmem:[%s10526_s10 + $0x2e4] ss:$8 sps:$4 sm:$0xff]   ;;  %v8263_v59 = vld [vmem:[%s10526_s10 + $0x2e0] ss:$8 sps:$4 sm:$0xff]  }
 0x5ab   :  { %5767 = vmatprep.subr.bf16.mxu0 %v8199_v1  ;;  %v8268_v13 = vld [vmem:[%s10526_s10 + $0x2f4] ss:$8 sps:$4 sm:$0xff]   ;;  %v8266_v22 = vld [vmem:[%s10526_s10 + $0x2f0] ss:$8 sps:$4 sm:$0xff]   ;;  %v8271_v20 = vld [vmem:[%s10526_s10 + $0x304] ss:$8 sps:$4 sm:$0xff]  }
 0x5ac   :  { %v8269_v9 = vld [vmem:[%s10526_s10 + $0x300] ss:$8 sps:$4 sm:$0xff]   ;;  %v8274_v52 = vld [vmem:[%s10526_s10 + $0x314] ss:$8 sps:$4 sm:$0xff]   ;;  %v4841_v26 = vld [vmem:[#allocation5 + $0x20] sm:$0xf] }
 0x5ad   :  { %v4844_v60 = vld [vmem:[#allocation5 + $0x38] sm:$0xf]  ;;  %v8277_v37 = vld [vmem:[%s10526_s10 + $0x324] ss:$8 sps:$4 sm:$0xff]   ;;  %v8275_v44 = vld [vmem:[%s10526_s10 + $0x320] ss:$8 sps:$4 sm:$0xff]  }
 0x5ae   :  { %5768 = vmatpush1.bf16.msra.mxu0 %v8197_v39  ;;  %v8272_v63 = vld [vmem:[%s10526_s10 + $0x310] ss:$8 sps:$4 sm:$0xff]   ;;  %v8280_v34 = vld [vmem:[%s10526_s10 + $0x334] ss:$8 sps:$4 sm:$0xff]   ;;  %v8283_v23 = vld [vmem:[%s10526_s10 + $0x344] ss:$8 sps:$4 sm:$0xff]  }
 0x5af   :  { %5769 = vmatprep.subr.bf16.mxu0 %v8202_v54  ;;  %v8278_v46 = vld [vmem:[%s10526_s10 + $0x330] ss:$8 sps:$4 sm:$0xff]   ;;  %v8281_v55 = vld [vmem:[%s10526_s10 + $0x340] ss:$8 sps:$4 sm:$0xff]   ;;  %v8286_v11 = vld [vmem:[%s10526_s10 + $0x354] ss:$8 sps:$4 sm:$0xff]  }
 0x5b0   :  { %v8284_v1 = vld [vmem:[%s10526_s10 + $0x350] ss:$8 sps:$4 sm:$0xff]   ;;  %v8289_v39 = vld [vmem:[%s10526_s10 + $0x364] ss:$8 sps:$4 sm:$0xff]   ;;  %v8287_v54 = vld [vmem:[%s10526_s10 + $0x360] ss:$8 sps:$4 sm:$0xff]  }
 0x5b2   :  { %5770 = vmatpush1.bf16.msra.mxu0 %v8200_v16  ;;  %v8292_v16 = vld [vmem:[%s10526_s10 + $0x374] ss:$8 sps:$4 sm:$0xff]  }
 0x5b3   :  { %5771 = vmatprep.subr.bf16.mxu0 %v8205_v62  ;;  %v8290_v62 = vld [vmem:[%s10526_s10 + $0x370] ss:$8 sps:$4 sm:$0xff]  }
 0x5b6   :  { %5772 = vmatpush1.bf16.msra.mxu0 %v8203_v31  ;;  %v8295_v31 = vld [vmem:[%s10526_s10 + $0x384] ss:$8 sps:$4 sm:$0xff]  }
 0x5b7   :  { %5773 = vmatprep.subr.bf16.mxu0 %v8208_v21  ;;  %v8293_v21 = vld [vmem:[%s10526_s10 + $0x380] ss:$8 sps:$4 sm:$0xff]  }
 0x5ba   :  { %5774 = vmatpush1.bf16.msra.mxu0 %v8206_v28  ;;  %v8298_v28 = vld [vmem:[%s10526_s10 + $0x394] ss:$8 sps:$4 sm:$0xff]  }
 0x5bb   :  { %5775 = vmatprep.subr.bf16.mxu0 %v8211_v48  ;;  %v8296_v48 = vld [vmem:[%s10526_s10 + $0x390] ss:$8 sps:$4 sm:$0xff]  }
 0x5be   :  { %5776 = vmatpush1.bf16.msra.mxu0 %v8209_v45  ;;  %v8301_v45 = vld [vmem:[%s10526_s10 + $0x3a4] ss:$8 sps:$4 sm:$0xff]  }
 0x5bf   :  { %5777 = vmatprep.subr.bf16.mxu0 %v8214_v19  ;;  %v8299_v19 = vld [vmem:[%s10526_s10 + $0x3a0] ss:$8 sps:$4 sm:$0xff]  }
 0x5c2   :  { %5778 = vmatpush1.bf16.msra.mxu0 %v8212_v43  ;;  %v8304_v43 = vld [vmem:[%s10526_s10 + $0x3b4] ss:$8 sps:$4 sm:$0xff]  }
 0x5c3   :  { %5779 = vmatprep.subr.bf16.mxu0 %v8217_v5  ;;  %v8302_v5 = vld [vmem:[%s10526_s10 + $0x3b0] ss:$8 sps:$4 sm:$0xff]  }
 0x5c6   :  { %5780 = vmatpush1.bf16.msra.mxu0 %v8215_v24  ;;  %v8307_v24 = vld [vmem:[%s10526_s10 + $0x3c4] ss:$8 sps:$4 sm:$0xff]  }
 0x5c7   :  { %5781 = vmatprep.subr.bf16.mxu0 %v8220_v15  ;;  %v8305_v15 = vld [vmem:[%s10526_s10 + $0x3c0] ss:$8 sps:$4 sm:$0xff]  }
 0x5ca   :  { %5782 = vmatpush1.bf16.msra.mxu0 %v8218_v3  ;;  %v8310_v3 = vld [vmem:[%s10526_s10 + $0x3d4] ss:$8 sps:$4 sm:$0xff]  }
 0x5cb   :  { %5792 = vmatprep.subr.bf16.mxu0 %v8223_v41  ;;  %v8308_v41 = vld [vmem:[%s10526_s10 + $0x3d0] ss:$8 sps:$4 sm:$0xff]  }
 0x5cd   :  { %5784 = vmatmul.mubr.bf16.vlgmr.msra.gmra.mrb[88].mxu0 %v4839_v8  ;;  %v8316_v8 = vld [vmem:[%s10526_s10 + $0x3f4] ss:$8 sps:$4 sm:$0xff]  }
 0x5ce   :  { %5793 = vmatpush1.bf16.msra.mxu0 %v8221_v58  ;;  %5824 = vmatprep.mubr.bf16.mxu0 %v4842_v42  ;;  %v8313_v58 = vld [vmem:[%s10526_s10 + $0x3e4] ss:$8 sps:$4 sm:$0xff]   ;;  %v8314_v42 = vld [vmem:[%s10526_s10 + $0x3f0] ss:$8 sps:$4 sm:$0xff]  }
 0x5cf   :  { %5794 = vmatprep.subr.bf16.mxu0 %v8226_v53  ;;  %v8311_v53 = vld [vmem:[%s10526_s10 + $0x3e0] ss:$8 sps:$4 sm:$0xff]  }
 0x5d2   :  { %5795 = vmatpush1.bf16.msra.mxu0 %v8224_v10  ;;  %v8319_v10 = vld [vmem:[%s10526_s10 + $0x404] ss:$8 sps:$4 sm:$0xff]  }
 0x5d3   :  { %5796 = vmatprep.subr.bf16.mxu0 %v8229_v40  ;;  %v8317_v40 = vld [vmem:[%s10526_s10 + $0x400] ss:$8 sps:$4 sm:$0xff]  }
 0x5d6   :  { %5797 = vmatpush1.bf16.msra.mxu0 %v8227_v30  ;;  %v8322_v30 = vld [vmem:[%s10526_s10 + $0x414] ss:$8 sps:$4 sm:$0xff]  }
 0x5d7   :  { %5798 = vmatprep.subr.bf16.mxu0 %v8232_v2  ;;  %v4843_v2 = vld [vmem:[#allocation5 + $0x30] sm:$0xf] }
 0x5da   :  { %5799 = vmatpush1.bf16.msra.mxu0 %v8230_v6  ;;  %v8320_v6 = vld [vmem:[%s10526_s10 + $0x410] ss:$8 sps:$4 sm:$0xff]  }
 0x5db   :  { %5800 = vmatprep.subr.bf16.mxu0 %v8235_v18  ;;  %v8517_v18 = vmov 0  }
 0x5de   :  { %5801 = vmatpush1.bf16.msra.mxu0 %v8233_v0  ;;  %v8325_v0 = vld [vmem:[%s10526_s10 + $0x424] ss:$8 sps:$4 sm:$0xff]  }
 0x5df   :  { %5802 = vmatprep.subr.bf16.mxu0 %v8238_v4  ;;  %v8323_v4 = vld [vmem:[%s10526_s10 + $0x420] ss:$8 sps:$4 sm:$0xff]  }
 0x5e2   :  { %5803 = vmatpush1.bf16.msra.mxu0 %v8236_v17  ;;  %v8328_v17 = vld [vmem:[%s10526_s10 + $0x434] ss:$8 sps:$4 sm:$0xff]  }
 0x5e3   :  { %5804 = vmatprep.subr.bf16.mxu0 %v8241_v12  ;;  %v8326_v12 = vld [vmem:[%s10526_s10 + $0x430] ss:$8 sps:$4 sm:$0xff]  }
 0x5e6   :  { %5805 = vmatpush1.bf16.msra.mxu0 %v8239_v47  ;;  %v8331_v47 = vld [vmem:[%s10526_s10 + $0x444] ss:$8 sps:$4 sm:$0xff]  }
 0x5e7   :  { %5806 = vmatprep.subr.bf16.mxu0 %v8244_v35  ;;  %v8329_v35 = vld [vmem:[%s10526_s10 + $0x440] ss:$8 sps:$4 sm:$0xff]  }
 0x5ea   :  { %5807 = vmatpush1.bf16.msra.mxu0 %v8242_v61  ;;  %v8334_v61 = vld [vmem:[%s10526_s10 + $0x454] ss:$8 sps:$4 sm:$0xff]  }
 0x5eb   :  { %5808 = vmatprep.subr.bf16.mxu0 %v8247_v36  ;;  %v8332_v36 = vld [vmem:[%s10526_s10 + $0x450] ss:$8 sps:$4 sm:$0xff]  }
 0x5ee   :  { %5809 = vmatpush1.bf16.msra.mxu0 %v8245_v51  ;;  %v8337_v51 = vld [vmem:[%s10526_s10 + $0x464] ss:$8 sps:$4 sm:$0xff]  }
 0x5ef   :  { %5810 = vmatprep.subr.bf16.mxu0 %v8250_v33  ;;  %v8335_v33 = vld [vmem:[%s10526_s10 + $0x460] ss:$8 sps:$4 sm:$0xff]  }
 0x5f2   :  { %5811 = vmatpush1.bf16.msra.mxu0 %v8248_v57  ;;  %v8340_v57 = vld [vmem:[%s10526_s10 + $0x474] ss:$8 sps:$4 sm:$0xff]  }
 0x5f3   :  { %5812 = vmatprep.subr.bf16.mxu0 %v8253_v56  ;;  %v8338_v56 = vld [vmem:[%s10526_s10 + $0x470] ss:$8 sps:$4 sm:$0xff]  }
 0x5f6   :  { %5813 = vmatpush1.bf16.msra.mxu0 %v8251_v50  ;;  %v4845_v50 = vld [vmem:[#allocation5 + $0x40] sm:$0xf] }
 0x5f7   :  { %5814 = vmatprep.subr.bf16.mxu0 %v8256_v25  ;;  %v8341_v25 = vld [vmem:[#allocation12 + $0x40] sm:$0xff]  }
 0x5f8   :  { %7679 = vmatprep.subr.bf16.mxu1 %v8341_v25 }
 0x5fa   :  { %5815 = vmatpush1.bf16.msra.mxu0 %v8254_v27  ;;  %v8342_v27 = vld [vmem:[#allocation12] sm:$0xff]  }
 0x5fb   :  { %5816 = vmatprep.subr.bf16.mxu0 %v8259_v32  ;;  %v8343_v32 = vld [vmem:[#allocation12 + $0x48] sm:$0xff]   ;;  %7680 = vmatpush3.bf16.msra.mxu1 %v8342_v27 }
 0x5fc   :  { %7681 = vmatprep.subr.bf16.mxu1 %v8343_v32 }
 0x5fe   :  { %5817 = vmatpush1.bf16.msra.mxu0 %v8257_v49  ;;  %v8344_v49 = vld [vmem:[#allocation12 + $0x8] sm:$0xff]  }
 0x5ff   :  { %5818 = vmatprep.subr.bf16.mxu0 %v8262_v38  ;;  %v8345_v38 = vld [vmem:[#allocation12 + $0x50] sm:$0xff]   ;;  %7682 = vmatpush3.bf16.msra.mxu1 %v8344_v49  ;;  %v5949_v49 = vld [vmem:[%s10527_s11] sm:$0x3] }
 0x600   :  { %7683 = vmatprep.subr.bf16.mxu1 %v8345_v38 }
 0x602   :  { %5819 = vmatpush1.bf16.msra.mxu0 %v8260_v29  ;;  %v8346_v29 = vld [vmem:[#allocation12 + $0x10] sm:$0xff]  }
 0x603   :  { %5820 = vmatprep.subr.bf16.mxu0 %v8265_v14  ;;  %v8347_v14 = vld [vmem:[#allocation12 + $0x58] sm:$0xff]   ;;  %7684 = vmatpush3.bf16.msra.mxu1 %v8346_v29 }
 0x604   :  { %7685 = vmatprep.subr.bf16.mxu1 %v8347_v14 }
 0x606   :  { %5821 = vmatpush1.bf16.msra.mxu0 %v8263_v59  ;;  %v8348_v59 = vld [vmem:[#allocation12 + $0x18] sm:$0xff]  }
 0x607   :  { %5822 = vmatprep.subr.bf16.mxu0 %v8268_v13  ;;  %v8349_v13 = vld [vmem:[#allocation12 + $0x60] sm:$0xff]   ;;  %7686 = vmatpush3.bf16.msra.mxu1 %v8348_v59 }
 0x608   :  { %7687 = vmatprep.subr.bf16.mxu1 %v8349_v13 }
 0x60a   :  { %5823 = vmatpush1.bf16.msra.mxu0 %v8266_v22  ;;  %v8350_v22 = vld [vmem:[#allocation12 + $0x20] sm:$0xff]  }
 0x60b   :  { %5833 = vmatprep.subr.bf16.mxu0 %v8271_v20  ;;  %v8351_v20 = vld [vmem:[#allocation12 + $0x68] sm:$0xff]   ;;  %7688 = vmatpush3.bf16.msra.mxu1 %v8350_v22 }
 0x60c   :  { %7689 = vmatprep.subr.bf16.mxu1 %v8351_v20 }
 0x60d   :  { %5825 = vmatmul.mubr.bf16.vlgmr.msra.gmra.mrb[88].mxu0 %v4841_v26  ;;  %v8354_v26 = vld [vmem:[#allocation12 + $0x30] sm:$0xff]  }
 0x60e   :  { %5834 = vmatpush1.bf16.msra.mxu0 %v8269_v9  ;;  %5865 = vmatprep.mubr.bf16.mxu0 %v4844_v60  ;;  %v8352_v9 = vld [vmem:[#allocation12 + $0x28] sm:$0xff]   ;;  %v8355_v60 = vld [vmem:[#allocation12 + $0x78] sm:$0xff]  }
 0x60f   :  { %5835 = vmatprep.subr.bf16.mxu0 %v8274_v52  ;;  %v8353_v52 = vld [vmem:[#allocation12 + $0x70] sm:$0xff]   ;;  %7690 = vmatpush3.bf16.msra.mxu1 %v8352_v9 }
 0x610   :  { %7691 = vmatprep.subr.bf16.mxu1 %v8353_v52 }
 0x612   :  { %5836 = vmatpush1.bf16.msra.mxu0 %v8272_v63  ;;  %v8356_v63 = vld [vmem:[#allocation12 + $0x38] sm:$0xff]  }
 0x613   :  { %5837 = vmatprep.subr.bf16.mxu0 %v8277_v37  ;;  %7692 = vmatpush3.bf16.msra.mxu1 %v8354_v26  ;;  %v8357_v37 = vld [vmem:[#allocation12 + $0xc0] sm:$0xff]  }
 0x614   :  { %7693 = vmatprep.subr.bf16.mxu1 %v8355_v60 }
 0x616   :  { %5838 = vmatpush1.bf16.msra.mxu0 %v8275_v44 }
 0x617   :  { %5839 = vmatprep.subr.bf16.mxu0 %v8280_v34  ;;  %7694 = vmatpush3.bf16.msra.mxu1 %v8356_v63  ;;  %v5973_v63 = vld [vmem:[%s10528_s12] sm:$0x3] }
 0x618   :  { %7701 = vmatprep.subr.bf16.mxu1 %v8357_v37 }
 0x61a   :  { %5840 = vmatpush1.bf16.msra.mxu0 %v8278_v46 }
 0x61b   :  { %5841 = vmatprep.subr.bf16.mxu0 %v8283_v23 }
 0x61e   :  { %5842 = vmatpush1.bf16.msra.mxu0 %v8281_v55 }
 0x61f   :  { %5843 = vmatprep.subr.bf16.mxu0 %v8286_v11 }
 0x622   :  { %5844 = vmatpush1.bf16.msra.mxu0 %v8284_v1 }
 0x623   :  { %5845 = vmatprep.subr.bf16.mxu0 %v8289_v39 }
 0x626   :  { %5846 = vmatpush1.bf16.msra.mxu0 %v8287_v54 }
 0x627   :  { %5847 = vmatprep.subr.bf16.mxu0 %v8292_v16 }
 0x62a   :  { %5848 = vmatpush1.bf16.msra.mxu0 %v8290_v62 }
 0x62b   :  { %5849 = vmatprep.subr.bf16.mxu0 %v8295_v31 }
 0x62e   :  { %5850 = vmatpush1.bf16.msra.mxu0 %v8293_v21 }
 0x62f   :  { %5851 = vmatprep.subr.bf16.mxu0 %v8298_v28 }
 0x632   :  { %5852 = vmatpush1.bf16.msra.mxu0 %v8296_v48 }
 0x633   :  { %5853 = vmatprep.subr.bf16.mxu0 %v8301_v45 }
 0x636   :  { %5854 = vmatpush1.bf16.msra.mxu0 %v8299_v19 }
 0x637   :  { %5855 = vmatprep.subr.bf16.mxu0 %v8304_v43 }
 0x63a   :  { %5856 = vmatpush1.bf16.msra.mxu0 %v8302_v5 }
 0x63b   :  { %5857 = vmatprep.subr.bf16.mxu0 %v8307_v24 }
 0x63e   :  { %5858 = vmatpush1.bf16.msra.mxu0 %v8305_v15 }
 0x63f   :  { %5859 = vmatprep.subr.bf16.mxu0 %v8310_v3 }
 0x642   :  { %5860 = vmatpush1.bf16.msra.mxu0 %v8308_v41 }
 0x643   :  { %5861 = vmatprep.subr.bf16.mxu0 %v8313_v58 }
 0x646   :  { %5862 = vmatpush1.bf16.msra.mxu0 %v8311_v53 }
 0x647   :  { %5863 = vmatprep.subr.bf16.mxu0 %v8316_v8 }
 0x64a   :  { %5864 = vmatpush1.bf16.msra.mxu0 %v8314_v42 }
 0x64b   :  { %5874 = vmatprep.subr.bf16.mxu0 %v8319_v10 }
 0x64d   :  { %5866 = vmatmul.mubr.bf16.vlgmr.msra.gmra.mrb[88].mxu0 %v4843_v2 }
 0x64e   :  { %5875 = vmatpush1.bf16.msra.mxu0 %v8317_v40  ;;  %5906 = vmatprep.mubr.bf16.mxu0 %v8517_v18 }
 0x64f   :  { %5876 = vmatprep.subr.bf16.mxu0 %v8322_v30 }
 0x652   :  { %5877 = vmatpush1.bf16.msra.mxu0 %v8320_v6 }
 0x653   :  { %5878 = vmatprep.subr.bf16.mxu0 %v8325_v0 }
 0x656   :  { %5879 = vmatpush1.bf16.msra.mxu0 %v8323_v4 }
 0x657   :  { %5880 = vmatprep.subr.bf16.mxu0 %v8328_v17 }
 0x65a   :  { %5881 = vmatpush1.bf16.msra.mxu0 %v8326_v12 }
 0x65b   :  { %5882 = vmatprep.subr.bf16.mxu0 %v8331_v47 }
 0x65e   :  { %5883 = vmatpush1.bf16.msra.mxu0 %v8329_v35 }
 0x65f   :  { %5884 = vmatprep.subr.bf16.mxu0 %v8334_v61 }
 0x662   :  { %5885 = vmatpush1.bf16.msra.mxu0 %v8332_v36  ;;  %v8518_v36 = vmov 1966171168  }
 0x663   :  { %5886 = vmatprep.subr.bf16.mxu0 %v8337_v51  ;;  %v5958_v51 = vunpack.c.l.s4 %v8518_v36  ;;  %v8364_v36 = vld [vmem:[#allocation12 + $0xd8] sm:$0xff]  }
 0x666   :  { %5887 = vmatpush1.bf16.msra.mxu0 %v8335_v33  ;;  %v5959_v33 = vunpack.c.0.s8 %v5958_v51  ;;  %v8365_v51 = vld [vmem:[#allocation12 + $0x98] sm:$0xff]  }
 0x667   :  { %5888 = vmatprep.subr.bf16.mxu0 %v8340_v57 }
 0x66a   :  { %5889 = vmatpush1.bf16.msra.mxu0 %v8338_v56  ;;  %v10638_v56 = vld [vmem:[#allocation39_spill] sm:$0xff] }
 0x66b   :  { %v5981_v29 = vsub.s32 1, %v10638_v56 }
 0x66d   :  { %5907 = vmatmul.mubr.bf16.vlgmr.msra.gmra.mrb[88].mxu0 %v4845_v50  ;;  %v5962_v50 = vsub.s32 %v5959_v33, %v10638_v56  ;;  %v8366_v33 = vld [vmem:[#allocation12 + $0xe0] sm:$0xff]  }
 0x740   :  { %v5908_v44 = vpop.f32.mrb[88].mxu0 }
 0x741   :  { %v5915_v34 = vrot.slane %v5908_v44, 4  ;;  %v5927_v46 = vmul.f32 %v5908_v44, %v5908_v44  ;;  %v5910_v23 = vpop.f32.mrb[89].mxu0 }
 0x742   :  { %v5921_v55 = vrot.slane %v5910_v23, 4  ;;  %v5928_v11 = vmul.f32 %v5910_v23, %v5910_v23  ;;  %v5912_v1 = vpop.f32.mrb[90].mxu0 }
 0x743   :  { %v5916_v39 = vadd.f32 %v5915_v34, %v5908_v44  ;;  %v5929_v54 = vrot.slane %v5927_v46, 4  ;;  %v5913_v16 = vpop.f32.mrb[91].mxu0 }
 0x744   :  { %v5922_v62 = vadd.f32 %v5921_v55, %v5910_v23  ;;  %v5935_v31 = vrot.slane %v5928_v11, 4 }
 0x745   :  { %v5917_v21 = vrot.slane %v5916_v39, 2  ;;  %v5930_v28 = vadd.f32 %v5929_v54, %v5927_v46 }
 0x746   :  { %v5923_v48 = vrot.slane %v5922_v62, 2  ;;  %v5936_v45 = vadd.f32 %v5935_v31, %v5928_v11 }
 0x747   :  { %v5918_v19 = vadd.f32 %v5917_v21, %v5916_v39  ;;  %v5931_v43 = vrot.slane %v5930_v28, 2  ;;  %v8391_v21 = vld [vmem:[#allocation12 + $0x180] sm:$0xff]  }
 0x748   :  { %v5924_v5 = vadd.f32 %v5923_v48, %v5922_v62  ;;  %v5937_v24 = vrot.slane %v5936_v45, 2 }
 0x749   :  { %v5919_v15 = vrot.slane %v5918_v19, 1  ;;  %v5932_v3 = vadd.f32 %v5931_v43, %v5930_v28  ;;  %v8519_v28 = vmov 1983009808  }
 0x74a   :  { %v5925_v41 = vrot.slane %v5924_v5, 1  ;;  %v5938_v58 = vadd.f32 %v5937_v24, %v5936_v45  ;;  %v6108_v48 = vunpack.c.l.s4 %v8519_v28 }
 0x74b   :  { %v5920_v53 = vadd.f32 %v5919_v15, %v5918_v19  ;;  %v5933_v8 = vrot.slane %v5932_v3, 1 }
 0x74c   :  { %v5926_v42 = vadd.f32 %v5925_v41, %v5924_v5  ;;  %v5939_v10 = vrot.slane %v5938_v58, 1 }
 0x74d   :  { %v5934_v40 = vadd.f32 %v5933_v8, %v5932_v3  ;;  %v5941_v30 = vmul.f32 0.125, %v5920_v53  ;;  %v6109_v53 = vunpack.c.0.s8 %v6108_v48  ;;  %v8393_v48 = vld [vmem:[#allocation12 + $0x1c8] sm:$0xff]  }
 0x74e   :  { %v5940_v2 = vadd.f32 %v5939_v10, %v5938_v58  ;;  %v5942_v6 = vmul.f32 0.125, %v5926_v42 }
 0x74f   :  { %v5943_v18 = vmul.f32 0.125, %v5934_v40  ;;  %v5945_v0 = vmul.f32 %v5941_v30, %v5941_v30  ;;  %v10495_v8 = vsub.s32 %v6109_v53, %v10638_v56  ;;  %v8368_v56 = vld [vmem:[#allocation12 + $0xe8] sm:$0xff]   ;;  %v8403_v53 = vld [vmem:[#allocation12 + $0x1f0] sm:$0xff]  }
 0x750   :  { %v5944_v4 = vmul.f32 0.125, %v5940_v2  ;;  %v5946_v17 = vmul.f32 %v5942_v6, %v5942_v6 }
 0x751   :  { %v5947_v12 = vsub.f32 %v5943_v18, %v5945_v0  ;;  %v8358_v18 = vld [vmem:[#allocation12 + $0x80] sm:$0xff]  }
 0x752   :  { %v5948_v47 = vsub.f32 %v5944_v4, %v5946_v17  ;;  %v8360_v17 = vld [vmem:[#allocation12 + $0xc8] sm:$0xff]  }
 0x753   :  { %v5950_v35 = vadd.f32 1e-05, %v5947_v12 }
 0x754   :  { %v5951_v61 = vadd.f32 1e-05, %v5948_v47  ;;  %v8361_v47 = vld [vmem:[#allocation12 + $0x88] sm:$0xff]  }
 0x755   :  { %8413 = vrsqrt.f32 %v5950_v35  ;;  %v8362_v35 = vld [vmem:[#allocation12 + $0xd0] sm:$0xff]  }
 0x756   :  { %8415 = vrsqrt.f32 %v5951_v61  ;;  %v8363_v61 = vld [vmem:[#allocation12 + $0x90] sm:$0xff]  }
 0x75f   :  { %v8414_v57 = vpop.eup %8413 }
 0x760   :  { %v8416_v25 = vpop.eup %8415 }
 0x761   :  { %v5956_v27 = vcombine.low %v8414_v57, %v8416_v25  ;;  %v8367_v57 = vld [vmem:[#allocation12 + $0xa0] sm:$0xff]   ;;  %v8370_v25 = vld [vmem:[#allocation12 + $0xf0] sm:$0xff]  }
 0x763   :  { %v5963_v32 = vrot.slane %v5956_v27, %v5962_v50 }
 0x765   :  { %v5970_v38 = vrot.slane %v5963_v32, %v5962_v50  ;;  %v8371_v32 = vld [vmem:[#allocation12 + $0xb0] sm:$0xff]  }
 0x767   :  { %v5972_v14 = vmul.f32 %v5970_v38, %v5949_v49  ;;  %v8372_v49 = vld [vmem:[#allocation12 + $0xf8] sm:$0xff]  }
 0x769   :  { %v5978_v59 = vrot.slane %v5972_v14, %v10637_v7  ;;  %v5982_v13 = vrot.slane %v5972_v14, %v5981_v29  ;;  %v8374_v14 = vld [vmem:[#allocation12 + $0x140] sm:$0xff]  }
 0x76b   :  { %v5985_v22 = vmul.f32 %v5978_v59, %v5941_v30  ;;  %v5986_v20 = vmul.f32 %v5982_v13, %v5942_v6  ;;  %v6006_v9 = vmul.f32 %v5978_v59, %v5908_v44  ;;  %v6007_v52 = vmul.f32 %v5982_v13, %v5910_v23  ;;  %v8375_v13 = vld [vmem:[#allocation12 + $0x100] sm:$0xff]  }
 0x76c   :  { %v10639_v23 = vlaneseq }
 0x76d   :  { %v5989_v26 = vcombine.low %v5985_v22, %v5986_v20  ;;  %v8376_v20 = vld [vmem:[#allocation12 + $0x148] sm:$0xff]  }
 0x76e   :  { %vm10474_vm0 = vcmp.lt.s32.totalorder %v10639_v23, 256 }
 0x76f   :  { %v5996_v60 = vrot.slane %v5989_v26, %v5962_v50  ;;  %v8378_v26 = vld [vmem:[#allocation12 + $0x150] sm:$0xff]  }
 0x771   :  { %v6003_v37 = vrot.slane %v5996_v60, %v5962_v50  ;;  %v8379_v60 = vld [vmem:[#allocation12 + $0x110] sm:$0xff]  }
 0x773   :  { %v6005_v34 = vsub.f32 %v5973_v63, %v6003_v37  ;;  %v8380_v63 = vld [vmem:[#allocation12 + $0x158] sm:$0xff]  }
 0x774   :  { %v8381_v37 = vld [vmem:[#allocation12 + $0x118] sm:$0xff]  }
 0x775   :  { %v6012_v46 = vrot.slane %v6005_v34, %v10637_v7  ;;  %v6016_v55 = vrot.slane %v6005_v34, %v5981_v29  ;;  %v8373_v29 = vld [vmem:[#allocation12 + $0xb8] sm:$0xff]   ;;  %v8382_v34 = vld [vmem:[#allocation12 + $0x160] sm:$0xff]  }
 0x777   :  { %v6019_v11 = vadd.f32 %v6012_v46, %v6006_v9  ;;  %v6020_v1 = vadd.f32 %v6016_v55, %v6007_v52  ;;  %v8377_v52 = vld [vmem:[#allocation12 + $0x108] sm:$0xff]   ;;  %v8383_v46 = vld [vmem:[#allocation12 + $0x120] sm:$0xff]  }
 0x778   :  { %v8384_v55 = vld [vmem:[#allocation12 + $0x168] sm:$0xff]  }
 0x779   :  { %v6021_v39 = vmax.f32 %v6019_v11, 0.0  ;;  %v6022_v54 = vmax.f32 %v6020_v1, 0.0  ;;  %v8385_v11 = vld [vmem:[#allocation12 + $0x128] sm:$0xff]   ;;  %v8386_v1 = vld [vmem:[#allocation12 + $0x170] sm:$0xff]  }
 0x77b   :  { %v6025_v16 = vcombine.low %v6021_v39, %v6022_v54  ;;  %v6065_v62 = vcombine.high %v6021_v39, %v6022_v54  ;;  %v8387_v54 = vld [vmem:[#allocation12 + $0x130] sm:$0xff]  }
 0x77d   :  { %v6032_v31 = vrot.slane %v6025_v16, %v5962_v50  ;;  %v6072_v44 = vrot.slane %v6065_v62, %v5962_v50  ;;  %v8388_v16 = vld [vmem:[#allocation12 + $0x178] sm:$0xff]  }
 0x77f   :  { %v6039_v45 = vrot.slane %v6032_v31, %v5962_v50  ;;  %v6046_v19 = vcombine.high %v6032_v31, %v6032_v31  ;;  %v6079_v43 = vrot.slane %v6072_v44, %v5962_v50  ;;  %v6083_v7 = vcombine.high %v6072_v44, %v6072_v44  ;;  %v8389_v31 = vld [vmem:[#allocation12 + $0x138] sm:$0xff]   ;;  %v8390_v44 = vld [vmem:[#allocation12 + $0x1c0] sm:$0xff]  }
 0x781   :  { %6045 = vst.msk [vmem:[#allocation6] ss:$2 sm:$0x3] %vm10474_vm0, %v6039_v45  ;;  %v6053_v5 = vrot.slane %v6046_v19, %v5962_v50  ;;  %v6057_v24 = vcombine.high %v6039_v45, %v6039_v45  ;;  %6082 = vst.msk [vmem:[#allocation6 + $0x1] ss:$2 sm:$0x3] %vm10474_vm0, %v6079_v43  ;;  %v6090_v15 = vrot.slane %v6083_v7, %v5962_v50 }
 0x782   :  { %v6094_v3 = vcombine.high %v6079_v43, %v6079_v43  ;;  %v8369_v50 = vld [vmem:[#allocation12 + $0xa8] sm:$0xff]   ;;  %v8395_v43 = vld [vmem:[#allocation12 + $0x1d0] sm:$0xff]  }
 0x783   :  { %6056 = vst.msk [vmem:[#allocation6 + $0x4] ss:$2 sm:$0x3] %vm10474_vm0, %v6053_v5  ;;  %6060 = vst.msk [vmem:[#allocation6 + $0x8] ss:$2 sm:$0x3] %vm10474_vm0, %v6057_v24  ;;  %v6061_v41 = vcombine.high %v6053_v5, %v6053_v5  ;;  %v6098_v58 = vcombine.high %v6090_v15, %v6090_v15 }
 0x784   :  { %6093 = vst.msk [vmem:[#allocation6 + $0x5] ss:$2 sm:$0x3] %vm10474_vm0, %v6090_v15  ;;  %6097 = vst.msk [vmem:[#allocation6 + $0x9] ss:$2 sm:$0x3] %vm10474_vm0, %v6094_v3 }
 0x785   :  { %6064 = vst.msk [vmem:[#allocation6 + $0xc] ss:$2 sm:$0x3] %vm10474_vm0, %v6061_v41  ;;  %6101 = vst.msk [vmem:[#allocation6 + $0xd] ss:$2 sm:$0x3] %vm10474_vm0, %v6098_v58 }
 0x786   :  { %v8394_v19 = vld [vmem:[#allocation12 + $0x188] sm:$0xff]   ;;  %v8396_v7 = vld [vmem:[#allocation12 + $0x190] sm:$0xff]   ;;  %v8397_v5 = vld [vmem:[#allocation12 + $0x1d8] sm:$0xff]  }
 0x787   :  { %v8398_v24 = vld [vmem:[#allocation12 + $0x198] sm:$0xff]   ;;  %v8399_v15 = vld [vmem:[#allocation12 + $0x1e0] sm:$0xff]   ;;  %v8401_v41 = vld [vmem:[#allocation12 + $0x1e8] sm:$0xff]  }
 0x788   :  { %v8400_v3 = vld [vmem:[#allocation12 + $0x1a0] sm:$0xff]   ;;  %v8402_v58 = vld [vmem:[#allocation12 + $0x1a8] sm:$0xff]  }
 0x78b   :  { %v6102_v42 = vld [vmem:[#allocation6] sm:$0xff] }
 0x78c   :  { %v6113_v10 = vrot.slane %v6102_v42, %v10495_v8  ;;  %v6106_v40 = vcombine.high %v6102_v42, %v6102_v42  ;;  %v6103_v27 = vld [vmem:[#allocation6 + $0x8] sm:$0xff] }
 0x78d   :  { %v6130_v38 = vrot.slane %v6103_v27, %v10495_v8  ;;  %v6123_v39 = vcombine.high %v6103_v27, %v6103_v27  ;;  %v8405_v42 = vld [vmem:[#allocation12 + $0x1f8] sm:$0xff]  }
 0x78e   :  { %v6121_v30 = vcombine.high %v6113_v10, %v6113_v10  ;;  %v6120_v2 = vrot.slane %v6106_v40, %v10495_v8  ;;  %v6148_v4 = vpack.c.bf16 %v6113_v10, %v6113_v10  ;;  %v8406_v10 = vld [vmem:[#allocation12 + $0x1b8] sm:$0xff]  }
 0x78f   :  { %v6138_v59 = vcombine.high %v6130_v38, %v6130_v38  ;;  %v6137_v62 = vrot.slane %v6123_v39, %v10495_v8  ;;  %v6152_v28 = vpack.c.bf16 %v6130_v38, %v6130_v38  ;;  %v8404_v8 = vld [vmem:[#allocation12 + $0x1b0] sm:$0xff]  }
 0x790   :  { %v6149_v6 = vpack.c.bf16 %v6121_v30, %v6121_v30  ;;  %v6122_v0 = vcombine.high %v6120_v2, %v6120_v2  ;;  %v6150_v22 = vpack.c.bf16 %v6120_v2, %v6120_v2 }
 0x791   :  { %v6153_v9 = vpack.c.bf16 %v6138_v59, %v6138_v59  ;;  %v6139_v23 = vcombine.high %v6137_v62, %v6137_v62  ;;  %v6154_v40 = vpack.c.bf16 %v6137_v62, %v6137_v62 }
 0x792   :  { %6707 = vmatprep.mubr.bf16.mxu1 %v6149_v6  ;;  %v6151_v12 = vpack.c.bf16 %v6122_v0, %v6122_v0 }
 0x793   :  { %6708 = vmatmul.mubr.bf16.vlgmr.msra.gmra.mrb[156].mxu1 %v6148_v4  ;;  %v6155_v45 = vpack.c.bf16 %v6139_v23, %v6139_v23  ;;  %v7180_v4 = vld [vmem:[%s10530_s14] ss:$0 sm:$0xff]  ;;  %s8483_s14 = scalar_lea.vmem %s6843_s28, 32 }
 0x794   :  { %7702 = vmatpush3.bf16.msra.mxu1 %v8358_v18  ;;  %6747 = vmatprep.mubr.bf16.mxu1 %v6151_v12  ;;  %p8484_p10 = scmp.ne.s32.totalorder %s6843_s28, %s8483_s14  ;;  %p8489_p12 = scmp.lt.s32.totalorder %s8483_s14, %s8483_s14 }
 0x795   :  { %7703 = vmatprep.subr.bf16.mxu1 %v8360_v17 }
 0x796   :  { %p8490_p13 = por %p8489_p12, %p8488_p11 }
 0x798   :  { %7704 = vmatpush3.bf16.msra.mxu1 %v8361_v47  ;;  %p8491_p0 = pnand %p8490_p13, %p8484_p10 }
 0x799   :  { %7705 = vmatprep.subr.bf16.mxu1 %v8362_v35 }
 0x79c   :  { %7706 = vmatpush3.bf16.msra.mxu1 %v8363_v61 }
 0x79d   :  { %7707 = vmatprep.subr.bf16.mxu1 %v8364_v36 }
 0x7a0   :  { %7708 = vmatpush3.bf16.msra.mxu1 %v8365_v51 }
 0x7a1   :  { %7709 = vmatprep.subr.bf16.mxu1 %v8366_v33 }
 0x7a4   :  { %7710 = vmatpush3.bf16.msra.mxu1 %v8367_v57 }
 0x7a5   :  { %7711 = vmatprep.subr.bf16.mxu1 %v8368_v56 }
 0x7a8   :  { %7712 = vmatpush3.bf16.msra.mxu1 %v8369_v50 }
 0x7a9   :  { %7713 = vmatprep.subr.bf16.mxu1 %v8370_v25 }
 0x7ac   :  { %7714 = vmatpush3.bf16.msra.mxu1 %v8371_v32 }
 0x7ad   :  { %7715 = vmatprep.subr.bf16.mxu1 %v8372_v49 }
 0x7b0   :  { %7716 = vmatpush3.bf16.msra.mxu1 %v8373_v29 }
 0x7b1   :  { %7723 = vmatprep.subr.bf16.mxu1 %v8374_v14 }
 0x7b3   :  { %6748 = vmatmul.mubr.bf16.vlgmr.msra.gmra.mrb[160].mxu1 %v6150_v22 }
 0x7b4   :  { %7724 = vmatpush3.bf16.msra.mxu1 %v8375_v13  ;;  %6787 = vmatprep.mubr.bf16.mxu1 %v6153_v9 }
 0x7b5   :  { %7725 = vmatprep.subr.bf16.mxu1 %v8376_v20 }
 0x7b8   :  { %7726 = vmatpush3.bf16.msra.mxu1 %v8377_v52 }
 0x7b9   :  { %7727 = vmatprep.subr.bf16.mxu1 %v8378_v26 }
 0x7bc   :  { %7728 = vmatpush3.bf16.msra.mxu1 %v8379_v60 }
 0x7bd   :  { %7729 = vmatprep.subr.bf16.mxu1 %v8380_v63 }
 0x7c0   :  { %7730 = vmatpush3.bf16.msra.mxu1 %v8381_v37 }
 0x7c1   :  { %7731 = vmatprep.subr.bf16.mxu1 %v8382_v34 }
 0x7c4   :  { %7732 = vmatpush3.bf16.msra.mxu1 %v8383_v46 }
 0x7c5   :  { %7733 = vmatprep.subr.bf16.mxu1 %v8384_v55 }
 0x7c8   :  { %7734 = vmatpush3.bf16.msra.mxu1 %v8385_v11 }
 0x7c9   :  { %7735 = vmatprep.subr.bf16.mxu1 %v8386_v1 }
 0x7cc   :  { %7736 = vmatpush3.bf16.msra.mxu1 %v8387_v54 }
 0x7cd   :  { %7737 = vmatprep.subr.bf16.mxu1 %v8388_v16 }
 0x7d0   :  { %7738 = vmatpush3.bf16.msra.mxu1 %v8389_v31 }
 0x7d1   :  { %7745 = vmatprep.subr.bf16.mxu1 %v8390_v44 }
 0x7d3   :  { %6788 = vmatmul.mubr.bf16.vlgmr.msra.gmra.mrb[164].mxu1 %v6152_v28 }
 0x7d4   :  { %7746 = vmatpush3.bf16.msra.mxu1 %v8391_v21  ;;  %6827 = vmatprep.mubr.bf16.mxu1 %v6155_v45 }
 0x7d5   :  { %7747 = vmatprep.subr.bf16.mxu1 %v8393_v48 }
 0x7d8   :  { %7748 = vmatpush3.bf16.msra.mxu1 %v8394_v19 }
 0x7d9   :  { %7749 = vmatprep.subr.bf16.mxu1 %v8395_v43 }
 0x7dc   :  { %7750 = vmatpush3.bf16.msra.mxu1 %v8396_v7 }
 0x7dd   :  { %7751 = vmatprep.subr.bf16.mxu1 %v8397_v5 }
 0x7e0   :  { %7752 = vmatpush3.bf16.msra.mxu1 %v8398_v24 }
 0x7e1   :  { %7753 = vmatprep.subr.bf16.mxu1 %v8399_v15 }
 0x7e4   :  { %7754 = vmatpush3.bf16.msra.mxu1 %v8400_v3 }
 0x7e5   :  { %7755 = vmatprep.subr.bf16.mxu1 %v8401_v41 }
 0x7e8   :  { %7756 = vmatpush3.bf16.msra.mxu1 %v8402_v58 }
 0x7e9   :  { %7757 = vmatprep.subr.bf16.mxu1 %v8403_v53 }
 0x7ec   :  { %7758 = vmatpush3.bf16.msra.mxu1 %v8404_v8 }
 0x7ed   :  { %7759 = vmatprep.subr.bf16.mxu1 %v8405_v42 }
 0x7f0   :  { %7760 = vmatpush3.bf16.msra.mxu1 %v8406_v10 }
 0x7f3   :  { %6828 = vmatmul.mubr.bf16.vlgmr.msra.gmra.mrb[168].mxu1 %v6154_v40 }
 0x866   :  { %v7695_v30 = vpop.f32.mrb[156].mxu1 }
 0x867   :  { %v7696_v2 = vpop.f32.mrb[157].mxu1 }
 0x868   :  { %v7697_v6 = vadd.f32 %v7696_v2, %v7695_v30  ;;  %v7698_v18 = vpop.f32.mrb[158].mxu1 }
 0x869   :  { %v7699_v0 = vpop.f32.mrb[159].mxu1 }
 0x86a   :  { %v6710_v47 = vadd.f32 %v7697_v6, %v7180_v4 }
 0x886   :  { %v7717_v17 = vpop.f32.mrb[160].mxu1 }
 0x887   :  { %v7718_v12 = vpop.f32.mrb[161].mxu1 }
 0x888   :  { %v7719_v35 = vadd.f32 %v7718_v12, %v7717_v17  ;;  %v7720_v61 = vpop.f32.mrb[162].mxu1 }
 0x889   :  { %v7721_v36 = vpop.f32.mrb[163].mxu1 }
 0x88a   :  { %v6750_v51 = vadd.f32 %v7719_v35, %v6710_v47 }
 0x8a6   :  { %v7739_v33 = vpop.f32.mrb[164].mxu1 }
 0x8a7   :  { %v7740_v57 = vpop.f32.mrb[165].mxu1 }
 0x8a8   :  { %v7741_v56 = vadd.f32 %v7740_v57, %v7739_v33  ;;  %v7742_v50 = vpop.f32.mrb[166].mxu1 }
 0x8a9   :  { %v7743_v25 = vpop.f32.mrb[167].mxu1 }
 0x8aa   :  { %v6790_v27 = vadd.f32 %v7741_v56, %v6750_v51 }
 0x8c6   :  { %v7761_v32 = vpop.f32.mrb[168].mxu1 }
 0x8c7   :  { %v7762_v49 = vpop.f32.mrb[169].mxu1 }
 0x8c8   :  { %v7763_v38 = vadd.f32 %v7762_v49, %v7761_v32  ;;  %v7764_v29 = vpop.f32.mrb[170].mxu1 }
 0x8c9   :  { %v7765_v14 = vpop.f32.mrb[171].mxu1 }
 0x8ca   :  { %v6830_v59 = vadd.f32 %v7763_v38, %v6790_v27 }
 0x8cc   :  { %6835 = vst [vmem:[#allocation13] sm:$0x3] %v6830_v59 }
 0x8cd   :  { %8494 = shalt.err (!%p8491_p0)
}
 0x8ce   :  { %s8495_s19 = scalar_lea.hbm %s10531_s15, 32 }
 0x8cf   :  { %p8496_p1 = scmp.ne.s32.totalorder %s10531_s15, %s8495_s19  ;;  %p8499_p2 = scmp.lt.u32.totalorder %s8495_s19, %s10531_s15 }
 0x8d1   :  { %p8501_p3 = pnand %p8499_p2, %p8496_p1 }
 0x8d3   :  { %8504 = shalt.err (!%p8501_p3)
}
 0x8d4   :  { %6845 = dma.vmem_to_hbm [thread:$0]  %s6843_s28, 32, %s10531_s15, [#allocation9]  }
 0x8d5   :  { %8509 = dma.done.wait [#allocation9], 32  }
 0x8d6   :  { %8510 = vsyncadd [#allocation9], 4294967264 }
 0x8d7   :  { %6849 = vsyncpa [#allocation8], 1 }
 0x8d8   :  { %6850 = vsyncpa [#allocation11], 1 }
 0x8d9   :  { %6851 = vsyncpa [#allocation9], 1 }

</bundles_post_ra>
